<compile_context>
chip_gen: v7x
topology: tpu7x:2x2x1
jax: 0.10.0
libtpu: 0.0.40
codegen_flags: <defaults>
</compile_context>

<pallas_src>
import functools

import jax
import jax.numpy as jnp
from jax.experimental import pallas as pl
from jax.experimental.pallas import tpu as pltpu

_EPS = 1e-5
_LANE = 128


def _rup(x, m):
    return ((x + m - 1) // m) * m


def _pick_tile(rows, cap):
    """Largest multiple-of-8 tile <= cap that divides `rows` (padded fallback)."""
    cap8 = max(8, (cap // 8) * 8)
    start = min(cap8, (rows // 8) * 8)
    for t in range(start, 7, -8):
        if rows % t == 0:
            return t
    return min(cap8, _rup(rows, 8))


def _pick_band(h, w, cp, budget_bytes=24 << 20):
    """Pass-2 row-band height: largest divisor of H that fits the VMEM budget."""
    per_row = 64 * w * cp          # rough bytes/row: dbl-buffered in/out + temps
    cap = max(1, min(h, 64, budget_bytes // max(per_row, 1)))
    for t in range(cap, 0, -1):
        if h % t == 0:
            return t
    return 1


def _params(n_axes, vmem=None):
    return pltpu.CompilerParams(dimension_semantics=("parallel",) * n_axes,
                                vmem_limit_bytes=vmem)


def _partial8(v):
    """(R, C) f32 -> (8, C) sublane partials whose column sums equal sum(v, 0)."""
    r, c = v.shape
    if r % 8 == 0:
        return jnp.sum(v.reshape(r // 8, 8, c), axis=0)
    return jnp.broadcast_to(jnp.sum(v, axis=0, keepdims=True) * 0.125, (8, c))


# ---------------------------------------------------------------------------
# Pass 1: z1 = x @ w1 (row-tiled 1x1 conv) + per-tile partial BN1 statistics.
# ---------------------------------------------------------------------------
def _mm_stats_kernel(x_ref, w_ref, z_ref, ps_ref, pss_ref):
    z = jnp.dot(x_ref[...], w_ref[...], preferred_element_type=jnp.float32)
    ps_ref[...] = _partial8(z)
    pss_ref[...] = _partial8(z * z)
    z_ref[...] = z.astype(jnp.bfloat16)


# ---------------------------------------------------------------------------
# Pass 2: y1 = relu(scale1*z1 + shift1); phase-decomposed ConvTranspose2d
# (k=3, stride=2, padding=1, output_padding=1), row-band tiled with a one-row
# halo.  Phase k = 2*py + px holds out[2m+py, 2n+px].  Emits BN2 partials.
# ---------------------------------------------------------------------------
def _deconv_phase_kernel(band_ref, halo_ref, sc_ref, sh_ref,
                         wee_ref, weo_ref, woe_ref, woo_ref,
                         o_ref, ps_ref, pss_ref):
    _, th, w, cp = band_ref.shape
    f32, bf16 = jnp.float32, jnp.bfloat16

    scale = sc_ref[...]
    shift = sh_ref[...]
    yb = jnp.maximum(band_ref[0].astype(f32) * scale + shift, 0.0).astype(bf16)

    # Halo = first row of the next band; past the last band it is the
    # transposed-conv output_padding region -> zero.
    keep = jnp.where(pl.program_id(1) == pl.num_programs(1) - 1, 0.0, 1.0)
    yh = jnp.maximum(halo_ref[0, 0].astype(f32) * scale + shift, 0.0) * keep
    yh = yh.astype(bf16)[None, :, :]

    yf = jnp.concatenate([yb, yh], axis=0)                      # (th+1, w, cp)

    # Column (W) shift; zero beyond the right edge (output_padding column).
    # TODO(synk): pltpu.roll(yf, shift=w-1, axis=1) + a lane-preserving mask
    # would keep this shift on the XLU instead of a sublane-relayout copy.
    zero_col = jnp.zeros((th + 1, 1, cp), bf16)
    yr = jnp.concatenate([yf[:, 1:, :], zero_col], axis=1)

    rows = th * w
    yf2 = yf.reshape((th + 1) * w, cp)
    yr2 = yr.reshape((th + 1) * w, cp)
    y = yf2[:rows]                 # y1[m,   n  ]
    y_r = yr2[:rows]               # y1[m,   n+1]
    y_d = yf2[w:w + rows]          # y1[m+1, n  ]
    y_dr = yr2[w:w + rows]         # y1[m+1, n+1]

    # K-packed MXU taps: one matmul per output phase (K = cp / 2cp / 2cp / 4cp).
    p_ee = jnp.dot(y, wee_ref[...], preferred_element_type=f32)
    p_eo = jnp.dot(jnp.concatenate([y, y_r], axis=1), weo_ref[...],
                   preferred_element_type=f32)
    p_oe = jnp.dot(jnp.concatenate([y, y_d], axis=1), woe_ref[...],
                   preferred_element_type=f32)
    p_oo = jnp.dot(jnp.concatenate([y, y_r, y_d, y_dr], axis=1), woo_ref[...],
                   preferred_element_type=f32)

    # BN2 partial statistics from the f32 accumulators (before the bf16 store).
    ps_ref[...] = _partial8(p_ee + p_eo + p_oe + p_oo)
    pss_ref[...] = _partial8(p_ee * p_ee + p_eo * p_eo + p_oe * p_oe + p_oo * p_oo)

    o_ref[0, 0] = p_ee.reshape(th, w, cp).astype(bf16)
    o_ref[0, 1] = p_eo.reshape(th, w, cp).astype(bf16)
    o_ref[0, 2] = p_oe.reshape(th, w, cp).astype(bf16)
    o_ref[0, 3] = p_oo.reshape(th, w, cp).astype(bf16)


# ---------------------------------------------------------------------------
# Pass 3: y2 = relu(scale2*z2 + shift2); z3 = y2 @ w3; partial BN3 statistics.
# ---------------------------------------------------------------------------
def _bn_mm_stats_kernel(z_ref, sc_ref, sh_ref, w_ref, o_ref, ps_ref, pss_ref,
                        *, tile_rows, valid_rows):
    y = jnp.maximum(z_ref[...].astype(jnp.float32) * sc_ref[...] + sh_ref[...], 0.0)
    if valid_rows is not None:      # zero padded rows so the BN3 stats stay exact
        base = pl.program_id(0) * tile_rows
        ridx = base + jax.lax.broadcasted_iota(jnp.int32, y.shape, 0)
        y = jnp.where(ridx < valid_rows, y, 0.0)
    z3 = jnp.dot(y.astype(jnp.bfloat16), w_ref[...],
                 preferred_element_type=jnp.float32)
    ps_ref[...] = _partial8(z3)
    pss_ref[...] = _partial8(z3 * z3)
    o_ref[...] = z3.astype(jnp.bfloat16)


# ---------------------------------------------------------------------------
# Pass 4: y3 = relu(scale3*z3 + shift3).
# ---------------------------------------------------------------------------
def _bn_relu_kernel(z_ref, sc_ref, sh_ref, o_ref):
    o_ref[...] = jnp.maximum(
        z_ref[...].astype(jnp.float32) * sc_ref[...] + sh_ref[...], 0.0)


# ---------------------------------------------------------------------------
# BN finalize (per-channel vectors only; plain JAX between passes).
# Train-mode BN: biased batch stats over all pixels; the conv bias is absorbed
# by the batch mean, so the kernels never add it.
# ---------------------------------------------------------------------------
def _finalize_bn(psum, psumsq, count, gamma_p, beta_p):
    # TODO(synk): for very large pixel counts switch to centered/Welford partials
    # (E[x^2]-E[x]^2 cancels in f32 when |mean| >> std).
    s = jnp.sum(psum, axis=0)
    ss = jnp.sum(psumsq, axis=0)
    mu = s / count
    var = jnp.maximum(ss / count - mu * mu, 0.0)
    scale = gamma_p * jax.lax.rsqrt(var + _EPS)          # (1, Cp)
    shift = beta_p - mu * scale                          # (1, Cp)
    return scale.astype(jnp.float32), shift.astype(jnp.float32)


# ---------------------------------------------------------------------------
# Wrapper
# ---------------------------------------------------------------------------
def decoder_block_forward(x_nchw, params, *, tile_rows=1024):
    """LinkNet DecoderBlock forward (train-mode / batch-statistic BatchNorm)."""
    n, cin, h, w = x_nchw.shape
    cm = params["w1"].shape[1]
    cout = params["w3"].shape[1]
    cm_p, cout_p = _rup(cm, _LANE), _rup(cout, _LANE)
    f32, bf16 = jnp.float32, jnp.bfloat16

    # --- weights: pad only the lane (output-channel) dims; activations keep the
    # true cin so pass-1 HBM traffic is not inflated by channel padding. ---------
    w1 = jnp.pad(params["w1"], ((0, 0), (0, cm_p - cm))).astype(bf16)
    w3 = jnp.pad(params["w3"], ((0, cm_p - cm), (0, cout_p - cout))).astype(bf16)
    wt = jnp.transpose(params["wt"], (2, 3, 0, 1))             # (ky, kx, ci, co)
    wt = jnp.pad(wt, ((0, 0), (0, 0), (0, cm_p - cm), (0, cm_p - cm))).astype(bf16)
    # Per-phase K-packed tap weights (operand order: [y, y_r, y_d, y_dr]).
    w_ee = wt[1, 1]
    w_eo = jnp.concatenate([wt[1, 2], wt[1, 0]], axis=0)
    w_oe = jnp.concatenate([wt[2, 1], wt[0, 1]], axis=0)
    w_oo = jnp.concatenate([wt[2, 2], wt[2, 0], wt[0, 2], wt[0, 0]], axis=0)

    padc = lambda v, cp: jnp.pad(v, ((0, 0), (0, cp - v.shape[1])))
    g1, be1 = padc(params["g1"], cm_p), padc(params["be1"], cm_p)
    g2, be2 = padc(params["g2"], cm_p), padc(params["be2"], cm_p)
    g3, be3 = padc(params["g3"], cout_p), padc(params["be3"], cout_p)
    # NOTE: conv biases b1/bt/b3 cancel exactly under train-mode BatchNorm.

    # ---------------- pass 1: 1x1 conv + BN1 partial stats -------------------
    r1 = n * h * w
    tr1 = _pick_tile(r1, tile_rows)
    r1p = _rup(r1, tr1)
    t1 = r1p // tr1
    x2d = jnp.transpose(x_nchw, (0, 2, 3, 1)).reshape(r1, cin).astype(bf16)
    if r1p != r1:
        x2d = jnp.pad(x2d, ((0, r1p - r1), (0, 0)))

    z1, ps1, pss1 = pl.pallas_call(
        _mm_stats_kernel,
        grid=(t1,),
        in_specs=[pl.BlockSpec((tr1, cin), lambda i: (i, 0)),
                  pl.BlockSpec((cin, cm_p), lambda i: (0, 0))],
        out_specs=(pl.BlockSpec((tr1, cm_p), lambda i: (i, 0)),
                   pl.BlockSpec((8, cm_p), lambda i: (i, 0)),
                   pl.BlockSpec((8, cm_p), lambda i: (i, 0))),
        out_shape=(jax.ShapeDtypeStruct((r1p, cm_p), bf16),
                   jax.ShapeDtypeStruct((t1 * 8, cm_p), f32),
                   jax.ShapeDtypeStruct((t1 * 8, cm_p), f32)),
        compiler_params=_params(1),
    )(x2d, w1)
    scale1, shift1 = _finalize_bn(ps1, pss1, r1, g1, be1)

    # ------- pass 2: BN1-apply + phase-decomposed transposed conv ------------
    if r1p != r1:
        z1 = z1[:r1]
    z1_sp = z1.reshape(n, h, w, cm_p)
    th = _pick_band(h, w, cm_p)
    nb = h // th

    y2pre, ps2, pss2 = pl.pallas_call(
        _deconv_phase_kernel,
        grid=(n, nb),
        in_specs=[pl.BlockSpec((1, th, w, cm_p), lambda b, m: (b, m, 0, 0)),
                  pl.BlockSpec((1, 1, w, cm_p),
                               lambda b, m: (b, jnp.minimum((m + 1) * th, h - 1),
                                             0, 0)),
                  pl.BlockSpec((1, cm_p), lambda b, m: (0, 0)),
                  pl.BlockSpec((1, cm_p), lambda b, m: (0, 0)),
                  pl.BlockSpec((cm_p, cm_p), lambda b, m: (0, 0)),
                  pl.BlockSpec((2 * cm_p, cm_p), lambda b, m: (0, 0)),
                  pl.BlockSpec((2 * cm_p, cm_p), lambda b, m: (0, 0)),
                  pl.BlockSpec((4 * cm_p, cm_p), lambda b, m: (0, 0))],
        out_specs=(pl.BlockSpec((1, 4, th, w, cm_p), lambda b, m: (b, 0, m, 0, 0)),
                   pl.BlockSpec((8, cm_p), lambda b, m: (b * nb + m, 0)),
                   pl.BlockSpec((8, cm_p), lambda b, m: (b * nb + m, 0))),
        out_shape=(jax.ShapeDtypeStruct((n, 4, h, w, cm_p), bf16),
                   jax.ShapeDtypeStruct((n * nb * 8, cm_p), f32),
                   jax.ShapeDtypeStruct((n * nb * 8, cm_p), f32)),
        compiler_params=_params(2, vmem=64 * 1024 * 1024),
    )(z1_sp, z1_sp, scale1, shift1, w_ee, w_eo, w_oe, w_oo)
    r2 = n * 4 * h * w
    scale2, shift2 = _finalize_bn(ps2, pss2, r2, g2, be2)

    # -------- pass 3: BN2-apply + 1x1 conv + BN3 partial stats ---------------
    tr2 = _pick_tile(r2, tile_rows)
    r2p = _rup(r2, tr2)
    t2 = r2p // tr2
    z2 = y2pre.reshape(r2, cm_p)
    if r2p != r2:
        z2 = jnp.pad(z2, ((0, r2p - r2), (0, 0)))
    kernel3 = functools.partial(_bn_mm_stats_kernel, tile_rows=tr2,
                                valid_rows=(None if r2p == r2 else r2))
    z3, ps3, pss3 = pl.pallas_call(
        kernel3,
        grid=(t2,),
        in_specs=[pl.BlockSpec((tr2, cm_p), lambda i: (i, 0)),
                  pl.BlockSpec((1, cm_p), lambda i: (0, 0)),
                  pl.BlockSpec((1, cm_p), lambda i: (0, 0)),
                  pl.BlockSpec((cm_p, cout_p), lambda i: (0, 0))],
        out_specs=(pl.BlockSpec((tr2, cout_p), lambda i: (i, 0)),
                   pl.BlockSpec((8, cout_p), lambda i: (i, 0)),
                   pl.BlockSpec((8, cout_p), lambda i: (i, 0))),
        out_shape=(jax.ShapeDtypeStruct((r2p, cout_p), bf16),
                   jax.ShapeDtypeStruct((t2 * 8, cout_p), f32),
                   jax.ShapeDtypeStruct((t2 * 8, cout_p), f32)),
        compiler_params=_params(1),
    )(z2, scale2, shift2, w3)
    scale3, shift3 = _finalize_bn(ps3, pss3, r2, g3, be3)

    # ------------------- pass 4: BN3-apply + ReLU ----------------------------
    y3 = pl.pallas_call(
        _bn_relu_kernel,
        grid=(t2,),
        in_specs=[pl.BlockSpec((tr2, cout_p), lambda i: (i, 0)),
                  pl.BlockSpec((1, cout_p), lambda i: (0, 0)),
                  pl.BlockSpec((1, cout_p), lambda i: (0, 0))],
        out_specs=pl.BlockSpec((tr2, cout_p), lambda i: (i, 0)),
        out_shape=jax.ShapeDtypeStruct((r2p, cout_p), f32),
        compiler_params=_params(1),
    )(z3, scale3, shift3)

    # --- un-interleave the 4 phases, drop channel padding, back to NCHW ------
    # TODO(synk): fuse this un-interleave into pass 4 (write (1, 2*Th, 2W, C)
    # NHWC blocks per band) to drop one more full-tensor XLA transpose pass.
    y3 = y3[:r2, :cout].reshape(n, 2, 2, h, w, cout)   # (n, py, px, m, nn, c)
    out = jnp.transpose(y3, (0, 5, 3, 1, 4, 2)).reshape(n, cout, 2 * h, 2 * w)
    return out


# ---------------------------------------------------------------------------
# Deterministic parameter init (PyTorch module's shapes)
# ---------------------------------------------------------------------------
def init_params(key, cin, cm, cout):
    ks = jax.random.split(key, 12)

    def rnd(k, shape, scale=0.3):
        return scale * jax.random.normal(k, shape, jnp.float32)

    return dict(
        w1=rnd(ks[0], (cin, cm)),          # Conv2d(cin, cm, 1) weight, (in, out)
        b1=rnd(ks[1], (1, cm)),
        wt=rnd(ks[2], (cm, cm, 3, 3)),     # ConvTranspose2d weight (in, out, kh, kw)
        bt=rnd(ks[3], (1, cm)),
        w3=rnd(ks[4], (cm, cout)),         # Conv2d(cm, cout, 1) weight, (in, out)
        b3=rnd(ks[5], (1, cout)),
        g1=1.0 + rnd(ks[6], (1, cm), 0.1), be1=rnd(ks[7], (1, cm), 0.1),
        g2=1.0 + rnd(ks[8], (1, cm), 0.1), be2=rnd(ks[9], (1, cm), 0.1),
        g3=1.0 + rnd(ks[10], (1, cout), 0.1), be3=rnd(ks[11], (1, cout), 0.1),
    )


# ---------------------------------------------------------------------------
# Pure-JAX reference (faithful module math: biases included, train-mode BN;
# bf16 matmul inputs / f32 accumulation to match the kernels' numerics).
# ---------------------------------------------------------------------------
def reference_forward(x_nchw, params):
    bf16 = jnp.bfloat16
    x = jnp.transpose(x_nchw, (0, 2, 3, 1))

    def bn_relu(y, g, b):
        mu = jnp.mean(y, axis=(0, 1, 2), keepdims=True)
        var = jnp.mean((y - mu) ** 2, axis=(0, 1, 2), keepdims=True)
        return jnp.maximum((y - mu) * jax.lax.rsqrt(var + _EPS) * g + b, 0.0)

    r = lambda p: p.reshape(1, 1, 1, -1)

    y1 = jnp.einsum("nhwc,cd->nhwd", x.astype(bf16), params["w1"].astype(bf16),
                    preferred_element_type=jnp.float32) + r(params["b1"])
    y1 = bn_relu(y1, r(params["g1"]), r(params["be1"]))

    wt_f = jnp.transpose(params["wt"][:, :, ::-1, ::-1], (2, 3, 0, 1))  # HWIO flipped
    y2 = jax.lax.conv_general_dilated(
        y1.astype(bf16), wt_f.astype(bf16), window_strides=(1, 1),
        padding=((1, 2), (1, 2)), lhs_dilation=(2, 2),
        dimension_numbers=("NHWC", "HWIO", "NHWC"),
        preferred_element_type=jnp.float32)
    y2 = bn_relu(y2 + r(params["bt"]), r(params["g2"]), r(params["be2"]))

    y3 = jnp.einsum("nhwc,cd->nhwd", y2.astype(bf16), params["w3"].astype(bf16),
                    preferred_element_type=jnp.float32) + r(params["b3"])
    y3 = bn_relu(y3, r(params["g3"]), r(params["be3"]))
    return jnp.transpose(y3, (0, 3, 1, 2))


# ---------------------------------------------------------------------------
if __name__ == "__main__":
    key = jax.random.PRNGKey(0)
    kx, kp = jax.random.split(key)

    N, CIN, H, W = 2, 4, 16, 16
    CM, COUT = 8, 4

    x = jax.random.normal(kx, (N, CIN, H, W), jnp.float32)
    params = init_params(kp, CIN, CM, COUT)

    out = jax.jit(decoder_block_forward)(x, params)
    out = jax.block_until_ready(out)
    assert out.shape == (N, COUT, 2 * H, 2 * W), out.shape

    ref = reference_forward(x, params)
    max_err = float(jnp.max(jnp.abs(out - ref)))
    # bf16 inter-pass activation storage adds ~0.4%/stage rounding vs. the f32
    # reference intermediates, so the tolerance is slightly wider than before.
    if not bool(jnp.allclose(out, ref, rtol=4e-2, atol=4e-2)):
        raise AssertionError(f"kernel/reference mismatch, max abs err = {max_err}")

    print("KERNEL_OK")
</pallas_src>

<mosaic_0001>
module attributes {stable_mosaic.version = 11 : i64} {
  func.func @_mm_stats_kernel(%arg0: i32, %arg1: memref<512x4xbf16, #tpu.memory_space<vmem>>, %arg2: memref<4x128xbf16, #tpu.memory_space<vmem>>, %arg3: memref<512x128xbf16, #tpu.memory_space<vmem>>, %arg4: memref<8x128xf32, #tpu.memory_space<vmem>>, %arg5: memref<8x128xf32, #tpu.memory_space<vmem>>) attributes {dimension_semantics = [#tpu.dimension_semantics<parallel>], iteration_bounds = array<i64: 1>, scalar_prefetch = 0 : i64, scratch_operands = 0 : i64, tpu.core_type = #tpu.core_type<tc>, window_params = [{transform_indices = @transform_0, window_bounds = array<i64: 512, 4>}, {pipeline_mode = #tpu.pipeline_mode<synchronous>, transform_indices = @transform_1, window_bounds = array<i64: 4, 128>}, {transform_indices = @transform_2, window_bounds = array<i64: 512, 128>}, {transform_indices = @transform_3, window_bounds = array<i64: 8, 128>}, {transform_indices = @transform_4, window_bounds = array<i64: 8, 128>}]} {
    %c0 = arith.constant 0 : index
    %c0_0 = arith.constant 0 : index
    %0 = vector.load %arg1[%c0, %c0_0] : memref<512x4xbf16, #tpu.memory_space<vmem>>, vector<512x4xbf16>
    %c0_1 = arith.constant 0 : index
    %c0_2 = arith.constant 0 : index
    %1 = vector.load %arg2[%c0_1, %c0_2] : memref<4x128xbf16, #tpu.memory_space<vmem>>, vector<4x128xbf16>
    %cst = arith.constant dense<0.000000e+00> : vector<512x128xf32>
    %2 = tpu.matmul %0, %1, %cst {dimension_numbers = #tpu.dot_dimension_numbers<[1], [0], [0], [1], [0, 0, 1, 1], [], []>} : vector<512x4xbf16>, vector<4x128xbf16>, vector<512x128xf32> -> vector<512x128xf32>
    %3 = vector.shape_cast %2 : vector<512x128xf32> to vector<64x8x128xf32>
    %cst_3 = arith.constant dense<0.000000e+00> : vector<8x128xf32>
    %4 = vector.multi_reduction <add>, %3, %cst_3 [0] : vector<64x8x128xf32> to vector<8x128xf32>
    %c0_4 = arith.constant 0 : index
    %c0_5 = arith.constant 0 : index
    %5 = vector.load %arg4[%c0_4, %c0_5] : memref<8x128xf32, #tpu.memory_space<vmem>>, vector<8x128xf32>
    tpu.vector_store %arg4[%c0_4, %c0_5], %4 {strides = array<i32>} : memref<8x128xf32, #tpu.memory_space<vmem>>, vector<8x128xf32>,
    %6 = arith.mulf %2, %2 : vector<512x128xf32>
    %7 = vector.shape_cast %6 : vector<512x128xf32> to vector<64x8x128xf32>
    %cst_6 = arith.constant dense<0.000000e+00> : vector<8x128xf32>
    %8 = vector.multi_reduction <add>, %7, %cst_6 [0] : vector<64x8x128xf32> to vector<8x128xf32>
    %c0_7 = arith.constant 0 : index
    %c0_8 = arith.constant 0 : index
    %9 = vector.load %arg5[%c0_7, %c0_8] : memref<8x128xf32, #tpu.memory_space<vmem>>, vector<8x128xf32>
    tpu.vector_store %arg5[%c0_7, %c0_8], %8 {strides = array<i32>} : memref<8x128xf32, #tpu.memory_space<vmem>>, vector<8x128xf32>,
    %10 = arith.truncf %2 : vector<512x128xf32> to vector<512x128xbf16>
    %c0_9 = arith.constant 0 : index
    %c0_10 = arith.constant 0 : index
    %11 = vector.load %arg3[%c0_9, %c0_10] : memref<512x128xbf16, #tpu.memory_space<vmem>>, vector<512x128xbf16>
    tpu.vector_store %arg3[%c0_9, %c0_10], %10 {strides = array<i32>} : memref<512x128xbf16, #tpu.memory_space<vmem>>, vector<512x128xbf16>,
    return
  }
  func.func @transform_0(%arg0: i32) -> (i32, i32) {
    %c0_i32 = arith.constant 0 : i32
    %c0_i32_0 = arith.constant 0 : i32
    return %arg0, %c0_i32 : i32, i32
  }
  func.func @transform_1(%arg0: i32) -> (i32, i32) {
    %c0_i32 = arith.constant 0 : i32
    %c0_i32_0 = arith.constant 0 : i32
    %c0_i32_1 = arith.constant 0 : i32
    return %c0_i32, %c0_i32_0 : i32, i32
  }
  func.func @transform_2(%arg0: i32) -> (i32, i32) {
    %c0_i32 = arith.constant 0 : i32
    %c0_i32_0 = arith.constant 0 : i32
    return %arg0, %c0_i32 : i32, i32
  }
  func.func @transform_3(%arg0: i32) -> (i32, i32) {
    %c0_i32 = arith.constant 0 : i32
    %c0_i32_0 = arith.constant 0 : i32
    return %arg0, %c0_i32 : i32, i32
  }
  func.func @transform_4(%arg0: i32) -> (i32, i32) {
    %c0_i32 = arith.constant 0 : i32
    %c0_i32_0 = arith.constant 0 : i32
    return %arg0, %c0_i32 : i32, i32
  }
}

module attributes {stable_mosaic.version = 11 : i64} {
  func.func @_deconv_phase_kernel(%arg0: i32, %arg1: i32, %arg2: memref<1x16x16x128xbf16, #tpu.memory_space<vmem>>, %arg3: memref<1x1x16x128xbf16, #tpu.memory_space<vmem>>, %arg4: memref<1x128xf32, #tpu.memory_space<vmem>>, %arg5: memref<1x128xf32, #tpu.memory_space<vmem>>, %arg6: memref<128x128xbf16, #tpu.memory_space<vmem>>, %arg7: memref<256x128xbf16, #tpu.memory_space<vmem>>, %arg8: memref<256x128xbf16, #tpu.memory_space<vmem>>, %arg9: memref<512x128xbf16, #tpu.memory_space<vmem>>, %arg10: memref<1x4x16x16x128xbf16, #tpu.memory_space<vmem>>, %arg11: memref<8x128xf32, #tpu.memory_space<vmem>>, %arg12: memref<8x128xf32, #tpu.memory_space<vmem>>) attributes {dimension_semantics = [#tpu.dimension_semantics<parallel>, #tpu.dimension_semantics<parallel>], iteration_bounds = array<i64: 2, 1>, scalar_prefetch = 0 : i64, scratch_operands = 0 : i64, tpu.core_type = #tpu.core_type<tc>, window_params = [{transform_indices = @transform_0, window_bounds = array<i64: 1, 16, 16, 128>}, {transform_indices = @transform_1, window_bounds = array<i64: 1, 1, 16, 128>}, {pipeline_mode = #tpu.pipeline_mode<synchronous>, transform_indices = @transform_2, window_bounds = array<i64: 1, 128>}, {pipeline_mode = #tpu.pipeline_mode<synchronous>, transform_indices = @transform_3, window_bounds = array<i64: 1, 128>}, {pipeline_mode = #tpu.pipeline_mode<synchronous>, transform_indices = @transform_4, window_bounds = array<i64: 128, 128>}, {pipeline_mode = #tpu.pipeline_mode<synchronous>, transform_indices = @transform_5, window_bounds = array<i64: 256, 128>}, {pipeline_mode = #tpu.pipeline_mode<synchronous>, transform_indices = @transform_6, window_bounds = array<i64: 256, 128>}, {pipeline_mode = #tpu.pipeline_mode<synchronous>, transform_indices = @transform_7, window_bounds = array<i64: 512, 128>}, {transform_indices = @transform_8, window_bounds = array<i64: 1, 4, 16, 16, 128>}, {transform_indices = @transform_9, window_bounds = array<i64: 8, 128>}, {transform_indices = @transform_10, window_bounds = array<i64: 8, 128>}]} {
    %c0 = arith.constant 0 : index
    %c0_0 = arith.constant 0 : index
    %0 = vector.load %arg4[%c0, %c0_0] : memref<1x128xf32, #tpu.memory_space<vmem>>, vector<1x128xf32>
    %c0_1 = arith.constant 0 : index
    %c0_2 = arith.constant 0 : index
    %1 = vector.load %arg5[%c0_1, %c0_2] : memref<1x128xf32, #tpu.memory_space<vmem>>, vector<1x128xf32>
    %c0_3 = arith.constant 0 : index
    %c0_4 = arith.constant 0 : index
    %c0_5 = arith.constant 0 : index
    %c0_6 = arith.constant 0 : index
    %2 = vector.load %arg2[%c0_3, %c0_4, %c0_5, %c0_6] : memref<1x16x16x128xbf16, #tpu.memory_space<vmem>>, vector<1x16x16x128xbf16>
    %3 = vector.shape_cast %2 : vector<1x16x16x128xbf16> to vector<16x16x128xbf16>
    %4 = arith.extf %3 : vector<16x16x128xbf16> to vector<16x16x128xf32>
    %5 = vector.shape_cast %0 : vector<1x128xf32> to vector<1x1x128xf32>
    %6 = vector.broadcast %5 : vector<1x1x128xf32> to vector<16x16x128xf32>
    %7 = arith.mulf %4, %6 : vector<16x16x128xf32>
    %8 = vector.shape_cast %1 : vector<1x128xf32> to vector<1x1x128xf32>
    %9 = vector.broadcast %8 : vector<1x1x128xf32> to vector<16x16x128xf32>
    %10 = arith.addf %7, %9 : vector<16x16x128xf32>
    %cst = arith.constant 0.000000e+00 : f32
    %11 = vector.broadcast %cst : f32 to vector<16x16x128xf32>
    %12 = arith.maximumf %10, %11 : vector<16x16x128xf32>
    %13 = arith.truncf %12 : vector<16x16x128xf32> to vector<16x16x128xbf16>
    %c0_i32 = arith.constant 0 : i32
    %14 = arith.cmpi eq, %arg1, %c0_i32 : i32
    %cst_7 = arith.constant 0.000000e+00 : f32
    %cst_8 = arith.constant 1.000000e+00 : f32
    %15 = arith.select %14, %cst_7, %cst_8 : f32
    %c0_9 = arith.constant 0 : index
    %c0_10 = arith.constant 0 : index
    %c0_11 = arith.constant 0 : index
    %c0_12 = arith.constant 0 : index
    %16 = vector.load %arg3[%c0_9, %c0_10, %c0_11, %c0_12] : memref<1x1x16x128xbf16, #tpu.memory_space<vmem>>, vector<1x1x16x128xbf16>
    %17 = vector.shape_cast %16 : vector<1x1x16x128xbf16> to vector<16x128xbf16>
    %18 = arith.extf %17 : vector<16x128xbf16> to vector<16x128xf32>
    %19 = vector.broadcast %0 : vector<1x128xf32> to vector<16x128xf32>
    %20 = arith.mulf %18, %19 : vector<16x128xf32>
    %21 = vector.broadcast %1 : vector<1x128xf32> to vector<16x128xf32>
    %22 = arith.addf %20, %21 : vector<16x128xf32>
    %cst_13 = arith.constant 0.000000e+00 : f32
    %23 = vector.broadcast %cst_13 : f32 to vector<16x128xf32>
    %24 = arith.maximumf %22, %23 : vector<16x128xf32>
    %25 = vector.broadcast %15 : f32 to vector<16x128xf32>
    %26 = arith.mulf %24, %25 : vector<16x128xf32>
    %27 = arith.truncf %26 : vector<16x128xf32> to vector<16x128xbf16>
    %28 = vector.shape_cast %27 : vector<16x128xbf16> to vector<1x16x128xbf16>
    %29 = tpu.concatenate %13, %28 in 0 : vector<16x16x128xbf16>, vector<1x16x128xbf16> -> vector<17x16x128xbf16>
    %cst_14 = arith.constant 0.000000e+00 : bf16
    %30 = vector.broadcast %cst_14 : bf16 to vector<17x1x128xbf16>
    %31 = vector.extract_strided_slice %29 {offsets = [0, 1, 0], sizes = [17, 15, 128], strides = [1, 1, 1]} : vector<17x16x128xbf16> to vector<17x15x128xbf16>
    %32 = tpu.concatenate %31, %30 in 1 : vector<17x15x128xbf16>, vector<17x1x128xbf16> -> vector<17x16x128xbf16>
    %33 = vector.shape_cast %29 : vector<17x16x128xbf16> to vector<272x128xbf16>
    %34 = vector.shape_cast %32 : vector<17x16x128xbf16> to vector<272x128xbf16>
    %35 = vector.extract_strided_slice %33 {offsets = [0, 0], sizes = [256, 128], strides = [1, 1]} : vector<272x128xbf16> to vector<256x128xbf16>
    %36 = vector.extract_strided_slice %34 {offsets = [0, 0], sizes = [256, 128], strides = [1, 1]} : vector<272x128xbf16> to vector<256x128xbf16>
    %37 = vector.extract_strided_slice %33 {offsets = [16, 0], sizes = [256, 128], strides = [1, 1]} : vector<272x128xbf16> to vector<256x128xbf16>
    %38 = vector.extract_strided_slice %34 {offsets = [16, 0], sizes = [256, 128], strides = [1, 1]} : vector<272x128xbf16> to vector<256x128xbf16>
    %c0_15 = arith.constant 0 : index
    %c0_16 = arith.constant 0 : index
    %39 = vector.load %arg6[%c0_15, %c0_16] : memref<128x128xbf16, #tpu.memory_space<vmem>>, vector<128x128xbf16>
    %cst_17 = arith.constant dense<0.000000e+00> : vector<256x128xf32>
    %40 = tpu.matmul %35, %39, %cst_17 {dimension_numbers = #tpu.dot_dimension_numbers<[1], [0], [0], [1], [0, 0, 1, 1], [], []>} : vector<256x128xbf16>, vector<128x128xbf16>, vector<256x128xf32> -> vector<256x128xf32>
    %41 = tpu.concatenate %35, %36 in 1 : vector<256x128xbf16>, vector<256x128xbf16> -> vector<256x256xbf16>
    %c0_18 = arith.constant 0 : index
    %c0_19 = arith.constant 0 : index
    %42 = vector.load %arg7[%c0_18, %c0_19] : memref<256x128xbf16, #tpu.memory_space<vmem>>, vector<256x128xbf16>
    %cst_20 = arith.constant dense<0.000000e+00> : vector<256x128xf32>
    %43 = tpu.matmul %41, %42, %cst_20 {dimension_numbers = #tpu.dot_dimension_numbers<[1], [0], [0], [1], [0, 0, 1, 1], [], []>} : vector<256x256xbf16>, vector<256x128xbf16>, vector<256x128xf32> -> vector<256x128xf32>
    %44 = tpu.concatenate %35, %37 in 1 : vector<256x128xbf16>, vector<256x128xbf16> -> vector<256x256xbf16>
    %c0_21 = arith.constant 0 : index
    %c0_22 = arith.constant 0 : index
    %45 = vector.load %arg8[%c0_21, %c0_22] : memref<256x128xbf16, #tpu.memory_space<vmem>>, vector<256x128xbf16>
    %cst_23 = arith.constant dense<0.000000e+00> : vector<256x128xf32>
    %46 = tpu.matmul %44, %45, %cst_23 {dimension_numbers = #tpu.dot_dimension_numbers<[1], [0], [0], [1], [0, 0, 1, 1], [], []>} : vector<256x256xbf16>, vector<256x128xbf16>, vector<256x128xf32> -> vector<256x128xf32>
    %47 = tpu.concatenate %35, %36, %37, %38 in 1 : vector<256x128xbf16>, vector<256x128xbf16>, vector<256x128xbf16>, vector<256x128xbf16> -> vector<256x512xbf16>
    %c0_24 = arith.constant 0 : index
    %c0_25 = arith.constant 0 : index
    %48 = vector.load %arg9[%c0_24, %c0_25] : memref<512x128xbf16, #tpu.memory_space<vmem>>, vector<512x128xbf16>
    %cst_26 = arith.constant dense<0.000000e+00> : vector<256x128xf32>
    %49 = tpu.matmul %47, %48, %cst_26 {dimension_numbers = #tpu.dot_dimension_numbers<[1], [0], [0], [1], [0, 0, 1, 1], [], []>} : vector<256x512xbf16>, vector<512x128xbf16>, vector<256x128xf32> -> vector<256x128xf32>
    %50 = arith.addf %40, %43 : vector<256x128xf32>
    %51 = arith.addf %50, %46 : vector<256x128xf32>
    %52 = arith.addf %51, %49 : vector<256x128xf32>
    %53 = vector.shape_cast %52 : vector<256x128xf32> to vector<32x8x128xf32>
    %cst_27 = arith.constant dense<0.000000e+00> : vector<8x128xf32>
    %54 = vector.multi_reduction <add>, %53, %cst_27 [0] : vector<32x8x128xf32> to vector<8x128xf32>
    %c0_28 = arith.constant 0 : index
    %c0_29 = arith.constant 0 : index
    %55 = vector.load %arg11[%c0_28, %c0_29] : memref<8x128xf32, #tpu.memory_space<vmem>>, vector<8x128xf32>
    tpu.vector_store %arg11[%c0_28, %c0_29], %54 {strides = array<i32>} : memref<8x128xf32, #tpu.memory_space<vmem>>, vector<8x128xf32>,
    %56 = arith.mulf %40, %40 : vector<256x128xf32>
    %57 = arith.mulf %43, %43 : vector<256x128xf32>
    %58 = arith.addf %56, %57 : vector<256x128xf32>
    %59 = arith.mulf %46, %46 : vector<256x128xf32>
    %60 = arith.addf %58, %59 : vector<256x128xf32>
    %61 = arith.mulf %49, %49 : vector<256x128xf32>
    %62 = arith.addf %60, %61 : vector<256x128xf32>
    %63 = vector.shape_cast %62 : vector<256x128xf32> to vector<32x8x128xf32>
    %cst_30 = arith.constant dense<0.000000e+00> : vector<8x128xf32>
    %64 = vector.multi_reduction <add>, %63, %cst_30 [0] : vector<32x8x128xf32> to vector<8x128xf32>
    %c0_31 = arith.constant 0 : index
    %c0_32 = arith.constant 0 : index
    %65 = vector.load %arg12[%c0_31, %c0_32] : memref<8x128xf32, #tpu.memory_space<vmem>>, vector<8x128xf32>
    tpu.vector_store %arg12[%c0_31, %c0_32], %64 {strides = array<i32>} : memref<8x128xf32, #tpu.memory_space<vmem>>, vector<8x128xf32>,
    %66 = vector.shape_cast %40 : vector<256x128xf32> to vector<16x16x128xf32>
    %67 = arith.truncf %66 : vector<16x16x128xf32> to vector<16x16x128xbf16>
    %c0_33 = arith.constant 0 : index
    %c0_34 = arith.constant 0 : index
    %c0_35 = arith.constant 0 : index
    %c0_36 = arith.constant 0 : index
    %c0_37 = arith.constant 0 : index
    %68 = vector.load %arg10[%c0_33, %c0_34, %c0_35, %c0_36, %c0_37] : memref<1x4x16x16x128xbf16, #tpu.memory_space<vmem>>, vector<1x1x16x16x128xbf16>
    %69 = vector.shape_cast %68 : vector<1x1x16x16x128xbf16> to vector<16x16x128xbf16>
    %70 = vector.shape_cast %67 : vector<16x16x128xbf16> to vector<1x1x16x16x128xbf16>
    tpu.vector_store %arg10[%c0_33, %c0_34, %c0_35, %c0_36, %c0_37], %70 {strides = array<i32>} : memref<1x4x16x16x128xbf16, #tpu.memory_space<vmem>>, vector<1x1x16x16x128xbf16>,
    %71 = vector.shape_cast %43 : vector<256x128xf32> to vector<16x16x128xf32>
    %72 = arith.truncf %71 : vector<16x16x128xf32> to vector<16x16x128xbf16>
    %c0_38 = arith.constant 0 : index
    %c1 = arith.constant 1 : index
    %c0_39 = arith.constant 0 : index
    %c0_40 = arith.constant 0 : index
    %c0_41 = arith.constant 0 : index
    %73 = vector.load %arg10[%c0_38, %c1, %c0_39, %c0_40, %c0_41] : memref<1x4x16x16x128xbf16, #tpu.memory_space<vmem>>, vector<1x1x16x16x128xbf16>
    %74 = vector.shape_cast %73 : vector<1x1x16x16x128xbf16> to vector<16x16x128xbf16>
    %75 = vector.shape_cast %72 : vector<16x16x128xbf16> to vector<1x1x16x16x128xbf16>
    tpu.vector_store %arg10[%c0_38, %c1, %c0_39, %c0_40, %c0_41], %75 {strides = array<i32>} : memref<1x4x16x16x128xbf16, #tpu.memory_space<vmem>>, vector<1x1x16x16x128xbf16>,
    %76 = vector.shape_cast %46 : vector<256x128xf32> to vector<16x16x128xf32>
    %77 = arith.truncf %76 : vector<16x16x128xf32> to vector<16x16x128xbf16>
    %c0_42 = arith.constant 0 : index
    %c2 = arith.constant 2 : index
    %c0_43 = arith.constant 0 : index
    %c0_44 = arith.constant 0 : index
    %c0_45 = arith.constant 0 : index
    %78 = vector.load %arg10[%c0_42, %c2, %c0_43, %c0_44, %c0_45] : memref<1x4x16x16x128xbf16, #tpu.memory_space<vmem>>, vector<1x1x16x16x128xbf16>
    %79 = vector.shape_cast %78 : vector<1x1x16x16x128xbf16> to vector<16x16x128xbf16>
    %80 = vector.shape_cast %77 : vector<16x16x128xbf16> to vector<1x1x16x16x128xbf16>
    tpu.vector_store %arg10[%c0_42, %c2, %c0_43, %c0_44, %c0_45], %80 {strides = array<i32>} : memref<1x4x16x16x128xbf16, #tpu.memory_space<vmem>>, vector<1x1x16x16x128xbf16>,
    %81 = vector.shape_cast %49 : vector<256x128xf32> to vector<16x16x128xf32>
    %82 = arith.truncf %81 : vector<16x16x128xf32> to vector<16x16x128xbf16>
    %c0_46 = arith.constant 0 : index
    %c3 = arith.constant 3 : index
    %c0_47 = arith.constant 0 : index
    %c0_48 = arith.constant 0 : index
    %c0_49 = arith.constant 0 : index
    %83 = vector.load %arg10[%c0_46, %c3, %c0_47, %c0_48, %c0_49] : memref<1x4x16x16x128xbf16, #tpu.memory_space<vmem>>, vector<1x1x16x16x128xbf16>
    %84 = vector.shape_cast %83 : vector<1x1x16x16x128xbf16> to vector<16x16x128xbf16>
    %85 = vector.shape_cast %82 : vector<16x16x128xbf16> to vector<1x1x16x16x128xbf16>
    tpu.vector_store %arg10[%c0_46, %c3, %c0_47, %c0_48, %c0_49], %85 {strides = array<i32>} : memref<1x4x16x16x128xbf16, #tpu.memory_space<vmem>>, vector<1x1x16x16x128xbf16>,
    return
  }
  func.func @transform_0(%arg0: i32, %arg1: i32) -> (i32, i32, i32, i32) {
    %c0_i32 = arith.constant 0 : i32
    %c0_i32_0 = arith.constant 0 : i32
    %c0_i32_1 = arith.constant 0 : i32
    return %arg0, %arg1, %c0_i32, %c0_i32_0 : i32, i32, i32, i32
  }
  func.func @transform_1(%arg0: i32, %arg1: i32) -> (i32, i32, i32, i32) {
    %c1_i32 = arith.constant 1 : i32
    %0 = arith.addi %arg1, %c1_i32 : i32
    %c16_i32 = arith.constant 16 : i32
    %1 = arith.muli %0, %c16_i32 : i32
    %c15_i32 = arith.constant 15 : i32
    %2 = arith.minsi %1, %c15_i32 : i32
    %c0_i32 = arith.constant 0 : i32
    %c0_i32_0 = arith.constant 0 : i32
    %c0_i32_1 = arith.constant 0 : i32
    return %arg0, %2, %c0_i32, %c0_i32_0 : i32, i32, i32, i32
  }
  func.func @transform_2(%arg0: i32, %arg1: i32) -> (i32, i32) {
    %c0_i32 = arith.constant 0 : i32
    %c0_i32_0 = arith.constant 0 : i32
    %c0_i32_1 = arith.constant 0 : i32
    return %c0_i32, %c0_i32_0 : i32, i32
  }
  func.func @transform_3(%arg0: i32, %arg1: i32) -> (i32, i32) {
    %c0_i32 = arith.constant 0 : i32
    %c0_i32_0 = arith.constant 0 : i32
    %c0_i32_1 = arith.constant 0 : i32
    return %c0_i32, %c0_i32_0 : i32, i32
  }
  func.func @transform_4(%arg0: i32, %arg1: i32) -> (i32, i32) {
    %c0_i32 = arith.constant 0 : i32
    %c0_i32_0 = arith.constant 0 : i32
    %c0_i32_1 = arith.constant 0 : i32
    return %c0_i32, %c0_i32_0 : i32, i32
  }
  func.func @transform_5(%arg0: i32, %arg1: i32) -> (i32, i32) {
    %c0_i32 = arith.constant 0 : i32
    %c0_i32_0 = arith.constant 0 : i32
    %c0_i32_1 = arith.constant 0 : i32
    return %c0_i32, %c0_i32_0 : i32, i32
  }
  func.func @transform_6(%arg0: i32, %arg1: i32) -> (i32, i32) {
    %c0_i32 = arith.constant 0 : i32
    %c0_i32_0 = arith.constant 0 : i32
    %c0_i32_1 = arith.constant 0 : i32
    return %c0_i32, %c0_i32_0 : i32, i32
  }
  func.func @transform_7(%arg0: i32, %arg1: i32) -> (i32, i32) {
    %c0_i32 = arith.constant 0 : i32
    %c0_i32_0 = arith.constant 0 : i32
    %c0_i32_1 = arith.constant 0 : i32
    return %c0_i32, %c0_i32_0 : i32, i32
  }
  func.func @transform_8(%arg0: i32, %arg1: i32) -> (i32, i32, i32, i32, i32) {
    %c0_i32 = arith.constant 0 : i32
    %c0_i32_0 = arith.constant 0 : i32
    %c0_i32_1 = arith.constant 0 : i32
    %c0_i32_2 = arith.constant 0 : i32
    return %arg0, %c0_i32, %arg1, %c0_i32_0, %c0_i32_1 : i32, i32, i32, i32, i32
  }
  func.func @transform_9(%arg0: i32, %arg1: i32) -> (i32, i32) {
    %c1_i32 = arith.constant 1 : i32
    %0 = arith.muli %arg0, %c1_i32 : i32
    %1 = arith.addi %0, %arg1 : i32
    %c0_i32 = arith.constant 0 : i32
    %c0_i32_0 = arith.constant 0 : i32
    return %1, %c0_i32 : i32, i32
  }
  func.func @transform_10(%arg0: i32, %arg1: i32) -> (i32, i32) {
    %c1_i32 = arith.constant 1 : i32
    %0 = arith.muli %arg0, %c1_i32 : i32
    %1 = arith.addi %0, %arg1 : i32
    %c0_i32 = arith.constant 0 : i32
    %c0_i32_0 = arith.constant 0 : i32
    return %1, %c0_i32 : i32, i32
  }
}

module attributes {stable_mosaic.version = 11 : i64} {
  func.func @_bn_mm_stats_kernel(%arg0: i32, %arg1: memref<1024x128xbf16, #tpu.memory_space<vmem>>, %arg2: memref<1x128xf32, #tpu.memory_space<vmem>>, %arg3: memref<1x128xf32, #tpu.memory_space<vmem>>, %arg4: memref<128x128xbf16, #tpu.memory_space<vmem>>, %arg5: memref<1024x128xbf16, #tpu.memory_space<vmem>>, %arg6: memref<8x128xf32, #tpu.memory_space<vmem>>, %arg7: memref<8x128xf32, #tpu.memory_space<vmem>>) attributes {dimension_semantics = [#tpu.dimension_semantics<parallel>], iteration_bounds = array<i64: 2>, scalar_prefetch = 0 : i64, scratch_operands = 0 : i64, tpu.core_type = #tpu.core_type<tc>, window_params = [{transform_indices = @transform_0, window_bounds = array<i64: 1024, 128>}, {pipeline_mode = #tpu.pipeline_mode<synchronous>, transform_indices = @transform_1, window_bounds = array<i64: 1, 128>}, {pipeline_mode = #tpu.pipeline_mode<synchronous>, transform_indices = @transform_2, window_bounds = array<i64: 1, 128>}, {pipeline_mode = #tpu.pipeline_mode<synchronous>, transform_indices = @transform_3, window_bounds = array<i64: 128, 128>}, {transform_indices = @transform_4, window_bounds = array<i64: 1024, 128>}, {transform_indices = @transform_5, window_bounds = array<i64: 8, 128>}, {transform_indices = @transform_6, window_bounds = array<i64: 8, 128>}]} {
    %c0 = arith.constant 0 : index
    %c0_0 = arith.constant 0 : index
    %0 = vector.load %arg1[%c0, %c0_0] : memref<1024x128xbf16, #tpu.memory_space<vmem>>, vector<1024x128xbf16>
    %1 = arith.extf %0 : vector<1024x128xbf16> to vector<1024x128xf32>
    %c0_1 = arith.constant 0 : index
    %c0_2 = arith.constant 0 : index
    %2 = vector.load %arg2[%c0_1, %c0_2] : memref<1x128xf32, #tpu.memory_space<vmem>>, vector<1x128xf32>
    %3 = vector.broadcast %2 : vector<1x128xf32> to vector<1024x128xf32>
    %4 = arith.mulf %1, %3 : vector<1024x128xf32>
    %c0_3 = arith.constant 0 : index
    %c0_4 = arith.constant 0 : index
    %5 = vector.load %arg3[%c0_3, %c0_4] : memref<1x128xf32, #tpu.memory_space<vmem>>, vector<1x128xf32>
    %6 = vector.broadcast %5 : vector<1x128xf32> to vector<1024x128xf32>
    %7 = arith.addf %4, %6 : vector<1024x128xf32>
    %cst = arith.constant 0.000000e+00 : f32
    %8 = vector.broadcast %cst : f32 to vector<1024x128xf32>
    %9 = arith.maximumf %7, %8 : vector<1024x128xf32>
    %10 = arith.truncf %9 : vector<1024x128xf32> to vector<1024x128xbf16>
    %c0_5 = arith.constant 0 : index
    %c0_6 = arith.constant 0 : index
    %11 = vector.load %arg4[%c0_5, %c0_6] : memref<128x128xbf16, #tpu.memory_space<vmem>>, vector<128x128xbf16>
    %cst_7 = arith.constant dense<0.000000e+00> : vector<1024x128xf32>
    %12 = tpu.matmul %10, %11, %cst_7 {dimension_numbers = #tpu.dot_dimension_numbers<[1], [0], [0], [1], [0, 0, 1, 1], [], []>} : vector<1024x128xbf16>, vector<128x128xbf16>, vector<1024x128xf32> -> vector<1024x128xf32>
    %13 = vector.shape_cast %12 : vector<1024x128xf32> to vector<128x8x128xf32>
    %cst_8 = arith.constant dense<0.000000e+00> : vector<8x128xf32>
    %14 = vector.multi_reduction <add>, %13, %cst_8 [0] : vector<128x8x128xf32> to vector<8x128xf32>
    %c0_9 = arith.constant 0 : index
    %c0_10 = arith.constant 0 : index
    %15 = vector.load %arg6[%c0_9, %c0_10] : memref<8x128xf32, #tpu.memory_space<vmem>>, vector<8x128xf32>
    tpu.vector_store %arg6[%c0_9, %c0_10], %14 {strides = array<i32>} : memref<8x128xf32, #tpu.memory_space<vmem>>, vector<8x128xf32>,
    %16 = arith.mulf %12, %12 : vector<1024x128xf32>
    %17 = vector.shape_cast %16 : vector<1024x128xf32> to vector<128x8x128xf32>
    %cst_11 = arith.constant dense<0.000000e+00> : vector<8x128xf32>
    %18 = vector.multi_reduction <add>, %17, %cst_11 [0] : vector<128x8x128xf32> to vector<8x128xf32>
    %c0_12 = arith.constant 0 : index
    %c0_13 = arith.constant 0 : index
    %19 = vector.load %arg7[%c0_12, %c0_13] : memref<8x128xf32, #tpu.memory_space<vmem>>, vector<8x128xf32>
    tpu.vector_store %arg7[%c0_12, %c0_13], %18 {strides = array<i32>} : memref<8x128xf32, #tpu.memory_space<vmem>>, vector<8x128xf32>,
    %20 = arith.truncf %12 : vector<1024x128xf32> to vector<1024x128xbf16>
    %c0_14 = arith.constant 0 : index
    %c0_15 = arith.constant 0 : index
    %21 = vector.load %arg5[%c0_14, %c0_15] : memref<1024x128xbf16, #tpu.memory_space<vmem>>, vector<1024x128xbf16>
    tpu.vector_store %arg5[%c0_14, %c0_15], %20 {strides = array<i32>} : memref<1024x128xbf16, #tpu.memory_space<vmem>>, vector<1024x128xbf16>,
    return
  }
  func.func @transform_0(%arg0: i32) -> (i32, i32) {
    %c0_i32 = arith.constant 0 : i32
    %c0_i32_0 = arith.constant 0 : i32
    return %arg0, %c0_i32 : i32, i32
  }
  func.func @transform_1(%arg0: i32) -> (i32, i32) {
    %c0_i32 = arith.constant 0 : i32
    %c0_i32_0 = arith.constant 0 : i32
    %c0_i32_1 = arith.constant 0 : i32
    return %c0_i32, %c0_i32_0 : i32, i32
  }
  func.func @transform_2(%arg0: i32) -> (i32, i32) {
    %c0_i32 = arith.constant 0 : i32
    %c0_i32_0 = arith.constant 0 : i32
    %c0_i32_1 = arith.constant 0 : i32
    return %c0_i32, %c0_i32_0 : i32, i32
  }
  func.func @transform_3(%arg0: i32) -> (i32, i32) {
    %c0_i32 = arith.constant 0 : i32
    %c0_i32_0 = arith.constant 0 : i32
    %c0_i32_1 = arith.constant 0 : i32
    return %c0_i32, %c0_i32_0 : i32, i32
  }
  func.func @transform_4(%arg0: i32) -> (i32, i32) {
    %c0_i32 = arith.constant 0 : i32
    %c0_i32_0 = arith.constant 0 : i32
    return %arg0, %c0_i32 : i32, i32
  }
  func.func @transform_5(%arg0: i32) -> (i32, i32) {
    %c0_i32 = arith.constant 0 : i32
    %c0_i32_0 = arith.constant 0 : i32
    return %arg0, %c0_i32 : i32, i32
  }
  func.func @transform_6(%arg0: i32) -> (i32, i32) {
    %c0_i32 = arith.constant 0 : i32
    %c0_i32_0 = arith.constant 0 : i32
    return %arg0, %c0_i32 : i32, i32
  }
}

module attributes {stable_mosaic.version = 11 : i64} {
  func.func @_bn_relu_kernel(%arg0: i32, %arg1: memref<1024x128xbf16, #tpu.memory_space<vmem>>, %arg2: memref<1x128xf32, #tpu.memory_space<vmem>>, %arg3: memref<1x128xf32, #tpu.memory_space<vmem>>, %arg4: memref<1024x128xf32, #tpu.memory_space<vmem>>) attributes {dimension_semantics = [#tpu.dimension_semantics<parallel>], iteration_bounds = array<i64: 2>, scalar_prefetch = 0 : i64, scratch_operands = 0 : i64, tpu.core_type = #tpu.core_type<tc>, window_params = [{transform_indices = @transform_0, window_bounds = array<i64: 1024, 128>}, {pipeline_mode = #tpu.pipeline_mode<synchronous>, transform_indices = @transform_1, window_bounds = array<i64: 1, 128>}, {pipeline_mode = #tpu.pipeline_mode<synchronous>, transform_indices = @transform_2, window_bounds = array<i64: 1, 128>}, {transform_indices = @transform_3, window_bounds = array<i64: 1024, 128>}]} {
    %c0 = arith.constant 0 : index
    %c0_0 = arith.constant 0 : index
    %0 = vector.load %arg1[%c0, %c0_0] : memref<1024x128xbf16, #tpu.memory_space<vmem>>, vector<1024x128xbf16>
    %1 = arith.extf %0 : vector<1024x128xbf16> to vector<1024x128xf32>
    %c0_1 = arith.constant 0 : index
    %c0_2 = arith.constant 0 : index
    %2 = vector.load %arg2[%c0_1, %c0_2] : memref<1x128xf32, #tpu.memory_space<vmem>>, vector<1x128xf32>
    %3 = vector.broadcast %2 : vector<1x128xf32> to vector<1024x128xf32>
    %4 = arith.mulf %1, %3 : vector<1024x128xf32>
    %c0_3 = arith.constant 0 : index
    %c0_4 = arith.constant 0 : index
    %5 = vector.load %arg3[%c0_3, %c0_4] : memref<1x128xf32, #tpu.memory_space<vmem>>, vector<1x128xf32>
    %6 = vector.broadcast %5 : vector<1x128xf32> to vector<1024x128xf32>
    %7 = arith.addf %4, %6 : vector<1024x128xf32>
    %cst = arith.constant 0.000000e+00 : f32
    %8 = vector.broadcast %cst : f32 to vector<1024x128xf32>
    %9 = arith.maximumf %7, %8 : vector<1024x128xf32>
    %c0_5 = arith.constant 0 : index
    %c0_6 = arith.constant 0 : index
    %10 = vector.load %arg4[%c0_5, %c0_6] : memref<1024x128xf32, #tpu.memory_space<vmem>>, vector<1024x128xf32>
    tpu.vector_store %arg4[%c0_5, %c0_6], %9 {strides = array<i32>} : memref<1024x128xf32, #tpu.memory_space<vmem>>, vector<1024x128xf32>,
    return
  }
  func.func @transform_0(%arg0: i32) -> (i32, i32) {
    %c0_i32 = arith.constant 0 : i32
    %c0_i32_0 = arith.constant 0 : i32
    return %arg0, %c0_i32 : i32, i32
  }
  func.func @transform_1(%arg0: i32) -> (i32, i32) {
    %c0_i32 = arith.constant 0 : i32
    %c0_i32_0 = arith.constant 0 : i32
    %c0_i32_1 = arith.constant 0 : i32
    return %c0_i32, %c0_i32_0 : i32, i32
  }
  func.func @transform_2(%arg0: i32) -> (i32, i32) {
    %c0_i32 = arith.constant 0 : i32
    %c0_i32_0 = arith.constant 0 : i32
    %c0_i32_1 = arith.constant 0 : i32
    return %c0_i32, %c0_i32_0 : i32, i32
  }
  func.func @transform_3(%arg0: i32) -> (i32, i32) {
    %c0_i32 = arith.constant 0 : i32
    %c0_i32_0 = arith.constant 0 : i32
    return %arg0, %c0_i32 : i32, i32
  }
}

</mosaic_0001>

<bundles_post_ra>
// kernel: decoder_block_forward.4
= control target key start
LH: loop header
LB: loop body
LE: loop exit
PB: predicated region body
PF: predicated region fallthrough
CT: control target
= control target key end

     0   :  { %vm338_vm0 = vcmask 1041408   ;;  %vm241_vm1 = vcmask 31744   ;;  %s2081_s0 = inlined_call_operand.vmem [shape: bf16[512,4], index: 0, kind: input, shape index: {}]   ;;  %s2082_s1 = inlined_call_operand.vmem [shape: bf16[4,128], index: 1, kind: input, shape index: {}]   ;;  %s2083_s2 = inlined_call_operand.hbm [shape: bf16[512,128], index: 2, kind: output, shape index: {0}]   ;;  %s2084_s3 = inlined_call_operand.vmem [shape: f32[8,128], index: 3, kind: output, shape index: {1}]   ;;  %s2085_s4 = inlined_call_operand.vmem [shape: f32[8,128], index: 4, kind: output, shape index: {2}]  }
   0x1   :  { %v80_v0 = vld [vmem:[%s2082_s1] sm:$0x3]  ;;  %v1657_v3 = vld [vmem:[%s2081_s0 + $0x8] sm:$0xff]   ;;  %v1658_v4 = vld [vmem:[%s2081_s0 + $0x10] sm:$0xff]  }
   0x2   :  { %v1656_v1 = vld [vmem:[%s2081_s0] sm:$0xff]   ;;  %1651 = vmatprep.subr.msk.bf16.mxu0 %vm338_vm0, %v80_v0  ;;  %v340_v2 = vsel %vm338_vm0, %v80_v0, 0  ;;  %1652 = vmatprep.subr.msk.bf16.mxu1 %vm338_vm0, %v80_v0  ;;  %v1659_v5 = vld [vmem:[%s2081_s0 + $0x18] sm:$0xff]   ;;  %v1661_v7 = vld [vmem:[%s2081_s0 + $0x28] sm:$0xff]  }
   0x3   :  { %1584 = vmatpush3.bf16.msra.mxu0 %v340_v2  ;;  %1585 = vmatprep.mubr.msk.bf16.mxu0 %vm241_vm1, %v1656_v1  ;;  %v1660_v6 = vld [vmem:[%s2081_s0 + $0x20] sm:$0xff]   ;;  %v1662_v8 = vld [vmem:[%s2081_s0 + $0x30] sm:$0xff]   ;;  %v1673_v10 = vld [vmem:[%s2081_s0 + $0x88] sm:$0xff]  }
   0x4   :  { %1650 = vmatpush3.bf16.msra.mxu1 %v340_v2  ;;  %v1672_v9 = vld [vmem:[%s2081_s0 + $0x80] sm:$0xff]   ;;  %v1674_v11 = vld [vmem:[%s2081_s0 + $0x90] sm:$0xff]   ;;  %v1663_v12 = vld [vmem:[%s2081_s0 + $0x38] sm:$0xff]  }
   0x5   :  { %1617 = vmatprep.mubr.msk.bf16.mxu1 %vm241_vm1, %v1672_v9  ;;  %v1675_v13 = vld [vmem:[%s2081_s0 + $0x98] sm:$0xff]   ;;  %v1676_v14 = vld [vmem:[%s2081_s0 + $0xa0] sm:$0xff]   ;;  %v1677_v16 = vld [vmem:[%s2081_s0 + $0xa8] sm:$0xff]  }
   0x6   :  { %1586 = vmatmul.mubr.msk.bf16.vlgmr.msra.gmra.mrb[0].mxu0 %vm241_vm1, %v1657_v3  ;;  %v1664_v15 = vld [vmem:[%s2081_s0 + $0x40] sm:$0xff]  }
   0x7   :  { %1589 = vmatprep.mubr.msk.bf16.mxu0 %vm241_vm1, %v1658_v4  ;;  %1618 = vmatmul.mubr.msk.bf16.vlgmr.msra.gmra.mrb[0].mxu1 %vm241_vm1, %v1673_v10 }
   0x8   :  { %1621 = vmatprep.mubr.msk.bf16.mxu1 %vm241_vm1, %v1674_v11 }
   0xe   :  { %1590 = vmatmul.mubr.msk.bf16.gmra.mrb[4].mxu0 %vm241_vm1, %v1659_v5 }
   0xf   :  { %1593 = vmatprep.mubr.msk.bf16.mxu0 %vm241_vm1, %v1660_v6  ;;  %1622 = vmatmul.mubr.msk.bf16.gmra.mrb[4].mxu1 %vm241_vm1, %v1675_v13 }
  0x10   :  { %1625 = vmatprep.mubr.msk.bf16.mxu1 %vm241_vm1, %v1676_v14 }
  0x16   :  { %1594 = vmatmul.mubr.msk.bf16.gmra.mrb[8].mxu0 %vm241_vm1, %v1661_v7 }
  0x17   :  { %1597 = vmatprep.mubr.msk.bf16.mxu0 %vm241_vm1, %v1662_v8 }
  0x1e   :  { %1598 = vmatmul.mubr.msk.bf16.gmra.mrb[12].mxu0 %vm241_vm1, %v1663_v12 }
  0x1f   :  { %1601 = vmatprep.mubr.msk.bf16.mxu0 %vm241_vm1, %v1664_v15 }
  0x20   :  { %10 = vsyncpa [#allocation3], 0  ;;  %v1665_v17 = vld [vmem:[%s2081_s0 + $0x48] sm:$0xff]   ;;  %v1678_v18 = vld [vmem:[%s2081_s0 + $0xb0] sm:$0xff]   ;;  %1626 = vmatmul.mubr.msk.bf16.gmra.mrb[8].mxu1 %vm241_vm1, %v1677_v16 }
  0x21   :  { %v1666_v19 = vld [vmem:[%s2081_s0 + $0x50] sm:$0xff]   ;;  %1629 = vmatprep.mubr.msk.bf16.mxu1 %vm241_vm1, %v1678_v18  ;;  %v1679_v20 = vld [vmem:[%s2081_s0 + $0xb8] sm:$0xff]   ;;  %v1680_v22 = vld [vmem:[%s2081_s0 + $0xc0] sm:$0xff]  }
  0x22   :  { %v1667_v21 = vld [vmem:[%s2081_s0 + $0x58] sm:$0xff]   ;;  %v1668_v23 = vld [vmem:[%s2081_s0 + $0x60] sm:$0xff]   ;;  %v1681_v24 = vld [vmem:[%s2081_s0 + $0xc8] sm:$0xff]  }
  0x23   :  { %v1669_v25 = vld [vmem:[%s2081_s0 + $0x68] sm:$0xff]   ;;  %v1682_v26 = vld [vmem:[%s2081_s0 + $0xd0] sm:$0xff]   ;;  %v1683_v28 = vld [vmem:[%s2081_s0 + $0xd8] sm:$0xff]  }
  0x24   :  { %v1670_v27 = vld [vmem:[%s2081_s0 + $0x70] sm:$0xff]   ;;  %v1671_v29 = vld [vmem:[%s2081_s0 + $0x78] sm:$0xff]   ;;  %v1684_v30 = vld [vmem:[%s2081_s0 + $0xe0] sm:$0xff]  }
  0x25   :  { %v1685_v31 = vld [vmem:[%s2081_s0 + $0xe8] sm:$0xff]   ;;  %v1686_v32 = vld [vmem:[%s2081_s0 + $0xf0] sm:$0xff]   ;;  %v1687_v33 = vld [vmem:[%s2081_s0 + $0xf8] sm:$0xff]   ;;  %s1712_s0 = smov [#allocation2]  }
  0x26   :  { %1602 = vmatmul.mubr.msk.bf16.gmra.mrb[16].mxu0 %vm241_vm1, %v1665_v17  ;;  %s1148_s26 = sshll.u32 %s1712_s0, 4  ;;  %s1149_s26 = int_to_ptr.vmem [resolvable:$true] %s1148_s26 }
  0x27   :  { %1605 = vmatprep.mubr.msk.bf16.mxu0 %vm241_vm1, %v1666_v19  ;;  %s1688_s27 = scalar_lea.vmem %s1149_s26, 4096  ;;  %p1693_p1 = scmp.lt.s32.totalorder %s1149_s26, %s1149_s26 }
  0x28   :  { %1630 = vmatmul.mubr.msk.bf16.gmra.mrb[12].mxu1 %vm241_vm1, %v1679_v20  ;;  %p1689_p0 = scmp.ne.s32.totalorder %s1149_s26, %s1688_s27  ;;  %p1694_p2 = scmp.lt.s32.totalorder %s1688_s27, %s1688_s27 }
  0x29   :  { %1633 = vmatprep.mubr.msk.bf16.mxu1 %vm241_vm1, %v1680_v22 }
  0x2a   :  { %p1695_p3 = por %p1694_p2, %p1693_p1 }
  0x2c   :  { %p1696_p4 = pnand %p1695_p3, %p1689_p0 }
  0x2e   :  { %1606 = vmatmul.mubr.msk.bf16.gmra.mrb[20].mxu0 %vm241_vm1, %v1667_v21 }
  0x2f   :  { %1609 = vmatprep.mubr.msk.bf16.mxu0 %vm241_vm1, %v1668_v23 }
  0x30   :  { %1634 = vmatmul.mubr.msk.bf16.gmra.mrb[16].mxu1 %vm241_vm1, %v1681_v24 }
  0x31   :  { %1637 = vmatprep.mubr.msk.bf16.mxu1 %vm241_vm1, %v1682_v26 }
  0x36   :  { %1610 = vmatmul.mubr.msk.bf16.gmra.mrb[24].mxu0 %vm241_vm1, %v1669_v25 }
  0x37   :  { %1613 = vmatprep.mubr.msk.bf16.mxu0 %vm241_vm1, %v1670_v27 }
  0x38   :  { %1638 = vmatmul.mubr.msk.bf16.gmra.mrb[20].mxu1 %vm241_vm1, %v1683_v28 }
  0x39   :  { %1641 = vmatprep.mubr.msk.bf16.mxu1 %vm241_vm1, %v1684_v30 }
  0x3e   :  { %1614 = vmatmul.mubr.msk.bf16.gmra.mrb[28].mxu0 %vm241_vm1, %v1671_v29 }
  0x40   :  { %1642 = vmatmul.mubr.msk.bf16.gmra.mrb[24].mxu1 %vm241_vm1, %v1685_v31 }
  0x41   :  { %1645 = vmatprep.mubr.msk.bf16.mxu1 %vm241_vm1, %v1686_v32 }
  0x48   :  { %1646 = vmatmul.mubr.msk.bf16.gmra.mrb[28].mxu1 %vm241_vm1, %v1687_v33 }
  0xd9   :  { %v1587_v34 = vpop.f32.mrb[0].mxu0 }
  0xda   :  { %v376_v35 = vpop.f32.mrb[1].mxu0  ;;  %v697_v43 = vmul.f32 %v1587_v34, %v1587_v34  ;;  %v1871_v0 = vpop.f32.mrb[0].mxu1 }
  0xdb   :  { %v1588_v36 = vpop.f32.mrb[2].mxu0  ;;  %v695_v39 = vmul.f32 %v376_v35, %v376_v35  ;;  %v1873_v5 = vpop.f32.mrb[1].mxu1 }
  0xdc   :  { %v1367_v37 = vpack.c.bf16 %v1588_v36, %v1587_v34  ;;  %v379_v38 = vpop.f32.mrb[3].mxu0  ;;  %v698_v46 = vmul.f32 %v1588_v36, %v1588_v36  ;;  %v1875_v7 = vpop.f32.mrb[2].mxu1 }
  0xdd   :  { %v631_v40 = vadd.f32 %v379_v38, %v376_v35  ;;  %v696_v41 = vmul.f32 %v379_v38, %v379_v38  ;;  %v1362_v42 = vpack.c.bf16 %v379_v38, %v376_v35  ;;  %v1877_v12 = vpop.f32.mrb[3].mxu1  ;;  %v1447_v15 = vpack.c.bf16 %v1875_v7, %v1871_v0 }
  0xde   :  { %1519 = vst [vmem:[#allocation2 + $0x8] sm:$0xff] %v1367_v37   ;;  %v1442_v20 = vpack.c.bf16 %v1877_v12, %v1873_v5 }
  0xdf   :  { %v632_v44 = vadd.f32 %v1587_v34, %v631_v40  ;;  %v759_v45 = vadd.f32 %v696_v41, %v695_v39  ;;  %1363 = vst [vmem:[#allocation2] sm:$0xff] %v1362_v42   ;;  %1535 = vst [vmem:[#allocation2 + $0x88] sm:$0xff] %v1447_v15  }
  0xe0   :  { %1534 = vst [vmem:[#allocation2 + $0x80] sm:$0xff] %v1442_v20  }
  0xe1   :  { %v760_v47 = vadd.f32 %v759_v45, %v697_v43  ;;  %v1591_v48 = vpop.f32.mrb[4].mxu0  ;;  %v633_v49 = vadd.f32 %v1588_v36, %v632_v44 }
  0xe2   :  { %v392_v50 = vpop.f32.mrb[5].mxu0  ;;  %v701_v61 = vmul.f32 %v1591_v48, %v1591_v48  ;;  %v1883_v24 = vpop.f32.mrb[4].mxu1 }
  0xe3   :  { %v634_v51 = vadd.f32 %v633_v49, %v392_v50  ;;  %v699_v52 = vmul.f32 %v392_v50, %v392_v50  ;;  %v761_v53 = vadd.f32 %v760_v47, %v698_v46  ;;  %v1592_v54 = vpop.f32.mrb[6].mxu0  ;;  %v1885_v29 = vpop.f32.mrb[5].mxu1 }
  0xe4   :  { %v1377_v55 = vpack.c.bf16 %v1592_v54, %v1591_v48  ;;  %v395_v56 = vpop.f32.mrb[7].mxu0  ;;  %v702_v1 = vmul.f32 %v1592_v54, %v1592_v54  ;;  %v1887_v31 = vpop.f32.mrb[6].mxu1 }
  0xe5   :  { %v762_v57 = vadd.f32 %v761_v53, %v699_v52  ;;  %v635_v58 = vadd.f32 %v634_v51, %v395_v56  ;;  %v700_v59 = vmul.f32 %v395_v56, %v395_v56  ;;  %v1372_v60 = vpack.c.bf16 %v395_v56, %v392_v50  ;;  %v1889_v36 = vpop.f32.mrb[7].mxu1 }
  0xe6   :  { %1521 = vst [vmem:[#allocation2 + $0x18] sm:$0xff] %v1377_v55   ;;  %v1457_v39 = vpack.c.bf16 %v1887_v31, %v1883_v24  ;;  %v1452_v44 = vpack.c.bf16 %v1889_v36, %v1885_v29 }
  0xe7   :  { %v636_v62 = vadd.f32 %v1591_v48, %v635_v58  ;;  %v763_v63 = vadd.f32 %v762_v57, %v700_v59  ;;  %1520 = vst [vmem:[#allocation2 + $0x10] sm:$0xff] %v1372_v60  }
  0xe8   :  { %1537 = vst [vmem:[#allocation2 + $0x98] sm:$0xff] %v1457_v39   ;;  %1536 = vst [vmem:[#allocation2 + $0x90] sm:$0xff] %v1452_v44  }
  0xe9   :  { %v764_v2 = vadd.f32 %v763_v63, %v701_v61  ;;  %v1595_v3 = vpop.f32.mrb[8].mxu0  ;;  %v637_v4 = vadd.f32 %v1592_v54, %v636_v62 }
  0xea   :  { %v408_v6 = vpop.f32.mrb[9].mxu0  ;;  %v705_v21 = vmul.f32 %v1595_v3, %v1595_v3 }
  0xeb   :  { %v638_v8 = vadd.f32 %v637_v4, %v408_v6  ;;  %v703_v9 = vmul.f32 %v408_v6, %v408_v6  ;;  %v765_v10 = vadd.f32 %v764_v2, %v702_v1  ;;  %v1596_v11 = vpop.f32.mrb[10].mxu0 }
  0xec   :  { %v1387_v13 = vpack.c.bf16 %v1596_v11, %v1595_v3  ;;  %v411_v14 = vpop.f32.mrb[11].mxu0  ;;  %v706_v25 = vmul.f32 %v1596_v11, %v1596_v11 }
  0xed   :  { %v766_v16 = vadd.f32 %v765_v10, %v703_v9  ;;  %v639_v17 = vadd.f32 %v638_v8, %v411_v14  ;;  %v704_v18 = vmul.f32 %v411_v14, %v411_v14  ;;  %v1382_v19 = vpack.c.bf16 %v411_v14, %v408_v6 }
  0xee   :  { %1523 = vst [vmem:[#allocation2 + $0x28] sm:$0xff] %v1387_v13  }
  0xef   :  { %v640_v22 = vadd.f32 %v1595_v3, %v639_v17  ;;  %v767_v23 = vadd.f32 %v766_v16, %v704_v18  ;;  %1522 = vst [vmem:[#allocation2 + $0x20] sm:$0xff] %v1382_v19  }
  0xf1   :  { %v768_v26 = vadd.f32 %v767_v23, %v705_v21  ;;  %v1599_v27 = vpop.f32.mrb[12].mxu0  ;;  %v641_v28 = vadd.f32 %v1596_v11, %v640_v22 }
  0xf2   :  { %v424_v30 = vpop.f32.mrb[13].mxu0  ;;  %v709_v45 = vmul.f32 %v1599_v27, %v1599_v27 }
  0xf3   :  { %v642_v32 = vadd.f32 %v641_v28, %v424_v30  ;;  %v707_v33 = vmul.f32 %v424_v30, %v424_v30  ;;  %v769_v34 = vadd.f32 %v768_v26, %v706_v25  ;;  %v1600_v35 = vpop.f32.mrb[14].mxu0  ;;  %v1895_v48 = vpop.f32.mrb[8].mxu1 }
  0xf4   :  { %v1397_v37 = vpack.c.bf16 %v1600_v35, %v1599_v27  ;;  %v427_v38 = vpop.f32.mrb[15].mxu0  ;;  %v710_v49 = vmul.f32 %v1600_v35, %v1600_v35  ;;  %v1897_v53 = vpop.f32.mrb[9].mxu1 }
  0xf5   :  { %v770_v40 = vadd.f32 %v769_v34, %v707_v33  ;;  %v643_v41 = vadd.f32 %v642_v32, %v427_v38  ;;  %v708_v42 = vmul.f32 %v427_v38, %v427_v38  ;;  %v1392_v43 = vpack.c.bf16 %v427_v38, %v424_v30  ;;  %v1899_v55 = vpop.f32.mrb[10].mxu1 }
  0xf6   :  { %1525 = vst [vmem:[#allocation2 + $0x38] sm:$0xff] %v1397_v37   ;;  %v1901_v60 = vpop.f32.mrb[11].mxu1  ;;  %v1467_v63 = vpack.c.bf16 %v1899_v55, %v1895_v48 }
  0xf7   :  { %v644_v46 = vadd.f32 %v1599_v27, %v643_v41  ;;  %v771_v47 = vadd.f32 %v770_v40, %v708_v42  ;;  %1524 = vst [vmem:[#allocation2 + $0x30] sm:$0xff] %v1392_v43   ;;  %v1462_v6 = vpack.c.bf16 %v1901_v60, %v1897_v53 }
  0xf8   :  { %1539 = vst [vmem:[#allocation2 + $0xa8] sm:$0xff] %v1467_v63  }
  0xf9   :  { %v772_v50 = vadd.f32 %v771_v47, %v709_v45  ;;  %v1603_v51 = vpop.f32.mrb[16].mxu0  ;;  %v645_v52 = vadd.f32 %v1600_v35, %v644_v46  ;;  %1538 = vst [vmem:[#allocation2 + $0xa0] sm:$0xff] %v1462_v6  }
  0xfa   :  { %v440_v54 = vpop.f32.mrb[17].mxu0  ;;  %v713_v8 = vmul.f32 %v1603_v51, %v1603_v51 }
  0xfb   :  { %v646_v56 = vadd.f32 %v645_v52, %v440_v54  ;;  %v711_v57 = vmul.f32 %v440_v54, %v440_v54  ;;  %v773_v58 = vadd.f32 %v772_v50, %v710_v49  ;;  %v1604_v59 = vpop.f32.mrb[18].mxu0  ;;  %v1907_v11 = vpop.f32.mrb[12].mxu1 }
  0xfc   :  { %v1407_v61 = vpack.c.bf16 %v1604_v59, %v1603_v51  ;;  %v443_v62 = vpop.f32.mrb[19].mxu0  ;;  %v714_v13 = vmul.f32 %v1604_v59, %v1604_v59  ;;  %v1909_v17 = vpop.f32.mrb[13].mxu1 }
  0xfd   :  { %v774_v1 = vadd.f32 %v773_v58, %v711_v57  ;;  %v647_v2 = vadd.f32 %v646_v56, %v443_v62  ;;  %v712_v3 = vmul.f32 %v443_v62, %v443_v62  ;;  %v1402_v4 = vpack.c.bf16 %v443_v62, %v440_v54  ;;  %v1911_v19 = vpop.f32.mrb[14].mxu1 }
  0xfe   :  { %1527 = vst [vmem:[#allocation2 + $0x48] sm:$0xff] %v1407_v61   ;;  %v1913_v25 = vpop.f32.mrb[15].mxu1  ;;  %v1477_v28 = vpack.c.bf16 %v1911_v19, %v1907_v11 }
  0xff   :  { %v648_v9 = vadd.f32 %v1603_v51, %v647_v2  ;;  %v775_v10 = vadd.f32 %v774_v1, %v712_v3  ;;  %1526 = vst [vmem:[#allocation2 + $0x40] sm:$0xff] %v1402_v4   ;;  %v1472_v35 = vpack.c.bf16 %v1913_v25, %v1909_v17 }
 0x100   :  { %1541 = vst [vmem:[#allocation2 + $0xb8] sm:$0xff] %v1477_v28  }
 0x101   :  { %v776_v14 = vadd.f32 %v775_v10, %v713_v8  ;;  %v1607_v15 = vpop.f32.mrb[20].mxu0  ;;  %v649_v16 = vadd.f32 %v1604_v59, %v648_v9  ;;  %1540 = vst [vmem:[#allocation2 + $0xb0] sm:$0xff] %v1472_v35  }
 0x102   :  { %v456_v18 = vpop.f32.mrb[21].mxu0  ;;  %v717_v37 = vmul.f32 %v1607_v15, %v1607_v15 }
 0x103   :  { %v650_v20 = vadd.f32 %v649_v16, %v456_v18  ;;  %v715_v21 = vmul.f32 %v456_v18, %v456_v18  ;;  %v777_v22 = vadd.f32 %v776_v14, %v714_v13  ;;  %v1608_v23 = vpop.f32.mrb[22].mxu0  ;;  %v1919_v40 = vpop.f32.mrb[16].mxu1 }
 0x104   :  { %v1417_v26 = vpack.c.bf16 %v1608_v23, %v1607_v15  ;;  %v459_v27 = vpop.f32.mrb[23].mxu0  ;;  %v718_v41 = vmul.f32 %v1608_v23, %v1608_v23  ;;  %v1921_v45 = vpop.f32.mrb[17].mxu1 }
 0x105   :  { %v778_v30 = vadd.f32 %v777_v22, %v715_v21  ;;  %v651_v32 = vadd.f32 %v650_v20, %v459_v27  ;;  %v716_v33 = vmul.f32 %v459_v27, %v459_v27  ;;  %v1412_v34 = vpack.c.bf16 %v459_v27, %v456_v18  ;;  %v1923_v47 = vpop.f32.mrb[18].mxu1 }
 0x106   :  { %1529 = vst [vmem:[#allocation2 + $0x58] sm:$0xff] %v1417_v26   ;;  %v1925_v54 = vpop.f32.mrb[19].mxu1  ;;  %v1487_v58 = vpack.c.bf16 %v1923_v47, %v1919_v40 }
 0x107   :  { %v652_v38 = vadd.f32 %v1607_v15, %v651_v32  ;;  %v779_v39 = vadd.f32 %v778_v30, %v716_v33  ;;  %1528 = vst [vmem:[#allocation2 + $0x50] sm:$0xff] %v1412_v34   ;;  %v1482_v1 = vpack.c.bf16 %v1925_v54, %v1921_v45 }
 0x108   :  { %1543 = vst [vmem:[#allocation2 + $0xc8] sm:$0xff] %v1487_v58  }
 0x109   :  { %v780_v42 = vadd.f32 %v779_v39, %v717_v37  ;;  %v1611_v43 = vpop.f32.mrb[24].mxu0  ;;  %v653_v44 = vadd.f32 %v1608_v23, %v652_v38  ;;  %1542 = vst [vmem:[#allocation2 + $0xc0] sm:$0xff] %v1482_v1  }
 0x10a   :  { %v472_v46 = vpop.f32.mrb[25].mxu0  ;;  %v721_v2 = vmul.f32 %v1611_v43, %v1611_v43 }
 0x10b   :  { %v654_v49 = vadd.f32 %v653_v44, %v472_v46  ;;  %v719_v50 = vmul.f32 %v472_v46, %v472_v46  ;;  %v781_v51 = vadd.f32 %v780_v42, %v718_v41  ;;  %v1612_v52 = vpop.f32.mrb[26].mxu0  ;;  %v1931_v6 = vpop.f32.mrb[20].mxu1 }
 0x10c   :  { %v1427_v56 = vpack.c.bf16 %v1612_v52, %v1611_v43  ;;  %v475_v57 = vpop.f32.mrb[27].mxu0  ;;  %v722_v8 = vmul.f32 %v1612_v52, %v1612_v52  ;;  %v1933_v14 = vpop.f32.mrb[21].mxu1 }
 0x10d   :  { %v782_v59 = vadd.f32 %v781_v51, %v719_v50  ;;  %v655_v61 = vadd.f32 %v654_v49, %v475_v57  ;;  %v720_v62 = vmul.f32 %v475_v57, %v475_v57  ;;  %v1422_v63 = vpack.c.bf16 %v475_v57, %v472_v46  ;;  %v1935_v16 = vpop.f32.mrb[22].mxu1 }
 0x10e   :  { %1531 = vst [vmem:[#allocation2 + $0x68] sm:$0xff] %v1427_v56   ;;  %v1937_v23 = vpop.f32.mrb[23].mxu1  ;;  %v1497_v28 = vpack.c.bf16 %v1935_v16, %v1931_v6  ;;  %v727_v46 = vmul.f32 %v1873_v5, %v1873_v5 }
 0x10f   :  { %v656_v3 = vadd.f32 %v1611_v43, %v655_v61  ;;  %v783_v4 = vadd.f32 %v782_v59, %v720_v62  ;;  %1530 = vst [vmem:[#allocation2 + $0x60] sm:$0xff] %v1422_v63   ;;  %v1492_v35 = vpack.c.bf16 %v1937_v23, %v1933_v14  ;;  %v728_v62 = vmul.f32 %v1877_v12, %v1877_v12 }
 0x110   :  { %1545 = vst [vmem:[#allocation2 + $0xd8] sm:$0xff] %v1497_v28  }
 0x111   :  { %v784_v9 = vadd.f32 %v783_v4, %v721_v2  ;;  %v1615_v10 = vpop.f32.mrb[28].mxu0  ;;  %v657_v13 = vadd.f32 %v1612_v52, %v656_v3  ;;  %1544 = vst [vmem:[#allocation2 + $0xd0] sm:$0xff] %v1492_v35   ;;  %v730_v3 = vmul.f32 %v1875_v7, %v1875_v7 }
 0x112   :  { %v488_v15 = vpop.f32.mrb[29].mxu0  ;;  %v725_v37 = vmul.f32 %v1615_v10, %v1615_v10 }
 0x113   :  { %v658_v18 = vadd.f32 %v657_v13, %v488_v15  ;;  %v723_v20 = vmul.f32 %v488_v15, %v488_v15  ;;  %v785_v21 = vadd.f32 %v784_v9, %v722_v8  ;;  %v1616_v22 = vpop.f32.mrb[30].mxu0  ;;  %v1943_v41 = vpop.f32.mrb[24].mxu1 }
 0x114   :  { %v1437_v26 = vpack.c.bf16 %v1616_v22, %v1615_v10  ;;  %v491_v27 = vpop.f32.mrb[31].mxu0  ;;  %v726_v42 = vmul.f32 %v1616_v22, %v1616_v22  ;;  %v1947_v49 = vpop.f32.mrb[25].mxu1 }
 0x115   :  { %v786_v30 = vadd.f32 %v785_v21, %v723_v20  ;;  %v659_v32 = vadd.f32 %v658_v18, %v491_v27  ;;  %v724_v33 = vmul.f32 %v491_v27, %v491_v27  ;;  %v1432_v34 = vpack.c.bf16 %v491_v27, %v488_v15  ;;  %v1949_v50 = vpop.f32.mrb[26].mxu1 }
 0x116   :  { %1533 = vst [vmem:[#allocation2 + $0x78] sm:$0xff] %v1437_v26   ;;  %v1507_v56 = vpack.c.bf16 %v1949_v50, %v1943_v41  ;;  %v1954_v57 = vpop.f32.mrb[27].mxu1 }
 0x117   :  { %v660_v38 = vadd.f32 %v1615_v10, %v659_v32  ;;  %v787_v39 = vadd.f32 %v786_v30, %v724_v33  ;;  %1532 = vst [vmem:[#allocation2 + $0x70] sm:$0xff] %v1432_v34   ;;  %v1502_v58 = vpack.c.bf16 %v1954_v57, %v1947_v49 }
 0x118   :  { %1547 = vst [vmem:[#allocation2 + $0xe8] sm:$0xff] %v1507_v56  }
 0x119   :  { %v788_v43 = vadd.f32 %v787_v39, %v725_v37  ;;  %v661_v44 = vadd.f32 %v1616_v22, %v660_v38  ;;  %1546 = vst [vmem:[#allocation2 + $0xe0] sm:$0xff] %v1502_v58   ;;  %v732_v22 = vmul.f32 %v1889_v36, %v1889_v36 }
 0x11b   :  { %v662_v51 = vadd.f32 %v661_v44, %v1873_v5  ;;  %v789_v52 = vadd.f32 %v788_v43, %v726_v42  ;;  %v729_v5 = vmul.f32 %v1871_v0, %v1871_v0  ;;  %v1964_v2 = vpop.f32.mrb[28].mxu1 }
 0x11c   :  { %v1971_v9 = vpop.f32.mrb[29].mxu1 }
 0x11d   :  { %v790_v59 = vadd.f32 %v789_v52, %v727_v46  ;;  %v663_v61 = vadd.f32 %v662_v51, %v1877_v12  ;;  %v731_v12 = vmul.f32 %v1885_v29, %v1885_v29  ;;  %v1973_v10 = vpop.f32.mrb[30].mxu1 }
 0x11e   :  { %v1517_v15 = vpack.c.bf16 %v1973_v10, %v1964_v2  ;;  %v1978_v18 = vpop.f32.mrb[31].mxu1 }
 0x11f   :  { %v664_v63 = vadd.f32 %v1871_v0, %v663_v61  ;;  %v791_v1 = vadd.f32 %v790_v59, %v728_v62  ;;  %v1512_v20 = vpack.c.bf16 %v1978_v18, %v1971_v9 }
 0x120   :  { %1549 = vst [vmem:[#allocation2 + $0xf8] sm:$0xff] %v1517_v15  }
 0x121   :  { %v792_v4 = vadd.f32 %v791_v1, %v729_v5  ;;  %v665_v8 = vadd.f32 %v1875_v7, %v664_v63  ;;  %1548 = vst [vmem:[#allocation2 + $0xf0] sm:$0xff] %v1512_v20  }
 0x123   :  { %v666_v0 = vadd.f32 %v665_v8, %v1885_v29  ;;  %v793_v13 = vadd.f32 %v792_v4, %v730_v3  ;;  %v733_v29 = vmul.f32 %v1883_v24, %v1883_v24 }
 0x125   :  { %v794_v7 = vadd.f32 %v793_v13, %v731_v12  ;;  %v667_v21 = vadd.f32 %v666_v0, %v1889_v36 }
 0x127   :  { %v668_v26 = vadd.f32 %v1883_v24, %v667_v21  ;;  %v795_v27 = vadd.f32 %v794_v7, %v732_v22 }
 0x128   :  { %1699 = shalt.err (!%p1696_p4)
}
 0x129   :  { %s1700_s30 = scalar_lea.hbm %s2083_s2, 4096 }
 0x12a   :  { %p1701_p5 = scmp.ne.s32.totalorder %s2083_s2, %s1700_s30  ;;  %p1704_p6 = scmp.lt.u32.totalorder %s1700_s30, %s2083_s2 }
 0x12c   :  { %p1706_p7 = pnand %p1704_p6, %p1701_p5 }
 0x12e   :  { %1709 = shalt.err (!%p1706_p7)
}
 0x12f   :  { %s1713_s9 = smov 64   ;;  %s1714_s10 = smov 4   ;;  %v734_v24 = vmul.f32 %v1887_v31, %v1887_v31  ;;  %v796_v36 = vadd.f32 %v795_v27, %v733_v29  ;;  %v669_v28 = vadd.f32 %v1887_v31, %v668_v26  ;;  %v735_v30 = vmul.f32 %v1897_v53, %v1897_v53 }
 0x130   :  { %1154 = dma.vmem_to_hbm [thread:$0]  %s1149_s26, 4096, %s2083_s2, [#allocation3], %s1713_s9, %s1713_s9, %s1714_s10   ;;  %v736_v37 = vmul.f32 %v1901_v60, %v1901_v60  ;;  %v737_v38 = vmul.f32 %v1895_v48, %v1895_v48  ;;  %v738_v31 = vmul.f32 %v1899_v55, %v1899_v55  ;;  %v740_v56 = vmul.f32 %v1913_v25, %v1913_v25 }
 0x131   :  { %v670_v32 = vadd.f32 %v669_v28, %v1897_v53  ;;  %v797_v33 = vadd.f32 %v796_v36, %v734_v24  ;;  %v739_v53 = vmul.f32 %v1909_v17, %v1909_v17  ;;  %v744_v3 = vmul.f32 %v1925_v54, %v1925_v54 }
 0x132   :  { %v748_v7 = vmul.f32 %v1937_v23, %v1937_v23  ;;  %v752_v28 = vmul.f32 %v1954_v57, %v1954_v57 }
 0x133   :  { %v798_v34 = vadd.f32 %v797_v33, %v735_v30  ;;  %v671_v35 = vadd.f32 %v670_v32, %v1901_v60 }
 0x135   :  { %v672_v39 = vadd.f32 %v1895_v48, %v671_v35  ;;  %v799_v42 = vadd.f32 %v798_v34, %v736_v37  ;;  %v741_v48 = vmul.f32 %v1907_v11, %v1907_v11 }
 0x137   :  { %v800_v43 = vadd.f32 %v799_v42, %v737_v38  ;;  %v673_v44 = vadd.f32 %v1899_v55, %v672_v39  ;;  %v742_v55 = vmul.f32 %v1911_v19, %v1911_v19  ;;  %v756_v39 = vmul.f32 %v1978_v18, %v1978_v18 }
 0x139   :  { %v674_v46 = vadd.f32 %v673_v44, %v1909_v17  ;;  %v801_v51 = vadd.f32 %v800_v43, %v738_v31  ;;  %v743_v17 = vmul.f32 %v1921_v45, %v1921_v45 }
 0x13b   :  { %v802_v52 = vadd.f32 %v801_v51, %v739_v53  ;;  %v675_v60 = vadd.f32 %v674_v46, %v1913_v25 }
 0x13d   :  { %v676_v58 = vadd.f32 %v1907_v11, %v675_v60  ;;  %v803_v59 = vadd.f32 %v802_v52, %v740_v56  ;;  %v745_v11 = vmul.f32 %v1919_v40, %v1919_v40 }
 0x13f   :  { %v804_v61 = vadd.f32 %v803_v59, %v741_v48  ;;  %v677_v62 = vadd.f32 %v1911_v19, %v676_v58  ;;  %v746_v19 = vmul.f32 %v1923_v47, %v1923_v47 }
 0x141   :  { %v678_v5 = vadd.f32 %v677_v62, %v1921_v45  ;;  %v805_v63 = vadd.f32 %v804_v61, %v742_v55  ;;  %v747_v45 = vmul.f32 %v1933_v14, %v1933_v14 }
 0x143   :  { %v806_v1 = vadd.f32 %v805_v63, %v743_v17  ;;  %v679_v25 = vadd.f32 %v678_v5, %v1925_v54 }
 0x145   :  { %v680_v4 = vadd.f32 %v1919_v40, %v679_v25  ;;  %v807_v8 = vadd.f32 %v806_v1, %v744_v3  ;;  %v749_v40 = vmul.f32 %v1931_v6, %v1931_v6 }
 0x147   :  { %v808_v12 = vadd.f32 %v807_v8, %v745_v11  ;;  %v681_v0 = vadd.f32 %v1923_v47, %v680_v4  ;;  %v750_v47 = vmul.f32 %v1935_v16, %v1935_v16 }
 0x149   :  { %v682_v13 = vadd.f32 %v681_v0, %v1933_v14  ;;  %v809_v15 = vadd.f32 %v808_v12, %v746_v19  ;;  %v751_v14 = vmul.f32 %v1947_v49, %v1947_v49 }
 0x14b   :  { %v810_v20 = vadd.f32 %v809_v15, %v747_v45  ;;  %v683_v54 = vadd.f32 %v682_v13, %v1937_v23 }
 0x14d   :  { %v684_v21 = vadd.f32 %v1931_v6, %v683_v54  ;;  %v811_v22 = vadd.f32 %v810_v20, %v748_v7  ;;  %v753_v6 = vmul.f32 %v1943_v41, %v1943_v41 }
 0x14f   :  { %v812_v29 = vadd.f32 %v811_v22, %v749_v40  ;;  %v685_v26 = vadd.f32 %v1935_v16, %v684_v21  ;;  %v754_v16 = vmul.f32 %v1949_v50, %v1949_v50 }
 0x151   :  { %v686_v27 = vadd.f32 %v685_v26, %v1947_v49  ;;  %v813_v24 = vadd.f32 %v812_v29, %v750_v47  ;;  %v755_v49 = vmul.f32 %v1971_v9, %v1971_v9 }
 0x153   :  { %v814_v36 = vadd.f32 %v813_v24, %v751_v14  ;;  %v687_v23 = vadd.f32 %v686_v27, %v1954_v57 }
 0x155   :  { %v688_v30 = vadd.f32 %v1943_v41, %v687_v23  ;;  %v815_v32 = vadd.f32 %v814_v36, %v752_v28  ;;  %v757_v41 = vmul.f32 %v1964_v2, %v1964_v2 }
 0x157   :  { %v816_v33 = vadd.f32 %v815_v32, %v753_v6  ;;  %v689_v34 = vadd.f32 %v1949_v50, %v688_v30  ;;  %v758_v50 = vmul.f32 %v1973_v10, %v1973_v10 }
 0x159   :  { %v690_v35 = vadd.f32 %v689_v34, %v1971_v9  ;;  %v817_v37 = vadd.f32 %v816_v33, %v754_v16 }
 0x15b   :  { %v818_v38 = vadd.f32 %v817_v37, %v755_v49  ;;  %v691_v57 = vadd.f32 %v690_v35, %v1978_v18 }
 0x15d   :  { %v692_v42 = vadd.f32 %v1964_v2, %v691_v57  ;;  %v819_v31 = vadd.f32 %v818_v38, %v756_v39 }
 0x15f   :  { %v693_v43 = vadd.f32 %v1973_v10, %v692_v42  ;;  %v820_v44 = vadd.f32 %v819_v31, %v757_v41 }
 0x161   :  { %694 = vst [vmem:[%s2084_s3] sm:$0xff] %v693_v43  ;;  %v821_v9 = vadd.f32 %v820_v44, %v758_v50 }
 0x163   :  { %822 = vst [vmem:[%s2085_s4] sm:$0xff] %v821_v9 }
 0x164   :  { %1710 = dma.done.wait [#allocation3], 4096  }
 0x165   :  { %1711 = vsyncadd [#allocation3], 4294963200 }
 0x166   :  { %1166 = vsyncpa [#allocation3], 1 }

// kernel: decoder_block_forward.7
= control target key start
LH: loop header
LB: loop body
LE: loop exit
PB: predicated region body
PF: predicated region fallthrough
CT: control target
= control target key end

     0   :  { %s1382_s12 = smov 0   ;;  %s1875_s0 = inlined_call_operand.vmem [shape: bf16[2048,128], index: 0, kind: input, shape index: {}]   ;;  %s1876_s1 = inlined_call_operand.vmem [shape: f32[1,128], index: 1, kind: input, shape index: {}]   ;;  %s1877_s2 = inlined_call_operand.vmem [shape: f32[1,128], index: 2, kind: input, shape index: {}]   ;;  %s1878_s3 = inlined_call_operand.vmem [shape: f32[2048,128], index: 3, kind: output, shape index: {}]  }
   0x1 LB: > { %s1012_s13 = sadd.s32 4294967295, %s1360_s12   ;;  %p1016_p0 = scmp.ge.s32.totalorder %s1360_s12, 1  ;;  %s1360_s12 = sphi %s1382_s12, %s13_s12  }
   0x2   : > { %p138_p1 = scmp.lt.s32.totalorder %s1360_s12, 3 }
   0x4   : > { %p139_p2 = pnand %p1016_p0, %p138_p1 }
   0x5   : > { %s1017_s14 = sshll.u32 (!%p139_p2), %s1012_s13, 7  ;;  %v1401_v0 = vld [vmem:[%s1876_s1] ss:$0 sm:$0xff] (!%p139_p2) }
   0x6   : > { %142 = sbr.rel (%p139_p2) target bundleno = 149 (0x95), region = 32  ;;  %p163_p3 = scmp.lt.s32.totalorder (!%p139_p2), %s1017_s14, 255  ;;  %v1410_v9 = vld [vmem:[%s1877_s2] ss:$0 sm:$0xff] (!%p139_p2) }
   0xd   : > { %s1880_s14 = smov (!%p163_p3, %s1017_s14), 255 }
   0xe   : > { %s1018_s15 = sshll.u32 %s1880_s14, 2  ;;  %s1020_s23 = sshll.u32 %s1880_s14, 3 }
   0xf   : > { %s1396_s18 = scalar_lea.vmem %s1875_s0, %s1018_s15  ;;  %s1428_s26 = scalar_lea.vmem %s1878_s3, %s1020_s23 }
  0x10   : > { %v1026_v1 = vld [vmem:[%s1396_s18] sm:$0xff]   ;;  %v1281_v2 = vld [vmem:[%s1396_s18 + $0x8] sm:$0xff]   ;;  %v1282_v3 = vld [vmem:[%s1396_s18 + $0x10] sm:$0xff]  }
  0x11   : > { %v1027_v4 = vunpack.c.l.bf16 %v1026_v1  ;;  %v1028_v5 = vunpack.c.h.bf16 %v1026_v1  ;;  %v1031_v6 = vunpack.c.l.bf16 %v1281_v2  ;;  %v1032_v7 = vunpack.c.h.bf16 %v1281_v2  ;;  %v1283_v8 = vld [vmem:[%s1396_s18 + $0x18] sm:$0xff]   ;;  %v1284_v30 = vld [vmem:[%s1396_s18 + $0x20] sm:$0xff]   ;;  %v1285_v31 = vld [vmem:[%s1396_s18 + $0x28] sm:$0xff]  }
  0x12   : > { %v1035_v10 = vunpack.c.l.bf16 %v1282_v3  ;;  %v1036_v11 = vunpack.c.h.bf16 %v1282_v3  ;;  %v1039_v12 = vunpack.c.l.bf16 %v1283_v8  ;;  %v1040_v13 = vunpack.c.h.bf16 %v1283_v8  ;;  %v1286_v36 = vld [vmem:[%s1396_s18 + $0x30] sm:$0xff]   ;;  %v1287_v37 = vld [vmem:[%s1396_s18 + $0x38] sm:$0xff]   ;;  %v1288_v3 = vld [vmem:[%s1396_s18 + $0x40] sm:$0xff]  }
  0x13   : > { %v437_v14 = vmul.f32 %v1027_v4, %v1401_v0  ;;  %v438_v15 = vmul.f32 %v1028_v5, %v1401_v0  ;;  %v439_v16 = vmul.f32 %v1031_v6, %v1401_v0  ;;  %v440_v17 = vmul.f32 %v1032_v7, %v1401_v0  ;;  %v1289_v4 = vld [vmem:[%s1396_s18 + $0x48] sm:$0xff]  }
  0x14   : > { %v441_v18 = vmul.f32 %v1035_v10, %v1401_v0  ;;  %v442_v19 = vmul.f32 %v1036_v11, %v1401_v0  ;;  %v443_v20 = vmul.f32 %v1039_v12, %v1401_v0  ;;  %v444_v21 = vmul.f32 %v1040_v13, %v1401_v0  ;;  %v1290_v10 = vld [vmem:[%s1396_s18 + $0x50] sm:$0xff]   ;;  %v1291_v11 = vld [vmem:[%s1396_s18 + $0x58] sm:$0xff]  }
  0x15   : > { %v572_v22 = vadd.f32 %v1410_v9, %v437_v14  ;;  %v573_v23 = vadd.f32 %v1410_v9, %v438_v15  ;;  %v574_v24 = vadd.f32 %v1410_v9, %v439_v16  ;;  %v575_v25 = vadd.f32 %v1410_v9, %v440_v17 }
  0x16   : > { %v576_v26 = vadd.f32 %v1410_v9, %v441_v18  ;;  %v577_v27 = vadd.f32 %v1410_v9, %v442_v19  ;;  %v578_v28 = vadd.f32 %v1410_v9, %v443_v20  ;;  %v579_v29 = vadd.f32 %v1410_v9, %v444_v21 }
  0x17   : > { %v700_v32 = vmax.f32 %v572_v22, 0.0  ;;  %v701_v33 = vmax.f32 %v573_v23, 0.0  ;;  %v702_v34 = vmax.f32 %v574_v24, 0.0  ;;  %v703_v35 = vmax.f32 %v575_v25, 0.0 }
  0x18   : > { %v704_v38 = vmax.f32 %v576_v26, 0.0  ;;  %v705_v39 = vmax.f32 %v577_v27, 0.0  ;;  %v706_v40 = vmax.f32 %v578_v28, 0.0  ;;  %v707_v41 = vmax.f32 %v579_v29, 0.0 }
  0x19   : > { %828 = vst [vmem:[%s1428_s26] sm:$0xff] %v700_v32  ;;  %829 = vst [vmem:[%s1428_s26 + $0x8] sm:$0xff] %v701_v33  ;;  %v1043_v42 = vunpack.c.l.bf16 %v1284_v30  ;;  %v1044_v43 = vunpack.c.h.bf16 %v1284_v30  ;;  %v1047_v44 = vunpack.c.l.bf16 %v1285_v31  ;;  %v1048_v45 = vunpack.c.h.bf16 %v1285_v31 }
  0x1a   : > { %830 = vst [vmem:[%s1428_s26 + $0x10] sm:$0xff] %v702_v34  ;;  %831 = vst [vmem:[%s1428_s26 + $0x18] sm:$0xff] %v703_v35  ;;  %v1051_v46 = vunpack.c.l.bf16 %v1286_v36  ;;  %v1052_v47 = vunpack.c.h.bf16 %v1286_v36  ;;  %v1055_v48 = vunpack.c.l.bf16 %v1287_v37  ;;  %v1056_v49 = vunpack.c.h.bf16 %v1287_v37 }
  0x1b   : > { %832 = vst [vmem:[%s1428_s26 + $0x20] sm:$0xff] %v704_v38  ;;  %833 = vst [vmem:[%s1428_s26 + $0x28] sm:$0xff] %v705_v39  ;;  %v445_v50 = vmul.f32 %v1043_v42, %v1401_v0  ;;  %v446_v51 = vmul.f32 %v1044_v43, %v1401_v0  ;;  %v447_v52 = vmul.f32 %v1047_v44, %v1401_v0  ;;  %v1059_v16 = vunpack.c.l.bf16 %v1288_v3 }
  0x1c   : > { %834 = vst [vmem:[%s1428_s26 + $0x30] sm:$0xff] %v706_v40  ;;  %835 = vst [vmem:[%s1428_s26 + $0x38] sm:$0xff] %v707_v41  ;;  %v448_v53 = vmul.f32 %v1048_v45, %v1401_v0  ;;  %v449_v54 = vmul.f32 %v1051_v46, %v1401_v0  ;;  %v450_v55 = vmul.f32 %v1052_v47, %v1401_v0  ;;  %v1060_v17 = vunpack.c.h.bf16 %v1288_v3  ;;  %v1292_v40 = vld [vmem:[%s1396_s18 + $0x60] sm:$0xff]   ;;  %v1293_v41 = vld [vmem:[%s1396_s18 + $0x68] sm:$0xff]  }
  0x1d   : > { %v451_v56 = vmul.f32 %v1055_v48, %v1401_v0  ;;  %v452_v57 = vmul.f32 %v1056_v49, %v1401_v0  ;;  %v580_v58 = vadd.f32 %v1410_v9, %v445_v50  ;;  %v581_v59 = vadd.f32 %v1410_v9, %v446_v51  ;;  %v1294_v46 = vld [vmem:[%s1396_s18 + $0x70] sm:$0xff]   ;;  %v1295_v47 = vld [vmem:[%s1396_s18 + $0x78] sm:$0xff]  }
  0x1e   : > { %v582_v60 = vadd.f32 %v1410_v9, %v447_v52  ;;  %v583_v61 = vadd.f32 %v1410_v9, %v448_v53  ;;  %v584_v62 = vadd.f32 %v1410_v9, %v449_v54  ;;  %v585_v63 = vadd.f32 %v1410_v9, %v450_v55 }
  0x1f   : > { %v586_v1 = vadd.f32 %v1410_v9, %v451_v56  ;;  %v587_v2 = vadd.f32 %v1410_v9, %v452_v57  ;;  %v708_v5 = vmax.f32 %v580_v58, 0.0  ;;  %v709_v6 = vmax.f32 %v581_v59, 0.0 }
  0x20   : > { %v710_v7 = vmax.f32 %v582_v60, 0.0  ;;  %v711_v8 = vmax.f32 %v583_v61, 0.0  ;;  %v712_v12 = vmax.f32 %v584_v62, 0.0  ;;  %v713_v13 = vmax.f32 %v585_v63, 0.0 }
  0x21   : > { %v714_v14 = vmax.f32 %v586_v1, 0.0  ;;  %v715_v15 = vmax.f32 %v587_v2, 0.0  ;;  %836 = vst [vmem:[%s1428_s26 + $0x40] sm:$0xff] %v708_v5  ;;  %837 = vst [vmem:[%s1428_s26 + $0x48] sm:$0xff] %v709_v6  ;;  %v1063_v18 = vunpack.c.l.bf16 %v1289_v4  ;;  %v1064_v19 = vunpack.c.h.bf16 %v1289_v4 }
  0x22   : > { %838 = vst [vmem:[%s1428_s26 + $0x50] sm:$0xff] %v710_v7  ;;  %839 = vst [vmem:[%s1428_s26 + $0x58] sm:$0xff] %v711_v8  ;;  %v1067_v20 = vunpack.c.l.bf16 %v1290_v10  ;;  %v1068_v21 = vunpack.c.h.bf16 %v1290_v10  ;;  %v1071_v22 = vunpack.c.l.bf16 %v1291_v11  ;;  %v1072_v23 = vunpack.c.h.bf16 %v1291_v11 }
  0x23   : > { %840 = vst [vmem:[%s1428_s26 + $0x60] sm:$0xff] %v712_v12  ;;  %841 = vst [vmem:[%s1428_s26 + $0x68] sm:$0xff] %v713_v13  ;;  %v453_v24 = vmul.f32 %v1059_v16, %v1401_v0  ;;  %v454_v25 = vmul.f32 %v1060_v17, %v1401_v0  ;;  %v455_v26 = vmul.f32 %v1063_v18, %v1401_v0  ;;  %v1075_v52 = vunpack.c.l.bf16 %v1292_v40 }
  0x24   : > { %842 = vst [vmem:[%s1428_s26 + $0x70] sm:$0xff] %v714_v14  ;;  %843 = vst [vmem:[%s1428_s26 + $0x78] sm:$0xff] %v715_v15  ;;  %v456_v27 = vmul.f32 %v1064_v19, %v1401_v0  ;;  %v457_v28 = vmul.f32 %v1067_v20, %v1401_v0  ;;  %v458_v29 = vmul.f32 %v1068_v21, %v1401_v0  ;;  %v1076_v53 = vunpack.c.h.bf16 %v1292_v40  ;;  %v1296_v14 = vld [vmem:[%s1396_s18 + $0x80] sm:$0xff]   ;;  %v1297_v15 = vld [vmem:[%s1396_s18 + $0x88] sm:$0xff]  }
  0x25   : > { %v459_v30 = vmul.f32 %v1071_v22, %v1401_v0  ;;  %v460_v31 = vmul.f32 %v1072_v23, %v1401_v0  ;;  %v588_v32 = vadd.f32 %v1410_v9, %v453_v24  ;;  %v589_v33 = vadd.f32 %v1410_v9, %v454_v25  ;;  %v1298_v20 = vld [vmem:[%s1396_s18 + $0x90] sm:$0xff]   ;;  %v1299_v21 = vld [vmem:[%s1396_s18 + $0x98] sm:$0xff]  }
  0x26   : > { %v590_v34 = vadd.f32 %v1410_v9, %v455_v26  ;;  %v591_v35 = vadd.f32 %v1410_v9, %v456_v27  ;;  %v592_v36 = vadd.f32 %v1410_v9, %v457_v28  ;;  %v593_v37 = vadd.f32 %v1410_v9, %v458_v29 }
  0x27   : > { %v594_v38 = vadd.f32 %v1410_v9, %v459_v30  ;;  %v595_v39 = vadd.f32 %v1410_v9, %v460_v31  ;;  %v716_v42 = vmax.f32 %v588_v32, 0.0  ;;  %v717_v43 = vmax.f32 %v589_v33, 0.0 }
  0x28   : > { %v718_v44 = vmax.f32 %v590_v34, 0.0  ;;  %v719_v45 = vmax.f32 %v591_v35, 0.0  ;;  %v720_v48 = vmax.f32 %v592_v36, 0.0  ;;  %v721_v49 = vmax.f32 %v593_v37, 0.0 }
  0x29   : > { %v722_v50 = vmax.f32 %v594_v38, 0.0  ;;  %v723_v51 = vmax.f32 %v595_v39, 0.0  ;;  %844 = vst [vmem:[%s1428_s26 + $0x80] sm:$0xff] %v716_v42  ;;  %845 = vst [vmem:[%s1428_s26 + $0x88] sm:$0xff] %v717_v43  ;;  %v1079_v54 = vunpack.c.l.bf16 %v1293_v41  ;;  %v1080_v55 = vunpack.c.h.bf16 %v1293_v41 }
  0x2a   : > { %846 = vst [vmem:[%s1428_s26 + $0x90] sm:$0xff] %v718_v44  ;;  %847 = vst [vmem:[%s1428_s26 + $0x98] sm:$0xff] %v719_v45  ;;  %v1083_v56 = vunpack.c.l.bf16 %v1294_v46  ;;  %v1084_v57 = vunpack.c.h.bf16 %v1294_v46  ;;  %v1087_v58 = vunpack.c.l.bf16 %v1295_v47  ;;  %v1088_v59 = vunpack.c.h.bf16 %v1295_v47 }
  0x2b   : > { %848 = vst [vmem:[%s1428_s26 + $0xa0] sm:$0xff] %v720_v48  ;;  %849 = vst [vmem:[%s1428_s26 + $0xa8] sm:$0xff] %v721_v49  ;;  %v461_v60 = vmul.f32 %v1075_v52, %v1401_v0  ;;  %v462_v61 = vmul.f32 %v1076_v53, %v1401_v0  ;;  %v463_v62 = vmul.f32 %v1079_v54, %v1401_v0  ;;  %v1091_v26 = vunpack.c.l.bf16 %v1296_v14 }
  0x2c   : > { %850 = vst [vmem:[%s1428_s26 + $0xb0] sm:$0xff] %v722_v50  ;;  %851 = vst [vmem:[%s1428_s26 + $0xb8] sm:$0xff] %v723_v51  ;;  %v464_v63 = vmul.f32 %v1080_v55, %v1401_v0  ;;  %v465_v1 = vmul.f32 %v1083_v56, %v1401_v0  ;;  %v466_v2 = vmul.f32 %v1084_v57, %v1401_v0  ;;  %v1092_v27 = vunpack.c.h.bf16 %v1296_v14  ;;  %v1300_v50 = vld [vmem:[%s1396_s18 + $0xa0] sm:$0xff]   ;;  %v1301_v51 = vld [vmem:[%s1396_s18 + $0xa8] sm:$0xff]  }
  0x2d   : > { %v467_v3 = vmul.f32 %v1087_v58, %v1401_v0  ;;  %v468_v4 = vmul.f32 %v1088_v59, %v1401_v0  ;;  %v596_v5 = vadd.f32 %v1410_v9, %v461_v60  ;;  %v597_v6 = vadd.f32 %v1410_v9, %v462_v61  ;;  %v1302_v56 = vld [vmem:[%s1396_s18 + $0xb0] sm:$0xff]   ;;  %v1303_v57 = vld [vmem:[%s1396_s18 + $0xb8] sm:$0xff]  }
  0x2e   : > { %v598_v7 = vadd.f32 %v1410_v9, %v463_v62  ;;  %v599_v8 = vadd.f32 %v1410_v9, %v464_v63  ;;  %v600_v10 = vadd.f32 %v1410_v9, %v465_v1  ;;  %v601_v11 = vadd.f32 %v1410_v9, %v466_v2 }
  0x2f   : > { %v602_v12 = vadd.f32 %v1410_v9, %v467_v3  ;;  %v603_v13 = vadd.f32 %v1410_v9, %v468_v4  ;;  %v724_v16 = vmax.f32 %v596_v5, 0.0  ;;  %v725_v17 = vmax.f32 %v597_v6, 0.0 }
  0x30   : > { %v726_v18 = vmax.f32 %v598_v7, 0.0  ;;  %v727_v19 = vmax.f32 %v599_v8, 0.0  ;;  %v728_v22 = vmax.f32 %v600_v10, 0.0  ;;  %v729_v23 = vmax.f32 %v601_v11, 0.0 }
  0x31   : > { %v730_v24 = vmax.f32 %v602_v12, 0.0  ;;  %v731_v25 = vmax.f32 %v603_v13, 0.0  ;;  %852 = vst [vmem:[%s1428_s26 + $0xc0] sm:$0xff] %v724_v16  ;;  %853 = vst [vmem:[%s1428_s26 + $0xc8] sm:$0xff] %v725_v17  ;;  %v1095_v28 = vunpack.c.l.bf16 %v1297_v15  ;;  %v1096_v29 = vunpack.c.h.bf16 %v1297_v15 }
  0x32   : > { %854 = vst [vmem:[%s1428_s26 + $0xd0] sm:$0xff] %v726_v18  ;;  %855 = vst [vmem:[%s1428_s26 + $0xd8] sm:$0xff] %v727_v19  ;;  %v1099_v30 = vunpack.c.l.bf16 %v1298_v20  ;;  %v1100_v31 = vunpack.c.h.bf16 %v1298_v20  ;;  %v1103_v32 = vunpack.c.l.bf16 %v1299_v21  ;;  %v1104_v33 = vunpack.c.h.bf16 %v1299_v21 }
  0x33   : > { %856 = vst [vmem:[%s1428_s26 + $0xe0] sm:$0xff] %v728_v22  ;;  %857 = vst [vmem:[%s1428_s26 + $0xe8] sm:$0xff] %v729_v23  ;;  %v469_v34 = vmul.f32 %v1091_v26, %v1401_v0  ;;  %v470_v35 = vmul.f32 %v1092_v27, %v1401_v0  ;;  %v471_v36 = vmul.f32 %v1095_v28, %v1401_v0  ;;  %v1107_v62 = vunpack.c.l.bf16 %v1300_v50 }
  0x34   : > { %858 = vst [vmem:[%s1428_s26 + $0xf0] sm:$0xff] %v730_v24  ;;  %859 = vst [vmem:[%s1428_s26 + $0xf8] sm:$0xff] %v731_v25  ;;  %v472_v37 = vmul.f32 %v1096_v29, %v1401_v0  ;;  %v473_v38 = vmul.f32 %v1099_v30, %v1401_v0  ;;  %v474_v39 = vmul.f32 %v1100_v31, %v1401_v0  ;;  %v1108_v63 = vunpack.c.h.bf16 %v1300_v50  ;;  %v1304_v24 = vld [vmem:[%s1396_s18 + $0xc0] sm:$0xff]   ;;  %v1305_v25 = vld [vmem:[%s1396_s18 + $0xc8] sm:$0xff]  }
  0x35   : > { %v475_v40 = vmul.f32 %v1103_v32, %v1401_v0  ;;  %v476_v41 = vmul.f32 %v1104_v33, %v1401_v0  ;;  %v604_v42 = vadd.f32 %v1410_v9, %v469_v34  ;;  %v605_v43 = vadd.f32 %v1410_v9, %v470_v35  ;;  %v1306_v30 = vld [vmem:[%s1396_s18 + $0xd0] sm:$0xff]   ;;  %v1307_v31 = vld [vmem:[%s1396_s18 + $0xd8] sm:$0xff]  }
  0x36   : > { %v606_v44 = vadd.f32 %v1410_v9, %v471_v36  ;;  %v607_v45 = vadd.f32 %v1410_v9, %v472_v37  ;;  %v608_v46 = vadd.f32 %v1410_v9, %v473_v38  ;;  %v609_v47 = vadd.f32 %v1410_v9, %v474_v39 }
  0x37   : > { %v610_v48 = vadd.f32 %v1410_v9, %v475_v40  ;;  %v611_v49 = vadd.f32 %v1410_v9, %v476_v41  ;;  %v732_v52 = vmax.f32 %v604_v42, 0.0  ;;  %v733_v53 = vmax.f32 %v605_v43, 0.0 }
  0x38   : > { %v734_v54 = vmax.f32 %v606_v44, 0.0  ;;  %v735_v55 = vmax.f32 %v607_v45, 0.0  ;;  %v736_v58 = vmax.f32 %v608_v46, 0.0  ;;  %v737_v59 = vmax.f32 %v609_v47, 0.0 }
  0x39   : > { %v738_v60 = vmax.f32 %v610_v48, 0.0  ;;  %v739_v61 = vmax.f32 %v611_v49, 0.0  ;;  %860 = vst [vmem:[%s1428_s26 + $0x100] sm:$0xff] %v732_v52  ;;  %861 = vst [vmem:[%s1428_s26 + $0x108] sm:$0xff] %v733_v53  ;;  %v1111_v1 = vunpack.c.l.bf16 %v1301_v51  ;;  %v1112_v2 = vunpack.c.h.bf16 %v1301_v51 }
  0x3a   : > { %862 = vst [vmem:[%s1428_s26 + $0x110] sm:$0xff] %v734_v54  ;;  %863 = vst [vmem:[%s1428_s26 + $0x118] sm:$0xff] %v735_v55  ;;  %v1115_v3 = vunpack.c.l.bf16 %v1302_v56  ;;  %v1116_v4 = vunpack.c.h.bf16 %v1302_v56  ;;  %v1119_v5 = vunpack.c.l.bf16 %v1303_v57  ;;  %v1120_v6 = vunpack.c.h.bf16 %v1303_v57 }
  0x3b   : > { %864 = vst [vmem:[%s1428_s26 + $0x120] sm:$0xff] %v736_v58  ;;  %865 = vst [vmem:[%s1428_s26 + $0x128] sm:$0xff] %v737_v59  ;;  %v477_v7 = vmul.f32 %v1107_v62, %v1401_v0  ;;  %v478_v8 = vmul.f32 %v1108_v63, %v1401_v0  ;;  %v479_v10 = vmul.f32 %v1111_v1, %v1401_v0  ;;  %v1123_v36 = vunpack.c.l.bf16 %v1304_v24 }
  0x3c   : > { %866 = vst [vmem:[%s1428_s26 + $0x130] sm:$0xff] %v738_v60  ;;  %867 = vst [vmem:[%s1428_s26 + $0x138] sm:$0xff] %v739_v61  ;;  %v480_v11 = vmul.f32 %v1112_v2, %v1401_v0  ;;  %v481_v12 = vmul.f32 %v1115_v3, %v1401_v0  ;;  %v482_v13 = vmul.f32 %v1116_v4, %v1401_v0  ;;  %v1124_v37 = vunpack.c.h.bf16 %v1304_v24  ;;  %v1308_v60 = vld [vmem:[%s1396_s18 + $0xe0] sm:$0xff]   ;;  %v1309_v61 = vld [vmem:[%s1396_s18 + $0xe8] sm:$0xff]  }
  0x3d   : > { %v483_v14 = vmul.f32 %v1119_v5, %v1401_v0  ;;  %v484_v15 = vmul.f32 %v1120_v6, %v1401_v0  ;;  %v612_v16 = vadd.f32 %v1410_v9, %v477_v7  ;;  %v613_v17 = vadd.f32 %v1410_v9, %v478_v8  ;;  %v1310_v3 = vld [vmem:[%s1396_s18 + $0xf0] sm:$0xff]   ;;  %v1311_v4 = vld [vmem:[%s1396_s18 + $0xf8] sm:$0xff]  }
  0x3e   : > { %v614_v18 = vadd.f32 %v1410_v9, %v479_v10  ;;  %v615_v19 = vadd.f32 %v1410_v9, %v480_v11  ;;  %v616_v20 = vadd.f32 %v1410_v9, %v481_v12  ;;  %v617_v21 = vadd.f32 %v1410_v9, %v482_v13 }
  0x3f   : > { %v618_v22 = vadd.f32 %v1410_v9, %v483_v14  ;;  %v619_v23 = vadd.f32 %v1410_v9, %v484_v15  ;;  %v740_v26 = vmax.f32 %v612_v16, 0.0  ;;  %v741_v27 = vmax.f32 %v613_v17, 0.0 }
  0x40   : > { %v742_v28 = vmax.f32 %v614_v18, 0.0  ;;  %v743_v29 = vmax.f32 %v615_v19, 0.0  ;;  %v744_v32 = vmax.f32 %v616_v20, 0.0  ;;  %v745_v33 = vmax.f32 %v617_v21, 0.0 }
  0x41   : > { %v746_v34 = vmax.f32 %v618_v22, 0.0  ;;  %v747_v35 = vmax.f32 %v619_v23, 0.0  ;;  %868 = vst [vmem:[%s1428_s26 + $0x140] sm:$0xff] %v740_v26  ;;  %869 = vst [vmem:[%s1428_s26 + $0x148] sm:$0xff] %v741_v27  ;;  %v1127_v38 = vunpack.c.l.bf16 %v1305_v25  ;;  %v1128_v39 = vunpack.c.h.bf16 %v1305_v25 }
  0x42   : > { %870 = vst [vmem:[%s1428_s26 + $0x150] sm:$0xff] %v742_v28  ;;  %871 = vst [vmem:[%s1428_s26 + $0x158] sm:$0xff] %v743_v29  ;;  %v1131_v40 = vunpack.c.l.bf16 %v1306_v30  ;;  %v1132_v41 = vunpack.c.h.bf16 %v1306_v30  ;;  %v1135_v42 = vunpack.c.l.bf16 %v1307_v31  ;;  %v1136_v43 = vunpack.c.h.bf16 %v1307_v31 }
  0x43   : > { %872 = vst [vmem:[%s1428_s26 + $0x160] sm:$0xff] %v744_v32  ;;  %873 = vst [vmem:[%s1428_s26 + $0x168] sm:$0xff] %v745_v33  ;;  %v485_v44 = vmul.f32 %v1123_v36, %v1401_v0  ;;  %v486_v45 = vmul.f32 %v1124_v37, %v1401_v0  ;;  %v487_v46 = vmul.f32 %v1127_v38, %v1401_v0  ;;  %v1139_v10 = vunpack.c.l.bf16 %v1308_v60 }
  0x44   : > { %874 = vst [vmem:[%s1428_s26 + $0x170] sm:$0xff] %v746_v34  ;;  %875 = vst [vmem:[%s1428_s26 + $0x178] sm:$0xff] %v747_v35  ;;  %v488_v47 = vmul.f32 %v1128_v39, %v1401_v0  ;;  %v489_v48 = vmul.f32 %v1131_v40, %v1401_v0  ;;  %v490_v49 = vmul.f32 %v1132_v41, %v1401_v0  ;;  %v1140_v11 = vunpack.c.h.bf16 %v1308_v60  ;;  %v1312_v34 = vld [vmem:[%s1396_s18 + $0x100] sm:$0xff]   ;;  %v1313_v35 = vld [vmem:[%s1396_s18 + $0x108] sm:$0xff]  }
  0x45   : > { %v491_v50 = vmul.f32 %v1135_v42, %v1401_v0  ;;  %v492_v51 = vmul.f32 %v1136_v43, %v1401_v0  ;;  %v620_v52 = vadd.f32 %v1410_v9, %v485_v44  ;;  %v621_v53 = vadd.f32 %v1410_v9, %v486_v45  ;;  %v1314_v40 = vld [vmem:[%s1396_s18 + $0x110] sm:$0xff]   ;;  %v1315_v41 = vld [vmem:[%s1396_s18 + $0x118] sm:$0xff]  }
  0x46   : > { %v622_v54 = vadd.f32 %v1410_v9, %v487_v46  ;;  %v623_v55 = vadd.f32 %v1410_v9, %v488_v47  ;;  %v624_v56 = vadd.f32 %v1410_v9, %v489_v48  ;;  %v625_v57 = vadd.f32 %v1410_v9, %v490_v49 }
  0x47   : > { %v626_v58 = vadd.f32 %v1410_v9, %v491_v50  ;;  %v627_v59 = vadd.f32 %v1410_v9, %v492_v51  ;;  %v748_v62 = vmax.f32 %v620_v52, 0.0  ;;  %v749_v63 = vmax.f32 %v621_v53, 0.0 }
  0x48   : > { %v750_v1 = vmax.f32 %v622_v54, 0.0  ;;  %v751_v2 = vmax.f32 %v623_v55, 0.0  ;;  %v752_v5 = vmax.f32 %v624_v56, 0.0  ;;  %v753_v6 = vmax.f32 %v625_v57, 0.0 }
  0x49   : > { %v754_v7 = vmax.f32 %v626_v58, 0.0  ;;  %v755_v8 = vmax.f32 %v627_v59, 0.0  ;;  %876 = vst [vmem:[%s1428_s26 + $0x180] sm:$0xff] %v748_v62  ;;  %877 = vst [vmem:[%s1428_s26 + $0x188] sm:$0xff] %v749_v63  ;;  %v1143_v12 = vunpack.c.l.bf16 %v1309_v61  ;;  %v1144_v13 = vunpack.c.h.bf16 %v1309_v61 }
  0x4a   : > { %878 = vst [vmem:[%s1428_s26 + $0x190] sm:$0xff] %v750_v1  ;;  %879 = vst [vmem:[%s1428_s26 + $0x198] sm:$0xff] %v751_v2  ;;  %v1147_v14 = vunpack.c.l.bf16 %v1310_v3  ;;  %v1148_v15 = vunpack.c.h.bf16 %v1310_v3  ;;  %v1151_v16 = vunpack.c.l.bf16 %v1311_v4  ;;  %v1152_v17 = vunpack.c.h.bf16 %v1311_v4 }
  0x4b   : > { %880 = vst [vmem:[%s1428_s26 + $0x1a0] sm:$0xff] %v752_v5  ;;  %881 = vst [vmem:[%s1428_s26 + $0x1a8] sm:$0xff] %v753_v6  ;;  %v493_v18 = vmul.f32 %v1139_v10, %v1401_v0  ;;  %v494_v19 = vmul.f32 %v1140_v11, %v1401_v0  ;;  %v495_v20 = vmul.f32 %v1143_v12, %v1401_v0  ;;  %v1155_v46 = vunpack.c.l.bf16 %v1312_v34 }
  0x4c   : > { %882 = vst [vmem:[%s1428_s26 + $0x1b0] sm:$0xff] %v754_v7  ;;  %883 = vst [vmem:[%s1428_s26 + $0x1b8] sm:$0xff] %v755_v8  ;;  %v496_v21 = vmul.f32 %v1144_v13, %v1401_v0  ;;  %v497_v22 = vmul.f32 %v1147_v14, %v1401_v0  ;;  %v498_v23 = vmul.f32 %v1148_v15, %v1401_v0  ;;  %v1156_v47 = vunpack.c.h.bf16 %v1312_v34  ;;  %v1316_v7 = vld [vmem:[%s1396_s18 + $0x120] sm:$0xff]   ;;  %v1317_v8 = vld [vmem:[%s1396_s18 + $0x128] sm:$0xff]  }
  0x4d   : > { %v499_v24 = vmul.f32 %v1151_v16, %v1401_v0  ;;  %v500_v25 = vmul.f32 %v1152_v17, %v1401_v0  ;;  %v628_v26 = vadd.f32 %v1410_v9, %v493_v18  ;;  %v629_v27 = vadd.f32 %v1410_v9, %v494_v19  ;;  %v1318_v14 = vld [vmem:[%s1396_s18 + $0x130] sm:$0xff]   ;;  %v1319_v15 = vld [vmem:[%s1396_s18 + $0x138] sm:$0xff]  }
  0x4e   : > { %v630_v28 = vadd.f32 %v1410_v9, %v495_v20  ;;  %v631_v29 = vadd.f32 %v1410_v9, %v496_v21  ;;  %v632_v30 = vadd.f32 %v1410_v9, %v497_v22  ;;  %v633_v31 = vadd.f32 %v1410_v9, %v498_v23 }
  0x4f   : > { %v634_v32 = vadd.f32 %v1410_v9, %v499_v24  ;;  %v635_v33 = vadd.f32 %v1410_v9, %v500_v25  ;;  %v756_v36 = vmax.f32 %v628_v26, 0.0  ;;  %v757_v37 = vmax.f32 %v629_v27, 0.0 }
  0x50   : > { %v758_v38 = vmax.f32 %v630_v28, 0.0  ;;  %v759_v39 = vmax.f32 %v631_v29, 0.0  ;;  %v760_v42 = vmax.f32 %v632_v30, 0.0  ;;  %v761_v43 = vmax.f32 %v633_v31, 0.0 }
  0x51   : > { %v762_v44 = vmax.f32 %v634_v32, 0.0  ;;  %v763_v45 = vmax.f32 %v635_v33, 0.0  ;;  %884 = vst [vmem:[%s1428_s26 + $0x1c0] sm:$0xff] %v756_v36  ;;  %885 = vst [vmem:[%s1428_s26 + $0x1c8] sm:$0xff] %v757_v37  ;;  %v1159_v48 = vunpack.c.l.bf16 %v1313_v35  ;;  %v1160_v49 = vunpack.c.h.bf16 %v1313_v35 }
  0x52   : > { %886 = vst [vmem:[%s1428_s26 + $0x1d0] sm:$0xff] %v758_v38  ;;  %887 = vst [vmem:[%s1428_s26 + $0x1d8] sm:$0xff] %v759_v39  ;;  %v1163_v50 = vunpack.c.l.bf16 %v1314_v40  ;;  %v1164_v51 = vunpack.c.h.bf16 %v1314_v40  ;;  %v1167_v52 = vunpack.c.l.bf16 %v1315_v41  ;;  %v1168_v53 = vunpack.c.h.bf16 %v1315_v41 }
  0x53   : > { %888 = vst [vmem:[%s1428_s26 + $0x1e0] sm:$0xff] %v760_v42  ;;  %889 = vst [vmem:[%s1428_s26 + $0x1e8] sm:$0xff] %v761_v43  ;;  %v501_v54 = vmul.f32 %v1155_v46, %v1401_v0  ;;  %v502_v55 = vmul.f32 %v1156_v47, %v1401_v0  ;;  %v503_v56 = vmul.f32 %v1159_v48, %v1401_v0  ;;  %v1171_v20 = vunpack.c.l.bf16 %v1316_v7 }
  0x54   : > { %890 = vst [vmem:[%s1428_s26 + $0x1f0] sm:$0xff] %v762_v44  ;;  %891 = vst [vmem:[%s1428_s26 + $0x1f8] sm:$0xff] %v763_v45  ;;  %v504_v57 = vmul.f32 %v1160_v49, %v1401_v0  ;;  %v505_v58 = vmul.f32 %v1163_v50, %v1401_v0  ;;  %v506_v59 = vmul.f32 %v1164_v51, %v1401_v0  ;;  %v1172_v21 = vunpack.c.h.bf16 %v1316_v7  ;;  %v1320_v44 = vld [vmem:[%s1396_s18 + $0x140] sm:$0xff]   ;;  %v1321_v45 = vld [vmem:[%s1396_s18 + $0x148] sm:$0xff]  }
  0x55   : > { %v507_v60 = vmul.f32 %v1167_v52, %v1401_v0  ;;  %v508_v61 = vmul.f32 %v1168_v53, %v1401_v0  ;;  %v636_v62 = vadd.f32 %v1410_v9, %v501_v54  ;;  %v637_v63 = vadd.f32 %v1410_v9, %v502_v55  ;;  %v1322_v50 = vld [vmem:[%s1396_s18 + $0x150] sm:$0xff]   ;;  %v1323_v51 = vld [vmem:[%s1396_s18 + $0x158] sm:$0xff]  }
  0x56   : > { %v638_v1 = vadd.f32 %v1410_v9, %v503_v56  ;;  %v639_v2 = vadd.f32 %v1410_v9, %v504_v57  ;;  %v640_v3 = vadd.f32 %v1410_v9, %v505_v58  ;;  %v641_v4 = vadd.f32 %v1410_v9, %v506_v59 }
  0x57   : > { %v642_v5 = vadd.f32 %v1410_v9, %v507_v60  ;;  %v643_v6 = vadd.f32 %v1410_v9, %v508_v61  ;;  %v764_v10 = vmax.f32 %v636_v62, 0.0  ;;  %v765_v11 = vmax.f32 %v637_v63, 0.0 }
  0x58   : > { %v766_v12 = vmax.f32 %v638_v1, 0.0  ;;  %v767_v13 = vmax.f32 %v639_v2, 0.0  ;;  %v768_v16 = vmax.f32 %v640_v3, 0.0  ;;  %v769_v17 = vmax.f32 %v641_v4, 0.0 }
  0x59   : > { %v770_v18 = vmax.f32 %v642_v5, 0.0  ;;  %v771_v19 = vmax.f32 %v643_v6, 0.0  ;;  %892 = vst [vmem:[%s1428_s26 + $0x200] sm:$0xff] %v764_v10  ;;  %893 = vst [vmem:[%s1428_s26 + $0x208] sm:$0xff] %v765_v11  ;;  %v1175_v22 = vunpack.c.l.bf16 %v1317_v8  ;;  %v1176_v23 = vunpack.c.h.bf16 %v1317_v8 }
  0x5a   : > { %894 = vst [vmem:[%s1428_s26 + $0x210] sm:$0xff] %v766_v12  ;;  %895 = vst [vmem:[%s1428_s26 + $0x218] sm:$0xff] %v767_v13  ;;  %v1179_v24 = vunpack.c.l.bf16 %v1318_v14  ;;  %v1180_v25 = vunpack.c.h.bf16 %v1318_v14  ;;  %v1183_v26 = vunpack.c.l.bf16 %v1319_v15  ;;  %v1184_v27 = vunpack.c.h.bf16 %v1319_v15 }
  0x5b   : > { %896 = vst [vmem:[%s1428_s26 + $0x220] sm:$0xff] %v768_v16  ;;  %897 = vst [vmem:[%s1428_s26 + $0x228] sm:$0xff] %v769_v17  ;;  %v509_v28 = vmul.f32 %v1171_v20, %v1401_v0  ;;  %v510_v29 = vmul.f32 %v1172_v21, %v1401_v0  ;;  %v511_v30 = vmul.f32 %v1175_v22, %v1401_v0  ;;  %v1187_v56 = vunpack.c.l.bf16 %v1320_v44 }
  0x5c   : > { %898 = vst [vmem:[%s1428_s26 + $0x230] sm:$0xff] %v770_v18  ;;  %899 = vst [vmem:[%s1428_s26 + $0x238] sm:$0xff] %v771_v19  ;;  %v512_v31 = vmul.f32 %v1176_v23, %v1401_v0  ;;  %v513_v32 = vmul.f32 %v1179_v24, %v1401_v0  ;;  %v514_v33 = vmul.f32 %v1180_v25, %v1401_v0  ;;  %v1188_v57 = vunpack.c.h.bf16 %v1320_v44  ;;  %v1324_v18 = vld [vmem:[%s1396_s18 + $0x160] sm:$0xff]   ;;  %v1325_v19 = vld [vmem:[%s1396_s18 + $0x168] sm:$0xff]  }
  0x5d   : > { %v515_v34 = vmul.f32 %v1183_v26, %v1401_v0  ;;  %v516_v35 = vmul.f32 %v1184_v27, %v1401_v0  ;;  %v644_v36 = vadd.f32 %v1410_v9, %v509_v28  ;;  %v645_v37 = vadd.f32 %v1410_v9, %v510_v29  ;;  %v1326_v24 = vld [vmem:[%s1396_s18 + $0x170] sm:$0xff]   ;;  %v1327_v25 = vld [vmem:[%s1396_s18 + $0x178] sm:$0xff]  }
  0x5e   : > { %v646_v38 = vadd.f32 %v1410_v9, %v511_v30  ;;  %v647_v39 = vadd.f32 %v1410_v9, %v512_v31  ;;  %v648_v40 = vadd.f32 %v1410_v9, %v513_v32  ;;  %v649_v41 = vadd.f32 %v1410_v9, %v514_v33 }
  0x5f   : > { %v650_v42 = vadd.f32 %v1410_v9, %v515_v34  ;;  %v651_v43 = vadd.f32 %v1410_v9, %v516_v35  ;;  %v772_v46 = vmax.f32 %v644_v36, 0.0  ;;  %v773_v47 = vmax.f32 %v645_v37, 0.0 }
  0x60   : > { %v774_v48 = vmax.f32 %v646_v38, 0.0  ;;  %v775_v49 = vmax.f32 %v647_v39, 0.0  ;;  %v776_v52 = vmax.f32 %v648_v40, 0.0  ;;  %v777_v53 = vmax.f32 %v649_v41, 0.0 }
  0x61   : > { %v778_v54 = vmax.f32 %v650_v42, 0.0  ;;  %v779_v55 = vmax.f32 %v651_v43, 0.0  ;;  %900 = vst [vmem:[%s1428_s26 + $0x240] sm:$0xff] %v772_v46  ;;  %901 = vst [vmem:[%s1428_s26 + $0x248] sm:$0xff] %v773_v47  ;;  %v1191_v58 = vunpack.c.l.bf16 %v1321_v45  ;;  %v1192_v59 = vunpack.c.h.bf16 %v1321_v45 }
  0x62   : > { %902 = vst [vmem:[%s1428_s26 + $0x250] sm:$0xff] %v774_v48  ;;  %903 = vst [vmem:[%s1428_s26 + $0x258] sm:$0xff] %v775_v49  ;;  %v1195_v60 = vunpack.c.l.bf16 %v1322_v50  ;;  %v1196_v61 = vunpack.c.h.bf16 %v1322_v50  ;;  %v1199_v62 = vunpack.c.l.bf16 %v1323_v51  ;;  %v1200_v63 = vunpack.c.h.bf16 %v1323_v51 }
  0x63   : > { %904 = vst [vmem:[%s1428_s26 + $0x260] sm:$0xff] %v776_v52  ;;  %905 = vst [vmem:[%s1428_s26 + $0x268] sm:$0xff] %v777_v53  ;;  %v517_v1 = vmul.f32 %v1187_v56, %v1401_v0  ;;  %v518_v2 = vmul.f32 %v1188_v57, %v1401_v0  ;;  %v519_v3 = vmul.f32 %v1191_v58, %v1401_v0  ;;  %v1203_v30 = vunpack.c.l.bf16 %v1324_v18  ;;  %v1328_v53 = vld [vmem:[%s1396_s18 + $0x180] sm:$0xff]  }
  0x64   : > { %906 = vst [vmem:[%s1428_s26 + $0x270] sm:$0xff] %v778_v54  ;;  %907 = vst [vmem:[%s1428_s26 + $0x278] sm:$0xff] %v779_v55  ;;  %v520_v4 = vmul.f32 %v1192_v59, %v1401_v0  ;;  %v521_v5 = vmul.f32 %v1195_v60, %v1401_v0  ;;  %v522_v6 = vmul.f32 %v1196_v61, %v1401_v0  ;;  %v1204_v31 = vunpack.c.h.bf16 %v1324_v18  ;;  %v1329_v54 = vld [vmem:[%s1396_s18 + $0x188] sm:$0xff]   ;;  %v1330_v59 = vld [vmem:[%s1396_s18 + $0x190] sm:$0xff]  }
  0x65   : > { %v523_v7 = vmul.f32 %v1199_v62, %v1401_v0  ;;  %v524_v8 = vmul.f32 %v1200_v63, %v1401_v0  ;;  %v652_v10 = vadd.f32 %v1410_v9, %v517_v1  ;;  %v653_v11 = vadd.f32 %v1410_v9, %v518_v2  ;;  %v1331_v60 = vld [vmem:[%s1396_s18 + $0x198] sm:$0xff]  }
  0x66   : > { %v654_v12 = vadd.f32 %v1410_v9, %v519_v3  ;;  %v655_v13 = vadd.f32 %v1410_v9, %v520_v4  ;;  %v656_v14 = vadd.f32 %v1410_v9, %v521_v5  ;;  %v657_v15 = vadd.f32 %v1410_v9, %v522_v6 }
  0x67   : > { %v658_v16 = vadd.f32 %v1410_v9, %v523_v7  ;;  %v659_v17 = vadd.f32 %v1410_v9, %v524_v8  ;;  %v780_v20 = vmax.f32 %v652_v10, 0.0  ;;  %v781_v21 = vmax.f32 %v653_v11, 0.0  ;;  %v1757_v10 = vld [vmem:[%s1876_s1] ss:$0 sm:$0xff] }
  0x68   : > { %v782_v22 = vmax.f32 %v654_v12, 0.0  ;;  %v783_v23 = vmax.f32 %v655_v13, 0.0  ;;  %v784_v26 = vmax.f32 %v656_v14, 0.0  ;;  %v785_v27 = vmax.f32 %v657_v15, 0.0 }
  0x69   : > { %v786_v28 = vmax.f32 %v658_v16, 0.0  ;;  %v787_v29 = vmax.f32 %v659_v17, 0.0  ;;  %908 = vst [vmem:[%s1428_s26 + $0x280] sm:$0xff] %v780_v20  ;;  %909 = vst [vmem:[%s1428_s26 + $0x288] sm:$0xff] %v781_v21  ;;  %v1207_v32 = vunpack.c.l.bf16 %v1325_v19  ;;  %v1208_v33 = vunpack.c.h.bf16 %v1325_v19  ;;  %v1770_v19 = vld [vmem:[%s1877_s2] ss:$0 sm:$0xff] }
  0x6a   : > { %910 = vst [vmem:[%s1428_s26 + $0x290] sm:$0xff] %v782_v22  ;;  %911 = vst [vmem:[%s1428_s26 + $0x298] sm:$0xff] %v783_v23  ;;  %v1211_v34 = vunpack.c.l.bf16 %v1326_v24  ;;  %v1212_v35 = vunpack.c.h.bf16 %v1326_v24  ;;  %v1215_v36 = vunpack.c.l.bf16 %v1327_v25  ;;  %v1216_v37 = vunpack.c.h.bf16 %v1327_v25 }
  0x6b   : > { %912 = vst [vmem:[%s1428_s26 + $0x2a0] sm:$0xff] %v784_v26  ;;  %913 = vst [vmem:[%s1428_s26 + $0x2a8] sm:$0xff] %v785_v27  ;;  %v525_v38 = vmul.f32 %v1203_v30, %v1401_v0  ;;  %v526_v39 = vmul.f32 %v1204_v31, %v1401_v0  ;;  %v527_v40 = vmul.f32 %v1207_v32, %v1401_v0  ;;  %v1220_v2 = vunpack.c.h.bf16 %v1328_v53 }
  0x6c   : > { %914 = vst [vmem:[%s1428_s26 + $0x2b0] sm:$0xff] %v786_v28  ;;  %915 = vst [vmem:[%s1428_s26 + $0x2b8] sm:$0xff] %v787_v29  ;;  %v528_v41 = vmul.f32 %v1208_v33, %v1401_v0  ;;  %v529_v42 = vmul.f32 %v1211_v34, %v1401_v0  ;;  %v530_v43 = vmul.f32 %v1212_v35, %v1401_v0  ;;  %v1223_v3 = vunpack.c.l.bf16 %v1329_v54  ;;  %v1332_v28 = vld [vmem:[%s1396_s18 + $0x1a0] sm:$0xff]   ;;  %v1333_v29 = vld [vmem:[%s1396_s18 + $0x1a8] sm:$0xff]  }
  0x6d   : > { %v531_v44 = vmul.f32 %v1215_v36, %v1401_v0  ;;  %v532_v45 = vmul.f32 %v1216_v37, %v1401_v0  ;;  %v660_v46 = vadd.f32 %v1410_v9, %v525_v38  ;;  %v661_v47 = vadd.f32 %v1410_v9, %v526_v39  ;;  %v1334_v34 = vld [vmem:[%s1396_s18 + $0x1b0] sm:$0xff]   ;;  %v1335_v35 = vld [vmem:[%s1396_s18 + $0x1b8] sm:$0xff]  }
  0x6e   : > { %v662_v48 = vadd.f32 %v1410_v9, %v527_v40  ;;  %v663_v49 = vadd.f32 %v1410_v9, %v528_v41  ;;  %v664_v50 = vadd.f32 %v1410_v9, %v529_v42  ;;  %v665_v51 = vadd.f32 %v1410_v9, %v530_v43 }
  0x6f   : > { %v666_v52 = vadd.f32 %v1410_v9, %v531_v44  ;;  %v667_v0 = vadd.f32 %v1410_v9, %v532_v45  ;;  %v788_v55 = vmax.f32 %v660_v46, 0.0  ;;  %v789_v56 = vmax.f32 %v661_v47, 0.0 }
  0x70   : > { %v790_v57 = vmax.f32 %v662_v48, 0.0  ;;  %v791_v58 = vmax.f32 %v663_v49, 0.0  ;;  %v792_v61 = vmax.f32 %v664_v50, 0.0  ;;  %v793_v62 = vmax.f32 %v665_v51, 0.0 }
  0x71   : > { %v794_v63 = vmax.f32 %v666_v52, 0.0  ;;  %v795_v1 = vmax.f32 %v667_v0, 0.0  ;;  %916 = vst [vmem:[%s1428_s26 + $0x2c0] sm:$0xff] %v788_v55  ;;  %917 = vst [vmem:[%s1428_s26 + $0x2c8] sm:$0xff] %v789_v56  ;;  %v1219_v9 = vunpack.c.l.bf16 %v1328_v53  ;;  %v1224_v4 = vunpack.c.h.bf16 %v1329_v54 }
  0x72   : > { %918 = vst [vmem:[%s1428_s26 + $0x2d0] sm:$0xff] %v790_v57  ;;  %919 = vst [vmem:[%s1428_s26 + $0x2d8] sm:$0xff] %v791_v58  ;;  %v1227_v5 = vunpack.c.l.bf16 %v1330_v59  ;;  %v1228_v6 = vunpack.c.h.bf16 %v1330_v59  ;;  %v1231_v7 = vunpack.c.l.bf16 %v1331_v60  ;;  %v1232_v8 = vunpack.c.h.bf16 %v1331_v60 }
  0x73   : > { %920 = vst [vmem:[%s1428_s26 + $0x2e0] sm:$0xff] %v792_v61  ;;  %921 = vst [vmem:[%s1428_s26 + $0x2e8] sm:$0xff] %v793_v62  ;;  %v533_v11 = vmul.f32 %v1757_v10, %v1219_v9  ;;  %v534_v12 = vmul.f32 %v1757_v10, %v1220_v2  ;;  %v535_v13 = vmul.f32 %v1757_v10, %v1223_v3  ;;  %v1235_v40 = vunpack.c.l.bf16 %v1332_v28 }
  0x74   : > { %922 = vst [vmem:[%s1428_s26 + $0x2f0] sm:$0xff] %v794_v63  ;;  %923 = vst [vmem:[%s1428_s26 + $0x2f8] sm:$0xff] %v795_v1  ;;  %v536_v14 = vmul.f32 %v1757_v10, %v1224_v4  ;;  %v537_v15 = vmul.f32 %v1757_v10, %v1227_v5  ;;  %v538_v16 = vmul.f32 %v1757_v10, %v1228_v6  ;;  %v1236_v41 = vunpack.c.h.bf16 %v1332_v28  ;;  %v1336_v63 = vld [vmem:[%s1396_s18 + $0x1c0] sm:$0xff]   ;;  %v1337_v1 = vld [vmem:[%s1396_s18 + $0x1c8] sm:$0xff]  }
  0x75   : > { %v539_v17 = vmul.f32 %v1757_v10, %v1231_v7  ;;  %v540_v18 = vmul.f32 %v1757_v10, %v1232_v8  ;;  %v668_v20 = vadd.f32 %v1770_v19, %v533_v11  ;;  %v669_v21 = vadd.f32 %v1770_v19, %v534_v12  ;;  %v1338_v5 = vld [vmem:[%s1396_s18 + $0x1d0] sm:$0xff]   ;;  %v1339_v6 = vld [vmem:[%s1396_s18 + $0x1d8] sm:$0xff]  }
  0x76   : > { %v670_v22 = vadd.f32 %v1770_v19, %v535_v13  ;;  %v671_v23 = vadd.f32 %v1770_v19, %v536_v14  ;;  %v672_v24 = vadd.f32 %v1770_v19, %v537_v15  ;;  %v673_v25 = vadd.f32 %v1770_v19, %v538_v16 }
  0x77   : > { %v674_v26 = vadd.f32 %v1770_v19, %v539_v17  ;;  %v675_v27 = vadd.f32 %v1770_v19, %v540_v18  ;;  %v796_v30 = vmax.f32 %v668_v20, 0.0  ;;  %v797_v31 = vmax.f32 %v669_v21, 0.0 }
  0x78   : > { %v798_v32 = vmax.f32 %v670_v22, 0.0  ;;  %v799_v33 = vmax.f32 %v671_v23, 0.0  ;;  %v800_v36 = vmax.f32 %v672_v24, 0.0  ;;  %v801_v37 = vmax.f32 %v673_v25, 0.0 }
  0x79   : > { %v802_v38 = vmax.f32 %v674_v26, 0.0  ;;  %v803_v39 = vmax.f32 %v675_v27, 0.0  ;;  %924 = vst [vmem:[%s1428_s26 + $0x300] sm:$0xff] %v796_v30  ;;  %925 = vst [vmem:[%s1428_s26 + $0x308] sm:$0xff] %v797_v31  ;;  %v1239_v42 = vunpack.c.l.bf16 %v1333_v29  ;;  %v1240_v43 = vunpack.c.h.bf16 %v1333_v29 }
  0x7a   : > { %926 = vst [vmem:[%s1428_s26 + $0x310] sm:$0xff] %v798_v32  ;;  %927 = vst [vmem:[%s1428_s26 + $0x318] sm:$0xff] %v799_v33  ;;  %v1243_v44 = vunpack.c.l.bf16 %v1334_v34  ;;  %v1244_v45 = vunpack.c.h.bf16 %v1334_v34  ;;  %v1247_v46 = vunpack.c.l.bf16 %v1335_v35  ;;  %v1248_v47 = vunpack.c.h.bf16 %v1335_v35 }
  0x7b   : > { %928 = vst [vmem:[%s1428_s26 + $0x320] sm:$0xff] %v800_v36  ;;  %929 = vst [vmem:[%s1428_s26 + $0x328] sm:$0xff] %v801_v37  ;;  %v541_v48 = vmul.f32 %v1757_v10, %v1235_v40  ;;  %v542_v49 = vmul.f32 %v1757_v10, %v1236_v41  ;;  %v543_v50 = vmul.f32 %v1757_v10, %v1239_v42  ;;  %v1251_v13 = vunpack.c.l.bf16 %v1336_v63 }
  0x7c   : > { %930 = vst [vmem:[%s1428_s26 + $0x330] sm:$0xff] %v802_v38  ;;  %931 = vst [vmem:[%s1428_s26 + $0x338] sm:$0xff] %v803_v39  ;;  %v544_v51 = vmul.f32 %v1757_v10, %v1240_v43  ;;  %v545_v52 = vmul.f32 %v1757_v10, %v1243_v44  ;;  %v546_v0 = vmul.f32 %v1757_v10, %v1244_v45  ;;  %v1252_v14 = vunpack.c.h.bf16 %v1336_v63  ;;  %v1340_v38 = vld [vmem:[%s1396_s18 + $0x1e0] sm:$0xff]   ;;  %v1341_v39 = vld [vmem:[%s1396_s18 + $0x1e8] sm:$0xff]  }
  0x7d   : > { %v547_v53 = vmul.f32 %v1757_v10, %v1247_v46  ;;  %v548_v54 = vmul.f32 %v1757_v10, %v1248_v47  ;;  %v676_v55 = vadd.f32 %v1770_v19, %v541_v48  ;;  %v677_v56 = vadd.f32 %v1770_v19, %v542_v49  ;;  %v1342_v44 = vld [vmem:[%s1396_s18 + $0x1f0] sm:$0xff]   ;;  %v1343_v45 = vld [vmem:[%s1396_s18 + $0x1f8] sm:$0xff]  }
  0x7e   : > { %v678_v57 = vadd.f32 %v1770_v19, %v543_v50  ;;  %v679_v58 = vadd.f32 %v1770_v19, %v544_v51  ;;  %v680_v59 = vadd.f32 %v1770_v19, %v545_v52  ;;  %v681_v60 = vadd.f32 %v1770_v19, %v546_v0 }
  0x7f   : > { %v682_v61 = vadd.f32 %v1770_v19, %v547_v53  ;;  %v683_v62 = vadd.f32 %v1770_v19, %v548_v54  ;;  %v804_v9 = vmax.f32 %v676_v55, 0.0  ;;  %v805_v2 = vmax.f32 %v677_v56, 0.0 }
  0x80   : > { %v806_v3 = vmax.f32 %v678_v57, 0.0  ;;  %v807_v4 = vmax.f32 %v679_v58, 0.0  ;;  %v808_v7 = vmax.f32 %v680_v59, 0.0  ;;  %v809_v8 = vmax.f32 %v681_v60, 0.0 }
  0x81   : > { %v810_v11 = vmax.f32 %v682_v61, 0.0  ;;  %v811_v12 = vmax.f32 %v683_v62, 0.0  ;;  %932 = vst [vmem:[%s1428_s26 + $0x340] sm:$0xff] %v804_v9  ;;  %933 = vst [vmem:[%s1428_s26 + $0x348] sm:$0xff] %v805_v2  ;;  %v1255_v15 = vunpack.c.l.bf16 %v1337_v1  ;;  %v1256_v16 = vunpack.c.h.bf16 %v1337_v1 }
  0x82   : > { %934 = vst [vmem:[%s1428_s26 + $0x350] sm:$0xff] %v806_v3  ;;  %935 = vst [vmem:[%s1428_s26 + $0x358] sm:$0xff] %v807_v4  ;;  %v1259_v17 = vunpack.c.l.bf16 %v1338_v5  ;;  %v1260_v18 = vunpack.c.h.bf16 %v1338_v5  ;;  %v1263_v20 = vunpack.c.l.bf16 %v1339_v6  ;;  %v1264_v21 = vunpack.c.h.bf16 %v1339_v6 }
  0x83   : > { %936 = vst [vmem:[%s1428_s26 + $0x360] sm:$0xff] %v808_v7  ;;  %937 = vst [vmem:[%s1428_s26 + $0x368] sm:$0xff] %v809_v8  ;;  %v549_v22 = vmul.f32 %v1757_v10, %v1251_v13  ;;  %v550_v23 = vmul.f32 %v1757_v10, %v1252_v14  ;;  %v551_v24 = vmul.f32 %v1757_v10, %v1255_v15  ;;  %v1267_v50 = vunpack.c.l.bf16 %v1340_v38 }
  0x84   : > { %938 = vst [vmem:[%s1428_s26 + $0x370] sm:$0xff] %v810_v11  ;;  %939 = vst [vmem:[%s1428_s26 + $0x378] sm:$0xff] %v811_v12  ;;  %v552_v25 = vmul.f32 %v1757_v10, %v1256_v16  ;;  %v553_v26 = vmul.f32 %v1757_v10, %v1259_v17  ;;  %v554_v27 = vmul.f32 %v1757_v10, %v1260_v18  ;;  %v1268_v51 = vunpack.c.h.bf16 %v1340_v38 }
  0x85   : > { %v555_v28 = vmul.f32 %v1757_v10, %v1263_v20  ;;  %v556_v29 = vmul.f32 %v1757_v10, %v1264_v21  ;;  %v684_v30 = vadd.f32 %v1770_v19, %v549_v22  ;;  %v685_v31 = vadd.f32 %v1770_v19, %v550_v23 }
  0x86   : > { %v686_v32 = vadd.f32 %v1770_v19, %v551_v24  ;;  %v687_v33 = vadd.f32 %v1770_v19, %v552_v25  ;;  %v688_v34 = vadd.f32 %v1770_v19, %v553_v26  ;;  %v689_v35 = vadd.f32 %v1770_v19, %v554_v27 }
  0x87   : > { %v690_v36 = vadd.f32 %v1770_v19, %v555_v28  ;;  %v691_v37 = vadd.f32 %v1770_v19, %v556_v29  ;;  %v812_v40 = vmax.f32 %v684_v30, 0.0  ;;  %v813_v41 = vmax.f32 %v685_v31, 0.0 }
  0x88   : > { %v814_v42 = vmax.f32 %v686_v32, 0.0  ;;  %v815_v43 = vmax.f32 %v687_v33, 0.0  ;;  %v816_v46 = vmax.f32 %v688_v34, 0.0  ;;  %v817_v47 = vmax.f32 %v689_v35, 0.0 }
  0x89   : > { %v818_v48 = vmax.f32 %v690_v36, 0.0  ;;  %v819_v49 = vmax.f32 %v691_v37, 0.0  ;;  %940 = vst [vmem:[%s1428_s26 + $0x380] sm:$0xff] %v812_v40  ;;  %941 = vst [vmem:[%s1428_s26 + $0x388] sm:$0xff] %v813_v41  ;;  %v1271_v52 = vunpack.c.l.bf16 %v1341_v39  ;;  %v1272_v0 = vunpack.c.h.bf16 %v1341_v39 }
  0x8a   : > { %942 = vst [vmem:[%s1428_s26 + $0x390] sm:$0xff] %v814_v42  ;;  %943 = vst [vmem:[%s1428_s26 + $0x398] sm:$0xff] %v815_v43  ;;  %v1275_v53 = vunpack.c.l.bf16 %v1342_v44  ;;  %v1276_v54 = vunpack.c.h.bf16 %v1342_v44  ;;  %v1279_v55 = vunpack.c.l.bf16 %v1343_v45  ;;  %v1280_v56 = vunpack.c.h.bf16 %v1343_v45 }
  0x8b   : > { %944 = vst [vmem:[%s1428_s26 + $0x3a0] sm:$0xff] %v816_v46  ;;  %945 = vst [vmem:[%s1428_s26 + $0x3a8] sm:$0xff] %v817_v47  ;;  %v557_v57 = vmul.f32 %v1757_v10, %v1267_v50  ;;  %v558_v58 = vmul.f32 %v1757_v10, %v1268_v51  ;;  %v559_v59 = vmul.f32 %v1757_v10, %v1271_v52 }
  0x8c   : > { %946 = vst [vmem:[%s1428_s26 + $0x3b0] sm:$0xff] %v818_v48  ;;  %947 = vst [vmem:[%s1428_s26 + $0x3b8] sm:$0xff] %v819_v49  ;;  %v560_v60 = vmul.f32 %v1757_v10, %v1272_v0  ;;  %v561_v61 = vmul.f32 %v1757_v10, %v1275_v53  ;;  %v562_v62 = vmul.f32 %v1757_v10, %v1276_v54 }
  0x8d   : > { %v563_v63 = vmul.f32 %v1757_v10, %v1279_v55  ;;  %v564_v1 = vmul.f32 %v1757_v10, %v1280_v56  ;;  %v692_v9 = vadd.f32 %v1770_v19, %v557_v57  ;;  %v693_v2 = vadd.f32 %v1770_v19, %v558_v58 }
  0x8e   : > { %v694_v3 = vadd.f32 %v1770_v19, %v559_v59  ;;  %v695_v4 = vadd.f32 %v1770_v19, %v560_v60  ;;  %v696_v5 = vadd.f32 %v1770_v19, %v561_v61  ;;  %v697_v6 = vadd.f32 %v1770_v19, %v562_v62 }
  0x8f   : > { %v698_v10 = vadd.f32 %v1770_v19, %v563_v63  ;;  %v699_v7 = vadd.f32 %v1770_v19, %v564_v1  ;;  %v820_v8 = vmax.f32 %v692_v9, 0.0  ;;  %v821_v11 = vmax.f32 %v693_v2, 0.0 }
  0x90   : > { %v822_v12 = vmax.f32 %v694_v3, 0.0  ;;  %v823_v13 = vmax.f32 %v695_v4, 0.0  ;;  %v824_v14 = vmax.f32 %v696_v5, 0.0  ;;  %v825_v15 = vmax.f32 %v697_v6, 0.0 }
  0x91   : > { %v826_v16 = vmax.f32 %v698_v10, 0.0  ;;  %v827_v17 = vmax.f32 %v699_v7, 0.0  ;;  %948 = vst [vmem:[%s1428_s26 + $0x3c0] sm:$0xff] %v820_v8  ;;  %949 = vst [vmem:[%s1428_s26 + $0x3c8] sm:$0xff] %v821_v11 }
  0x92   : > { %950 = vst [vmem:[%s1428_s26 + $0x3d0] sm:$0xff] %v822_v12  ;;  %951 = vst [vmem:[%s1428_s26 + $0x3d8] sm:$0xff] %v823_v13 }
  0x93   : > { %952 = vst [vmem:[%s1428_s26 + $0x3e0] sm:$0xff] %v824_v14  ;;  %953 = vst [vmem:[%s1428_s26 + $0x3e8] sm:$0xff] %v825_v15 }
  0x94   : > { %954 = vst [vmem:[%s1428_s26 + $0x3f0] sm:$0xff] %v826_v16  ;;  %955 = vst [vmem:[%s1428_s26 + $0x3f8] sm:$0xff] %v827_v17 }
  0x95 PF: > { %s13_s12 = sadd.s32 1, %s1360_s12  }
  0x96   : > { %p10_p4 = scmp.ge.s32.totalorder %s13_s12, 4  }
  0x98   :  { %12 = sbr.rel (!%p10_p4) target bundleno = 1 (0x1), region = 62 }

// kernel: decoder_block_forward.6
= control target key start
LH: loop header
LB: loop body
LE: loop exit
PB: predicated region body
PF: predicated region fallthrough
CT: control target
= control target key end

     0   :  { %12 = vsyncpa [#allocation3], 0  ;;  %s5126_s0 = inlined_call_operand.hbm [shape: bf16[2048,128], index: 0, kind: input, shape index: {}]   ;;  %s5127_s1 = inlined_call_operand.vmem [shape: f32[1,128], index: 1, kind: input, shape index: {}]   ;;  %s5128_s2 = inlined_call_operand.vmem [shape: f32[1,128], index: 2, kind: input, shape index: {}]   ;;  %s5129_s3 = inlined_call_operand.vmem [shape: bf16[128,128], index: 3, kind: input, shape index: {}]   ;;  %s5130_s4 = inlined_call_operand.vmem [shape: bf16[2048,128], index: 4, kind: output, shape index: {0}]   ;;  %s5131_s5 = inlined_call_operand.vmem [shape: f32[16,128], index: 5, kind: output, shape index: {1}]   ;;  %s5132_s6 = inlined_call_operand.vmem [shape: f32[16,128], index: 6, kind: output, shape index: {2}]  }
   0x1   :  { %14 = vsyncpa [#allocation3 + $0x1], 0  ;;  %s4147_s21 = smov 0   ;;  %s4149_s22 = smov 0  }
   0x2   :  { %s4151_s23 = smov 0   ;;  %s4153_s24 = smov 0  }
   0x3 LB: > { %s4166_s25 = sadd.s32 4294967295, %s4107_s24   ;;  %s4169_s26 = sadd.s32 1, %s4107_s24   ;;  %s4107_s24 = sphi %s4153_s24, %s5139_s24   ;;  %s4103_s23 = sphi %s4151_s23, %s5138_s23   ;;  %s4099_s22 = sphi %s4149_s22, %s5137_s22   ;;  %s4095_s21 = sphi %s4147_s21, %s5136_s21  }
   0x4   : > { %s24_s27 = ssub.s32 %s4107_s24, %s4169_s26  ;;  %s27_s28 = sadd.s32 1, %s4103_s23 }
   0x5   : > { %p25_p0 = scmp.eq.s32.totalorder %s24_s27, 0  ;;  %p34_p1 = scmp.ne.s32.totalorder %s4103_s23, %s4099_s22 }
   0x6   : > { %p35_p2 = scmp.eq.s32.totalorder %s4107_s24, 0  ;;  %p40_p3 = scmp.ne.s32.totalorder %s4099_s22, %s4095_s21 }
   0x7   : > { %s4179_s29 = scalar_select %p25_p0, %s4103_s23, %s27_s28  }
   0x8   : > { %p36_p4 = por %p35_p2, %p34_p1  ;;  %p41_p5 = scmp.eq.s32.totalorder %s4166_s25, 0 }
   0x9   : > { %p3998_p6 = scmp.lt.s32.totalorder %s4107_s24, 2  ;;  %s214_s7 = sand.u32 1, %s4103_s23  }
   0xa   : > { %p4183_p7 = por %p41_p5, %p40_p3  ;;  %s2780_s8 = sshll.u32 %s214_s7, 9 }
   0xb   : > { %s2929_s9 = sshll.u32 %s4107_s24, 13  ;;  %s218_s13 = scalar_lea.vmem [#allocation2], %s2780_s8 }
   0xc   : > { %s4192_s12 = scalar_lea.hbm %s5126_s0, %s2929_s9  ;;  %s225_s14 = sshll.u32 %s218_s13, 4  ;;  %s4194_s14 = int_to_ptr.vmem [resolvable:$true] %s225_s14 }
   0xd   : > { %p4196_p8 = pnand %p3998_p6, %p36_p4  ;;  %s4201_s16 = scalar_lea.sflag [#allocation3], %s214_s7 }
   0xe   : > { %s4043_s17 = scalar_lea.hbm %s4192_s12, 8192  ;;  %s4048_s20 = scalar_lea.hbm %s5126_s0, 16384 }
   0xf   : > { %p4044_p10 = scmp.ne.s32.totalorder %s4192_s12, %s4043_s17  ;;  %p4045_p11 = pneg %p4196_p8 }
  0x10   : > { %p4049_p0 = scmp.lt.u32.totalorder %s4192_s12, %s5126_s0  ;;  %p4050_p1 = scmp.lt.u32.totalorder %s4048_s20, %s4043_s17 }
  0x11   : > { %p4046_p12 = pnand %p4045_p11, %p4044_p10  ;;  %p4052_p3 = scmp.lt.u32.totalorder %s4043_s17, %s4192_s12 }
  0x12   : > { %p4051_p2 = por %p4050_p1, %p4049_p0 }
  0x13   : > { %p4047_p13 = pneg %p4046_p12 }
  0x14   : > { %p4053_p4 = por %p4052_p3, %p4051_p2 }
  0x16   : > { %p4054_p5 = pnand %p4053_p4, %p4047_p13 }
  0x18   : > { %4057 = shalt.err (!%p4054_p5)
}
  0x19   : > { %s4058_s28 = scalar_lea.vmem %s4194_s14, 8192  ;;  %s4109_s7 = smov [#allocation2]  }
  0x1a   : > { %p4059_p6 = scmp.ne.s32.totalorder %s4194_s14, %s4058_s28  ;;  %s4063_s8 = sshll.u32 %s4109_s7, 4  ;;  %s4064_s8 = int_to_ptr.vmem [resolvable:$false] %s4063_s8 }
  0x1b   : > { %s4065_s9 = scalar_lea.vmem %s4064_s8, 16384  ;;  %p4066_p9 = scmp.lt.s32.totalorder %s4194_s14, %s4064_s8 }
  0x1c   : > { %p4061_p10 = pnand %p4059_p6, %p4045_p11  ;;  %p4067_p0 = scmp.lt.s32.totalorder %s4065_s9, %s4058_s28 }
  0x1e   : > { %p4062_p12 = pneg %p4061_p10  ;;  %p4068_p1 = por %p4067_p0, %p4066_p9 }
  0x20   : > { %p4069_p2 = pnand %p4068_p1, %p4062_p12 }
  0x22   : > { %4072 = shalt.err (!%p4069_p2)
}
  0x23   : > { %s4110_s10 = smov 64   ;;  %s4111_s11 = smov 4  }
  0x24   : > { %3997 = dma.hbm_to_vmem [thread:$0]  (!%p4196_p8), %s4192_s12, 8192, %s4194_s14, %s4201_s16, %s4110_s10, %s4110_s10, %s4111_s11  }
  0x25   : > { %p233_p11 = scmp.lt.s32.totalorder %s4107_s24, 3  ;;  %p5135_p13 = scmp.ge.s32.totalorder %s4107_s24, 1 }
  0x27   : > { %p234_p3 = pnand %p5135_p13, %p233_p11 }
  0x28   : > { %s239_s13 = sand.u32 (!%p234_p3), 1, %s4099_s22  }
  0x29   : > { %237 = sbr.rel (%p234_p3) target bundleno = 554 (0x22a), region = 36  ;;  %s2784_s17 = sshll.u32 (!%p234_p3), %s239_s13, 9 }
  0x2a   : > { %s240_s18 = scalar_lea.sflag (!%p234_p3), [#allocation3], %s239_s13  ;;  %s4233_s19 = scalar_lea.vmem (!%p234_p3), [#allocation2], %s2784_s17 }
  0x30   : > { %4090 = dma.done.wait (%p4183_p7), %s240_s18, 8192  }
  0x31   : > { %4092 = vsyncadd (%p4183_p7), %s240_s18, 4294959104  ;;  %v4033_v0 = vld [vmem:[%s5129_s3] sm:$0xff]   ;;  %v4034_v1 = vld [vmem:[%s5129_s3 + $0x8] sm:$0xff]   ;;  %p287_p8 = scmp.lt.s32.totalorder %s4166_s25, 1 }
  0x32   : > { %3832 = vmatprep.subr.bf16.mxu0 %v4033_v0  ;;  %3976 = vmatprep.subr.bf16.mxu1 %v4033_v0  ;;  %v4035_v2 = vld [vmem:[%s5129_s3 + $0x10] sm:$0xff]   ;;  %v4036_v3 = vld [vmem:[%s5129_s3 + $0x18] sm:$0xff]   ;;  %v3059_v4 = vld [vmem:[%s4233_s19] sm:$0xff]  }
  0x33   : > { %3833 = vmatpush3.bf16.msra.mxu0 %v4033_v0  ;;  %3984 = vmatpush3.bf16.msra.mxu1 %v4033_v0  ;;  %v4255_v5 = vld [vmem:[%s5127_s1] ss:$0 sm:$0xff]  ;;  %v3060_v6 = vunpack.c.l.bf16 %v3059_v4  ;;  %v3061_v7 = vunpack.c.h.bf16 %v3059_v4  ;;  %v3634_v11 = vld [vmem:[%s4233_s19 + $0x8] sm:$0xff]   ;;  %v3635_v13 = vld [vmem:[%s4233_s19 + $0x10] sm:$0xff]  }
  0x34   : > { %3834 = vmatprep.subr.bf16.mxu0 %v4034_v1  ;;  %3977 = vmatprep.subr.bf16.mxu1 %v4034_v1  ;;  %v4260_v8 = vld [vmem:[%s5128_s2] ss:$0 sm:$0xff]  ;;  %v3064_v16 = vunpack.c.l.bf16 %v3634_v11  ;;  %v3065_v17 = vunpack.c.h.bf16 %v3634_v11  ;;  %v3068_v20 = vunpack.c.l.bf16 %v3635_v13  ;;  %v3069_v21 = vunpack.c.h.bf16 %v3635_v13  ;;  %v4038_v22 = vld [vmem:[%s5129_s3 + $0x28] sm:$0xff]   ;;  %v3636_v26 = vld [vmem:[%s4233_s19 + $0x18] sm:$0xff]  }
  0x35   : > { %v559_v9 = vmul.f32 %v3060_v6, %v4255_v5  ;;  %v560_v10 = vmul.f32 %v3061_v7, %v4255_v5  ;;  %v4037_v12 = vld [vmem:[%s5129_s3 + $0x20] sm:$0xff]   ;;  %v4039_v29 = vld [vmem:[%s5129_s3 + $0x30] sm:$0xff]   ;;  %v3072_v31 = vunpack.c.l.bf16 %v3636_v26  ;;  %v3073_v32 = vunpack.c.h.bf16 %v3636_v26  ;;  %v4040_v39 = vld [vmem:[%s5129_s3 + $0x38] sm:$0xff]  }
  0x36   : > { %v561_v24 = vmul.f32 %v3064_v16, %v4255_v5  ;;  %v562_v25 = vmul.f32 %v3065_v17, %v4255_v5  ;;  %v563_v27 = vmul.f32 %v3068_v20, %v4255_v5  ;;  %v564_v28 = vmul.f32 %v3069_v21, %v4255_v5  ;;  %v3637_v30 = vld [vmem:[%s4233_s19 + $0x20] sm:$0xff]   ;;  %v3638_v48 = vld [vmem:[%s4233_s19 + $0x28] sm:$0xff]   ;;  %v3639_v49 = vld [vmem:[%s4233_s19 + $0x30] sm:$0xff]  }
  0x37   : > { %3835 = vmatpush3.bf16.msra.mxu0 %v4034_v1  ;;  %3985 = vmatpush3.bf16.msra.mxu1 %v4034_v1  ;;  %v694_v14 = vadd.f32 %v4260_v8, %v559_v9  ;;  %v695_v15 = vadd.f32 %v4260_v8, %v560_v10  ;;  %v3076_v37 = vunpack.c.l.bf16 %v3637_v30  ;;  %v3077_v38 = vunpack.c.h.bf16 %v3637_v30  ;;  %v3640_v1 = vld [vmem:[%s4233_s19 + $0x38] sm:$0xff]   ;;  %v3641_v6 = vld [vmem:[%s4233_s19 + $0x40] sm:$0xff]   ;;  %v3643_v21 = vld [vmem:[%s4233_s19 + $0x50] sm:$0xff]  }
  0x38   : > { %3836 = vmatprep.subr.bf16.mxu0 %v4035_v2  ;;  %3978 = vmatprep.subr.bf16.mxu1 %v4035_v2  ;;  %v696_v33 = vadd.f32 %v4260_v8, %v561_v24  ;;  %v697_v34 = vadd.f32 %v4260_v8, %v562_v25  ;;  %v698_v35 = vadd.f32 %v4260_v8, %v563_v27  ;;  %v3080_v53 = vunpack.c.l.bf16 %v3638_v48  ;;  %v3644_v26 = vld [vmem:[%s4233_s19 + $0x58] sm:$0xff]  }
  0x39   : > { %v822_v18 = vmax.f32 %v694_v14, 0.0  ;;  %v823_v19 = vmax.f32 %v695_v15, 0.0  ;;  %v699_v36 = vadd.f32 %v4260_v8, %v564_v28  ;;  %v565_v40 = vmul.f32 %v3072_v31, %v4255_v5 }
  0x3a   : > { %v566_v41 = vmul.f32 %v3073_v32, %v4255_v5  ;;  %v824_v42 = vmax.f32 %v696_v33, 0.0  ;;  %v825_v43 = vmax.f32 %v697_v34, 0.0  ;;  %v826_v44 = vmax.f32 %v698_v35, 0.0 }
  0x3b   : > { %3837 = vmatpush3.bf16.msra.mxu0 %v4035_v2  ;;  %3986 = vmatpush3.bf16.msra.mxu1 %v4035_v2  ;;  %v950_v23 = vpack.c.bf16 %v823_v19, %v822_v18  ;;  %v827_v45 = vmax.f32 %v699_v36, 0.0  ;;  %v567_v46 = vmul.f32 %v3076_v37, %v4255_v5  ;;  %v568_v47 = vmul.f32 %v3077_v38, %v4255_v5  ;;  %v3642_v18 = vld [vmem:[%s4233_s19 + $0x48] sm:$0xff]  }
  0x3c   : > { %3838 = vmatprep.subr.bf16.mxu0 %v4036_v3  ;;  %3979 = vmatprep.subr.bf16.mxu1 %v4036_v3  ;;  %v700_v50 = vadd.f32 %v4260_v8, %v565_v40  ;;  %v701_v51 = vadd.f32 %v4260_v8, %v566_v41  ;;  %v951_v52 = vpack.c.bf16 %v825_v43, %v824_v42  ;;  %v3081_v54 = vunpack.c.h.bf16 %v3638_v48 }
  0x3d   : > { %3848 = vmatprep.mubr.bf16.mxu0 %v950_v23  ;;  %v3084_v55 = vunpack.c.l.bf16 %v3639_v49  ;;  %v952_v56 = vpack.c.bf16 %v827_v45, %v826_v44  ;;  %v702_v57 = vadd.f32 %v4260_v8, %v567_v46  ;;  %v703_v58 = vadd.f32 %v4260_v8, %v568_v47  ;;  %v3645_v45 = vld [vmem:[%s4233_s19 + $0x60] sm:$0xff]  }
  0x3e   : > { %v3085_v59 = vunpack.c.h.bf16 %v3639_v49  ;;  %v828_v60 = vmax.f32 %v700_v50, 0.0  ;;  %v829_v61 = vmax.f32 %v701_v51, 0.0  ;;  %v569_v62 = vmul.f32 %v3080_v53, %v4255_v5 }
  0x3f   : > { %3839 = vmatpush3.bf16.msra.mxu0 %v4036_v3  ;;  %3987 = vmatpush3.bf16.msra.mxu1 %v4036_v3  ;;  %v570_v63 = vmul.f32 %v3081_v54, %v4255_v5  ;;  %v571_v0 = vmul.f32 %v3084_v55, %v4255_v5  ;;  %v830_v2 = vmax.f32 %v702_v57, 0.0  ;;  %v831_v3 = vmax.f32 %v703_v58, 0.0  ;;  %v3646_v57 = vld [vmem:[%s4233_s19 + $0x68] sm:$0xff]  }
  0x40   : > { %3840 = vmatprep.subr.bf16.mxu0 %v4037_v12  ;;  %3980 = vmatprep.subr.bf16.mxu1 %v4037_v12  ;;  %v572_v4 = vmul.f32 %v3085_v59, %v4255_v5  ;;  %v3088_v7 = vunpack.c.l.bf16 %v3640_v1  ;;  %v3089_v9 = vunpack.c.h.bf16 %v3640_v1  ;;  %v953_v10 = vpack.c.bf16 %v829_v61, %v828_v60 }
  0x41   : > { %v704_v11 = vadd.f32 %v4260_v8, %v569_v62  ;;  %v706_v13 = vadd.f32 %v4260_v8, %v571_v0  ;;  %v954_v14 = vpack.c.bf16 %v831_v3, %v830_v2  ;;  %v3092_v16 = vunpack.c.l.bf16 %v3641_v6 }
  0x42   : > { %v707_v15 = vadd.f32 %v4260_v8, %v572_v4  ;;  %v3093_v17 = vunpack.c.h.bf16 %v3641_v6  ;;  %v573_v19 = vmul.f32 %v3088_v7, %v4255_v5  ;;  %v574_v20 = vmul.f32 %v3089_v9, %v4255_v5 }
  0x43   : > { %3841 = vmatpush3.bf16.msra.mxu0 %v4037_v12  ;;  %3988 = vmatpush3.bf16.msra.mxu1 %v4037_v12  ;;  %v705_v12 = vadd.f32 %v4260_v8, %v570_v63  ;;  %v834_v24 = vmax.f32 %v706_v13, 0.0  ;;  %v3096_v25 = vunpack.c.l.bf16 %v3642_v18  ;;  %v575_v28 = vmul.f32 %v3092_v16, %v4255_v5  ;;  %v3649_v16 = vld [vmem:[%s4233_s19 + $0x80] sm:$0xff]  }
  0x44   : > { %3842 = vmatprep.subr.bf16.mxu0 %v4038_v22  ;;  %3981 = vmatprep.subr.bf16.mxu1 %v4038_v22  ;;  %v835_v27 = vmax.f32 %v707_v15, 0.0  ;;  %v3097_v30 = vunpack.c.h.bf16 %v3642_v18  ;;  %v3100_v31 = vunpack.c.l.bf16 %v3643_v21  ;;  %v3101_v32 = vunpack.c.h.bf16 %v3643_v21 }
  0x45   : > { %v833_v23 = vmax.f32 %v705_v12, 0.0  ;;  %v3104_v33 = vunpack.c.l.bf16 %v3644_v26  ;;  %v3105_v34 = vunpack.c.h.bf16 %v3644_v26  ;;  %v708_v36 = vadd.f32 %v4260_v8, %v573_v19  ;;  %v3648_v12 = vld [vmem:[%s4233_s19 + $0x78] sm:$0xff]  }
  0x46   : > { %v709_v37 = vadd.f32 %v4260_v8, %v574_v20  ;;  %v577_v38 = vmul.f32 %v3096_v25, %v4255_v5  ;;  %v710_v40 = vadd.f32 %v4260_v8, %v575_v28  ;;  %v578_v42 = vmul.f32 %v3097_v30, %v4255_v5 }
  0x47   : > { %3843 = vmatpush3.bf16.msra.mxu0 %v4038_v22  ;;  %3989 = vmatpush3.bf16.msra.mxu1 %v4038_v22  ;;  %v832_v22 = vmax.f32 %v704_v11, 0.0  ;;  %v579_v43 = vmul.f32 %v3100_v31, %v4255_v5  ;;  %v580_v44 = vmul.f32 %v3101_v32, %v4255_v5  ;;  %v581_v46 = vmul.f32 %v3104_v33, %v4255_v5  ;;  %v3647_v11 = vld [vmem:[%s4233_s19 + $0x70] sm:$0xff]  }
  0x48   : > { %3844 = vmatprep.subr.bf16.mxu0 %v4039_v29  ;;  %3982 = vmatprep.subr.bf16.mxu1 %v4039_v29  ;;  %v582_v47 = vmul.f32 %v3105_v34, %v4255_v5  ;;  %v836_v48 = vmax.f32 %v708_v36, 0.0  ;;  %v837_v49 = vmax.f32 %v709_v37, 0.0  ;;  %v712_v50 = vadd.f32 %v4260_v8, %v577_v38 }
  0x49   : > { %v955_v35 = vpack.c.bf16 %v833_v23, %v832_v22  ;;  %v838_v51 = vmax.f32 %v710_v40, 0.0  ;;  %v713_v53 = vadd.f32 %v4260_v8, %v578_v42  ;;  %v3108_v54 = vunpack.c.l.bf16 %v3645_v45  ;;  %v3651_v22 = vld [vmem:[%s4233_s19 + $0x90] sm:$0xff]   ;;  %v3653_v40 = vld [vmem:[%s4233_s19 + $0xa0] sm:$0xff]  }
  0x4a   : > { %v714_v55 = vadd.f32 %v4260_v8, %v579_v43  ;;  %v716_v58 = vadd.f32 %v4260_v8, %v581_v46  ;;  %v717_v59 = vadd.f32 %v4260_v8, %v582_v47  ;;  %v3109_v60 = vunpack.c.h.bf16 %v3645_v45 }
  0x4b   : > { %3845 = vmatpush3.bf16.msra.mxu0 %v4039_v29  ;;  %3990 = vmatpush3.bf16.msra.mxu1 %v4039_v29  ;;  %v576_v29 = vmul.f32 %v3093_v17, %v4255_v5  ;;  %v957_v61 = vpack.c.bf16 %v837_v49, %v836_v48  ;;  %v840_v62 = vmax.f32 %v712_v50, 0.0  ;;  %v841_v0 = vmax.f32 %v713_v53, 0.0  ;;  %v3650_v17 = vld [vmem:[%s4233_s19 + $0x88] sm:$0xff]  }
  0x4c   : > { %3846 = vmatprep.subr.bf16.mxu0 %v4040_v39  ;;  %3983 = vmatprep.subr.bf16.mxu1 %v4040_v39  ;;  %v583_v1 = vmul.f32 %v3108_v54, %v4255_v5  ;;  %v3112_v2 = vunpack.c.l.bf16 %v3646_v57  ;;  %v842_v3 = vmax.f32 %v714_v55, 0.0  ;;  %v3113_v6 = vunpack.c.h.bf16 %v3646_v57 }
  0x4d   : > { %v711_v41 = vadd.f32 %v4260_v8, %v576_v29  ;;  %v844_v7 = vmax.f32 %v716_v58, 0.0  ;;  %v845_v9 = vmax.f32 %v717_v59, 0.0  ;;  %v959_v13 = vpack.c.bf16 %v841_v0, %v840_v62 }
  0x4e   : > { %v585_v15 = vmul.f32 %v3112_v2, %v4255_v5  ;;  %v586_v19 = vmul.f32 %v3113_v6, %v4255_v5  ;;  %v3116_v20 = vunpack.c.l.bf16 %v3647_v11  ;;  %v3117_v21 = vunpack.c.h.bf16 %v3647_v11 }
  0x4f   : > { %3847 = vmatpush3.bf16.msra.mxu0 %v4040_v39  ;;  %3991 = vmatpush3.bf16.msra.mxu1 %v4040_v39  ;;  %v956_v39 = vpack.c.bf16 %v835_v27, %v834_v24  ;;  %v961_v23 = vpack.c.bf16 %v845_v9, %v844_v7  ;;  %v3120_v25 = vunpack.c.l.bf16 %v3648_v12  ;;  %v3121_v26 = vunpack.c.h.bf16 %v3648_v12  ;;  %v3652_v27 = vld [vmem:[%s4233_s19 + $0x98] sm:$0xff]  }
  0x50   : > { %v3124_v28 = vunpack.c.l.bf16 %v3649_v16  ;;  %v3125_v29 = vunpack.c.h.bf16 %v3649_v16  ;;  %v3128_v30 = vunpack.c.l.bf16 %v3650_v17  ;;  %v3129_v31 = vunpack.c.h.bf16 %v3650_v17 }
  0x51   : > { %v720_v33 = vadd.f32 %v4260_v8, %v585_v15  ;;  %v3132_v34 = vunpack.c.l.bf16 %v3651_v22  ;;  %v721_v36 = vadd.f32 %v4260_v8, %v586_v19  ;;  %v587_v37 = vmul.f32 %v3116_v20, %v4255_v5  ;;  %v3655_v20 = vld [vmem:[%s4233_s19 + $0xb0] sm:$0xff]  }
  0x52   : > { %3849 = vmatmul.mubr.bf16.vlgmr.msra.gmra.mrb[0].mxu0 %v951_v52  ;;  %v839_v52 = vmax.f32 %v711_v41, 0.0  ;;  %v3136_v38 = vunpack.c.l.bf16 %v3652_v27  ;;  %v588_v42 = vmul.f32 %v3117_v21, %v4255_v5  ;;  %v589_v43 = vmul.f32 %v3120_v25, %v4255_v5 }
  0x53   : > { %3852 = vmatprep.mubr.bf16.mxu0 %v952_v56  ;;  %v715_v56 = vadd.f32 %v4260_v8, %v580_v44  ;;  %v590_v44 = vmul.f32 %v3121_v26, %v4255_v5  ;;  %v591_v45 = vmul.f32 %v3124_v28, %v4255_v5  ;;  %v592_v46 = vmul.f32 %v3125_v29, %v4255_v5  ;;  %v3665_v26 = vld [vmem:[%s4233_s19 + $0x100] sm:$0xff]  }
  0x54   : > { %v958_v63 = vpack.c.bf16 %v839_v52, %v838_v51  ;;  %v593_v47 = vmul.f32 %v3128_v30, %v4255_v5  ;;  %v594_v48 = vmul.f32 %v3129_v31, %v4255_v5  ;;  %v848_v49 = vmax.f32 %v720_v33, 0.0 }
  0x55   : > { %v843_v4 = vmax.f32 %v715_v56, 0.0  ;;  %v595_v50 = vmul.f32 %v3132_v34, %v4255_v5  ;;  %v3140_v52 = vunpack.c.l.bf16 %v3653_v40  ;;  %v849_v53 = vmax.f32 %v721_v36, 0.0  ;;  %v4385_v34 = vld [vmem:[%s4233_s19 + $0xb8] sm:$0xff]  }
  0x56   : > { %v722_v54 = vadd.f32 %v4260_v8, %v587_v37  ;;  %v597_v55 = vmul.f32 %v3136_v38, %v4255_v5  ;;  %v723_v58 = vadd.f32 %v4260_v8, %v588_v42  ;;  %v724_v59 = vadd.f32 %v4260_v8, %v589_v43 }
  0x57   : > { %v960_v18 = vpack.c.bf16 %v843_v4, %v842_v3  ;;  %v726_v62 = vadd.f32 %v4260_v8, %v591_v45  ;;  %v728_v0 = vadd.f32 %v4260_v8, %v593_v47  ;;  %v730_v2 = vadd.f32 %v4260_v8, %v595_v50 }
  0x58   : > { %v3141_v4 = vunpack.c.h.bf16 %v3653_v40  ;;  %v599_v6 = vmul.f32 %v3140_v52, %v4255_v5  ;;  %v850_v7 = vmax.f32 %v722_v54, 0.0  ;;  %v732_v9 = vadd.f32 %v4260_v8, %v597_v55 }
  0x59   : > { %v851_v12 = vmax.f32 %v723_v58, 0.0  ;;  %v854_v16 = vmax.f32 %v726_v62, 0.0  ;;  %v858_v21 = vmax.f32 %v730_v2, 0.0  ;;  %v3148_v33 = vunpack.c.l.bf16 %v3655_v20  ;;  %v3669_v2 = vld [vmem:[%s4233_s19 + $0x120] sm:$0xff]  }
  0x5a   : > { %3853 = vmatmul.mubr.bf16.gmra.mrb[4].mxu0 %v953_v10  ;;  %v584_v10 = vmul.f32 %v3109_v60, %v4255_v5  ;;  %v725_v60 = vadd.f32 %v4260_v8, %v590_v44  ;;  %v4379_v25 = vadd.f32 %v4260_v8, %v599_v6  ;;  %v860_v28 = vmax.f32 %v732_v9, 0.0  ;;  %v3667_v44 = vld [vmem:[%s4233_s19 + $0x110] sm:$0xff]  }
  0x5b   : > { %3856 = vmatprep.mubr.bf16.mxu0 %v954_v14  ;;  %v718_v14 = vadd.f32 %v4260_v8, %v583_v1  ;;  %v729_v1 = vadd.f32 %v4260_v8, %v594_v48  ;;  %v964_v30 = vpack.c.bf16 %v851_v12, %v850_v7  ;;  %v3149_v37 = vunpack.c.h.bf16 %v3655_v20 }
  0x5c   : > { %v719_v24 = vadd.f32 %v4260_v8, %v584_v10  ;;  %v3188_v38 = vunpack.c.l.bf16 %v3665_v26  ;;  %v862_v42 = vmax.f32 %v4379_v25, 0.0  ;;  %v3189_v43 = vunpack.c.h.bf16 %v3665_v26 }
  0x5d   : > { %v846_v32 = vmax.f32 %v718_v14, 0.0  ;;  %v853_v14 = vmax.f32 %v725_v60, 0.0  ;;  %v857_v19 = vmax.f32 %v729_v1, 0.0  ;;  %v3152_v47 = vunpack.c.l.bf16 %v4385_v34 }
  0x5e   : > { %v847_v41 = vmax.f32 %v719_v24, 0.0  ;;  %v600_v24 = vmul.f32 %v3141_v4, %v4255_v5  ;;  %v623_v48 = vmul.f32 %v3188_v38, %v4255_v5  ;;  %v4408_v50 = vmul.f32 %v3148_v33, %v4255_v5 }
  0x5f   : > { %v4413_v54 = vmul.f32 %v3149_v37, %v4255_v5 }
  0x60   : > { %v962_v57 = vpack.c.bf16 %v847_v41, %v846_v32  ;;  %v4393_v41 = vadd.f32 %v4260_v8, %v600_v24  ;;  %v758_v55 = vadd.f32 %v4260_v8, %v623_v48  ;;  %v3205_v24 = vunpack.c.h.bf16 %v3669_v2 }
  0x62   : > { %3857 = vmatmul.mubr.bf16.gmra.mrb[8].mxu0 %v955_v35  ;;  %v3133_v35 = vunpack.c.h.bf16 %v3651_v22  ;;  %v863_v58 = vmax.f32 %v4393_v41, 0.0  ;;  %v886_v62 = vmax.f32 %v758_v55, 0.0  ;;  %v632_v37 = vmul.f32 %v3205_v24, %v4255_v5 }
  0x63   : > { %3860 = vmatprep.mubr.bf16.mxu0 %v956_v39  ;;  %v3137_v39 = vunpack.c.h.bf16 %v3652_v27  ;;  %v963_v27 = vpack.c.bf16 %v849_v53, %v848_v49  ;;  %v3668_v53 = vld [vmem:[%s4233_s19 + $0x118] sm:$0xff]  }
  0x64   : > { %v596_v51 = vmul.f32 %v3133_v35, %v4255_v5  ;;  %v3200_v1 = vunpack.c.l.bf16 %v3668_v53  ;;  %v767_v55 = vadd.f32 %v4260_v8, %v632_v37 }
  0x65   : > { %v598_v56 = vmul.f32 %v3137_v39, %v4255_v5  ;;  %v3666_v39 = vld [vmem:[%s4233_s19 + $0x108] sm:$0xff]  }
  0x66   : > { %v731_v3 = vadd.f32 %v4260_v8, %v596_v51  ;;  %v624_v51 = vmul.f32 %v3189_v43, %v4255_v5  ;;  %v3192_v52 = vunpack.c.l.bf16 %v3666_v39  ;;  %v629_v12 = vmul.f32 %v3200_v1, %v4255_v5  ;;  %v3657_v43 = vld [vmem:[%s4233_s19 + $0xc0] sm:$0xff]  }
  0x67   : > { %v733_v10 = vadd.f32 %v4260_v8, %v598_v56  ;;  %v3193_v56 = vunpack.c.h.bf16 %v3666_v39 }
  0x68   : > { %v859_v22 = vmax.f32 %v731_v3, 0.0  ;;  %v625_v60 = vmul.f32 %v3192_v52, %v4255_v5  ;;  %v3672_v52 = vld [vmem:[%s4233_s19 + $0x138] sm:$0xff]  }
  0x69   : > { %v861_v29 = vmax.f32 %v733_v10, 0.0  ;;  %v3216_v1 = vunpack.c.l.bf16 %v3672_v52 }
  0x6a   : > { %3861 = vmatmul.mubr.bf16.gmra.mrb[12].mxu0 %v957_v61  ;;  %v3654_v61 = vld [vmem:[%s4233_s19 + $0xa8] sm:$0xff]   ;;  %v4390_v40 = vpack.c.bf16 %v859_v22, %v858_v21  ;;  %v760_v6 = vadd.f32 %v4260_v8, %v625_v60  ;;  %v764_v21 = vadd.f32 %v4260_v8, %v629_v12 }
  0x6b   : > { %3864 = vmatprep.mubr.bf16.mxu0 %v958_v63  ;;  %v727_v63 = vadd.f32 %v4260_v8, %v592_v46  ;;  %v3144_v11 = vunpack.c.l.bf16 %v3654_v61  ;;  %v3145_v15 = vunpack.c.h.bf16 %v3654_v61  ;;  %v4397_v45 = vpack.c.bf16 %v861_v29, %v860_v28  ;;  %v3671_v28 = vld [vmem:[%s4233_s19 + $0x130] sm:$0xff]  }
  0x6c   : > { %v3197_v61 = vunpack.c.h.bf16 %v3667_v44  ;;  %v3212_v48 = vunpack.c.l.bf16 %v3671_v28 }
  0x6d   : > { %v855_v17 = vmax.f32 %v727_v63, 0.0  ;;  %v602_v32 = vmul.f32 %v3145_v15, %v4255_v5  ;;  %v626_v63 = vmul.f32 %v3193_v56, %v4255_v5  ;;  %v888_v15 = vmax.f32 %v760_v6, 0.0 }
  0x6e   : > { %v628_v7 = vmul.f32 %v3197_v61, %v4255_v5  ;;  %v635_v60 = vmul.f32 %v3212_v48, %v4255_v5 }
  0x6f   : > { %v966_v35 = vpack.c.bf16 %v855_v17, %v854_v16  ;;  %v4405_v49 = vadd.f32 %v4260_v8, %v602_v32  ;;  %v761_v9 = vadd.f32 %v4260_v8, %v626_v63  ;;  %v3204_v17 = vunpack.c.l.bf16 %v3669_v2 }
  0x70   : > { %v763_v16 = vadd.f32 %v4260_v8, %v628_v7  ;;  %v3156_v63 = vunpack.c.l.bf16 %v3657_v43  ;;  %v3217_v2 = vunpack.c.h.bf16 %v3672_v52  ;;  %v770_v6 = vadd.f32 %v4260_v8, %v635_v60 }
  0x71   : > { %v631_v26 = vmul.f32 %v3204_v17, %v4255_v5 }
  0x72   : > { %3865 = vmatmul.mubr.bf16.gmra.mrb[16].mxu0 %v959_v13  ;;  %v852_v13 = vmax.f32 %v724_v59, 0.0  ;;  %v759_v59 = vadd.f32 %v4260_v8, %v624_v51  ;;  %v891_v22 = vmax.f32 %v763_v16, 0.0  ;;  %v3213_v51 = vunpack.c.h.bf16 %v3671_v28  ;;  %v3659_v28 = vld [vmem:[%s4233_s19 + $0xd0] sm:$0xff]  }
  0x73   : > { %3868 = vmatprep.mubr.bf16.mxu0 %v960_v18  ;;  %v856_v18 = vmax.f32 %v728_v0, 0.0  ;;  %v766_v38 = vadd.f32 %v4260_v8, %v631_v26  ;;  %v898_v41 = vmax.f32 %v770_v6, 0.0  ;;  %v3164_v52 = vunpack.c.l.bf16 %v3659_v28 }
  0x74   : > { %v965_v31 = vpack.c.bf16 %v853_v14, %v852_v13  ;;  %v887_v4 = vmax.f32 %v759_v59, 0.0  ;;  %v3670_v13 = vld [vmem:[%s4233_s19 + $0x128] sm:$0xff]   ;;  %v738_v59 = vadd.f32 %v4260_v8, %v4408_v50  ;;  %v636_v61 = vmul.f32 %v3213_v51, %v4255_v5 }
  0x75   : > { %v4387_v36 = vpack.c.bf16 %v857_v19, %v856_v18  ;;  %v889_v18 = vmax.f32 %v761_v9, 0.0  ;;  %v3209_v32 = vunpack.c.h.bf16 %v3670_v13  ;;  %v894_v56 = vmax.f32 %v766_v38, 0.0 }
  0x76   : > { %v982_v14 = vpack.c.bf16 %v887_v4, %v886_v62  ;;  %v3673_v62 = vld [vmem:[%s4233_s19 + $0x140] sm:$0xff]   ;;  %v771_v50 = vadd.f32 %v4260_v8, %v636_v61  ;;  %v866_v17 = vmax.f32 %v738_v59, 0.0 }
  0x77   : > { %v983_v29 = vpack.c.bf16 %v889_v18, %v888_v15  ;;  %v3220_v7 = vunpack.c.l.bf16 %v3673_v62  ;;  %v3221_v9 = vunpack.c.h.bf16 %v3673_v62  ;;  %v637_v15 = vmul.f32 %v3216_v1, %v4255_v5  ;;  %v3658_v18 = vld [vmem:[%s4233_s19 + $0xc8] sm:$0xff]   ;;  %v3676_v62 = vld [vmem:[%s4233_s19 + $0x158] sm:$0xff]  }
  0x78   : > { %3912 = vmatprep.mubr.bf16.mxu1 %v982_v14  ;;  %v970_v14 = vpack.c.bf16 %v863_v58, %v862_v42  ;;  %v899_v42 = vmax.f32 %v771_v50, 0.0  ;;  %v3161_v51 = vunpack.c.h.bf16 %v3658_v18 }
  0x79   : > { %3913 = vmatmul.mubr.bf16.vlgmr.msra.gmra.mrb[0].mxu1 %v983_v29  ;;  %v639_v58 = vmul.f32 %v3220_v7, %v4255_v5  ;;  %v772_v29 = vadd.f32 %v4260_v8, %v637_v15 }
  0x7a   : > { %3869 = vmatmul.mubr.bf16.gmra.mrb[20].mxu0 %v961_v23  ;;  %v601_v23 = vmul.f32 %v3144_v11, %v4255_v5  ;;  %v3201_v11 = vunpack.c.h.bf16 %v3668_v53  ;;  %v3153_v53 = vunpack.c.h.bf16 %v4385_v34  ;;  %v988_v38 = vpack.c.bf16 %v899_v42, %v898_v41 }
  0x7b   : > { %3872 = vmatprep.mubr.bf16.mxu0 %v962_v57  ;;  %v3196_v57 = vunpack.c.l.bf16 %v3667_v44 }
  0x7c   : > { %v4400_v46 = vadd.f32 %v4260_v8, %v601_v23  ;;  %v630_v20 = vmul.f32 %v3201_v11, %v4255_v5  ;;  %v606_v11 = vmul.f32 %v3153_v53, %v4255_v5 }
  0x7d   : > { %v627_v0 = vmul.f32 %v3196_v57, %v4255_v5  ;;  %v865_v57 = vmax.f32 %v4405_v49, 0.0 }
  0x7e   : > { %v864_v3 = vmax.f32 %v4400_v46, 0.0  ;;  %v765_v23 = vadd.f32 %v4260_v8, %v630_v20  ;;  %v3674_v20 = vld [vmem:[%s4233_s19 + $0x148] sm:$0xff]   ;;  %v741_v46 = vadd.f32 %v4260_v8, %v606_v11 }
  0x7f   : > { %v762_v10 = vadd.f32 %v4260_v8, %v627_v0  ;;  %v895_v0 = vmax.f32 %v767_v55, 0.0  ;;  %v3660_v55 = vld [vmem:[%s4233_s19 + $0xd8] sm:$0xff]  }
  0x80   : > { %v893_v44 = vmax.f32 %v765_v23, 0.0  ;;  %v4473_v16 = vpack.c.bf16 %v865_v57, %v864_v3  ;;  %v869_v59 = vmax.f32 %v741_v46, 0.0  ;;  %v3168_v6 = vunpack.c.l.bf16 %v3660_v55 }
  0x81   : > { %v890_v19 = vmax.f32 %v762_v10, 0.0  ;;  %v986_v49 = vpack.c.bf16 %v895_v0, %v894_v56  ;;  %v739_v10 = vadd.f32 %v4260_v8, %v4413_v54  ;;  %v638_v54 = vmul.f32 %v3217_v2, %v4255_v5 }
  0x82   : > { %3873 = vmatmul.mubr.bf16.gmra.mrb[24].mxu0 %v963_v27  ;;  %v3208_v27 = vunpack.c.l.bf16 %v3670_v13  ;;  %v3157_v13 = vunpack.c.h.bf16 %v3657_v43  ;;  %v900_v56 = vmax.f32 %v772_v29, 0.0  ;;  %v3169_v41 = vunpack.c.h.bf16 %v3660_v55 }
  0x83   : > { %3876 = vmatprep.mubr.bf16.mxu0 %v964_v30  ;;  %v892_v30 = vmax.f32 %v764_v21, 0.0  ;;  %v984_v33 = vpack.c.bf16 %v891_v22, %v890_v19  ;;  %v640_v19 = vmul.f32 %v3221_v9, %v4255_v5  ;;  %v3675_v21 = vld [vmem:[%s4233_s19 + $0x150] sm:$0xff]   ;;  %v867_v22 = vmax.f32 %v739_v10, 0.0 }
  0x84   : > { %v633_v39 = vmul.f32 %v3208_v27, %v4255_v5  ;;  %v608_v24 = vmul.f32 %v3157_v13, %v4255_v5  ;;  %v3160_v27 = vunpack.c.l.bf16 %v3658_v18  ;;  %v773_v23 = vadd.f32 %v4260_v8, %v638_v54 }
  0x85   : > { %3916 = vmatprep.mubr.bf16.mxu1 %v984_v33  ;;  %v985_v34 = vpack.c.bf16 %v893_v44, %v892_v30  ;;  %v3225_v33 = vunpack.c.h.bf16 %v3674_v20  ;;  %v3228_v37 = vunpack.c.l.bf16 %v3675_v21  ;;  %v775_v43 = vadd.f32 %v4260_v8, %v640_v19 }
  0x86   : > { %v3229_v44 = vunpack.c.h.bf16 %v3675_v21  ;;  %v743_v48 = vadd.f32 %v4260_v8, %v608_v24  ;;  %v609_v53 = vmul.f32 %v3160_v27, %v4255_v5  ;;  %v901_v57 = vmax.f32 %v773_v23, 0.0  ;;  %v3678_v24 = vld [vmem:[%s4233_s19 + $0x168] sm:$0xff]   ;;  %v3679_v23 = vld [vmem:[%s4233_s19 + $0x170] sm:$0xff]  }
  0x87   : > { %3917 = vmatmul.mubr.bf16.gmra.mrb[4].mxu1 %v985_v34  ;;  %v643_v61 = vmul.f32 %v3228_v37, %v4255_v5  ;;  %v903_v1 = vmax.f32 %v775_v43, 0.0  ;;  %v3232_v10 = vunpack.c.l.bf16 %v3676_v62  ;;  %v613_v19 = vmul.f32 %v3168_v6, %v4255_v5  ;;  %v3662_v43 = vld [vmem:[%s4233_s19 + $0xe8] sm:$0xff]  }
  0x88   : > { %3920 = vmatprep.mubr.bf16.mxu1 %v986_v49  ;;  %v644_v2 = vmul.f32 %v3229_v44, %v4255_v5  ;;  %v871_v34 = vmax.f32 %v743_v48, 0.0  ;;  %v3677_v49 = vld [vmem:[%s4233_s19 + $0x160] sm:$0xff]   ;;  %v744_v50 = vadd.f32 %v4260_v8, %v609_v53  ;;  %v989_v9 = vpack.c.bf16 %v901_v57, %v900_v56 }
  0x89   : > { %v778_v13 = vadd.f32 %v4260_v8, %v643_v61  ;;  %v3236_v54 = vunpack.c.l.bf16 %v3677_v49  ;;  %v645_v21 = vmul.f32 %v3232_v10, %v4255_v5  ;;  %v3244_v53 = vunpack.c.l.bf16 %v3679_v23 }
  0x8a   : > { %3877 = vmatmul.mubr.bf16.gmra.mrb[28].mxu0 %v965_v31  ;;  %v634_v31 = vmul.f32 %v3209_v32, %v4255_v5  ;;  %v3224_v32 = vunpack.c.l.bf16 %v3674_v20  ;;  %v779_v15 = vadd.f32 %v4260_v8, %v644_v2  ;;  %v3661_v20 = vld [vmem:[%s4233_s19 + $0xe0] sm:$0xff]   ;;  %v3245_v57 = vunpack.c.h.bf16 %v3679_v23 }
  0x8b   : > { %3880 = vmatprep.mubr.bf16.mxu0 %v966_v35  ;;  %v605_v35 = vmul.f32 %v3152_v47, %v4255_v5  ;;  %v768_v47 = vadd.f32 %v4260_v8, %v633_v39  ;;  %v774_v39 = vadd.f32 %v4260_v8, %v639_v58  ;;  %v872_v58 = vmax.f32 %v744_v50, 0.0  ;;  %v4560_v23 = vld [vmem:[%s5128_s2] ss:$0 sm:$0xff] }
  0x8c   : > { %v769_v4 = vadd.f32 %v4260_v8, %v634_v31  ;;  %v972_v31 = vpack.c.bf16 %v867_v22, %v866_v17  ;;  %v641_v60 = vmul.f32 %v3224_v32, %v4255_v5  ;;  %v3237_v17 = vunpack.c.h.bf16 %v3677_v49  ;;  %v3680_v49 = vld [vmem:[%s4233_s19 + $0x178] sm:$0xff]  }
  0x8d   : > { %v4461_v12 = vadd.f32 %v4260_v8, %v605_v35  ;;  %v896_v25 = vmax.f32 %v768_v47, 0.0  ;;  %v3165_v35 = vunpack.c.h.bf16 %v3659_v28  ;;  %v902_v0 = vmax.f32 %v774_v39, 0.0 }
  0x8e   : > { %v610_v47 = vmul.f32 %v3161_v51, %v4255_v5  ;;  %v776_v11 = vadd.f32 %v4260_v8, %v641_v60  ;;  %v907_v27 = vmax.f32 %v779_v15, 0.0  ;;  %v647_v28 = vmul.f32 %v3236_v54, %v4255_v5 }
  0x8f   : > { %v868_v3 = vmax.f32 %v4461_v12, 0.0  ;;  %v612_v7 = vmul.f32 %v3165_v35, %v4255_v5  ;;  %v648_v29 = vmul.f32 %v3237_v17, %v4255_v5  ;;  %v3172_v37 = vunpack.c.l.bf16 %v3661_v20 }
  0x90   : > { %v3173_v39 = vunpack.c.h.bf16 %v3661_v20  ;;  %v780_v44 = vadd.f32 %v4260_v8, %v645_v21  ;;  %v782_v55 = vadd.f32 %v4260_v8, %v647_v28  ;;  %v3176_v61 = vunpack.c.l.bf16 %v3662_v43 }
  0x91   : > { %v973_v18 = vpack.c.bf16 %v869_v59, %v868_v3  ;;  %v747_v22 = vadd.f32 %v4260_v8, %v612_v7  ;;  %v783_v56 = vadd.f32 %v4260_v8, %v648_v29  ;;  %v651_v6 = vmul.f32 %v3244_v53, %v4255_v5 }
  0x92   : > { %3881 = vmatmul.mubr.bf16.gmra.mrb[32].mxu0 %v4387_v36  ;;  %v607_v36 = vmul.f32 %v3156_v63, %v4255_v5  ;;  %v908_v2 = vmax.f32 %v780_v44, 0.0  ;;  %v3177_v50 = vunpack.c.h.bf16 %v3662_v43  ;;  %v910_v7 = vmax.f32 %v782_v55, 0.0  ;;  %v3682_v44 = vld [vmem:[%s4233_s19 + $0x188] sm:$0xff]  }
  0x93   : > { %3884 = vmatprep.mubr.bf16.mxu0 %v4390_v40  ;;  %v897_v40 = vmax.f32 %v769_v4, 0.0  ;;  %v611_v4 = vmul.f32 %v3164_v52, %v4255_v5  ;;  %v3241_v52 = vunpack.c.h.bf16 %v3678_v24  ;;  %v875_v60 = vmax.f32 %v747_v22, 0.0 }
  0x94   : > { %v742_v26 = vadd.f32 %v4260_v8, %v607_v36  ;;  %v990_v36 = vpack.c.bf16 %v903_v1, %v902_v0  ;;  %v616_v0 = vmul.f32 %v3173_v39, %v4255_v5  ;;  %v3663_v1 = vld [vmem:[%s4233_s19 + $0xf0] sm:$0xff]   ;;  %v652_v10 = vmul.f32 %v3245_v57, %v4255_v5 }
  0x95   : > { %v987_v30 = vpack.c.bf16 %v897_v40, %v896_v25  ;;  %v745_v25 = vadd.f32 %v4260_v8, %v610_v47  ;;  %v746_v40 = vadd.f32 %v4260_v8, %v611_v4  ;;  %v650_v4 = vmul.f32 %v3241_v52, %v4255_v5 }
  0x96   : > { %v870_v63 = vmax.f32 %v742_v26, 0.0  ;;  %v906_v26 = vmax.f32 %v778_v13, 0.0  ;;  %v617_v13 = vmul.f32 %v3176_v61, %v4255_v5  ;;  %v751_v15 = vadd.f32 %v4260_v8, %v616_v0 }
  0x97   : > { %3921 = vmatmul.mubr.bf16.gmra.mrb[8].mxu1 %v987_v30  ;;  %v873_v30 = vmax.f32 %v745_v25, 0.0  ;;  %v874_v32 = vmax.f32 %v746_v40, 0.0  ;;  %v3181_v54 = vunpack.c.h.bf16 %v3663_v1  ;;  %v3248_v17 = vunpack.c.l.bf16 %v3680_v49 }
  0x98   : > { %3924 = vmatprep.mubr.bf16.mxu1 %v988_v38  ;;  %v974_v42 = vpack.c.bf16 %v871_v34, %v870_v63  ;;  %v4521_v38 = vadd.f32 %v4260_v8, %v613_v19  ;;  %v992_v35 = vpack.c.bf16 %v907_v27, %v906_v26  ;;  %v787_v20 = vadd.f32 %v4260_v8, %v652_v10  ;;  %v4552_v27 = vld [vmem:[%s5127_s1] ss:$0 sm:$0xff] }
  0x99   : > { %v975_v59 = vpack.c.bf16 %v873_v30, %v872_v58  ;;  %v3664_v58 = vld [vmem:[%s4233_s19 + $0xf8] sm:$0xff]   ;;  %v879_v26 = vmax.f32 %v751_v15, 0.0  ;;  %v653_v28 = vmul.f32 %v4552_v27, %v3248_v17 }
  0x9a   : > { %3885 = vmatmul.mubr.bf16.gmra.mrb[36].mxu0 %v4397_v45  ;;  %v642_v45 = vmul.f32 %v3225_v33, %v4255_v5  ;;  %v614_v33 = vmul.f32 %v3169_v41, %v4255_v5  ;;  %v876_v63 = vmax.f32 %v4521_v38, 0.0  ;;  %v785_v41 = vadd.f32 %v4260_v8, %v650_v4 }
  0x9b   : > { %3888 = vmatprep.mubr.bf16.mxu0 %v970_v14  ;;  %v3233_v14 = vunpack.c.h.bf16 %v3676_v62  ;;  %v3184_v30 = vunpack.c.l.bf16 %v3664_v58  ;;  %v915_v38 = vmax.f32 %v787_v20, 0.0  ;;  %v3185_v53 = vunpack.c.h.bf16 %v3664_v58 }
  0x9c   : > { %v777_v12 = vadd.f32 %v4260_v8, %v642_v45  ;;  %v615_v45 = vmul.f32 %v3172_v37, %v4255_v5  ;;  %v749_v62 = vadd.f32 %v4260_v8, %v614_v33  ;;  %v913_v33 = vmax.f32 %v785_v41, 0.0 }
  0x9d   : > { %v646_v3 = vmul.f32 %v3233_v14, %v4255_v5  ;;  %v3180_v14 = vunpack.c.l.bf16 %v3663_v1  ;;  %v622_v4 = vmul.f32 %v4552_v27, %v3185_v53 }
  0x9e   : > { %v905_v46 = vmax.f32 %v777_v12, 0.0  ;;  %v750_v12 = vadd.f32 %v4260_v8, %v615_v45  ;;  %v3257_v45 = vunpack.c.h.bf16 %v3682_v44 }
  0x9f   : > { %3925 = vmatmul.mubr.bf16.gmra.mrb[12].mxu1 %v989_v9  ;;  %v781_v51 = vadd.f32 %v4260_v8, %v646_v3  ;;  %v911_v9 = vmax.f32 %v783_v56, 0.0  ;;  %v618_v3 = vmul.f32 %v3177_v50, %v4255_v5  ;;  %v788_v56 = vadd.f32 %v4560_v23, %v653_v28 }
  0xa0   : > { %3928 = vmatprep.mubr.bf16.mxu1 %v990_v36  ;;  %v3681_v36 = vld [vmem:[%s4233_s19 + $0x180] sm:$0xff]   ;;  %v658_v10 = vmul.f32 %v4552_v27, %v3257_v45  ;;  %v757_v17 = vadd.f32 %v4560_v23, %v622_v4 }
  0xa1   : > { %v909_v34 = vmax.f32 %v781_v51, 0.0  ;;  %v994_v19 = vpack.c.bf16 %v911_v9, %v910_v7  ;;  %v3252_v21 = vunpack.c.l.bf16 %v3681_v36  ;;  %v3253_v22 = vunpack.c.h.bf16 %v3681_v36 }
  0xa2   : > { %3889 = vmatmul.mubr.bf16.gmra.mrb[40].mxu0 %v4473_v16  ;;  %v904_v16 = vmax.f32 %v776_v11, 0.0  ;;  %v976_v11 = vpack.c.bf16 %v875_v60, %v874_v32  ;;  %v753_v51 = vadd.f32 %v4560_v23, %v618_v3  ;;  %v3256_v60 = vunpack.c.l.bf16 %v3682_v44 }
  0xa3   : > { %3892 = vmatprep.mubr.bf16.mxu0 %v972_v31  ;;  %v3240_v31 = vunpack.c.l.bf16 %v3678_v24  ;;  %v993_v25 = vpack.c.bf16 %v909_v34, %v908_v2  ;;  %v619_v24 = vmul.f32 %v3180_v14, %v4255_v5  ;;  %v655_v39 = vmul.f32 %v4552_v27, %v3252_v21 }
  0xa4   : > { %v991_v48 = vpack.c.bf16 %v905_v46, %v904_v16  ;;  %v877_v16 = vmax.f32 %v749_v62, 0.0  ;;  %v878_v46 = vmax.f32 %v750_v12, 0.0  ;;  %v656_v43 = vmul.f32 %v4552_v27, %v3253_v22  ;;  %v3684_v12 = vld [vmem:[%s4233_s19 + $0x198] sm:$0xff]  }
  0xa5   : > { %v649_v47 = vmul.f32 %v3240_v31, %v4255_v5  ;;  %v752_v5 = vadd.f32 %v4560_v23, %v617_v13  ;;  %v3683_v31 = vld [vmem:[%s4233_s19 + $0x190] sm:$0xff]   ;;  %v754_v52 = vadd.f32 %v4560_v23, %v619_v24  ;;  %v790_v0 = vadd.f32 %v4560_v23, %v655_v39 }
  0xa6   : > { %v3260_v61 = vunpack.c.l.bf16 %v3683_v31  ;;  %v3261_v1 = vunpack.c.h.bf16 %v3683_v31  ;;  %v881_v34 = vmax.f32 %v753_v51, 0.0  ;;  %v916_v50 = vmax.f32 %v788_v56, 0.0 }
  0xa7   : > { %3929 = vmatmul.mubr.bf16.gmra.mrb[16].mxu1 %v991_v48  ;;  %v784_v40 = vadd.f32 %v4260_v8, %v649_v47  ;;  %v977_v48 = vpack.c.bf16 %v877_v16, %v876_v63  ;;  %v791_v63 = vadd.f32 %v4560_v23, %v656_v43  ;;  %v880_v2 = vmax.f32 %v752_v5, 0.0  ;;  %v3686_v5 = vld [vmem:[%s4233_s19 + $0x1a8] sm:$0xff]  }
  0xa8   : > { %3932 = vmatprep.mubr.bf16.mxu1 %v992_v35  ;;  %v978_v35 = vpack.c.bf16 %v879_v26, %v878_v46  ;;  %v621_v47 = vmul.f32 %v4552_v27, %v3184_v30  ;;  %v657_v9 = vmul.f32 %v4552_v27, %v3256_v60  ;;  %v918_v13 = vmax.f32 %v790_v0, 0.0 }
  0xa9   : > { %v912_v32 = vmax.f32 %v784_v40, 0.0  ;;  %v919_v14 = vmax.f32 %v791_v63, 0.0  ;;  %v660_v36 = vmul.f32 %v4552_v27, %v3261_v1  ;;  %v979_v15 = vpack.c.bf16 %v881_v34, %v880_v2  ;;  %v3689_v2 = vld [vmem:[%s4233_s19 + $0x1c0] sm:$0xff]  }
  0xaa   : > { %3893 = vmatmul.mubr.bf16.gmra.mrb[44].mxu0 %v973_v18  ;;  %v3249_v18 = vunpack.c.h.bf16 %v3680_v49  ;;  %v3264_v41 = vunpack.c.l.bf16 %v3684_v12  ;;  %v793_v58 = vadd.f32 %v4560_v23, %v658_v10  ;;  %v3265_v20 = vunpack.c.h.bf16 %v3684_v12 }
  0xab   : > { %3896 = vmatprep.mubr.bf16.mxu0 %v974_v42  ;;  %v786_v42 = vadd.f32 %v4260_v8, %v651_v6  ;;  %v620_v8 = vmul.f32 %v4552_v27, %v3181_v54  ;;  %v882_v6 = vmax.f32 %v754_v52, 0.0  ;;  %v756_v54 = vadd.f32 %v4560_v23, %v621_v47 }
  0xac   : > { %v654_v29 = vmul.f32 %v4552_v27, %v3249_v18  ;;  %v3685_v18 = vld [vmem:[%s4233_s19 + $0x1a0] sm:$0xff]   ;;  %v998_v21 = vpack.c.bf16 %v919_v14, %v918_v13  ;;  %v795_v22 = vadd.f32 %v4560_v23, %v660_v36  ;;  %v885_v24 = vmax.f32 %v757_v17, 0.0 }
  0xad   : > { %v914_v37 = vmax.f32 %v786_v42, 0.0  ;;  %v755_v55 = vadd.f32 %v4560_v23, %v620_v8  ;;  %v792_v42 = vadd.f32 %v4560_v23, %v657_v9  ;;  %v3268_v16 = vunpack.c.l.bf16 %v3685_v18 }
  0xae   : > { %v789_v57 = vadd.f32 %v4560_v23, %v654_v29  ;;  %v3269_v46 = vunpack.c.h.bf16 %v3685_v18  ;;  %v884_v3 = vmax.f32 %v756_v54, 0.0  ;;  %v661_v26 = vmul.f32 %v4552_v27, %v3264_v41 }
  0xaf   : > { %3933 = vmatmul.mubr.bf16.gmra.mrb[20].mxu1 %v993_v25  ;;  %v996_v62 = vpack.c.bf16 %v915_v38, %v914_v37  ;;  %v883_v49 = vmax.f32 %v755_v55, 0.0  ;;  %v920_v8 = vmax.f32 %v792_v42, 0.0  ;;  %v921_v28 = vmax.f32 %v793_v58, 0.0  ;;  %v3687_v38 = vld [vmem:[%s4233_s19 + $0x1b0] sm:$0xff]  }
  0xb0   : > { %3936 = vmatprep.mubr.bf16.mxu1 %v994_v19  ;;  %v917_v7 = vmax.f32 %v789_v57, 0.0  ;;  %v662_v29 = vmul.f32 %v4552_v27, %v3265_v20  ;;  %v664_v37 = vmul.f32 %v4552_v27, %v3269_v46  ;;  %v981_v39 = vpack.c.bf16 %v885_v24, %v884_v3 }
  0xb1   : > { %v980_v25 = vpack.c.bf16 %v883_v49, %v882_v6  ;;  %v796_v43 = vadd.f32 %v4560_v23, %v661_v26  ;;  %v3272_v44 = vunpack.c.l.bf16 %v3686_v5  ;;  %v999_v31 = vpack.c.bf16 %v921_v28, %v920_v8 }
  0xb2   : > { %3897 = vmatmul.mubr.bf16.gmra.mrb[48].mxu0 %v975_v59  ;;  %v995_v59 = vpack.c.bf16 %v913_v33, %v912_v32  ;;  %v997_v40 = vpack.c.bf16 %v917_v7, %v916_v50  ;;  %v923_v32 = vmax.f32 %v795_v22, 0.0  ;;  %v663_v33 = vmul.f32 %v4552_v27, %v3268_v16 }
  0xb3   : > { %3900 = vmatprep.mubr.bf16.mxu0 %v976_v11  ;;  %v659_v11 = vmul.f32 %v4552_v27, %v3260_v61  ;;  %v3273_v51 = vunpack.c.h.bf16 %v3686_v5  ;;  %v3276_v52 = vunpack.c.l.bf16 %v3687_v38  ;;  %v799_v55 = vadd.f32 %v4560_v23, %v664_v37  ;;  %v3693_v37 = vld [vmem:[%s4233_s19 + $0x1e0] sm:$0xff]  }
  0xb4   : > { %v3277_v56 = vunpack.c.h.bf16 %v3687_v38  ;;  %v924_v57 = vmax.f32 %v796_v43, 0.0  ;;  %v665_v60 = vmul.f32 %v4552_v27, %v3272_v44  ;;  %v3284_v10 = vunpack.c.l.bf16 %v3689_v2 }
  0xb5   : > { %v794_v19 = vadd.f32 %v4560_v23, %v659_v11  ;;  %v666_v45 = vmul.f32 %v4552_v27, %v3273_v51  ;;  %v667_v61 = vmul.f32 %v4552_v27, %v3276_v52  ;;  %v927_v63 = vmax.f32 %v799_v55, 0.0 }
  0xb6   : > { %v668_v1 = vmul.f32 %v4552_v27, %v3277_v56  ;;  %v800_v6 = vadd.f32 %v4560_v23, %v665_v60  ;;  %v3285_v11 = vunpack.c.h.bf16 %v3689_v2  ;;  %v671_v18 = vmul.f32 %v4552_v27, %v3284_v10 }
  0xb7   : > { %3937 = vmatmul.mubr.bf16.gmra.mrb[24].mxu1 %v995_v59  ;;  %v922_v30 = vmax.f32 %v794_v19, 0.0  ;;  %v801_v49 = vadd.f32 %v4560_v23, %v666_v45  ;;  %v802_v50 = vadd.f32 %v4560_v23, %v667_v61  ;;  %v3694_v61 = vld [vmem:[%s4233_s19 + $0x1e8] sm:$0xff]  }
  0xb8   : > { %3940 = vmatprep.mubr.bf16.mxu1 %v996_v62  ;;  %v3688_v62 = vld [vmem:[%s4233_s19 + $0x1b8] sm:$0xff]   ;;  %v803_v9 = vadd.f32 %v4560_v23, %v668_v1  ;;  %v928_v14 = vmax.f32 %v800_v6, 0.0  ;;  %v806_v46 = vadd.f32 %v4560_v23, %v671_v18  ;;  %v3304_v2 = vunpack.c.l.bf16 %v3694_v61 }
  0xb9   : > { %v1000_v53 = vpack.c.bf16 %v923_v32, %v922_v30  ;;  %v3280_v34 = vunpack.c.l.bf16 %v3688_v62  ;;  %v3281_v47 = vunpack.c.h.bf16 %v3688_v62  ;;  %v929_v36 = vmax.f32 %v801_v49, 0.0  ;;  %v3692_v30 = vld [vmem:[%s4233_s19 + $0x1d8] sm:$0xff]  }
  0xba   : > { %3901 = vmatmul.mubr.bf16.gmra.mrb[52].mxu0 %v977_v48  ;;  %v797_v48 = vadd.f32 %v4560_v23, %v662_v29  ;;  %v930_v54 = vmax.f32 %v802_v50, 0.0  ;;  %v931_v17 = vmax.f32 %v803_v9, 0.0  ;;  %v934_v32 = vmax.f32 %v806_v46, 0.0 }
  0xbb   : > { %3904 = vmatprep.mubr.bf16.mxu0 %v978_v35  ;;  %v798_v35 = vadd.f32 %v4560_v23, %v663_v33  ;;  %v669_v12 = vmul.f32 %v4552_v27, %v3280_v34  ;;  %v670_v13 = vmul.f32 %v4552_v27, %v3281_v47  ;;  %v1003_v19 = vpack.c.bf16 %v929_v36, %v928_v14 }
  0xbc   : > { %v925_v59 = vmax.f32 %v797_v48, 0.0  ;;  %v1004_v16 = vpack.c.bf16 %v931_v17, %v930_v54  ;;  %v3296_v43 = vunpack.c.l.bf16 %v3692_v30  ;;  %v3297_v51 = vunpack.c.h.bf16 %v3692_v30  ;;  %v3696_v17 = vld [vmem:[%s4233_s19 + $0x1f8] sm:$0xff]  }
  0xbd   : > { %v926_v0 = vmax.f32 %v798_v35, 0.0  ;;  %v804_v41 = vadd.f32 %v4560_v23, %v669_v12  ;;  %v805_v42 = vadd.f32 %v4560_v23, %v670_v13  ;;  %v3301_v35 = vunpack.c.h.bf16 %v3693_v37 }
  0xbe   : > { %v1001_v4 = vpack.c.bf16 %v925_v59, %v924_v57  ;;  %v677_v56 = vmul.f32 %v4552_v27, %v3296_v43  ;;  %v678_v45 = vmul.f32 %v4552_v27, %v3297_v51  ;;  %v3305_v6 = vunpack.c.h.bf16 %v3694_v61 }
  0xbf   : > { %3941 = vmatmul.mubr.bf16.gmra.mrb[28].mxu1 %v997_v40  ;;  %v1002_v7 = vpack.c.bf16 %v927_v63, %v926_v0  ;;  %v3691_v40 = vld [vmem:[%s4233_s19 + $0x1d0] sm:$0xff]   ;;  %v932_v24 = vmax.f32 %v804_v41, 0.0  ;;  %v933_v26 = vmax.f32 %v805_v42, 0.0  ;;  %v680_v0 = vmul.f32 %v4552_v27, %v3301_v35 }
  0xc0   : > { %3944 = vmatprep.mubr.bf16.mxu1 %v998_v21  ;;  %v3292_v21 = vunpack.c.l.bf16 %v3691_v40  ;;  %v3293_v22 = vunpack.c.h.bf16 %v3691_v40  ;;  %v3695_v63 = vld [vmem:[%s4233_s19 + $0x1f0] sm:$0xff]   ;;  %v812_v1 = vadd.f32 %v4560_v23, %v677_v56  ;;  %v681_v10 = vmul.f32 %v4552_v27, %v3304_v2 }
  0xc1   : > { %v1005_v38 = vpack.c.bf16 %v933_v26, %v932_v24  ;;  %v815_v50 = vadd.f32 %v4560_v23, %v680_v0  ;;  %v3309_v9 = vunpack.c.h.bf16 %v3695_v63  ;;  %v682_v13 = vmul.f32 %v4552_v27, %v3305_v6 }
  0xc2   : > { %3905 = vmatmul.mubr.bf16.gmra.mrb[56].mxu0 %v979_v15  ;;  %v3690_v15 = vld [vmem:[%s4233_s19 + $0x1c8] sm:$0xff]   ;;  %v675_v29 = vmul.f32 %v4552_v27, %v3292_v21  ;;  %v676_v5 = vmul.f32 %v4552_v27, %v3293_v22  ;;  %v816_v18 = vadd.f32 %v4560_v23, %v681_v10  ;;  %v3312_v41 = vunpack.c.l.bf16 %v3696_v17  ;;  %s2785_s19 = sshll.u32 %s4166_s25, 7  ;;  %s5143_s25 = smov (!%p287_p8, %s4166_s25), 1 }
  0xc3   : > { %3908 = vmatprep.mubr.bf16.mxu0 %v980_v25  ;;  %v672_v25 = vmul.f32 %v4552_v27, %v3285_v11  ;;  %v3288_v58 = vunpack.c.l.bf16 %v3690_v15  ;;  %v3289_v20 = vunpack.c.h.bf16 %v3690_v15  ;;  %v940_v11 = vmax.f32 %v812_v1, 0.0  ;;  %p282_p7 = scmp.lt.s32.totalorder %s2785_s19, 255  ;;  %s2787_s7 = sshll.u32 %s5143_s25, 3 }
  0xc4   : > { %v811_v48 = vadd.f32 %v4560_v23, %v676_v5  ;;  %v943_v36 = vmax.f32 %v815_v50, 0.0  ;;  %v684_v54 = vmul.f32 %v4552_v27, %v3309_v9  ;;  %v817_v40 = vadd.f32 %v4560_v23, %v682_v13  ;;  %s290_s10 = scalar_lea.vmem %s5131_s5, %s2787_s7  ;;  %s294_s13 = scalar_lea.vmem %s5132_s6, %s2787_s7 }
  0xc5   : > { %v807_v3 = vadd.f32 %v4560_v23, %v672_v25  ;;  %v673_v8 = vmul.f32 %v4552_v27, %v3288_v58  ;;  %v674_v28 = vmul.f32 %v4552_v27, %v3289_v20  ;;  %v3313_v42 = vunpack.c.h.bf16 %v3696_v17  ;;  %s5141_s19 = smov (!%p282_p7, %s2785_s19), 255 }
  0xc6   : > { %v939_v60 = vmax.f32 %v811_v48, 0.0  ;;  %v819_v20 = vadd.f32 %v4560_v23, %v684_v54  ;;  %v944_v21 = vmax.f32 %v816_v18, 0.0  ;;  %v945_v22 = vmax.f32 %v817_v40, 0.0  ;;  %s2786_s30 = sshll.u32 %s5141_s19, 2 }
  0xc7   : > { %3945 = vmatmul.mubr.bf16.gmra.mrb[32].mxu1 %v999_v31  ;;  %v935_v33 = vmax.f32 %v807_v3, 0.0  ;;  %v809_v44 = vadd.f32 %v4560_v23, %v674_v28  ;;  %v810_v31 = vadd.f32 %v4560_v23, %v675_v29  ;;  %v686_v46 = vmul.f32 %v4552_v27, %v3313_v42  ;;  %s4655_s28 = scalar_lea.vmem %s5130_s4, %s2786_s30 }
  0xc8   : > { %3948 = vmatprep.mubr.bf16.mxu1 %v1000_v53  ;;  %v3300_v53 = vunpack.c.l.bf16 %v3693_v37  ;;  %v947_v24 = vmax.f32 %v819_v20, 0.0  ;;  %v1011_v26 = vpack.c.bf16 %v945_v22, %v944_v21 }
  0xc9   : > { %v1006_v52 = vpack.c.bf16 %v935_v33, %v934_v32  ;;  %v937_v57 = vmax.f32 %v809_v44, 0.0  ;;  %v938_v59 = vmax.f32 %v810_v31, 0.0  ;;  %v821_v28 = vadd.f32 %v4560_v23, %v686_v46 }
  0xca   : > { %3909 = vmatmul.mubr.bf16.gmra.mrb[60].mxu0 %v981_v39  ;;  %v808_v39 = vadd.f32 %v4560_v23, %v673_v8  ;;  %v679_v62 = vmul.f32 %v4552_v27, %v3300_v53 }
  0xcb   : > { %v1008_v47 = vpack.c.bf16 %v939_v60, %v938_v59  ;;  %v949_v30 = vmax.f32 %v821_v28, 0.0 }
  0xcc   : > { %v936_v55 = vmax.f32 %v808_v39, 0.0  ;;  %v814_v49 = vadd.f32 %v4560_v23, %v679_v62 }
  0xce   : > { %v1007_v34 = vpack.c.bf16 %v937_v57, %v936_v55  ;;  %v942_v14 = vmax.f32 %v814_v49, 0.0 }
  0xcf   : > { %3949 = vmatmul.mubr.bf16.gmra.mrb[36].mxu1 %v1001_v4  ;;  %v813_v4 = vadd.f32 %v4560_v23, %v678_v45 }
  0xd0   : > { %3952 = vmatprep.mubr.bf16.mxu1 %v1002_v7  ;;  %v3308_v7 = vunpack.c.l.bf16 %v3695_v63  ;;  %v1010_v58 = vpack.c.bf16 %v943_v36, %v942_v14 }
  0xd1   : > { %v941_v12 = vmax.f32 %v813_v4, 0.0 }
  0xd2   : > { %v683_v15 = vmul.f32 %v4552_v27, %v3308_v7 }
  0xd3   : > { %v1009_v25 = vpack.c.bf16 %v941_v12, %v940_v11 }
  0xd7   : > { %3953 = vmatmul.mubr.bf16.gmra.mrb[40].mxu1 %v1003_v19  ;;  %v818_v19 = vadd.f32 %v4560_v23, %v683_v15 }
  0xd8   : > { %3956 = vmatprep.mubr.bf16.mxu1 %v1004_v16  ;;  %v685_v16 = vmul.f32 %v4552_v27, %v3312_v41 }
  0xd9   : > { %v946_v3 = vmax.f32 %v818_v19, 0.0 }
  0xda   : > { %v820_v8 = vadd.f32 %v4560_v23, %v685_v16 }
  0xdb   : > { %v1012_v29 = vpack.c.bf16 %v947_v24, %v946_v3 }
  0xdc   : > { %v948_v5 = vmax.f32 %v820_v8, 0.0 }
  0xde   : > { %v1013_v32 = vpack.c.bf16 %v949_v30, %v948_v5 }
  0xdf   : > { %3957 = vmatmul.mubr.bf16.gmra.mrb[44].mxu1 %v1005_v38 }
  0xe0   : > { %3960 = vmatprep.mubr.bf16.mxu1 %v1006_v52 }
  0xe7   : > { %3961 = vmatmul.mubr.bf16.gmra.mrb[48].mxu1 %v1007_v34 }
  0xe8   : > { %3964 = vmatprep.mubr.bf16.mxu1 %v1008_v47 }
  0xef   : > { %3965 = vmatmul.mubr.bf16.gmra.mrb[52].mxu1 %v1009_v25 }
  0xf0   : > { %3968 = vmatprep.mubr.bf16.mxu1 %v1010_v58 }
  0xf7   : > { %3969 = vmatmul.mubr.bf16.gmra.mrb[56].mxu1 %v1011_v26 }
  0xf8   : > { %3972 = vmatprep.mubr.bf16.mxu1 %v1012_v29 }
  0xff   : > { %3973 = vmatmul.mubr.bf16.gmra.mrb[60].mxu1 %v1013_v32 }
 0x125   : > { %v3850_v27 = vpop.f32.mrb[0].mxu0 }
 0x126   : > { %v1112_v33 = vpop.f32.mrb[1].mxu0  ;;  %v1753_v48 = vmul.f32 %v3850_v27, %v3850_v27 }
 0x127   : > { %v3851_v23 = vpop.f32.mrb[2].mxu0  ;;  %v1751_v39 = vmul.f32 %v1112_v33, %v1112_v33 }
 0x128   : > { %v3322_v37 = vpack.c.bf16 %v3851_v23, %v3850_v27  ;;  %v1115_v38 = vpop.f32.mrb[3].mxu0  ;;  %v1754_v53 = vmul.f32 %v3851_v23, %v3851_v23 }
 0x129   : > { %v1623_v43 = vadd.f32 %v1115_v38, %v1112_v33  ;;  %v1752_v44 = vmul.f32 %v1115_v38, %v1115_v38  ;;  %v3317_v31 = vpack.c.bf16 %v1115_v38, %v1112_v33 }
 0x12a   : > { %3697 = vst [vmem:[%s4655_s28 + $0x8] sm:$0xff] %v3322_v37  }
 0x12b   : > { %v1624_v51 = vadd.f32 %v3850_v27, %v1623_v43  ;;  %v1879_v52 = vadd.f32 %v1752_v44, %v1751_v39  ;;  %3318 = vst [vmem:[%s4655_s28] sm:$0xff] %v3317_v31  }
 0x12d   : > { %v1880_v35 = vadd.f32 %v1879_v52, %v1753_v48  ;;  %v3854_v55 = vpop.f32.mrb[4].mxu0  ;;  %v1625_v56 = vadd.f32 %v3851_v23, %v1624_v51 }
 0x12e   : > { %v1128_v57 = vpop.f32.mrb[5].mxu0  ;;  %v1757_v47 = vmul.f32 %v3854_v55, %v3854_v55 }
 0x12f   : > { %v1626_v59 = vadd.f32 %v1625_v56, %v1128_v57  ;;  %v1755_v60 = vmul.f32 %v1128_v57, %v1128_v57  ;;  %v1881_v45 = vadd.f32 %v1880_v35, %v1754_v53  ;;  %v3855_v61 = vpop.f32.mrb[6].mxu0 }
 0x130   : > { %v3332_v62 = vpack.c.bf16 %v3855_v61, %v3854_v55  ;;  %v1131_v0 = vpop.f32.mrb[7].mxu0  ;;  %v1758_v49 = vmul.f32 %v3855_v61, %v3855_v61 }
 0x131   : > { %v1882_v63 = vadd.f32 %v1881_v45, %v1755_v60  ;;  %v1627_v1 = vadd.f32 %v1626_v59, %v1131_v0  ;;  %v1756_v2 = vmul.f32 %v1131_v0, %v1131_v0  ;;  %v3327_v34 = vpack.c.bf16 %v1131_v0, %v1128_v57 }
 0x132   : > { %3699 = vst [vmem:[%s4655_s28 + $0x18] sm:$0xff] %v3332_v62  }
 0x133   : > { %v1628_v4 = vadd.f32 %v3854_v55, %v1627_v1  ;;  %v1883_v6 = vadd.f32 %v1882_v63, %v1756_v2  ;;  %3698 = vst [vmem:[%s4655_s28 + $0x10] sm:$0xff] %v3327_v34  }
 0x135   : > { %v1884_v50 = vadd.f32 %v1883_v6, %v1757_v47  ;;  %v3858_v7 = vpop.f32.mrb[8].mxu0  ;;  %v1629_v9 = vadd.f32 %v3855_v61, %v1628_v4 }
 0x136   : > { %v1144_v10 = vpop.f32.mrb[9].mxu0  ;;  %v1761_v40 = vmul.f32 %v3858_v7, %v3858_v7 }
 0x137   : > { %v1630_v11 = vadd.f32 %v1629_v9, %v1144_v10  ;;  %v1759_v12 = vmul.f32 %v1144_v10, %v1144_v10  ;;  %v1885_v13 = vadd.f32 %v1884_v50, %v1758_v49  ;;  %v3859_v14 = vpop.f32.mrb[10].mxu0 }
 0x138   : > { %v3342_v36 = vpack.c.bf16 %v3859_v14, %v3858_v7  ;;  %v1147_v15 = vpop.f32.mrb[11].mxu0  ;;  %v1762_v58 = vmul.f32 %v3859_v14, %v3859_v14 }
 0x139   : > { %v1886_v54 = vadd.f32 %v1885_v13, %v1759_v12  ;;  %v1631_v17 = vadd.f32 %v1630_v11, %v1147_v15  ;;  %v1760_v18 = vmul.f32 %v1147_v15, %v1147_v15  ;;  %v3337_v25 = vpack.c.bf16 %v1147_v15, %v1144_v10 }
 0x13a   : > { %3701 = vst [vmem:[%s4655_s28 + $0x28] sm:$0xff] %v3342_v36  }
 0x13b   : > { %v1632_v41 = vadd.f32 %v3858_v7, %v1631_v17  ;;  %v1887_v42 = vadd.f32 %v1886_v54, %v1760_v18  ;;  %3700 = vst [vmem:[%s4655_s28 + $0x20] sm:$0xff] %v3337_v25  }
 0x13d   : > { %v1888_v19 = vadd.f32 %v1887_v42, %v1761_v40  ;;  %v3862_v20 = vpop.f32.mrb[12].mxu0  ;;  %v1633_v21 = vadd.f32 %v3859_v14, %v1632_v41 }
 0x13e   : > { %v1160_v22 = vpop.f32.mrb[13].mxu0  ;;  %v1765_v32 = vmul.f32 %v3862_v20, %v3862_v20 }
 0x13f   : > { %v1634_v16 = vadd.f32 %v1633_v21, %v1160_v22  ;;  %v1763_v46 = vmul.f32 %v1160_v22, %v1160_v22  ;;  %v1889_v3 = vadd.f32 %v1888_v19, %v1762_v58  ;;  %v3863_v24 = vpop.f32.mrb[14].mxu0 }
 0x140   : > { %v3352_v26 = vpack.c.bf16 %v3863_v24, %v3862_v20  ;;  %v1163_v8 = vpop.f32.mrb[15].mxu0  ;;  %v1766_v23 = vmul.f32 %v3863_v24, %v3863_v24 }
 0x141   : > { %v1890_v28 = vadd.f32 %v1889_v3, %v1763_v46  ;;  %v1635_v29 = vadd.f32 %v1634_v16, %v1163_v8  ;;  %v1764_v5 = vmul.f32 %v1163_v8, %v1163_v8  ;;  %v3347_v30 = vpack.c.bf16 %v1163_v8, %v1160_v22 }
 0x142   : > { %3703 = vst [vmem:[%s4655_s28 + $0x38] sm:$0xff] %v3352_v26  }
 0x143   : > { %v1636_v27 = vadd.f32 %v3862_v20, %v1635_v29  ;;  %v1891_v33 = vadd.f32 %v1890_v28, %v1764_v5  ;;  %3702 = vst [vmem:[%s4655_s28 + $0x30] sm:$0xff] %v3347_v30  }
 0x145   : > { %v1892_v37 = vadd.f32 %v1891_v33, %v1765_v32  ;;  %v3866_v38 = vpop.f32.mrb[16].mxu0  ;;  %v1637_v39 = vadd.f32 %v3863_v24, %v1636_v27 }
 0x146   : > { %v1176_v43 = vpop.f32.mrb[17].mxu0  ;;  %v1769_v59 = vmul.f32 %v3866_v38, %v3866_v38 }
 0x147   : > { %v1638_v44 = vadd.f32 %v1637_v39, %v1176_v43  ;;  %v1767_v31 = vmul.f32 %v1176_v43, %v1176_v43  ;;  %v1893_v48 = vadd.f32 %v1892_v37, %v1766_v23  ;;  %v3867_v51 = vpop.f32.mrb[18].mxu0 }
 0x148   : > { %v3362_v52 = vpack.c.bf16 %v3867_v51, %v3866_v38  ;;  %v1179_v53 = vpop.f32.mrb[19].mxu0  ;;  %v1770_v61 = vmul.f32 %v3867_v51, %v3867_v51 }
 0x149   : > { %v1894_v35 = vadd.f32 %v1893_v48, %v1767_v31  ;;  %v1639_v55 = vadd.f32 %v1638_v44, %v1179_v53  ;;  %v1768_v56 = vmul.f32 %v1179_v53, %v1179_v53  ;;  %v3357_v57 = vpack.c.bf16 %v1179_v53, %v1176_v43 }
 0x14a   : > { %3705 = vst [vmem:[%s4655_s28 + $0x48] sm:$0xff] %v3362_v52  }
 0x14b   : > { %v1640_v60 = vadd.f32 %v3866_v38, %v1639_v55  ;;  %v1895_v45 = vadd.f32 %v1894_v35, %v1768_v56  ;;  %3704 = vst [vmem:[%s4655_s28 + $0x40] sm:$0xff] %v3357_v57  }
 0x14c   : > { %v4671_v33 = vpop.f32.mrb[0].mxu1 }
 0x14d   : > { %v1896_v62 = vadd.f32 %v1895_v45, %v1769_v59  ;;  %v3870_v0 = vpop.f32.mrb[20].mxu0  ;;  %v1641_v63 = vadd.f32 %v3867_v51, %v1640_v60  ;;  %v4673_v38 = vpop.f32.mrb[1].mxu1 }
 0x14e   : > { %v1192_v1 = vpop.f32.mrb[21].mxu0  ;;  %v1773_v11 = vmul.f32 %v3870_v0, %v3870_v0  ;;  %v4675_v48 = vpop.f32.mrb[2].mxu1 }
 0x14f   : > { %v1642_v2 = vadd.f32 %v1641_v63, %v1192_v1  ;;  %v1771_v34 = vmul.f32 %v1192_v1, %v1192_v1  ;;  %v1897_v47 = vadd.f32 %v1896_v62, %v1770_v61  ;;  %v3871_v4 = vpop.f32.mrb[22].mxu0  ;;  %v3482_v51 = vpack.c.bf16 %v4675_v48, %v4671_v33  ;;  %v4680_v52 = vpop.f32.mrb[3].mxu1 }
 0x150   : > { %v3372_v6 = vpack.c.bf16 %v3871_v4, %v3870_v0  ;;  %v1195_v49 = vpop.f32.mrb[23].mxu0  ;;  %v1774_v14 = vmul.f32 %v3871_v4, %v3871_v4  ;;  %v3477_v56 = vpack.c.bf16 %v4680_v52, %v4673_v38 }
 0x151   : > { %v1898_v50 = vadd.f32 %v1897_v47, %v1771_v34  ;;  %v1643_v7 = vadd.f32 %v1642_v2, %v1195_v49  ;;  %v1772_v9 = vmul.f32 %v1195_v49, %v1195_v49  ;;  %v3367_v10 = vpack.c.bf16 %v1195_v49, %v1192_v1  ;;  %3729 = vst [vmem:[%s4655_s28 + $0x108] sm:$0xff] %v3482_v51  }
 0x152   : > { %3707 = vst [vmem:[%s4655_s28 + $0x58] sm:$0xff] %v3372_v6   ;;  %3728 = vst [vmem:[%s4655_s28 + $0x100] sm:$0xff] %v3477_v56  }
 0x153   : > { %v1644_v12 = vadd.f32 %v3870_v0, %v1643_v7  ;;  %v1899_v13 = vadd.f32 %v1898_v50, %v1772_v9  ;;  %3706 = vst [vmem:[%s4655_s28 + $0x50] sm:$0xff] %v3367_v10  }
 0x155   : > { %v1900_v36 = vadd.f32 %v1899_v13, %v1773_v11  ;;  %v3874_v15 = vpop.f32.mrb[24].mxu0  ;;  %v1645_v54 = vadd.f32 %v3871_v4, %v1644_v12 }
 0x156   : > { %v1208_v17 = vpop.f32.mrb[25].mxu0  ;;  %v1777_v16 = vmul.f32 %v3874_v15, %v3874_v15 }
 0x157   : > { %v1646_v18 = vadd.f32 %v1645_v54, %v1208_v17  ;;  %v1775_v25 = vmul.f32 %v1208_v17, %v1208_v17  ;;  %v1901_v40 = vadd.f32 %v1900_v36, %v1774_v14  ;;  %v3875_v41 = vpop.f32.mrb[26].mxu0 }
 0x158   : > { %v3382_v42 = vpack.c.bf16 %v3875_v41, %v3874_v15  ;;  %v1211_v58 = vpop.f32.mrb[27].mxu0  ;;  %v1778_v24 = vmul.f32 %v3875_v41, %v3875_v41 }
 0x159   : > { %v1902_v19 = vadd.f32 %v1901_v40, %v1775_v25  ;;  %v1647_v20 = vadd.f32 %v1646_v18, %v1211_v58  ;;  %v1776_v21 = vmul.f32 %v1211_v58, %v1211_v58  ;;  %v3377_v22 = vpack.c.bf16 %v1211_v58, %v1208_v17 }
 0x15a   : > { %3709 = vst [vmem:[%s4655_s28 + $0x68] sm:$0xff] %v3382_v42   ;;  %v4687_v2 = vpop.f32.mrb[4].mxu1 }
 0x15b   : > { %v1648_v46 = vadd.f32 %v3874_v15, %v1647_v20  ;;  %v1903_v3 = vadd.f32 %v1902_v19, %v1776_v21  ;;  %3708 = vst [vmem:[%s4655_s28 + $0x60] sm:$0xff] %v3377_v22   ;;  %v4689_v4 = vpop.f32.mrb[5].mxu1 }
 0x15c   : > { %v4691_v9 = vpop.f32.mrb[6].mxu1 }
 0x15d   : > { %v1904_v26 = vadd.f32 %v1903_v3, %v1777_v16  ;;  %v3878_v8 = vpop.f32.mrb[28].mxu0  ;;  %v1649_v28 = vadd.f32 %v3875_v41, %v1648_v46  ;;  %v3492_v10 = vpack.c.bf16 %v4691_v9, %v4687_v2  ;;  %v4696_v11 = vpop.f32.mrb[7].mxu1 }
 0x15e   : > { %v1224_v29 = vpop.f32.mrb[29].mxu0  ;;  %v1781_v53 = vmul.f32 %v3878_v8, %v3878_v8  ;;  %v3487_v36 = vpack.c.bf16 %v4696_v11, %v4689_v4 }
 0x15f   : > { %v1650_v5 = vadd.f32 %v1649_v28, %v1224_v29  ;;  %v1779_v30 = vmul.f32 %v1224_v29, %v1224_v29  ;;  %v1905_v32 = vadd.f32 %v1904_v26, %v1778_v24  ;;  %v3879_v27 = vpop.f32.mrb[30].mxu0  ;;  %3731 = vst [vmem:[%s4655_s28 + $0x118] sm:$0xff] %v3492_v10  }
 0x160   : > { %v3392_v23 = vpack.c.bf16 %v3879_v27, %v3878_v8  ;;  %v1227_v37 = vpop.f32.mrb[31].mxu0  ;;  %v1782_v57 = vmul.f32 %v3879_v27, %v3879_v27  ;;  %3730 = vst [vmem:[%s4655_s28 + $0x110] sm:$0xff] %v3487_v36  }
 0x161   : > { %v1906_v39 = vadd.f32 %v1905_v32, %v1779_v30  ;;  %v1651_v43 = vadd.f32 %v1650_v5, %v1227_v37  ;;  %v1780_v44 = vmul.f32 %v1227_v37, %v1227_v37  ;;  %v3387_v31 = vpack.c.bf16 %v1227_v37, %v1224_v29 }
 0x162   : > { %3711 = vst [vmem:[%s4655_s28 + $0x78] sm:$0xff] %v3392_v23  }
 0x163   : > { %v1652_v35 = vadd.f32 %v3878_v8, %v1651_v43  ;;  %v1907_v55 = vadd.f32 %v1906_v39, %v1780_v44  ;;  %3710 = vst [vmem:[%s4655_s28 + $0x70] sm:$0xff] %v3387_v31  }
 0x165   : > { %v1908_v59 = vadd.f32 %v1907_v55, %v1781_v53  ;;  %v3882_v60 = vpop.f32.mrb[32].mxu0  ;;  %v1653_v45 = vadd.f32 %v3879_v27, %v1652_v35 }
 0x166   : > { %v1240_v61 = vpop.f32.mrb[33].mxu0  ;;  %v1785_v12 = vmul.f32 %v3882_v60, %v3882_v60 }
 0x167   : > { %v1654_v62 = vadd.f32 %v1653_v45, %v1240_v61  ;;  %v1783_v0 = vmul.f32 %v1240_v61, %v1240_v61  ;;  %v1909_v63 = vadd.f32 %v1908_v59, %v1782_v57  ;;  %v3883_v1 = vpop.f32.mrb[34].mxu0 }
 0x168   : > { %v3402_v34 = vpack.c.bf16 %v3883_v1, %v3882_v60  ;;  %v1243_v47 = vpop.f32.mrb[35].mxu0  ;;  %v1786_v15 = vmul.f32 %v3883_v1, %v3883_v1 }
 0x169   : > { %v1910_v6 = vadd.f32 %v1909_v63, %v1783_v0  ;;  %v1655_v49 = vadd.f32 %v1654_v62, %v1243_v47  ;;  %v1784_v50 = vmul.f32 %v1243_v47, %v1243_v47  ;;  %v3397_v7 = vpack.c.bf16 %v1243_v47, %v1240_v61 }
 0x16a   : > { %3713 = vst [vmem:[%s4655_s28 + $0x88] sm:$0xff] %v3402_v34   ;;  %v4703_v19 = vpop.f32.mrb[8].mxu1 }
 0x16b   : > { %v1656_v13 = vadd.f32 %v3882_v60, %v1655_v49  ;;  %v1911_v14 = vadd.f32 %v1910_v6, %v1784_v50  ;;  %3712 = vst [vmem:[%s4655_s28 + $0x80] sm:$0xff] %v3397_v7   ;;  %v4705_v22 = vpop.f32.mrb[9].mxu1 }
 0x16c   : > { %v4707_v26 = vpop.f32.mrb[10].mxu1 }
 0x16d   : > { %v1912_v54 = vadd.f32 %v1911_v14, %v1785_v12  ;;  %v3886_v17 = vpop.f32.mrb[36].mxu0  ;;  %v1657_v18 = vadd.f32 %v3883_v1, %v1656_v13  ;;  %v3502_v8 = vpack.c.bf16 %v4707_v26, %v4703_v19  ;;  %v4712_v28 = vpop.f32.mrb[11].mxu1 }
 0x16e   : > { %v1256_v25 = vpop.f32.mrb[37].mxu0  ;;  %v1789_v29 = vmul.f32 %v3886_v17, %v3886_v17  ;;  %v3497_v32 = vpack.c.bf16 %v4712_v28, %v4705_v22 }
 0x16f   : > { %v1658_v40 = vadd.f32 %v1657_v18, %v1256_v25  ;;  %v1787_v41 = vmul.f32 %v1256_v25, %v1256_v25  ;;  %v1913_v42 = vadd.f32 %v1912_v54, %v1786_v15  ;;  %v3887_v58 = vpop.f32.mrb[38].mxu0  ;;  %3733 = vst [vmem:[%s4655_s28 + $0x128] sm:$0xff] %v3502_v8  }
 0x170   : > { %v3412_v20 = vpack.c.bf16 %v3887_v58, %v3886_v17  ;;  %v1259_v21 = vpop.f32.mrb[39].mxu0  ;;  %v1790_v27 = vmul.f32 %v3887_v58, %v3887_v58  ;;  %3732 = vst [vmem:[%s4655_s28 + $0x120] sm:$0xff] %v3497_v32  }
 0x171   : > { %v1914_v16 = vadd.f32 %v1913_v42, %v1787_v41  ;;  %v1659_v46 = vadd.f32 %v1658_v40, %v1259_v21  ;;  %v1788_v3 = vmul.f32 %v1259_v21, %v1259_v21  ;;  %v3407_v24 = vpack.c.bf16 %v1259_v21, %v1256_v25 }
 0x172   : > { %3715 = vst [vmem:[%s4655_s28 + $0x98] sm:$0xff] %v3412_v20   ;;  %v4719_v35 = vpop.f32.mrb[12].mxu1 }
 0x173   : > { %v1660_v5 = vadd.f32 %v3886_v17, %v1659_v46  ;;  %v1915_v30 = vadd.f32 %v1914_v16, %v1788_v3  ;;  %3714 = vst [vmem:[%s4655_s28 + $0x90] sm:$0xff] %v3407_v24   ;;  %v4721_v57 = vpop.f32.mrb[13].mxu1 }
 0x174   : > { %v4723_v62 = vpop.f32.mrb[14].mxu1 }
 0x175   : > { %v1916_v23 = vadd.f32 %v1915_v30, %v1789_v29  ;;  %v3890_v37 = vpop.f32.mrb[40].mxu0  ;;  %v1661_v39 = vadd.f32 %v3887_v58, %v1660_v5  ;;  %v3512_v0 = vpack.c.bf16 %v4723_v62, %v4719_v35  ;;  %v4728_v63 = vpop.f32.mrb[15].mxu1 }
 0x176   : > { %v1272_v43 = vpop.f32.mrb[41].mxu0  ;;  %v1793_v1 = vmul.f32 %v3890_v37, %v3890_v37  ;;  %v3507_v6 = vpack.c.bf16 %v4728_v63, %v4721_v57 }
 0x177   : > { %v1662_v44 = vadd.f32 %v1661_v39, %v1272_v43  ;;  %v1791_v31 = vmul.f32 %v1272_v43, %v1272_v43  ;;  %v1917_v51 = vadd.f32 %v1916_v23, %v1790_v27  ;;  %v3891_v53 = vpop.f32.mrb[42].mxu0  ;;  %3735 = vst [vmem:[%s4655_s28 + $0x138] sm:$0xff] %v3512_v0  }
 0x178   : > { %v3422_v55 = vpack.c.bf16 %v3891_v53, %v3890_v37  ;;  %v1275_v56 = vpop.f32.mrb[43].mxu0  ;;  %v1794_v49 = vmul.f32 %v3891_v53, %v3891_v53  ;;  %3734 = vst [vmem:[%s4655_s28 + $0x130] sm:$0xff] %v3507_v6  }
 0x179   : > { %v1918_v59 = vadd.f32 %v1917_v51, %v1791_v31  ;;  %v1663_v60 = vadd.f32 %v1662_v44, %v1275_v56  ;;  %v1792_v45 = vmul.f32 %v1275_v56, %v1275_v56  ;;  %v3417_v61 = vpack.c.bf16 %v1275_v56, %v1272_v43 }
 0x17a   : > { %3717 = vst [vmem:[%s4655_s28 + $0xa8] sm:$0xff] %v3422_v55   ;;  %v4735_v54 = vpop.f32.mrb[16].mxu1 }
 0x17b   : > { %v1664_v34 = vadd.f32 %v3890_v37, %v1663_v60  ;;  %v1919_v47 = vadd.f32 %v1918_v59, %v1792_v45  ;;  %3716 = vst [vmem:[%s4655_s28 + $0xa0] sm:$0xff] %v3417_v61   ;;  %v4737_v25 = vpop.f32.mrb[17].mxu1 }
 0x17c   : > { %v4739_v20 = vpop.f32.mrb[18].mxu1 }
 0x17d   : > { %v1920_v50 = vadd.f32 %v1919_v47, %v1793_v1  ;;  %v3894_v7 = vpop.f32.mrb[44].mxu0  ;;  %v1665_v10 = vadd.f32 %v3891_v53, %v1664_v34  ;;  %v3522_v21 = vpack.c.bf16 %v4739_v20, %v4735_v54  ;;  %v4744_v16 = vpop.f32.mrb[19].mxu1 }
 0x17e   : > { %v1288_v12 = vpop.f32.mrb[45].mxu0  ;;  %v1797_v46 = vmul.f32 %v3894_v7, %v3894_v7  ;;  %v3517_v8 = vpack.c.bf16 %v4744_v16, %v4737_v25 }
 0x17f   : > { %v1666_v13 = vadd.f32 %v1665_v10, %v1288_v12  ;;  %v1795_v14 = vmul.f32 %v1288_v12, %v1288_v12  ;;  %v1921_v36 = vadd.f32 %v1920_v50, %v1794_v49  ;;  %v3895_v15 = vpop.f32.mrb[46].mxu0  ;;  %3737 = vst [vmem:[%s4655_s28 + $0x148] sm:$0xff] %v3522_v21  }
 0x180   : > { %v3432_v17 = vpack.c.bf16 %v3895_v15, %v3894_v7  ;;  %v1291_v18 = vpop.f32.mrb[47].mxu0  ;;  %v1798_v29 = vmul.f32 %v3895_v15, %v3895_v15  ;;  %3736 = vst [vmem:[%s4655_s28 + $0x140] sm:$0xff] %v3517_v8  }
 0x181   : > { %v1922_v40 = vadd.f32 %v1921_v36, %v1795_v14  ;;  %v1667_v41 = vadd.f32 %v1666_v13, %v1291_v18  ;;  %v1796_v42 = vmul.f32 %v1291_v18, %v1291_v18  ;;  %v3427_v58 = vpack.c.bf16 %v1291_v18, %v1288_v12 }
 0x182   : > { %3719 = vst [vmem:[%s4655_s28 + $0xb8] sm:$0xff] %v3432_v17   ;;  %v4751_v44 = vpop.f32.mrb[20].mxu1 }
 0x183   : > { %v1668_v3 = vadd.f32 %v3894_v7, %v1667_v41  ;;  %v1923_v24 = vadd.f32 %v1922_v40, %v1796_v42  ;;  %3718 = vst [vmem:[%s4655_s28 + $0xb0] sm:$0xff] %v3427_v58   ;;  %v4753_v53 = vpop.f32.mrb[21].mxu1 }
 0x184   : > { %v4755_v45 = vpop.f32.mrb[22].mxu1 }
 0x185   : > { %v1924_v5 = vadd.f32 %v1923_v24, %v1797_v46  ;;  %v3898_v30 = vpop.f32.mrb[48].mxu0  ;;  %v1669_v32 = vadd.f32 %v3895_v15, %v1668_v3  ;;  %v3532_v61 = vpack.c.bf16 %v4755_v45, %v4751_v44  ;;  %v4760_v0 = vpop.f32.mrb[23].mxu1 }
 0x186   : > { %v1304_v27 = vpop.f32.mrb[49].mxu0  ;;  %v1801_v1 = vmul.f32 %v3898_v30, %v3898_v30  ;;  %v3527_v6 = vpack.c.bf16 %v4760_v0, %v4753_v53 }
 0x187   : > { %v1670_v23 = vadd.f32 %v1669_v32, %v1304_v27  ;;  %v1799_v37 = vmul.f32 %v1304_v27, %v1304_v27  ;;  %v1925_v39 = vadd.f32 %v1924_v5, %v1798_v29  ;;  %v3899_v43 = vpop.f32.mrb[50].mxu0  ;;  %3739 = vst [vmem:[%s4655_s28 + $0x158] sm:$0xff] %v3532_v61  }
 0x188   : > { %v3442_v31 = vpack.c.bf16 %v3899_v43, %v3898_v30  ;;  %v1307_v51 = vpop.f32.mrb[51].mxu0  ;;  %v1802_v49 = vmul.f32 %v3899_v43, %v3899_v43  ;;  %3738 = vst [vmem:[%s4655_s28 + $0x150] sm:$0xff] %v3527_v6  }
 0x189   : > { %v1926_v55 = vadd.f32 %v1925_v39, %v1799_v37  ;;  %v1671_v56 = vadd.f32 %v1670_v23, %v1307_v51  ;;  %v1800_v59 = vmul.f32 %v1307_v51, %v1307_v51  ;;  %v3437_v60 = vpack.c.bf16 %v1307_v51, %v1304_v27 }
 0x18a   : > { %3721 = vst [vmem:[%s4655_s28 + $0xc8] sm:$0xff] %v3442_v31   ;;  %v4767_v17 = vpop.f32.mrb[24].mxu1 }
 0x18b   : > { %v1672_v34 = vadd.f32 %v3898_v30, %v1671_v56  ;;  %v1927_v47 = vadd.f32 %v1926_v55, %v1800_v59  ;;  %3720 = vst [vmem:[%s4655_s28 + $0xc0] sm:$0xff] %v3437_v60   ;;  %v4769_v41 = vpop.f32.mrb[25].mxu1 }
 0x18c   : > { %v4771_v3 = vpop.f32.mrb[26].mxu1 }
 0x18d   : > { %v1928_v50 = vadd.f32 %v1927_v47, %v1801_v1  ;;  %v3902_v7 = vpop.f32.mrb[52].mxu0  ;;  %v1673_v10 = vadd.f32 %v3899_v43, %v1672_v34  ;;  %v3542_v24 = vpack.c.bf16 %v4771_v3, %v4767_v17  ;;  %v4776_v8 = vpop.f32.mrb[27].mxu1 }
 0x18e   : > { %v1320_v12 = vpop.f32.mrb[53].mxu0  ;;  %v1805_v29 = vmul.f32 %v3902_v7, %v3902_v7  ;;  %v3537_v32 = vpack.c.bf16 %v4776_v8, %v4769_v41 }
 0x18f   : > { %v1674_v13 = vadd.f32 %v1673_v10, %v1320_v12  ;;  %v1803_v14 = vmul.f32 %v1320_v12, %v1320_v12  ;;  %v1929_v36 = vadd.f32 %v1928_v50, %v1802_v49  ;;  %v3903_v15 = vpop.f32.mrb[54].mxu0  ;;  %3741 = vst [vmem:[%s4655_s28 + $0x168] sm:$0xff] %v3542_v24  }
 0x190   : > { %v3452_v18 = vpack.c.bf16 %v3903_v15, %v3902_v7  ;;  %v1323_v40 = vpop.f32.mrb[55].mxu0  ;;  %v1806_v27 = vmul.f32 %v3903_v15, %v3903_v15  ;;  %3740 = vst [vmem:[%s4655_s28 + $0x160] sm:$0xff] %v3537_v32  }
 0x191   : > { %v1930_v42 = vadd.f32 %v1929_v36, %v1803_v14  ;;  %v1675_v58 = vadd.f32 %v1674_v13, %v1323_v40  ;;  %v1804_v21 = vmul.f32 %v1323_v40, %v1323_v40  ;;  %v3447_v46 = vpack.c.bf16 %v1323_v40, %v1320_v12 }
 0x192   : > { %3723 = vst [vmem:[%s4655_s28 + $0xd8] sm:$0xff] %v3452_v18   ;;  %v4783_v59 = vpop.f32.mrb[28].mxu1 }
 0x193   : > { %v1676_v5 = vadd.f32 %v3902_v7, %v1675_v58  ;;  %v1931_v30 = vadd.f32 %v1930_v42, %v1804_v21  ;;  %3722 = vst [vmem:[%s4655_s28 + $0xd0] sm:$0xff] %v3447_v46   ;;  %v4785_v1 = vpop.f32.mrb[29].mxu1 }
 0x194   : > { %v4787_v50 = vpop.f32.mrb[30].mxu1 }
 0x195   : > { %v1932_v23 = vadd.f32 %v1931_v30, %v1805_v29  ;;  %v3906_v37 = vpop.f32.mrb[56].mxu0  ;;  %v1677_v39 = vadd.f32 %v3903_v15, %v1676_v5  ;;  %v3552_v7 = vpack.c.bf16 %v4787_v50, %v4783_v59  ;;  %v4792_v10 = vpop.f32.mrb[31].mxu1 }
 0x196   : > { %v1336_v43 = vpop.f32.mrb[57].mxu0  ;;  %v1809_v12 = vmul.f32 %v3906_v37, %v3906_v37  ;;  %v3547_v36 = vpack.c.bf16 %v4792_v10, %v4785_v1 }
 0x197   : > { %v1678_v31 = vadd.f32 %v1677_v39, %v1336_v43  ;;  %v1807_v51 = vmul.f32 %v1336_v43, %v1336_v43  ;;  %v1933_v55 = vadd.f32 %v1932_v23, %v1806_v27  ;;  %v3907_v56 = vpop.f32.mrb[58].mxu0  ;;  %3743 = vst [vmem:[%s4655_s28 + $0x178] sm:$0xff] %v3552_v7   ;;  %v1815_v7 = vmul.f32 %v4673_v38, %v4673_v38 }
 0x198   : > { %v3462_v60 = vpack.c.bf16 %v3907_v56, %v3906_v37  ;;  %v1339_v61 = vpop.f32.mrb[59].mxu0  ;;  %v1810_v15 = vmul.f32 %v3907_v56, %v3907_v56  ;;  %3742 = vst [vmem:[%s4655_s28 + $0x170] sm:$0xff] %v3547_v36  }
 0x199   : > { %v1934_v34 = vadd.f32 %v1933_v55, %v1807_v51  ;;  %v1679_v47 = vadd.f32 %v1678_v31, %v1339_v61  ;;  %v1808_v6 = vmul.f32 %v1339_v61, %v1339_v61  ;;  %v3457_v49 = vpack.c.bf16 %v1339_v61, %v1336_v43 }
 0x19a   : > { %3725 = vst [vmem:[%s4655_s28 + $0xe8] sm:$0xff] %v3462_v60   ;;  %v4799_v5 = vpop.f32.mrb[32].mxu1 }
 0x19b   : > { %v1680_v13 = vadd.f32 %v3906_v37, %v1679_v47  ;;  %v1935_v14 = vadd.f32 %v1934_v34, %v1808_v6  ;;  %3724 = vst [vmem:[%s4655_s28 + $0xe0] sm:$0xff] %v3457_v49   ;;  %v4801_v27 = vpop.f32.mrb[33].mxu1 }
 0x19c   : > { %v4803_v31 = vpop.f32.mrb[34].mxu1 }
 0x19d   : > { %v1936_v18 = vadd.f32 %v1935_v14, %v1809_v12  ;;  %v3910_v40 = vpop.f32.mrb[60].mxu0  ;;  %v1681_v42 = vadd.f32 %v3907_v56, %v1680_v13  ;;  %v3562_v51 = vpack.c.bf16 %v4803_v31, %v4799_v5  ;;  %v4808_v55 = vpop.f32.mrb[35].mxu1 }
 0x19e   : > { %v1352_v58 = vpop.f32.mrb[61].mxu0  ;;  %v1813_v56 = vmul.f32 %v3910_v40, %v3910_v40  ;;  %v3557_v34 = vpack.c.bf16 %v4808_v55, %v4801_v27 }
 0x19f   : > { %v1682_v21 = vadd.f32 %v1681_v42, %v1352_v58  ;;  %v1811_v46 = vmul.f32 %v1352_v58, %v1352_v58  ;;  %v1937_v24 = vadd.f32 %v1936_v18, %v1810_v15  ;;  %v3911_v29 = vpop.f32.mrb[62].mxu0  ;;  %3745 = vst [vmem:[%s4655_s28 + $0x188] sm:$0xff] %v3562_v51  }
 0x1a0   : > { %v3472_v30 = vpack.c.bf16 %v3911_v29, %v3910_v40  ;;  %v1355_v32 = vpop.f32.mrb[63].mxu0  ;;  %v1814_v47 = vmul.f32 %v3911_v29, %v3911_v29  ;;  %3744 = vst [vmem:[%s4655_s28 + $0x180] sm:$0xff] %v3557_v34  }
 0x1a1   : > { %v1938_v23 = vadd.f32 %v1937_v24, %v1811_v46  ;;  %v1683_v37 = vadd.f32 %v1682_v21, %v1355_v32  ;;  %v1812_v39 = vmul.f32 %v1355_v32, %v1355_v32  ;;  %v3467_v43 = vpack.c.bf16 %v1355_v32, %v1352_v58 }
 0x1a2   : > { %3727 = vst [vmem:[%s4655_s28 + $0xf8] sm:$0xff] %v3472_v30   ;;  %v4818_v14 = vpop.f32.mrb[36].mxu1 }
 0x1a3   : > { %v1684_v60 = vadd.f32 %v3910_v40, %v1683_v37  ;;  %v1939_v61 = vadd.f32 %v1938_v23, %v1812_v39  ;;  %3726 = vst [vmem:[%s4655_s28 + $0xf0] sm:$0xff] %v3467_v43   ;;  %v4820_v36 = vpop.f32.mrb[37].mxu1  ;;  %v1816_v40 = vmul.f32 %v4680_v52, %v4680_v52  ;;  %v1819_v23 = vmul.f32 %v4689_v4, %v4689_v4 }
 0x1a4   : > { %v4825_v42 = vpop.f32.mrb[38].mxu1 }
 0x1a5   : > { %v1685_v6 = vadd.f32 %v3911_v29, %v1684_v60  ;;  %v1940_v49 = vadd.f32 %v1939_v61, %v1813_v56  ;;  %v3572_v58 = vpack.c.bf16 %v4825_v42, %v4818_v14  ;;  %v4829_v21 = vpop.f32.mrb[39].mxu1  ;;  %v1820_v60 = vmul.f32 %v4696_v11, %v4696_v11 }
 0x1a6   : > { %v3567_v29 = vpack.c.bf16 %v4829_v21, %v4820_v36 }
 0x1a7   : > { %v1941_v12 = vadd.f32 %v1940_v49, %v1814_v47  ;;  %v1686_v13 = vadd.f32 %v1685_v6, %v4673_v38  ;;  %v1817_v38 = vmul.f32 %v4671_v33, %v4671_v33  ;;  %3747 = vst [vmem:[%s4655_s28 + $0x198] sm:$0xff] %v3572_v58  }
 0x1a8   : > { %3746 = vst [vmem:[%s4655_s28 + $0x190] sm:$0xff] %v3567_v29  }
 0x1a9   : > { %v1942_v15 = vadd.f32 %v1941_v12, %v1815_v7  ;;  %v1687_v18 = vadd.f32 %v1686_v13, %v4680_v52  ;;  %v1818_v52 = vmul.f32 %v4675_v48, %v4675_v48  ;;  %v1823_v13 = vmul.f32 %v4705_v22, %v4705_v22 }
 0x1ab   : > { %v1688_v46 = vadd.f32 %v4671_v33, %v1687_v18  ;;  %v1943_v24 = vadd.f32 %v1942_v15, %v1816_v40  ;;  %v4844_v33 = vpop.f32.mrb[40].mxu1 }
 0x1ac   : > { %v4846_v43 = vpop.f32.mrb[41].mxu1 }
 0x1ad   : > { %v1944_v30 = vadd.f32 %v1943_v24, %v1817_v38  ;;  %v1689_v32 = vadd.f32 %v4675_v48, %v1688_v46  ;;  %v4851_v48 = vpop.f32.mrb[42].mxu1  ;;  %v1824_v46 = vmul.f32 %v4712_v28, %v4712_v28 }
 0x1ae   : > { %v3582_v61 = vpack.c.bf16 %v4851_v48, %v4844_v33  ;;  %v4855_v34 = vpop.f32.mrb[43].mxu1 }
 0x1af   : > { %v1690_v37 = vadd.f32 %v1689_v32, %v4689_v4  ;;  %v1945_v39 = vadd.f32 %v1944_v30, %v1818_v52  ;;  %v1821_v4 = vmul.f32 %v4687_v2, %v4687_v2  ;;  %v3577_v49 = vpack.c.bf16 %v4855_v34, %v4846_v43 }
 0x1b0   : > { %3749 = vst [vmem:[%s4655_s28 + $0x1a8] sm:$0xff] %v3582_v61  }
 0x1b1   : > { %v1946_v51 = vadd.f32 %v1945_v39, %v1819_v23  ;;  %v1691_v56 = vadd.f32 %v1690_v37, %v4696_v11  ;;  %v1822_v11 = vmul.f32 %v4691_v9, %v4691_v9  ;;  %3748 = vst [vmem:[%s4655_s28 + $0x1a0] sm:$0xff] %v3577_v49   ;;  %v1827_v39 = vmul.f32 %v4721_v57, %v4721_v57 }
 0x1b3   : > { %v1692_v47 = vadd.f32 %v4687_v2, %v1691_v56  ;;  %v1947_v6 = vadd.f32 %v1946_v51, %v1820_v60  ;;  %v4870_v2 = vpop.f32.mrb[44].mxu1 }
 0x1b4   : > { %v4872_v40 = vpop.f32.mrb[45].mxu1 }
 0x1b5   : > { %v1948_v7 = vadd.f32 %v1947_v6, %v1821_v4  ;;  %v1693_v12 = vadd.f32 %v4691_v9, %v1692_v47  ;;  %v4877_v9 = vpop.f32.mrb[46].mxu1  ;;  %v1828_v47 = vmul.f32 %v4728_v63, %v4728_v63 }
 0x1b6   : > { %v3592_v24 = vpack.c.bf16 %v4877_v9, %v4870_v2  ;;  %v4881_v29 = vpop.f32.mrb[47].mxu1 }
 0x1b7   : > { %v1694_v15 = vadd.f32 %v1693_v12, %v4705_v22  ;;  %v1949_v18 = vadd.f32 %v1948_v7, %v1822_v11  ;;  %v1825_v22 = vmul.f32 %v4703_v19, %v4703_v19  ;;  %v3587_v32 = vpack.c.bf16 %v4881_v29, %v4872_v40 }
 0x1b8   : > { %3751 = vst [vmem:[%s4655_s28 + $0x1b8] sm:$0xff] %v3592_v24  }
 0x1b9   : > { %v1950_v58 = vadd.f32 %v1949_v18, %v1823_v13  ;;  %v1695_v38 = vadd.f32 %v1694_v15, %v4712_v28  ;;  %v1826_v28 = vmul.f32 %v4707_v26, %v4707_v26  ;;  %3750 = vst [vmem:[%s4655_s28 + $0x1b0] sm:$0xff] %v3587_v32   ;;  %v1831_v18 = vmul.f32 %v4737_v25, %v4737_v25 }
 0x1bb   : > { %v1696_v52 = vadd.f32 %v4703_v19, %v1695_v38  ;;  %v1951_v30 = vadd.f32 %v1950_v58, %v1824_v46  ;;  %v4896_v19 = vpop.f32.mrb[48].mxu1 }
 0x1bc   : > { %v4898_v60 = vpop.f32.mrb[49].mxu1 }
 0x1bd   : > { %v1952_v23 = vadd.f32 %v1951_v30, %v1825_v22  ;;  %v1697_v37 = vadd.f32 %v4707_v26, %v1696_v52  ;;  %v4903_v26 = vpop.f32.mrb[50].mxu1  ;;  %v1832_v52 = vmul.f32 %v4744_v16, %v4744_v16 }
 0x1be   : > { %v3602_v6 = vpack.c.bf16 %v4903_v26, %v4896_v19  ;;  %v4907_v49 = vpop.f32.mrb[51].mxu1 }
 0x1bf   : > { %v1698_v51 = vadd.f32 %v1697_v37, %v4721_v57  ;;  %v1953_v56 = vadd.f32 %v1952_v23, %v1826_v28  ;;  %v1829_v57 = vmul.f32 %v4719_v35, %v4719_v35  ;;  %v3597_v12 = vpack.c.bf16 %v4907_v49, %v4898_v60 }
 0x1c0   : > { %3753 = vst [vmem:[%s4655_s28 + $0x1c8] sm:$0xff] %v3602_v6  }
 0x1c1   : > { %v1954_v61 = vadd.f32 %v1953_v56, %v1827_v39  ;;  %v1699_v4 = vadd.f32 %v1698_v51, %v4728_v63  ;;  %v1830_v63 = vmul.f32 %v4723_v62, %v4723_v62  ;;  %3752 = vst [vmem:[%s4655_s28 + $0x1c0] sm:$0xff] %v3597_v12   ;;  %v1835_v56 = vmul.f32 %v4753_v53, %v4753_v53 }
 0x1c3   : > { %v1700_v11 = vadd.f32 %v4719_v35, %v1699_v4  ;;  %v1955_v7 = vadd.f32 %v1954_v61, %v1828_v47  ;;  %v4922_v35 = vpop.f32.mrb[52].mxu1 }
 0x1c4   : > { %v4924_v46 = vpop.f32.mrb[53].mxu1 }
 0x1c5   : > { %v1956_v13 = vadd.f32 %v1955_v7, %v1829_v57  ;;  %v1701_v15 = vadd.f32 %v4723_v62, %v1700_v11  ;;  %v4929_v62 = vpop.f32.mrb[54].mxu1  ;;  %v1836_v11 = vmul.f32 %v4760_v0, %v4760_v0 }
 0x1c6   : > { %v3612_v30 = vpack.c.bf16 %v4929_v62, %v4922_v35  ;;  %v4933_v32 = vpop.f32.mrb[55].mxu1 }
 0x1c7   : > { %v1702_v58 = vadd.f32 %v1701_v15, %v4737_v25  ;;  %v1957_v38 = vadd.f32 %v1956_v13, %v1830_v63  ;;  %v1833_v25 = vmul.f32 %v4735_v54, %v4735_v54  ;;  %v3607_v37 = vpack.c.bf16 %v4933_v32, %v4924_v46 }
 0x1c8   : > { %3755 = vst [vmem:[%s4655_s28 + $0x1d8] sm:$0xff] %v3612_v30  }
 0x1c9   : > { %v1958_v24 = vadd.f32 %v1957_v38, %v1831_v18  ;;  %v1703_v22 = vadd.f32 %v1702_v58, %v4744_v16  ;;  %v1834_v16 = vmul.f32 %v4739_v20, %v4739_v20  ;;  %3754 = vst [vmem:[%s4655_s28 + $0x1d0] sm:$0xff] %v3607_v37   ;;  %v1839_v38 = vmul.f32 %v4769_v41, %v4769_v41 }
 0x1cb   : > { %v1704_v28 = vadd.f32 %v4735_v54, %v1703_v22  ;;  %v1959_v23 = vadd.f32 %v1958_v24, %v1832_v52  ;;  %v4948_v54 = vpop.f32.mrb[56].mxu1 }
 0x1cc   : > { %v4950_v47 = vpop.f32.mrb[57].mxu1 }
 0x1cd   : > { %v1960_v39 = vadd.f32 %v1959_v23, %v1833_v25  ;;  %v1705_v51 = vadd.f32 %v4739_v20, %v1704_v28  ;;  %v4955_v20 = vpop.f32.mrb[58].mxu1  ;;  %v1840_v28 = vmul.f32 %v4776_v8, %v4776_v8 }
 0x1ce   : > { %v3622_v7 = vpack.c.bf16 %v4955_v20, %v4948_v54  ;;  %v4959_v12 = vpop.f32.mrb[59].mxu1 }
 0x1cf   : > { %v1706_v61 = vadd.f32 %v1705_v51, %v4753_v53  ;;  %v1961_v4 = vadd.f32 %v1960_v39, %v1834_v16  ;;  %v1837_v53 = vmul.f32 %v4751_v44, %v4751_v44  ;;  %v3617_v15 = vpack.c.bf16 %v4959_v12, %v4950_v47 }
 0x1d0   : > { %3757 = vst [vmem:[%s4655_s28 + $0x1e8] sm:$0xff] %v3622_v7   ;;  %v1844_v7 = vmul.f32 %v4792_v10, %v4792_v10 }
 0x1d1   : > { %v1962_v6 = vadd.f32 %v1961_v4, %v1835_v56  ;;  %v1707_v57 = vadd.f32 %v1706_v61, %v4760_v0  ;;  %v1838_v0 = vmul.f32 %v4755_v45, %v4755_v45  ;;  %3756 = vst [vmem:[%s4655_s28 + $0x1e0] sm:$0xff] %v3617_v15   ;;  %v1843_v4 = vmul.f32 %v4785_v1, %v4785_v1 }
 0x1d3   : > { %v1708_v63 = vadd.f32 %v4751_v44, %v1707_v57  ;;  %v1963_v13 = vadd.f32 %v1962_v6, %v1836_v11  ;;  %v4974_v44 = vpop.f32.mrb[60].mxu1 }
 0x1d4   : > { %v4976_v52 = vpop.f32.mrb[61].mxu1 }
 0x1d5   : > { %v1964_v18 = vadd.f32 %v1963_v13, %v1837_v53  ;;  %v1709_v58 = vadd.f32 %v4755_v45, %v1708_v63  ;;  %v4981_v45 = vpop.f32.mrb[62].mxu1  ;;  %v1845_v53 = vmul.f32 %v4783_v59, %v4783_v59 }
 0x1d6   : > { %v3632_v23 = vpack.c.bf16 %v4981_v45, %v4974_v44  ;;  %v4985_v37 = vpop.f32.mrb[63].mxu1 }
 0x1d7   : > { %v1710_v24 = vadd.f32 %v1709_v58, %v4769_v41  ;;  %v1965_v22 = vadd.f32 %v1964_v18, %v1838_v0  ;;  %v1841_v41 = vmul.f32 %v4767_v17, %v4767_v17  ;;  %v3627_v51 = vpack.c.bf16 %v4985_v37, %v4976_v52 }
 0x1d8   : > { %3759 = vst [vmem:[%s4655_s28 + $0x1f8] sm:$0xff] %v3632_v23  }
 0x1d9   : > { %v1966_v30 = vadd.f32 %v1965_v22, %v1839_v38  ;;  %v1711_v25 = vadd.f32 %v1710_v24, %v4776_v8  ;;  %v1842_v8 = vmul.f32 %v4771_v3, %v4771_v3  ;;  %3758 = vst [vmem:[%s4655_s28 + $0x1f0] sm:$0xff] %v3627_v51   ;;  %v1848_v24 = vmul.f32 %v4808_v55, %v4808_v55 }
 0x1db   : > { %v1712_v16 = vadd.f32 %v4767_v17, %v1711_v25  ;;  %v1967_v39 = vadd.f32 %v1966_v30, %v1840_v28 }
 0x1dd   : > { %v1968_v56 = vadd.f32 %v1967_v39, %v1841_v41  ;;  %v1713_v61 = vadd.f32 %v4771_v3, %v1712_v16  ;;  %v1846_v3 = vmul.f32 %v4787_v50, %v4787_v50  ;;  %v1852_v39 = vmul.f32 %v4829_v21, %v4829_v21 }
 0x1df   : > { %v1714_v6 = vadd.f32 %v1713_v61, %v4785_v1  ;;  %v1969_v57 = vadd.f32 %v1968_v56, %v1842_v8  ;;  %v1847_v1 = vmul.f32 %v4801_v27, %v4801_v27 }
 0x1e1   : > { %v1970_v11 = vadd.f32 %v1969_v57, %v1843_v4  ;;  %v1715_v17 = vadd.f32 %v1714_v6, %v4792_v10 }
 0x1e3   : > { %v1716_v63 = vadd.f32 %v4783_v59, %v1715_v17  ;;  %v1971_v13 = vadd.f32 %v1970_v11, %v1844_v7  ;;  %v1849_v59 = vmul.f32 %v4799_v5, %v4799_v5  ;;  %v1856_v11 = vmul.f32 %v4855_v34, %v4855_v34 }
 0x1e5   : > { %v1972_v15 = vadd.f32 %v1971_v13, %v1845_v53  ;;  %v1717_v0 = vadd.f32 %v4787_v50, %v1716_v63  ;;  %v1850_v50 = vmul.f32 %v4803_v31, %v4803_v31 }
 0x1e7   : > { %v1718_v18 = vadd.f32 %v1717_v0, %v4801_v27  ;;  %v1973_v58 = vadd.f32 %v1972_v15, %v1846_v3  ;;  %v1851_v27 = vmul.f32 %v4820_v36, %v4820_v36  ;;  %v1860_v0 = vmul.f32 %v4881_v29, %v4881_v29 }
 0x1e9   : > { %v1974_v38 = vadd.f32 %v1973_v58, %v1847_v1  ;;  %v1719_v10 = vadd.f32 %v1718_v18, %v4808_v55 }
 0x1eb   : > { %v1720_v22 = vadd.f32 %v4799_v5, %v1719_v10  ;;  %v1975_v30 = vadd.f32 %v1974_v38, %v1848_v24  ;;  %v1853_v5 = vmul.f32 %v4818_v14, %v4818_v14 }
 0x1ed   : > { %v1976_v25 = vadd.f32 %v1975_v30, %v1849_v59  ;;  %v1721_v28 = vadd.f32 %v4803_v31, %v1720_v22  ;;  %v1854_v31 = vmul.f32 %v4825_v42, %v4825_v42  ;;  %v1864_v22 = vmul.f32 %v4907_v49, %v4907_v49 }
 0x1ef   : > { %v1722_v23 = vadd.f32 %v1721_v28, %v4820_v36  ;;  %v1977_v41 = vadd.f32 %v1976_v25, %v1850_v50  ;;  %v1855_v36 = vmul.f32 %v4846_v43, %v4846_v43 }
 0x1f1   : > { %v1978_v16 = vadd.f32 %v1977_v41, %v1851_v27  ;;  %v1723_v55 = vadd.f32 %v1722_v23, %v4829_v21 }
 0x1f3   : > { %v1724_v51 = vadd.f32 %v4818_v14, %v1723_v55  ;;  %v1979_v8 = vadd.f32 %v1978_v16, %v1852_v39  ;;  %v1857_v14 = vmul.f32 %v4844_v33, %v4844_v33  ;;  %v1869_v16 = vmul.f32 %v4922_v35, %v4922_v35 }
 0x1f5   : > { %v1980_v56 = vadd.f32 %v1979_v8, %v1853_v5  ;;  %v1725_v61 = vadd.f32 %v4825_v42, %v1724_v51  ;;  %v1858_v42 = vmul.f32 %v4851_v48, %v4851_v48  ;;  %v1871_v51 = vmul.f32 %v4950_v47, %v4950_v47 }
 0x1f7   : > { %v1726_v4 = vadd.f32 %v1725_v61, %v4846_v43  ;;  %v1981_v6 = vadd.f32 %v1980_v56, %v1854_v31  ;;  %v1859_v43 = vmul.f32 %v4872_v40, %v4872_v40  ;;  %v1873_v61 = vmul.f32 %v4948_v54, %v4948_v54 }
 0x1f9   : > { %v1982_v57 = vadd.f32 %v1981_v6, %v1855_v36  ;;  %v1727_v21 = vadd.f32 %v1726_v4, %v4855_v34 }
 0x1fb   : > { %v1728_v17 = vadd.f32 %v4844_v33, %v1727_v21  ;;  %v1983_v7 = vadd.f32 %v1982_v57, %v1856_v11  ;;  %v1861_v33 = vmul.f32 %v4870_v2, %v4870_v2  ;;  %v1875_v57 = vmul.f32 %v4976_v52, %v4976_v52 }
 0x1fd   : > { %v1984_v53 = vadd.f32 %v1983_v7, %v1857_v14  ;;  %v1729_v63 = vadd.f32 %v4851_v48, %v1728_v17  ;;  %v1862_v48 = vmul.f32 %v4877_v9, %v4877_v9  ;;  %v1877_v17 = vmul.f32 %v4974_v44, %v4974_v44 }
 0x1ff   : > { %v1730_v13 = vadd.f32 %v1729_v63, %v4872_v40  ;;  %v1985_v3 = vadd.f32 %v1984_v53, %v1858_v42  ;;  %v1863_v40 = vmul.f32 %v4898_v60, %v4898_v60 }
 0x201   : > { %v1986_v15 = vadd.f32 %v1985_v3, %v1859_v43  ;;  %v1731_v34 = vadd.f32 %v1730_v13, %v4881_v29 }
 0x203   : > { %v1732_v1 = vadd.f32 %v4870_v2, %v1731_v34  ;;  %v1987_v18 = vadd.f32 %v1986_v15, %v1860_v0  ;;  %v1865_v2 = vmul.f32 %v4896_v19, %v4896_v19 }
 0x205   : > { %v1988_v58 = vadd.f32 %v1987_v18, %v1861_v33  ;;  %v1733_v38 = vadd.f32 %v4877_v9, %v1732_v1  ;;  %v1866_v9 = vmul.f32 %v4903_v26, %v4903_v26 }
 0x207   : > { %v1734_v10 = vadd.f32 %v1733_v38, %v4898_v60  ;;  %v1989_v24 = vadd.f32 %v1988_v58, %v1862_v48  ;;  %v1867_v60 = vmul.f32 %v4924_v46, %v4924_v46 }
 0x209   : > { %v1990_v59 = vadd.f32 %v1989_v24, %v1863_v40  ;;  %v1735_v29 = vadd.f32 %v1734_v10, %v4907_v49 }
 0x20b   : > { %v1736_v30 = vadd.f32 %v4896_v19, %v1735_v29  ;;  %v1991_v50 = vadd.f32 %v1990_v59, %v1864_v22  ;;  %v1868_v19 = vmul.f32 %v4933_v32, %v4933_v32 }
 0x20d   : > { %v1992_v25 = vadd.f32 %v1991_v50, %v1865_v2  ;;  %v1737_v28 = vadd.f32 %v4903_v26, %v1736_v30  ;;  %v1870_v26 = vmul.f32 %v4929_v62, %v4929_v62 }
 0x20f   : > { %v1738_v27 = vadd.f32 %v1737_v28, %v4924_v46  ;;  %v1993_v23 = vadd.f32 %v1992_v25, %v1866_v9 }
 0x211   : > { %v1994_v49 = vadd.f32 %v1993_v23, %v1867_v60  ;;  %v1739_v41 = vadd.f32 %v1738_v27, %v4933_v32 }
 0x213   : > { %v1740_v55 = vadd.f32 %v4922_v35, %v1739_v41  ;;  %v1995_v39 = vadd.f32 %v1994_v49, %v1868_v19  ;;  %v1872_v35 = vmul.f32 %v4959_v12, %v4959_v12 }
 0x215   : > { %v1996_v5 = vadd.f32 %v1995_v39, %v1869_v16  ;;  %v1741_v46 = vadd.f32 %v4929_v62, %v1740_v55  ;;  %v1874_v62 = vmul.f32 %v4955_v20, %v4955_v20 }
 0x217   : > { %v1742_v8 = vadd.f32 %v1741_v46, %v4950_v47  ;;  %v1997_v31 = vadd.f32 %v1996_v5, %v1870_v26 }
 0x219   : > { %v1998_v32 = vadd.f32 %v1997_v31, %v1871_v51  ;;  %v1743_v56 = vadd.f32 %v1742_v8, %v4959_v12 }
 0x21b   : > { %v1744_v36 = vadd.f32 %v4948_v54, %v1743_v56  ;;  %v1999_v4 = vadd.f32 %v1998_v32, %v1872_v35  ;;  %v1876_v54 = vmul.f32 %v4985_v37, %v4985_v37 }
 0x21d   : > { %v2000_v6 = vadd.f32 %v1999_v4, %v1873_v61  ;;  %v1745_v47 = vadd.f32 %v4955_v20, %v1744_v36 }
 0x21f   : > { %v1746_v21 = vadd.f32 %v1745_v47, %v4976_v52  ;;  %v2001_v12 = vadd.f32 %v2000_v6, %v1874_v62  ;;  %v1878_v52 = vmul.f32 %v4981_v45, %v4981_v45 }
 0x221   : > { %v2002_v11 = vadd.f32 %v2001_v12, %v1875_v57  ;;  %v1747_v14 = vadd.f32 %v1746_v21, %v4985_v37 }
 0x223   : > { %v1748_v7 = vadd.f32 %v4974_v44, %v1747_v14  ;;  %v2003_v20 = vadd.f32 %v2002_v11, %v1876_v54 }
 0x225   : > { %v1749_v42 = vadd.f32 %v4981_v45, %v1748_v7  ;;  %v2004_v53 = vadd.f32 %v2003_v20, %v1877_v17 }
 0x227   : > { %1750 = vst [vmem:[%s290_s10] sm:$0xff] %v1749_v42  ;;  %v2005_v37 = vadd.f32 %v2004_v53, %v1878_v52 }
 0x229   : > { %2006 = vst [vmem:[%s294_s13] sm:$0xff] %v2005_v37 }
 0x22a PF: > { %p17_p9 = scmp.ge.s32.totalorder %s4169_s26, 4   ;;  %s5136_s21 = smov %s4099_s22 }
 0x22b   : > { %s5137_s22 = smov %s4103_s23  ;;  %s5138_s23 = smov %s4179_s29 }
 0x22c   : > { %s5139_s24 = smov %s4169_s26  ;;  %19 = sbr.rel (!%p17_p9) target bundleno = 3 (0x3), region = 100 }
 0x233   :  { %2697 = vsyncpa [#allocation3], 1 }
 0x234   :  { %2699 = vsyncpa [#allocation3 + $0x1], 1 }

// kernel: decoder_block_forward.5
= control target key start
LH: loop header
LB: loop body
LE: loop exit
PB: predicated region body
PF: predicated region fallthrough
CT: control target
= control target key end

     0   :  { %s7079_s0 = inlined_call_operand.hbm [shape: bf16[2,16,16,128], index: 0, kind: input, shape index: {}, may-alias: {0,1}]   ;;  %s7080_s1 = inlined_call_operand.hbm [shape: bf16[2,16,16,128], index: 1, kind: input, shape index: {}, may-alias: {0,1}]   ;;  %s7081_s2 = inlined_call_operand.hbm [shape: f32[1,128], index: 2, kind: input, shape index: {}]   ;;  %s7082_s3 = inlined_call_operand.hbm [shape: f32[1,128], index: 3, kind: input, shape index: {}]   ;;  %s7083_s4 = inlined_call_operand.hbm [shape: bf16[128,128], index: 4, kind: input, shape index: {}]   ;;  %s7084_s5 = inlined_call_operand.hbm [shape: bf16[256,128], index: 5, kind: input, shape index: {}]   ;;  %s7085_s6 = inlined_call_operand.hbm [shape: bf16[256,128], index: 6, kind: input, shape index: {}]   ;;  %s7086_s7 = inlined_call_operand.hbm [shape: bf16[512,128], index: 7, kind: input, shape index: {}]   ;;  %s7087_s8 = inlined_call_operand.hbm [shape: bf16[2,4,16,16,128], index: 8, kind: output, shape index: {0}]   ;;  %s7088_s9 = inlined_call_operand.hbm [shape: f32[16,128], index: 9, kind: output, shape index: {1}]   ;;  %s7089_s10 = inlined_call_operand.hbm [shape: f32[16,128], index: 10, kind: output, shape index: {2}]  }
   0x1   :  { %7104 = sst [smem:[#allocation51_spill]] %s7079_s0 }
   0x2   :  { %7105 = sst [smem:[#allocation52_spill]] %s7080_s1 }
   0x3   :  { %7106 = sst [smem:[#allocation53_spill]] %s7081_s2 }
   0x4   :  { %7107 = sst [smem:[#allocation54_spill]] %s7082_s3 }
   0x5   :  { %7108 = sst [smem:[#allocation55_spill]] %s7083_s4 }
   0x6   :  { %7109 = sst [smem:[#allocation56_spill]] %s7084_s5 }
   0x7   :  { %7110 = sst [smem:[#allocation57_spill]] %s7085_s6 }
   0x8   :  { %7111 = sst [smem:[#allocation58_spill]] %s7086_s7 }
   0x9   :  { %7112 = sst [smem:[#allocation59_spill]] %s7087_s8 }
   0xa   :  { %7113 = sst [smem:[#allocation60_spill]] %s7088_s9 }
   0xb   :  { %7114 = sst [smem:[#allocation61_spill]] %s7089_s10 }
   0xc   :  { %16 = vsyncpa [#allocation3], 0 }
   0xd   :  { %18 = vsyncpa [#allocation3 + $0x1], 0 }
   0xe   :  { %19 = vsyncpa [#allocation6], 0 }
   0xf   :  { %21 = vsyncpa [#allocation6 + $0x1], 0 }
  0x10   :  { %22 = vsyncpa [#allocation9], 0 }
  0x11   :  { %23 = vsyncpa [#allocation12], 0 }
  0x12   :  { %24 = vsyncpa [#allocation15], 0 }
  0x13   :  { %25 = vsyncpa [#allocation4], 0 }
  0x14   :  { %27 = vsyncpa [#allocation4 + $0x1], 0 }
  0x15   :  { %28 = vsyncpa [#allocation18], 0 }
  0x16   :  { %30 = vsyncpa [#allocation18 + $0x1], 0  ;;  %s5773_s13 = smov 0   ;;  %s5775_s14 = smov 0  }
  0x17   :  { %s5777_s15 = smov 0   ;;  %s5779_s16 = smov 0  }
  0x18   :  { %s5781_s17 = smov 0   ;;  %s5783_s18 = smov 0  }
  0x19 LB: > { %7115 = sst [smem:[#allocation28_spill]] %s5693_s16  ;;  %s5804_s19 = sadd.s32 4294967295, %s5701_s18   ;;  %s5701_s18 = sphi %s5783_s18, %s36_s18   ;;  %s5697_s17 = sphi %s5781_s17, %s7204_s17   ;;  %s5693_s16 = sphi %s5779_s16, %s7203_s16   ;;  %s5689_s15 = sphi %s5777_s15, %s7202_s15   ;;  %s5685_s14 = sphi %s5775_s14, %s7201_s14   ;;  %s5681_s13 = sphi %s5773_s13, %s7200_s13  }
  0x1a   : > { %p3627_p0 = scmp.ge.s32.totalorder %s5701_s18, 1  ;;  %p7090_p1 = scmp.eq.s32.totalorder %s5804_s19, 0 }
  0x1b   : > { %p327_p2 = scmp.lt.s32.totalorder %s5701_s18, 3  ;;  %s5703_s21 = smov [#allocation7]  }
  0x1c   : > { %s340_s22 = sshll.u32 %s5703_s21, 4  ;;  %s5704_s23 = smov [#allocation8]   ;;  %s341_s22 = int_to_ptr.vmem [resolvable:$true] %s340_s22 }
  0x1d   : > { %p5809_p3 = pnand %p3627_p0, %p327_p2  ;;  %s351_s24 = sshll.u32 %s5704_s23, 4  ;;  %s5822_s24 = int_to_ptr.vmem [resolvable:$true] %s351_s24 }
  0x1e   : > { %s5705_s26 = smov [#allocation11]   ;;  %s7118_s2 = sld [smem:[#allocation53_spill]] }
  0x1f   : > { %s7116_s20 = scalar_select %p5809_p3, 1, 0 }
  0x20   : > { %p5129_p5 = pneg %p5809_p3  ;;  %s5824_s27 = sshll.u32 %s5705_s26, 4  ;;  %s375_s27 = int_to_ptr.vmem [resolvable:$true] %s5824_s27 }
  0x22   : > { %p5818_p6 = pnand %p5129_p5, %p7090_p1 }
  0x24   : > { %s5311_s30 = scalar_lea.hbm %s7118_s2, 16  ;;  %p5834_p8 = pneg %p5818_p6 }
  0x25   : > { %p5312_p7 = scmp.ne.s32.totalorder %s7118_s2, %s5311_s30  ;;  %p5318_p11 = scmp.lt.u32.totalorder %s5311_s30, %s7118_s2 }
  0x27   : > { %p5314_p9 = pnand %p5834_p8, %p5312_p7 }
  0x29   : > { %p5315_p10 = pneg %p5314_p9 }
  0x2b   : > { %p5320_p12 = pnand %p5318_p11, %p5315_p10 }
  0x2d   : > { %5323 = shalt.err (!%p5320_p12)
}
  0x2e   : > { %s5324_s28 = scalar_lea.vmem %s341_s22, 16  ;;  %s5331_s29 = scalar_lea.vmem %s341_s22, 32 }
  0x2f   : > { %p5325_p13 = scmp.ne.s32.totalorder %s341_s22, %s5324_s28  ;;  %p5332_p5 = scmp.lt.s32.totalorder %s341_s22, %s341_s22 }
  0x30   : > { %p5333_p4 = scmp.lt.s32.totalorder %s5331_s29, %s5324_s28 }
  0x31   : > { %p5327_p0 = pnand %p5325_p13, %p5834_p8 }
  0x32   : > { %p5334_p1 = por %p5333_p4, %p5332_p5 }
  0x33   : > { %p5328_p2 = pneg %p5327_p0 }
  0x35   : > { %p5335_p3 = pnand %p5334_p1, %p5328_p2 }
  0x37   : > { %5338 = shalt.err (!%p5335_p3)
}
  0x38   : > { %5132 = dma.hbm_to_vmem [thread:$0]  (!%p5818_p6), %s7118_s2, 16, %s341_s22, [#allocation6]  }
  0x39   : > { %s7120_s3 = sld [smem:[#allocation54_spill]] }
  0x3f   : > { %s5339_s26 = scalar_lea.hbm %s7120_s3, 16 }
  0x40   : > { %p5340_p7 = scmp.ne.s32.totalorder %s7120_s3, %s5339_s26  ;;  %p5346_p1 = scmp.lt.u32.totalorder %s5339_s26, %s7120_s3 }
  0x42   : > { %p5342_p9 = pnand %p5340_p7, %p5834_p8 }
  0x44   : > { %p5343_p4 = pneg %p5342_p9 }
  0x46   : > { %p5348_p3 = pnand %p5346_p1, %p5343_p4 }
  0x48   : > { %5351 = shalt.err (!%p5348_p3)
}
  0x49   : > { %s5352_s22 = scalar_lea.vmem %s5822_s24, 16  ;;  %s5359_s9 = scalar_lea.vmem %s5822_s24, 32 }
  0x4a   : > { %p5353_p10 = scmp.ne.s32.totalorder %s5822_s24, %s5352_s22  ;;  %p5360_p13 = scmp.lt.s32.totalorder %s5822_s24, %s5822_s24 }
  0x4b   : > { %p5361_p0 = scmp.lt.s32.totalorder %s5359_s9, %s5352_s22 }
  0x4c   : > { %p5355_p11 = pnand %p5353_p10, %p5834_p8 }
  0x4d   : > { %p5362_p2 = por %p5361_p0, %p5360_p13 }
  0x4e   : > { %p5356_p12 = pneg %p5355_p11 }
  0x50   : > { %p5363_p5 = pnand %p5362_p2, %p5356_p12 }
  0x52   : > { %5366 = shalt.err (!%p5363_p5)
}
  0x53   : > { %5135 = dma.hbm_to_vmem [thread:$0]  (!%p5818_p6), %s7120_s3, 16, %s5822_s24, [#allocation9]  }
  0x54   : > { %s7121_s5 = sld [smem:[#allocation56_spill]] }
  0x5a   : > { %s5367_s23 = scalar_lea.hbm %s7121_s5, 2048 }
  0x5b   : > { %p5368_p7 = scmp.ne.s32.totalorder %s7121_s5, %s5367_s23  ;;  %p5374_p1 = scmp.lt.u32.totalorder %s5367_s23, %s7121_s5 }
  0x5d   : > { %p5370_p9 = pnand %p5368_p7, %p5834_p8 }
  0x5f   : > { %p5371_p4 = pneg %p5370_p9 }
  0x61   : > { %p5376_p3 = pnand %p5374_p1, %p5371_p4 }
  0x63   : > { %5379 = shalt.err (!%p5376_p3)
}
  0x64   : > { %s5380_s9 = scalar_lea.vmem %s375_s27, 2048  ;;  %p5388_p13 = scmp.lt.s32.totalorder %s375_s27, %s375_s27 }
  0x65   : > { %p5381_p10 = scmp.ne.s32.totalorder %s375_s27, %s5380_s9  ;;  %p5389_p0 = scmp.lt.s32.totalorder %s5380_s9, %s5380_s9 }
  0x67   : > { %p5383_p11 = pnand %p5381_p10, %p5834_p8  ;;  %p5390_p2 = por %p5389_p0, %p5388_p13 }
  0x69   : > { %p5384_p12 = pneg %p5383_p11 }
  0x6b   : > { %p5391_p5 = pnand %p5390_p2, %p5384_p12 }
  0x6d   : > { %5394 = shalt.err (!%p5391_p5)
}
  0x6e   : > { %s7097_s24 = smov 64   ;;  %s7099_s10 = smov 4  }
  0x6f   : > { %5141 = dma.hbm_to_vmem [thread:$0]  (!%p5818_p6), %s7121_s5, 2048, %s375_s27, [#allocation12], %s7097_s24, %s7097_s24, %s7099_s10  }
  0x70   : > { %s5708_s30 = smov [#allocation10]   ;;  %s5709_s26 = smov [#allocation13]  }
  0x71   : > { %s361_s23 = sshll.u32 %s5708_s30, 4  ;;  %s387_s28 = sshll.u32 %s5709_s26, 4  ;;  %s362_s23 = int_to_ptr.vmem [resolvable:$true] %s361_s23  ;;  %s388_s28 = int_to_ptr.vmem [resolvable:$true] %s387_s28 }
  0x72   : > { %s7122_s4 = sld [smem:[#allocation55_spill]] }
  0x78   : > { %s5395_s9 = scalar_lea.hbm %s7122_s4, 1024 }
  0x79   : > { %p5396_p7 = scmp.ne.s32.totalorder %s7122_s4, %s5395_s9  ;;  %p5402_p1 = scmp.lt.u32.totalorder %s5395_s9, %s7122_s4 }
  0x7b   : > { %p5398_p9 = pnand %p5396_p7, %p5834_p8 }
  0x7d   : > { %p5399_p4 = pneg %p5398_p9 }
  0x7f   : > { %p5404_p3 = pnand %p5402_p1, %p5399_p4 }
  0x81   : > { %5407 = shalt.err (!%p5404_p3)
}
  0x82   : > { %s5408_s27 = scalar_lea.vmem %s362_s23, 1024  ;;  %p5416_p13 = scmp.lt.s32.totalorder %s362_s23, %s362_s23 }
  0x83   : > { %p5409_p10 = scmp.ne.s32.totalorder %s362_s23, %s5408_s27  ;;  %p5417_p0 = scmp.lt.s32.totalorder %s5408_s27, %s5408_s27 }
  0x85   : > { %p5411_p11 = pnand %p5409_p10, %p5834_p8  ;;  %p5418_p2 = por %p5417_p0, %p5416_p13 }
  0x87   : > { %p5412_p12 = pneg %p5411_p11 }
  0x89   : > { %p5419_p5 = pnand %p5418_p2, %p5412_p12 }
  0x8b   : > { %5422 = shalt.err (!%p5419_p5)
}
  0x8c   : > { %5138 = dma.hbm_to_vmem [thread:$0]  (!%p5818_p6), %s7122_s4, 1024, %s362_s23, [#allocation9], %s7097_s24, %s7097_s24, %s7099_s10  }
  0x8d   : > { %s7123_s6 = sld [smem:[#allocation57_spill]] }
  0x93   : > { %s5423_s11 = scalar_lea.hbm %s7123_s6, 2048 }
  0x94   : > { %p5424_p7 = scmp.ne.s32.totalorder %s7123_s6, %s5423_s11  ;;  %p5430_p1 = scmp.lt.u32.totalorder %s5423_s11, %s7123_s6 }
  0x96   : > { %p5426_p9 = pnand %p5424_p7, %p5834_p8 }
  0x98   : > { %p5427_p4 = pneg %p5426_p9 }
  0x9a   : > { %p5432_p3 = pnand %p5430_p1, %p5427_p4 }
  0x9c   : > { %5435 = shalt.err (!%p5432_p3)
}
  0x9d   : > { %s5436_s22 = scalar_lea.vmem %s388_s28, 2048  ;;  %p5444_p13 = scmp.lt.s32.totalorder %s388_s28, %s388_s28 }
  0x9e   : > { %p5437_p10 = scmp.ne.s32.totalorder %s388_s28, %s5436_s22  ;;  %p5445_p0 = scmp.lt.s32.totalorder %s5436_s22, %s5436_s22 }
  0xa0   : > { %p5439_p11 = pnand %p5437_p10, %p5834_p8  ;;  %p5446_p2 = por %p5445_p0, %p5444_p13 }
  0xa2   : > { %p5440_p12 = pneg %p5439_p11 }
  0xa4   : > { %p5447_p5 = pnand %p5446_p2, %p5440_p12 }
  0xa6   : > { %5450 = shalt.err (!%p5447_p5)
}
  0xa7   : > { %5144 = dma.hbm_to_vmem [thread:$0]  (!%p5818_p6), %s7123_s6, 2048, %s388_s28, [#allocation12], %s7097_s24, %s7097_s24, %s7099_s10  }
  0xa8   : > { %s5710_s27 = smov [#allocation14]   ;;  %s7124_s7 = sld [smem:[#allocation58_spill]] }
  0xa9   : > { %s400_s2 = sshll.u32 %s5710_s27, 4  ;;  %s401_s2 = int_to_ptr.vmem [resolvable:$true] %s400_s2 }
  0xae   : > { %s5451_s16 = scalar_lea.hbm %s7124_s7, 4096 }
  0xaf   : > { %p5452_p7 = scmp.ne.s32.totalorder %s7124_s7, %s5451_s16  ;;  %p5458_p1 = scmp.lt.u32.totalorder %s5451_s16, %s7124_s7 }
  0xb1   : > { %p5454_p9 = pnand %p5452_p7, %p5834_p8 }
  0xb3   : > { %p5455_p4 = pneg %p5454_p9 }
  0xb5   : > { %p5460_p3 = pnand %p5458_p1, %p5455_p4 }
  0xb7   : > { %5463 = shalt.err (!%p5460_p3)
}
  0xb8   : > { %s5464_s28 = scalar_lea.vmem %s401_s2, 4096  ;;  %p5472_p13 = scmp.lt.s32.totalorder %s401_s2, %s401_s2 }
  0xb9   : > { %p5465_p10 = scmp.ne.s32.totalorder %s401_s2, %s5464_s28  ;;  %p5473_p0 = scmp.lt.s32.totalorder %s5464_s28, %s5464_s28 }
  0xbb   : > { %p5467_p11 = pnand %p5465_p10, %p5834_p8  ;;  %p5474_p2 = por %p5473_p0, %p5472_p13 }
  0xbd   : > { %p5468_p12 = pneg %p5467_p11 }
  0xbf   : > { %p5475_p5 = pnand %p5474_p2, %p5468_p12 }
  0xc1   : > { %5478 = shalt.err (!%p5475_p5)
}
  0xc2   : > { %5147 = dma.hbm_to_vmem [thread:$0]  (!%p5818_p6), %s7124_s7, 4096, %s401_s2, [#allocation15], %s7097_s24, %s7097_s24, %s7099_s10  }
  0xc3   : > { %s7096_s25 = sadd.s32 4294967294, %s5701_s18   ;;  %s48_s21 = sadd.s32 1, %s5697_s17 }
  0xc4   : > { %p50_p8 = scmp.ge.s32.totalorder %s48_s21, 2  ;;  %s57_s23 = sadd.s32 1, %s5689_s15 }
  0xc5   : > { %p64_p7 = scmp.ne.s32.totalorder %s5689_s15, %s5685_s14  ;;  %p65_p9 = scmp.eq.s32.totalorder %s5701_s18, 0 }
  0xc6   : > { %s7206_s21 = smov (%p50_p8, %s48_s21), 0  ;;  %p70_p1 = scmp.ne.s32.totalorder %s5685_s14, %s5681_s13 }
  0xc7   : > { %p5967_p4 = por %p65_p9, %p64_p7  ;;  %s52_s27 = ssub.s32 %s5697_s17, %s7206_s21 }
  0xc8   : > { %p258_p6 = scmp.eq.s32.totalorder %s5804_s19, 1  ;;  %p55_p3 = scmp.eq.s32.totalorder %s52_s27, 0 }
  0xc9   : > { %p7126_p10 = scmp.eq.s32.totalorder %s5804_s19, 0  ;;  %p264_p13 = scmp.eq.s32.totalorder %s7096_s25, 1 }
  0xca   : > { %p5982_p12 = por %p258_p6, %p64_p7  ;;  %p5171_p2 = scmp.lt.s32.totalorder %s5701_s18, 2 }
  0xcb   : > { %p5978_p11 = por %p7126_p10, %p70_p1  ;;  %p5991_p0 = por %p264_p13, %p70_p1 }
  0xcc   : > { %s7128_s3 = scalar_select %p5982_p12, 1, 0 }
  0xcd   : > { %s5989_s8 = scalar_select %p55_p3, %s5689_s15, %s57_s23  }
  0xce   : > { %s7129_s16 = scalar_select %p5991_p0, 1, 0 }
  0xcf   : > { %s5997_s11 = sand.u32 1, %s5689_s15   ;;  %s3960_s12 = sshll.u32 %s5697_s17, 11 }
  0xd0   : > { %s3635_s30 = sshll.u32 %s5997_s11, 7  ;;  %s7130_s0 = sld [smem:[#allocation51_spill]] }
  0xd1   : > { %s418_s22 = scalar_lea.vmem [#allocation2], %s3635_s30  ;;  %p6008_p5 = pnand %p5171_p2, %p5967_p4 }
  0xd2   : > { %s428_s23 = sshll.u32 %s418_s22, 4  ;;  %s3962_s25 = sadd.s32 1920, %s3960_s12  ;;  %s6012_s23 = int_to_ptr.vmem [resolvable:$true] %s428_s23 }
  0xd3   : > { %s7132_s1 = sld [smem:[#allocation52_spill]]  ;;  %s415_s10 = scalar_lea.sflag [#allocation3], %s5997_s11 }
  0xd4   : > { %p5481_p7 = pneg %p6008_p5 }
  0xd6   : > { %s6004_s29 = scalar_lea.hbm %s7130_s0, %s3960_s12  ;;  %s5484_s22 = scalar_lea.hbm %s7130_s0, 4096 }
  0xd7   : > { %s5479_s4 = scalar_lea.hbm %s6004_s29, 2048  ;;  %p5485_p1 = scmp.lt.u32.totalorder %s6004_s29, %s7130_s0 }
  0xd8   : > { %p5480_p8 = scmp.ne.s32.totalorder %s6004_s29, %s5479_s4  ;;  %p5486_p6 = scmp.lt.u32.totalorder %s5484_s22, %s5479_s4 }
  0xd9   : > { %s6017_s28 = scalar_lea.hbm %s7132_s1, %s3962_s25  ;;  %p5488_p10 = scmp.lt.u32.totalorder %s5479_s4, %s6004_s29 }
  0xda   : > { %p5482_p9 = pnand %p5481_p7, %p5480_p8  ;;  %p5487_p3 = por %p5486_p6, %p5485_p1 }
  0xdc   : > { %p5483_p4 = pneg %p5482_p9  ;;  %p5489_p13 = por %p5488_p10, %p5487_p3 }
  0xde   : > { %p5490_p2 = pnand %p5489_p13, %p5483_p4 }
  0xe0   : > { %5493 = shalt.err (!%p5490_p2)
}
  0xe1   : > { %s5494_s24 = scalar_lea.vmem %s6012_s23, 2048  ;;  %s5711_s25 = smov [#allocation2]  }
  0xe2   : > { %p5495_p8 = scmp.ne.s32.totalorder %s6012_s23, %s5494_s24  ;;  %s5499_s26 = sshll.u32 %s5711_s25, 4  ;;  %s5500_s26 = int_to_ptr.vmem [resolvable:$false] %s5499_s26 }
  0xe3   : > { %s5501_s5 = scalar_lea.vmem %s5500_s26, 4096  ;;  %p5502_p12 = scmp.lt.s32.totalorder %s6012_s23, %s5500_s26 }
  0xe4   : > { %p5497_p9 = pnand %p5495_p8, %p5481_p7  ;;  %p5503_p1 = scmp.lt.s32.totalorder %s5501_s5, %s5494_s24 }
  0xe6   : > { %p5498_p0 = pneg %p5497_p9  ;;  %p5504_p6 = por %p5503_p1, %p5502_p12 }
  0xe8   : > { %p5505_p3 = pnand %p5504_p6, %p5498_p0 }
  0xea   : > { %5508 = shalt.err (!%p5505_p3)
}
  0xeb   : > { %s7133_s4 = smov 4   ;;  %s7134_s9 = smov 64  }
  0xec   : > { %5151 = dma.hbm_to_vmem [thread:$0]  (!%p6008_p5), %s6004_s29, 2048, %s6012_s23, %s415_s10, %s7134_s9, %s7134_s9, %s7133_s4  }
  0xed   : > { %s438_s30 = sand.u32 1, %s5701_s18   ;;  %s3638_s22 = sshll.u32 %s5997_s11, 3 }
  0xee   : > { %s442_s12 = scalar_lea.vmem [#allocation5], %s3638_s22  ;;  %s6054_s25 = scalar_lea.sflag [#allocation6], %s438_s30 }
  0xef   : > { %s455_s24 = sshll.u32 %s442_s12, 4  ;;  %s5509_s26 = scalar_lea.hbm %s6017_s28, 128  ;;  %s6052_s24 = int_to_ptr.vmem [resolvable:$true] %s455_s24 }
  0xf0   : > { %p5510_p12 = scmp.ne.s32.totalorder %s6017_s28, %s5509_s26  ;;  %s5514_s6 = scalar_lea.hbm %s7132_s1, 4096 }
  0xf1   : > { %p5515_p10 = scmp.lt.u32.totalorder %s6017_s28, %s7132_s1  ;;  %p5516_p13 = scmp.lt.u32.totalorder %s5514_s6, %s5509_s26 }
  0xf2   : > { %p5512_p0 = pnand %p5510_p12, %p5481_p7  ;;  %p5518_p8 = scmp.lt.u32.totalorder %s5509_s26, %s6017_s28 }
  0xf3   : > { %p5517_p2 = por %p5516_p13, %p5515_p10 }
  0xf4   : > { %p5513_p4 = pneg %p5512_p0 }
  0xf5   : > { %p5519_p9 = por %p5518_p8, %p5517_p2 }
  0xf7   : > { %p5520_p1 = pnand %p5519_p9, %p5513_p4 }
  0xf9   : > { %5523 = shalt.err (!%p5520_p1)
}
  0xfa   : > { %s5524_s11 = scalar_lea.vmem %s6052_s24, 128  ;;  %s5712_s0 = smov [#allocation5]  }
  0xfb   : > { %p5525_p6 = scmp.ne.s32.totalorder %s6052_s24, %s5524_s11  ;;  %s5529_s29 = sshll.u32 %s5712_s0, 4  ;;  %s5530_s29 = int_to_ptr.vmem [resolvable:$false] %s5529_s29 }
  0xfc   : > { %s5531_s7 = scalar_lea.vmem %s5530_s29, 256  ;;  %p5532_p0 = scmp.lt.s32.totalorder %s6052_s24, %s5530_s29 }
  0xfd   : > { %p5527_p3 = pnand %p5525_p6, %p5481_p7  ;;  %p5533_p10 = scmp.lt.s32.totalorder %s5531_s7, %s5524_s11 }
  0xff   : > { %p5528_p12 = pneg %p5527_p3  ;;  %p5534_p13 = por %p5533_p10, %p5532_p0 }
 0x101   : > { %p5535_p2 = pnand %p5534_p13, %p5528_p12 }
 0x103   : > { %5538 = shalt.err (!%p5535_p2)
}
 0x104   : > { %5154 = dma.hbm_to_vmem [thread:$0]  (!%p6008_p5), %s6017_s28, 128, %s6052_s24, %s6054_s25, %s7134_s9, %s7134_s9, %s7133_s4  }
 0x105   : > { %p7135_p7 = scmp.ne.s32.totalorder %s7116_s20, 0 }
 0x107   : > { %467 = sbr.rel (%p7135_p7) target bundleno = 888 (0x378), region = 52 }
 0x10e   : > { %s6086_s6 = sand.u32 1, %s5685_s14  }
 0x10f   : > { %s3642_s23 = sshll.u32 %s6086_s6, 7  ;;  %s470_s30 = scalar_lea.sflag [#allocation3], %s6086_s6 }
 0x110   : > { %s6090_s22 = scalar_lea.vmem [#allocation2], %s3642_s23 }
 0x111   : > { %5648 = dma.done.wait (%p5978_p11), %s470_s30, 2048  }
 0x112   : > { %5650 = vsyncadd (%p5978_p11), %s470_s30, 4294965248  ;;  %s7103_s20 = sand.u32 1, %s5804_s19   ;;  %s6098_s27 = sshll.u32 %s6086_s6, 3 }
 0x113   : > { %s479_s28 = scalar_lea.sflag [#allocation6], %s7103_s20  ;;  %s482_s4 = scalar_lea.vmem [#allocation5], %s6098_s27 }
 0x114   : > { %5652 = dma.done.wait (%p5978_p11), %s479_s28, 128  }
 0x115   : > { %5654 = vsyncadd (%p5978_p11), %s479_s28, 4294967168  ;;  %p7136_p5 = scmp.eq.s32.totalorder %s5804_s19, 0 }
 0x117   : > { %5656 = dma.done.wait (%p7136_p5), [#allocation6], 16   ;;  %p7137_p4 = pmov %p7136_p5 }
 0x119   : > { %5658 = vsyncadd (%p7137_p4), [#allocation6], 4294967280  ;;  %p7138_p8 = pmov %p7137_p4 }
 0x11a   : > { %p7139_p9 = pmov %p7137_p4 }
 0x11b   : > { %5660 = dma.done.wait (%p7138_p8), [#allocation9], 1040  }
 0x11c   : > { %5662 = vsyncadd (%p7139_p9), [#allocation9], 4294966256  ;;  %p7140_p1 = pmov %p7137_p4 }
 0x11e   : > { %5664 = dma.done.wait (%p7140_p1), [#allocation12], 4096   ;;  %p7141_p6 = pmov %p7140_p1 }
 0x11f   : > { %p7142_p11 = pmov %p7140_p1 }
 0x120   : > { %5666 = vsyncadd (%p7141_p6), [#allocation12], 4294963200 }
 0x121   : > { %5668 = dma.done.wait (%p7142_p11), [#allocation15], 4096   ;;  %p7143_p3 = pmov %p7140_p1 }
 0x122   : > { %v5237_v0 = vld [vmem:[#allocation10] sm:$0xff]   ;;  %v5238_v1 = vld [vmem:[#allocation10 + $0x8] sm:$0xff]   ;;  %v5239_v2 = vld [vmem:[#allocation10 + $0x10] sm:$0xff]   ;;  %vm910_vm0 = vsmask.f32 7424  ;;  %vm909_vm1 = vcmask 1047552  }
 0x123   : > { %5670 = vsyncadd (%p7143_p3), [#allocation15], 4294963200  ;;  %5031 = vmatprep.subr.bf16.mxu0 %v5237_v0  ;;  %5079 = vmatprep.subr.bf16.mxu1 %v5237_v0  ;;  %v5240_v3 = vld [vmem:[#allocation10 + $0x18] sm:$0xff]   ;;  %v4093_v5 = vld [vmem:[%s6090_s22] sm:$0xff]   ;;  %s3650_s2 = sshll.u32 %s6086_s6, 9  ;;  %s7188_s12 = sld [smem:[#allocation28_spill]] }
 0x124   : > { %5032 = vmatpush3.bf16.msra.mxu0 %v5237_v0  ;;  %5087 = vmatpush3.bf16.msra.mxu1 %v5237_v0  ;;  %v6123_v4 = vld [vmem:[#allocation7] ss:$0 sm:$0xff]  ;;  %v4094_v6 = vunpack.c.l.bf16 %v4093_v5  ;;  %v4095_v7 = vunpack.c.h.bf16 %v4093_v5  ;;  %v4488_v8 = vld [vmem:[%s6090_s22 + $0x40] sm:$0xff]   ;;  %v4481_v9 = vld [vmem:[%s6090_s22 + $0x8] sm:$0xff]   ;;  %s6489_s9 = scalar_lea.vmem [#allocation16], %s3650_s2  ;;  %s550_s5 = scalar_lea.vmem [#allocation17], %s6098_s27 }
 0x125   : > { %5033 = vmatprep.subr.bf16.mxu0 %v5238_v1  ;;  %5080 = vmatprep.subr.bf16.mxu1 %v5238_v1  ;;  %v4489_v10 = vld [vmem:[%s6090_s22 + $0x48] sm:$0xff]   ;;  %v6129_v11 = vld [vmem:[#allocation8] ss:$0 sm:$0xff]  ;;  %v4126_v12 = vunpack.c.l.bf16 %v4488_v8  ;;  %v4127_v13 = vunpack.c.h.bf16 %v4488_v8  ;;  %v4098_v14 = vunpack.c.l.bf16 %v4481_v9  ;;  %v4099_v15 = vunpack.c.h.bf16 %v4481_v9  ;;  %v5241_v20 = vld [vmem:[#allocation10 + $0x20] sm:$0xff]   ;;  %s3364_s25 = sshll.u32 %s6489_s9, 4  ;;  %s3381_s10 = sshll.u32 %s550_s5, 4  ;;  %s6959_s25 = int_to_ptr.vmem [resolvable:$true] %s3364_s25  ;;  %s6970_s10 = int_to_ptr.vmem [resolvable:$true] %s3381_s10 }
 0x126   : > { %v639_v16 = vmul.f32 %v4094_v6, %v6123_v4  ;;  %v640_v17 = vmul.f32 %v4095_v7, %v6123_v4  ;;  %v4130_v18 = vunpack.c.l.bf16 %v4489_v10  ;;  %v4131_v19 = vunpack.c.h.bf16 %v4489_v10  ;;  %v5242_v34 = vld [vmem:[#allocation10 + $0x28] sm:$0xff]   ;;  %v4482_v41 = vld [vmem:[%s6090_s22 + $0x10] sm:$0xff]   ;;  %v5243_v49 = vld [vmem:[#allocation10 + $0x30] sm:$0xff]   ;;  %s7190_s29 = sld [smem:[#allocation59_spill]]  ;;  %s7102_s23 = scalar_lea.vmem [#allocation19], %s6098_s27 }
 0x127   : > { %v655_v21 = vmul.f32 %v4126_v12, %v6123_v4  ;;  %v656_v22 = vmul.f32 %v4127_v13, %v6123_v4  ;;  %v641_v23 = vmul.f32 %v4098_v14, %v6123_v4  ;;  %v642_v26 = vmul.f32 %v4099_v15, %v6123_v4  ;;  %v4490_v46 = vld [vmem:[%s6090_s22 + $0x50] sm:$0xff]   ;;  %v4483_v47 = vld [vmem:[%s6090_s22 + $0x18] sm:$0xff]   ;;  %vm6262_vm2 = vmand %vm909_vm1, %vm910_vm0  ;;  %s3395_s30 = sshll.u32 %s7102_s23, 4  ;;  %s7193_s11 = sld [smem:[#allocation61_spill]]  ;;  %s6978_s30 = int_to_ptr.vmem [resolvable:$true] %s3395_s30 }
 0x128   : > { %5034 = vmatpush3.bf16.msra.mxu0 %v5238_v1  ;;  %5088 = vmatpush3.bf16.msra.mxu1 %v5238_v1  ;;  %v677_v24 = vadd.f32 %v6129_v11, %v639_v16  ;;  %v678_v25 = vadd.f32 %v6129_v11, %v640_v17  ;;  %v657_v29 = vmul.f32 %v4130_v18, %v6123_v4  ;;  %v4102_v44 = vunpack.c.l.bf16 %v4482_v41  ;;  %v4491_v48 = vld [vmem:[%s6090_s22 + $0x58] sm:$0xff]   ;;  %s3338_s23 = scalar_lea.sflag [#allocation4], %s6086_s6  ;;  %s5539_s20 = scalar_lea.vmem %s6959_s25, 8192 }
 0x129   : > { %5035 = vmatprep.subr.bf16.mxu0 %v5239_v2  ;;  %5081 = vmatprep.subr.bf16.mxu1 %v5239_v2  ;;  %v693_v27 = vadd.f32 %v6129_v11, %v655_v21  ;;  %v694_v28 = vadd.f32 %v6129_v11, %v656_v22  ;;  %v679_v32 = vadd.f32 %v6129_v11, %v641_v23  ;;  %v4103_v45 = vunpack.c.h.bf16 %v4482_v41  ;;  %v5245_v17 = vld [vmem:[#allocation11 + $0x40] sm:$0xff]   ;;  %v4484_v23 = vld [vmem:[%s6090_s22 + $0x20] sm:$0xff]   ;;  %s4091_s24 = sshll.u32 %s7188_s12, 13  ;;  %s3956_s26 = sshll.u32 %s7188_s12, 7 }
 0x12a   : > { %v709_v30 = vmax.f32 %v677_v24, 0.0  ;;  %v710_v31 = vmax.f32 %v678_v25, 0.0  ;;  %v658_v33 = vmul.f32 %v4131_v19, %v6123_v4  ;;  %v680_v37 = vadd.f32 %v6129_v11, %v642_v26  ;;  %v5246_v19 = vld [vmem:[#allocation13 + $0x40] sm:$0xff]   ;;  %p5540_p12 = scmp.ne.s32.totalorder %s6959_s25, %s5539_s20  ;;  %p7194_p0 = scmp.ne.s32.totalorder %s7128_s3, 0 }
 0x12b   : > { %v725_v35 = vmax.f32 %v693_v27, 0.0  ;;  %v726_v36 = vmax.f32 %v694_v28, 0.0  ;;  %v695_v40 = vadd.f32 %v6129_v11, %v657_v29  ;;  %v711_v42 = vmax.f32 %v679_v32, 0.0  ;;  %v5247_v24 = vld [vmem:[#allocation11] sm:$0xff]   ;;  %v4492_v29 = vld [vmem:[%s6090_s22 + $0x60] sm:$0xff]  }
 0x12c   : > { %5036 = vmatpush3.bf16.msra.mxu0 %v5239_v2  ;;  %5089 = vmatpush3.bf16.msra.mxu1 %v5239_v2  ;;  %v6145_v38 = vpack.c.bf16 %v710_v31, %v709_v30  ;;  %v696_v43 = vadd.f32 %v6129_v11, %v658_v33  ;;  %v712_v50 = vmax.f32 %v680_v37, 0.0  ;;  %v4134_v51 = vunpack.c.l.bf16 %v4490_v46  ;;  %v5244_v2 = vld [vmem:[#allocation10 + $0x38] sm:$0xff]   ;;  %v5248_v32 = vld [vmem:[#allocation13] sm:$0xff]   ;;  %v5249_v37 = vld [vmem:[#allocation11 + $0x48] sm:$0xff]   ;;  %s6955_s7 = scalar_lea.hbm %s7190_s29, %s4091_s24  ;;  %p5541_p10 = pnand %p5540_p12, %p7194_p0 }
 0x12d   : > { %5037 = vmatprep.subr.bf16.mxu0 %v5240_v3  ;;  %5082 = vmatprep.subr.bf16.mxu1 %v5240_v3  ;;  %v6147_v39 = vpack.c.bf16 %v726_v36, %v725_v35  ;;  %v4135_v52 = vunpack.c.h.bf16 %v4490_v46  ;;  %v4106_v53 = vunpack.c.l.bf16 %v4483_v47  ;;  %v643_v54 = vmul.f32 %v4102_v44, %v6123_v4  ;;  %v4485_v30 = vld [vmem:[%s6090_s22 + $0x28] sm:$0xff]   ;;  %v5250_v44 = vld [vmem:[#allocation13 + $0x48] sm:$0xff]   ;;  %s6976_s0 = scalar_lea.hbm %s7193_s11, %s3956_s26 }
 0x12e   : > { %5047 = vmatprep.mubr.bf16.mxu0 %v6145_v38  ;;  %v644_v55 = vmul.f32 %v4103_v45, %v6123_v4  ;;  %v4107_v56 = vunpack.c.h.bf16 %v4483_v47  ;;  %v4138_v57 = vunpack.c.l.bf16 %v4491_v48  ;;  %v659_v58 = vmul.f32 %v4134_v51, %v6123_v4  ;;  %v4493_v31 = vld [vmem:[%s6090_s22 + $0x68] sm:$0xff]   ;;  %p5542_p13 = pneg %p5541_p10 }
 0x12f   : > { %5063 = vmatprep.mubr.bf16.mxu1 %v6147_v39  ;;  %v660_v59 = vmul.f32 %v4135_v52, %v6123_v4  ;;  %v645_v60 = vmul.f32 %v4106_v53, %v6123_v4  ;;  %v4139_v61 = vunpack.c.h.bf16 %v4491_v48  ;;  %v727_v62 = vmax.f32 %v695_v40, 0.0 }
 0x130   : > { %5038 = vmatpush3.bf16.msra.mxu0 %v5240_v3  ;;  %5090 = vmatpush3.bf16.msra.mxu1 %v5240_v3  ;;  %v681_v63 = vadd.f32 %v6129_v11, %v643_v54  ;;  %v682_v0 = vadd.f32 %v6129_v11, %v644_v55  ;;  %v646_v1 = vmul.f32 %v4107_v56, %v6123_v4  ;;  %v728_v3 = vmax.f32 %v696_v43, 0.0  ;;  %v5252_v54 = vld [vmem:[#allocation13 + $0x8] sm:$0xff]  }
 0x131   : > { %5039 = vmatprep.subr.bf16.mxu0 %v5241_v20  ;;  %5083 = vmatprep.subr.bf16.mxu1 %v5241_v20  ;;  %v697_v5 = vadd.f32 %v6129_v11, %v659_v58  ;;  %v698_v6 = vadd.f32 %v6129_v11, %v660_v59  ;;  %v6168_v7 = vadd.f32 %v6129_v11, %v645_v60  ;;  %v4110_v27 = vunpack.c.l.bf16 %v4484_v23 }
 0x132   : > { %v713_v8 = vmax.f32 %v681_v63, 0.0  ;;  %v714_v9 = vmax.f32 %v682_v0, 0.0  ;;  %v6171_v10 = vadd.f32 %v6129_v11, %v646_v1  ;;  %v661_v12 = vmul.f32 %v4138_v57, %v6123_v4  ;;  %v5253_v63 = vld [vmem:[#allocation11 + $0x50] sm:$0xff]  }
 0x133   : > { %v729_v13 = vmax.f32 %v697_v5, 0.0  ;;  %v730_v14 = vmax.f32 %v698_v6, 0.0  ;;  %v662_v15 = vmul.f32 %v4139_v61, %v6123_v4  ;;  %v6175_v16 = vpack.c.bf16 %v712_v50, %v711_v42  ;;  %v5254_v0 = vld [vmem:[#allocation13 + $0x50] sm:$0xff]  }
 0x134   : > { %5040 = vmatpush3.bf16.msra.mxu0 %v5241_v20  ;;  %5091 = vmatpush3.bf16.msra.mxu1 %v5241_v20  ;;  %v6177_v18 = vpack.c.bf16 %v728_v3, %v727_v62  ;;  %v6179_v20 = vpack.c.bf16 %v714_v9, %v713_v8  ;;  %v715_v21 = vmax.f32 %v6168_v7, 0.0  ;;  %v6183_v22 = vadd.f32 %v6129_v11, %v661_v12  ;;  %v5255_v7 = vld [vmem:[#allocation11 + $0x10] sm:$0xff]  }
 0x135   : > { %5041 = vmatprep.subr.bf16.mxu0 %v5242_v34  ;;  %5084 = vmatprep.subr.bf16.mxu1 %v5242_v34  ;;  %v6186_v25 = vpack.c.bf16 %v730_v14, %v729_v13  ;;  %v716_v26 = vmax.f32 %v6171_v10, 0.0  ;;  %v4111_v28 = vunpack.c.h.bf16 %v4484_v23  ;;  %v700_v33 = vadd.f32 %v6129_v11, %v662_v15  ;;  %v5256_v8 = vld [vmem:[#allocation13 + $0x10] sm:$0xff]   ;;  %v5257_v13 = vld [vmem:[#allocation11 + $0x58] sm:$0xff]  }
 0x136   : > { %v4143_v35 = vunpack.c.h.bf16 %v4492_v29  ;;  %v4114_v36 = vunpack.c.l.bf16 %v4485_v30  ;;  %v647_v40 = vmul.f32 %v4110_v27, %v6123_v4  ;;  %v4115_v42 = vunpack.c.h.bf16 %v4485_v30  ;;  %v4487_v27 = vld [vmem:[%s6090_s22 + $0x38] sm:$0xff]  }
 0x137   : > { %v648_v41 = vmul.f32 %v4111_v28, %v6123_v4  ;;  %v4146_v43 = vunpack.c.l.bf16 %v4493_v31  ;;  %v731_v45 = vmax.f32 %v6183_v22, 0.0  ;;  %v4147_v48 = vunpack.c.h.bf16 %v4493_v31  ;;  %v4495_v28 = vld [vmem:[%s6090_s22 + $0x78] sm:$0xff]  }
 0x138   : > { %5042 = vmatpush3.bf16.msra.mxu0 %v5242_v34  ;;  %5092 = vmatpush3.bf16.msra.mxu1 %v5242_v34  ;;  %v4142_v34 = vunpack.c.l.bf16 %v4492_v29  ;;  %v664_v47 = vmul.f32 %v4143_v35, %v6123_v4  ;;  %v685_v50 = vadd.f32 %v6129_v11, %v647_v40  ;;  %v649_v52 = vmul.f32 %v4114_v36, %v6123_v4  ;;  %v5258_v29 = vld [vmem:[#allocation13 + $0x58] sm:$0xff]  }
 0x139   : > { %5043 = vmatprep.subr.bf16.mxu0 %v5243_v49  ;;  %5085 = vmatprep.subr.bf16.mxu1 %v5243_v49  ;;  %v686_v51 = vadd.f32 %v6129_v11, %v648_v41  ;;  %v650_v53 = vmul.f32 %v4115_v42, %v6123_v4  ;;  %v732_v55 = vmax.f32 %v700_v33, 0.0  ;;  %v665_v58 = vmul.f32 %v4146_v43, %v6123_v4  ;;  %v5260_v41 = vld [vmem:[#allocation13 + $0x18] sm:$0xff]  }
 0x13a   : > { %v663_v46 = vmul.f32 %v4142_v34, %v6123_v4  ;;  %v702_v57 = vadd.f32 %v6129_v11, %v664_v47  ;;  %v717_v59 = vmax.f32 %v685_v50, 0.0  ;;  %v687_v61 = vadd.f32 %v6129_v11, %v649_v52  ;;  %v5259_v34 = vld [vmem:[#allocation11 + $0x18] sm:$0xff]   ;;  %v5262_v50 = vld [vmem:[#allocation13 + $0x60] sm:$0xff]  }
 0x13b   : > { %v718_v60 = vmax.f32 %v686_v51, 0.0  ;;  %v688_v62 = vadd.f32 %v6129_v11, %v650_v53  ;;  %v666_v3 = vmul.f32 %v4147_v48, %v6123_v4  ;;  %v703_v5 = vadd.f32 %v6129_v11, %v665_v58 }
 0x13c   : > { %5044 = vmatpush3.bf16.msra.mxu0 %v5243_v49  ;;  %5093 = vmatpush3.bf16.msra.mxu1 %v5243_v49  ;;  %v5251_v49 = vld [vmem:[#allocation11 + $0x8] sm:$0xff]   ;;  %v701_v56 = vadd.f32 %v6129_v11, %v663_v46  ;;  %v6213_v6 = vpack.c.bf16 %v716_v26, %v715_v21  ;;  %v719_v9 = vmax.f32 %v687_v61, 0.0  ;;  %v6215_v12 = vpack.c.bf16 %v732_v55, %v731_v45  ;;  %v4494_v26 = vld [vmem:[%s6090_s22 + $0x70] sm:$0xff]  }
 0x13d   : > { %5045 = vmatprep.subr.bf16.mxu0 %v5244_v2  ;;  %5086 = vmatprep.subr.bf16.mxu1 %v5244_v2  ;;  %v720_v10 = vmax.f32 %v688_v62, 0.0  ;;  %v6217_v14 = vpack.c.bf16 %v718_v60, %v717_v59  ;;  %v704_v15 = vadd.f32 %v6129_v11, %v666_v3  ;;  %v4150_v31 = vunpack.c.l.bf16 %v4494_v26  ;;  %v5261_v46 = vld [vmem:[#allocation11 + $0x60] sm:$0xff]  }
 0x13e   : > { %v733_v1 = vmax.f32 %v701_v56, 0.0  ;;  %v4122_v33 = vunpack.c.l.bf16 %v4487_v27  ;;  %v4154_v40 = vunpack.c.l.bf16 %v4495_v28  ;;  %v4155_v45 = vunpack.c.h.bf16 %v4495_v28  ;;  %v5263_v59 = vld [vmem:[#allocation11 + $0x20] sm:$0xff]  }
 0x13f   : > { %v6223_v22 = vpack.c.bf16 %v720_v10, %v719_v9  ;;  %v736_v30 = vmax.f32 %v704_v15, 0.0  ;;  %v667_v43 = vmul.f32 %v4150_v31, %v6123_v4  ;;  %v5264_v60 = vld [vmem:[#allocation13 + $0x20] sm:$0xff]   ;;  %v774_v3 = vshrl.u32 %v6145_v38, 16  ;;  %v5267_v9 = vld [vmem:[#allocation11 + $0x28] sm:$0xff]  }
 0x140   : > { %5046 = vmatpush3.bf16.msra.mxu0 %v5244_v2  ;;  %5094 = vmatpush3.bf16.msra.mxu1 %v5244_v2  ;;  %v734_v2 = vmax.f32 %v702_v57, 0.0  ;;  %v669_v58 = vmul.f32 %v4154_v40, %v6123_v4  ;;  %v5268_v10 = vld [vmem:[#allocation13 + $0x28] sm:$0xff]  }
 0x141   : > { %4583 = vmatprep.subr.bf16.mxu1 %v5245_v17  ;;  %4695 = vmatprep.subr.bf16.mxu0 %v5246_v19  ;;  %v735_v17 = vmax.f32 %v703_v5, 0.0  ;;  %v4486_v19 = vld [vmem:[%s6090_s22 + $0x30] sm:$0xff]   ;;  %v705_v51 = vadd.f32 %v6129_v11, %v667_v43  ;;  %v5266_v5 = vld [vmem:[#allocation13 + $0x68] sm:$0xff]   ;;  %s5713_s22 = smov [#allocation16]  }
 0x142   : > { %v6221_v21 = vpack.c.bf16 %v734_v2, %v733_v1  ;;  %v4118_v23 = vunpack.c.l.bf16 %v4486_v19  ;;  %v5265_v1 = vld [vmem:[#allocation11 + $0x68] sm:$0xff]   ;;  %v707_v2 = vadd.f32 %v6129_v11, %v669_v58  ;;  %v5277_v43 = vld [vmem:[#allocation14 + $0x40] sm:$0xff]   ;;  %s5543_s28 = sshll.u32 %s5713_s22, 4  ;;  %s5544_s28 = int_to_ptr.vmem [resolvable:$false] %s5543_s28 }
 0x143   : > { %5048 = vmatmul.mubr.bf16.vlgmr.msra.gmra.mrb[0].mxu0 %v6175_v16  ;;  %5064 = vmatmul.mubr.bf16.vlgmr.msra.gmra.mrb[0].mxu1 %v6177_v18  ;;  %v6232_v42 = vpack.c.bf16 %v736_v30, %v735_v17  ;;  %v737_v61 = vmax.f32 %v705_v51, 0.0  ;;  %v5271_v30 = vld [vmem:[#allocation11 + $0x30] sm:$0xff]   ;;  %s5545_s1 = scalar_lea.vmem %s5544_s28, 16384  ;;  %p5546_p2 = scmp.lt.s32.totalorder %s6959_s25, %s5544_s28 }
 0x144   : > { %4584 = vmatpush3.bf16.msra.mxu1 %v5247_v24  ;;  %4696 = vmatpush3.bf16.msra.mxu0 %v5248_v32  ;;  %v4119_v24 = vunpack.c.h.bf16 %v4486_v19  ;;  %v4151_v32 = vunpack.c.h.bf16 %v4494_v26  ;;  %v651_v35 = vmul.f32 %v4118_v23, %v6123_v4  ;;  %v739_v19 = vmax.f32 %v707_v2, 0.0  ;;  %v5290_v2 = vld [vmem:[#allocation14 + $0xd8] sm:$0xff]   ;;  %p5547_p7 = scmp.lt.s32.totalorder %s5545_s1, %s5539_s20 }
 0x145   : > { %4585 = vmatprep.subr.bf16.mxu1 %v5249_v37  ;;  %4697 = vmatprep.subr.bf16.mxu0 %v5250_v44  ;;  %v4123_v37 = vunpack.c.h.bf16 %v4487_v27  ;;  %v783_v27 = vshll.u32 %v6175_v16, 16 }
 0x146   : > { %5051 = vmatprep.mubr.bf16.mxu0 %v6179_v20  ;;  %5067 = vmatprep.mubr.bf16.mxu1 %v6186_v25  ;;  %v652_v36 = vmul.f32 %v4119_v24, %v6123_v4  ;;  %v668_v44 = vmul.f32 %v4151_v32, %v6123_v4  ;;  %v689_v47 = vadd.f32 %v6129_v11, %v651_v35  ;;  %v5269_v24 = vld [vmem:[#allocation11 + $0x70] sm:$0xff]   ;;  %v781_v35 = vshrl.u32 %v6175_v16, 16  ;;  %p5548_p5 = por %p5547_p7, %p5546_p2 }
 0x147   : > { %v654_v53 = vmul.f32 %v4123_v37, %v6123_v4  ;;  %v5272_v32 = vld [vmem:[#allocation13 + $0x30] sm:$0xff]   ;;  %v5275_v37 = vld [vmem:[#allocation11 + $0x38] sm:$0xff]  }
 0x148   : > { %4586 = vmatpush3.bf16.msra.mxu1 %v5251_v49  ;;  %4698 = vmatpush3.bf16.msra.mxu0 %v5252_v54  ;;  %v690_v48 = vadd.f32 %v6129_v11, %v652_v36  ;;  %v653_v49 = vmul.f32 %v4122_v33, %v6123_v4  ;;  %v706_v52 = vadd.f32 %v6129_v11, %v668_v44  ;;  %v776_v54 = vshll.u32 %v6145_v38, 16  ;;  %v5273_v33 = vld [vmem:[#allocation11 + $0x78] sm:$0xff]   ;;  %v5278_v44 = vld [vmem:[#allocation14 + $0xc0] sm:$0xff]   ;;  %p5549_p4 = pnand %p5548_p5, %p5542_p13 }
 0x149   : > { %4587 = vmatprep.subr.bf16.mxu1 %v5253_v63  ;;  %4699 = vmatprep.subr.bf16.mxu0 %v5254_v0  ;;  %v721_v55 = vmax.f32 %v689_v47, 0.0  ;;  %v692_v63 = vadd.f32 %v6129_v11, %v654_v53  ;;  %v670_v0 = vmul.f32 %v4155_v45, %v6123_v4  ;;  %v785_v36 = vrot.slane %v783_v27, 1  ;;  %v5279_v47 = vld [vmem:[#allocation14] sm:$0xff]   ;;  %v5282_v53 = vld [vmem:[#allocation14 + $0xc8] sm:$0xff]  }
 0x14a   : > { %v722_v56 = vmax.f32 %v690_v48, 0.0  ;;  %v691_v57 = vadd.f32 %v6129_v11, %v653_v49  ;;  %v738_v62 = vmax.f32 %v706_v52, 0.0  ;;  %v790_v45 = vshll.u32 %v6179_v20, 16  ;;  %v5280_v48 = vld [vmem:[#allocation14 + $0x80] sm:$0xff]   ;;  %v5281_v52 = vld [vmem:[#allocation14 + $0x48] sm:$0xff]  }
 0x14b   : > { %5052 = vmatmul.mubr.bf16.gmra.mrb[4].mxu0 %v6213_v6  ;;  %5068 = vmatmul.mubr.bf16.gmra.mrb[4].mxu1 %v6215_v12  ;;  %v724_v17 = vmax.f32 %v692_v63, 0.0  ;;  %v788_v49 = vshrl.u32 %v6179_v20, 16  ;;  %v5288_v63 = vld [vmem:[#allocation14 + $0x90] sm:$0xff]   ;;  %v5298_v27 = vld [vmem:[#allocation14 + $0xe8] sm:$0xff]  }
 0x14c   : > { %4588 = vmatpush3.bf16.msra.mxu1 %v5255_v7  ;;  %4700 = vmatpush3.bf16.msra.mxu0 %v5256_v8  ;;  %v708_v7 = vadd.f32 %v6129_v11, %v670_v0  ;;  %v778_v8 = vrot.slane %v776_v54, 1  ;;  %v6254_v15 = vpack.c.bf16 %v738_v62, %v737_v61  ;;  %v723_v4 = vmax.f32 %v691_v57, 0.0  ;;  %v5270_v11 = vld [vmem:[#allocation13 + $0x70] sm:$0xff]   ;;  %v5283_v54 = vld [vmem:[#allocation14 + $0x8] sm:$0xff]  }
 0x14d   : > { %4589 = vmatprep.subr.bf16.mxu1 %v5257_v13  ;;  %4701 = vmatprep.subr.bf16.mxu0 %v5258_v29  ;;  %v6252_v13 = vpack.c.bf16 %v722_v56, %v721_v55  ;;  %v5284_v55 = vld [vmem:[#allocation14 + $0x88] sm:$0xff]   ;;  %v797_v56 = vshll.u32 %v6213_v6, 16  ;;  %v5285_v57 = vld [vmem:[#allocation14 + $0x50] sm:$0xff]  }
 0x14e   : > { %5055 = vmatprep.mubr.bf16.mxu0 %v6217_v14  ;;  %5071 = vmatprep.mubr.bf16.mxu1 %v6221_v21  ;;  %v740_v23 = vmax.f32 %v708_v7, 0.0  ;;  %v6267_v28 = vpack.c.bf16 %v724_v17, %v723_v4  ;;  %v779_v31 = vor.u32 %v778_v8, %v774_v3  ;;  %v5287_v62 = vld [vmem:[#allocation14 + $0x10] sm:$0xff]   ;;  %v5291_v3 = vld [vmem:[#allocation14 + $0x18] sm:$0xff]   ;;  %v804_v8 = vshll.u32 %v6217_v14, 16  ;;  %v5295_v17 = vld [vmem:[#allocation14 + $0x20] sm:$0xff]  }
 0x14f   : > { %v799_v61 = vrot.slane %v797_v56, 1  ;;  %v802_v4 = vshrl.u32 %v6217_v14, 16 }
 0x150   : > { %4590 = vmatpush3.bf16.msra.mxu1 %v5259_v34  ;;  %4702 = vmatpush3.bf16.msra.mxu0 %v5260_v41  ;;  %v6269_v29 = vpack.c.bf16 %v740_v23, %v739_v19  ;;  %v5274_v34 = vld [vmem:[#allocation13 + $0x78] sm:$0xff]   ;;  %v6276_v40 = vsel %vm6262_vm2, %v779_v31, 0  ;;  %v806_v23 = vrot.slane %v804_v8, 1  ;;  %v811_v31 = vshll.u32 %v6223_v22, 16 }
 0x151   : > { %4591 = vmatprep.subr.bf16.mxu1 %v5261_v46  ;;  %4703 = vmatprep.subr.bf16.mxu0 %v5262_v50  ;;  %v5276_v41 = vld [vmem:[#allocation13 + $0x38] sm:$0xff]   ;;  %v786_v46 = vor.u32 %v785_v36, %v781_v35  ;;  %v792_v50 = vrot.slane %v790_v45, 1  ;;  %v5302_v35 = vld [vmem:[#allocation14 + $0xf0] sm:$0xff]   ;;  %v825_v56 = vshll.u32 %v6267_v28, 16 }
 0x152   : > { %v5305_v45 = vld [vmem:[#allocation14 + $0x78] sm:$0xff]  }
 0x153   : > { %5056 = vmatmul.mubr.bf16.gmra.mrb[8].mxu0 %v6223_v22  ;;  %5072 = vmatmul.mubr.bf16.gmra.mrb[8].mxu1 %v6232_v42  ;;  %v6284_v51 = vsel %vm6262_vm2, %v786_v46, 0  ;;  %v793_v58 = vor.u32 %v792_v50, %v788_v49  ;;  %v5306_v46 = vld [vmem:[#allocation14 + $0xf8] sm:$0xff]  }
 0x154   : > { %4592 = vmatpush3.bf16.msra.mxu1 %v5263_v59  ;;  %4704 = vmatpush3.bf16.msra.mxu0 %v5264_v60  ;;  %v5286_v59 = vld [vmem:[#allocation14 + $0xd0] sm:$0xff]   ;;  %v795_v60 = vshrl.u32 %v6213_v6, 16  ;;  %v5307_v49 = vld [vmem:[#allocation14 + $0x38] sm:$0xff]  }
 0x155   : > { %4593 = vmatprep.subr.bf16.mxu1 %v5265_v1  ;;  %4705 = vmatprep.subr.bf16.mxu0 %v5266_v5  ;;  %v6294_v0 = vsel %vm6262_vm2, %v793_v58, 0  ;;  %v5289_v1 = vld [vmem:[#allocation14 + $0x58] sm:$0xff]   ;;  %v823_v58 = vshrl.u32 %v6267_v28, 16 }
 0x156   : > { %5059 = vmatprep.mubr.bf16.mxu0 %v6252_v13  ;;  %5075 = vmatprep.mubr.bf16.mxu1 %v6254_v15  ;;  %v5292_v5 = vld [vmem:[#allocation14 + $0x98] sm:$0xff]   ;;  %v800_v7 = vor.u32 %v799_v61, %v795_v60  ;;  %v832_v61 = vshll.u32 %v6147_v39, 16 }
 0x157   : > { %v5308_v50 = vld [vmem:[#allocation14 + $0xb8] sm:$0xff]  }
 0x158   : > { %4594 = vmatpush3.bf16.msra.mxu1 %v5267_v9  ;;  %4706 = vmatpush3.bf16.msra.mxu0 %v5268_v10  ;;  %v5293_v9 = vld [vmem:[#allocation14 + $0x60] sm:$0xff]   ;;  %v6304_v19 = vsel %vm6262_vm2, %v800_v7, 0  ;;  %v837_v7 = vshrl.u32 %v6177_v18, 16 }
 0x159   : > { %4595 = vmatprep.subr.bf16.mxu1 %v5269_v24  ;;  %4707 = vmatprep.subr.bf16.mxu0 %v5270_v11  ;;  %v5294_v10 = vld [vmem:[#allocation14 + $0xe0] sm:$0xff]   ;;  %v5297_v11 = vld [vmem:[#allocation14 + $0x68] sm:$0xff]  }
 0x15a   : > { %v5296_v24 = vld [vmem:[#allocation14 + $0xa0] sm:$0xff]  }
 0x15b   : > { %5060 = vmatmul.mubr.bf16.gmra.mrb[12].mxu0 %v6267_v28  ;;  %5076 = vmatmul.mubr.bf16.gmra.mrb[12].mxu1 %v6269_v29 }
 0x15c   : > { %4596 = vmatpush3.bf16.msra.mxu1 %v5271_v30  ;;  %4708 = vmatpush3.bf16.msra.mxu0 %v5272_v32  ;;  %v807_v30 = vor.u32 %v806_v23, %v802_v4  ;;  %v5299_v32 = vld [vmem:[#allocation14 + $0x28] sm:$0xff]  }
 0x15d   : > { %4597 = vmatprep.subr.bf16.mxu1 %v5273_v33  ;;  %4709 = vmatprep.subr.bf16.mxu0 %v5274_v34  ;;  %v5300_v33 = vld [vmem:[#allocation14 + $0xa8] sm:$0xff]   ;;  %v5301_v34 = vld [vmem:[#allocation14 + $0x70] sm:$0xff]  }
 0x15e   : > { %1314 = vmatprep.mubr.bf16.mxu1 %v6276_v40  ;;  %1603 = vmatprep.mubr.bf16.mxu0 %v6175_v16  ;;  %v6313_v36 = vsel %vm6262_vm2, %v807_v30, 0  ;;  %v851_v30 = vshrl.u32 %v6215_v12, 16 }
 0x160   : > { %4598 = vmatpush3.bf16.msra.mxu1 %v5275_v37  ;;  %4710 = vmatpush3.bf16.msra.mxu0 %v5276_v41  ;;  %v809_v37 = vshrl.u32 %v6223_v22, 16  ;;  %v813_v41 = vrot.slane %v811_v31, 1 }
 0x161   : > { %4807 = vmatprep.subr.bf16.mxu1 %v5277_v43  ;;  %4919 = vmatprep.subr.bf16.mxu0 %v5278_v44  ;;  %v5303_v43 = vld [vmem:[#allocation14 + $0x30] sm:$0xff]  }
 0x162   : > { %v5304_v44 = vld [vmem:[#allocation14 + $0xb0] sm:$0xff]  }
 0x163   : > { %1315 = vmatmul.mubr.bf16.vlgmr.msra.gmra.mrb[16].mxu1 %v6145_v38  ;;  %1604 = vmatmul.mubr.bf16.vlgmr.msra.gmra.mrb[16].mxu0 %v6145_v38 }
 0x164   : > { %4808 = vmatpush3.bf16.msra.mxu1 %v5279_v47  ;;  %4920 = vmatpush3.bf16.msra.mxu0 %v5280_v48  ;;  %v814_v47 = vor.u32 %v813_v41, %v809_v37  ;;  %v818_v48 = vshll.u32 %v6252_v13, 16 }
 0x165   : > { %1322 = vmatprep.mubr.bf16.mxu1 %v6284_v51  ;;  %1611 = vmatprep.mubr.bf16.mxu0 %v6179_v20 }
 0x166   : > { %4809 = vmatprep.subr.bf16.mxu1 %v5281_v52  ;;  %4921 = vmatprep.subr.bf16.mxu0 %v5282_v53  ;;  %v6323_v52 = vsel %vm6262_vm2, %v814_v47, 0  ;;  %v816_v53 = vshrl.u32 %v6252_v13, 16  ;;  %v4157_v47 = vld [vmem:[%s482_s4] sm:$0xff]   ;;  %s7192_s4 = sld [smem:[#allocation60_spill]] }
 0x168   : > { %4810 = vmatpush3.bf16.msra.mxu1 %v5283_v54  ;;  %4922 = vmatpush3.bf16.msra.mxu0 %v5284_v55  ;;  %v820_v54 = vrot.slane %v818_v48, 1  ;;  %v4158_v48 = vunpack.c.l.bf16 %v4157_v47 }
 0x169   : > { %4811 = vmatprep.subr.bf16.mxu1 %v5285_v57  ;;  %4923 = vmatprep.subr.bf16.mxu0 %v5286_v59  ;;  %v827_v59 = vrot.slane %v825_v56, 1 }
 0x16a   : > { %v821_v55 = vor.u32 %v820_v54, %v816_v53  ;;  %v874_v53 = vshll.u32 %v6254_v15, 16  ;;  %v5309_v54 = vld [vmem:[#allocation7] ss:$0 sm:$0xff] }
 0x16b   : > { %1323 = vmatmul.mubr.bf16.gmra.mrb[20].mxu1 %v6175_v16  ;;  %1612 = vmatmul.mubr.bf16.gmra.mrb[20].mxu0 %v6175_v16  ;;  %v828_v60 = vor.u32 %v827_v59, %v823_v58  ;;  %v872_v59 = vshrl.u32 %v6254_v15, 16 }
 0x16c   : > { %1330 = vmatprep.mubr.bf16.mxu1 %v6294_v0  ;;  %1619 = vmatprep.mubr.bf16.mxu0 %v6213_v6  ;;  %v6333_v57 = vsel %vm6262_vm2, %v821_v55, 0  ;;  %v763_v55 = vmul.f32 %v5309_v54, %v4158_v48  ;;  %s6968_s2 = scalar_lea.hbm %s7192_s4, %s3956_s26 }
 0x16d   : > { %4812 = vmatpush3.bf16.msra.mxu1 %v5287_v62  ;;  %4924 = vmatpush3.bf16.msra.mxu0 %v5288_v63  ;;  %v6343_v62 = vsel %vm6262_vm2, %v828_v60, 0  ;;  %v830_v63 = vshrl.u32 %v6147_v39, 16  ;;  %v876_v60 = vrot.slane %v874_v53, 1 }
 0x16e   : > { %4813 = vmatprep.subr.bf16.mxu1 %v5289_v1  ;;  %4925 = vmatprep.subr.bf16.mxu0 %v5290_v2  ;;  %v834_v1 = vrot.slane %v832_v61, 1  ;;  %v5310_v61 = vld [vmem:[#allocation8] ss:$0 sm:$0xff] }
 0x170   : > { %v835_v2 = vor.u32 %v834_v1, %v830_v63  ;;  %v765_v63 = vadd.f32 %v5310_v61, %v763_v55 }
 0x171   : > { %4814 = vmatpush3.bf16.msra.mxu1 %v5291_v3  ;;  %4926 = vmatpush3.bf16.msra.mxu0 %v5292_v5  ;;  %v839_v3 = vshll.u32 %v6177_v18, 16 }
 0x172   : > { %4815 = vmatprep.subr.bf16.mxu1 %v5293_v9  ;;  %4927 = vmatprep.subr.bf16.mxu0 %v5294_v10  ;;  %v6353_v5 = vsel %vm6262_vm2, %v835_v2, 0  ;;  %v846_v10 = vshll.u32 %v6186_v25, 16  ;;  %v877_v2 = vor.u32 %v876_v60, %v872_v59 }
 0x173   : > { %1331 = vmatmul.mubr.bf16.gmra.mrb[24].mxu1 %v6179_v20  ;;  %1620 = vmatmul.mubr.bf16.gmra.mrb[24].mxu0 %v6179_v20  ;;  %v841_v8 = vrot.slane %v839_v3, 1  ;;  %v881_v3 = vshll.u32 %v6269_v29, 16 }
 0x174   : > { %1338 = vmatprep.mubr.bf16.mxu1 %v6304_v19  ;;  %1627 = vmatprep.mubr.bf16.mxu0 %v6217_v14  ;;  %v848_v23 = vrot.slane %v846_v10, 1  ;;  %v879_v10 = vshrl.u32 %v6269_v29, 16 }
 0x175   : > { %4816 = vmatpush3.bf16.msra.mxu1 %v5295_v17  ;;  %4928 = vmatpush3.bf16.msra.mxu0 %v5296_v24  ;;  %v842_v9 = vor.u32 %v841_v8, %v837_v7  ;;  %v844_v17 = vshrl.u32 %v6186_v25, 16  ;;  %v767_v7 = vmax.f32 %v765_v63, 0.0 }
 0x176   : > { %4817 = vmatprep.subr.bf16.mxu1 %v5297_v11  ;;  %4929 = vmatprep.subr.bf16.mxu0 %v5298_v27  ;;  %v853_v11 = vshll.u32 %v6215_v12, 16 }
 0x177   : > { %v6363_v4 = vsel %vm6262_vm2, %v842_v9, 0  ;;  %v849_v24 = vor.u32 %v848_v23, %v844_v17  ;;  %v6415_v9 = vsel %vm6262_vm2, %v877_v2, 0  ;;  %v883_v17 = vrot.slane %v881_v3, 1 }
 0x178   : > { %v855_v31 = vrot.slane %v853_v11, 1  ;;  %v770_v23 = vmul.f32 0.0, %v767_v7 }
 0x179   : > { %4818 = vmatpush3.bf16.msra.mxu1 %v5299_v32  ;;  %4930 = vmatpush3.bf16.msra.mxu0 %v5300_v33  ;;  %v6373_v27 = vsel %vm6262_vm2, %v849_v24, 0  ;;  %v860_v33 = vshll.u32 %v6221_v21, 16  ;;  %v884_v11 = vor.u32 %v883_v17, %v879_v10 }
 0x17a   : > { %4819 = vmatprep.subr.bf16.mxu1 %v5301_v34  ;;  %4931 = vmatprep.subr.bf16.mxu0 %v5302_v35  ;;  %v856_v32 = vor.u32 %v855_v31, %v851_v30  ;;  %v858_v35 = vshrl.u32 %v6221_v21, 16 }
 0x17b   : > { %1339 = vmatmul.mubr.bf16.gmra.mrb[28].mxu1 %v6213_v6  ;;  %1628 = vmatmul.mubr.bf16.gmra.mrb[28].mxu0 %v6213_v6  ;;  %v862_v37 = vrot.slane %v860_v33, 1  ;;  %v6426_v31 = vsel %vm6262_vm2, %v884_v11, 0 }
 0x17c   : > { %1346 = vmatprep.mubr.bf16.mxu1 %v6313_v36  ;;  %1635 = vmatprep.mubr.bf16.mxu0 %v6223_v22  ;;  %v6383_v34 = vsel %vm6262_vm2, %v856_v32, 0 }
 0x17d   : > { %4820 = vmatpush3.bf16.msra.mxu1 %v5303_v43  ;;  %4932 = vmatpush3.bf16.msra.mxu0 %v5304_v44  ;;  %v863_v41 = vor.u32 %v862_v37, %v858_v35  ;;  %v867_v43 = vshll.u32 %v6232_v42, 16 }
 0x17e   : > { %4821 = vmatprep.subr.bf16.mxu1 %v5305_v45  ;;  %4933 = vmatprep.subr.bf16.mxu0 %v5306_v46  ;;  %v865_v45 = vshrl.u32 %v6232_v42, 16 }
 0x17f   : > { %v6393_v44 = vsel %vm6262_vm2, %v863_v41, 0  ;;  %v869_v46 = vrot.slane %v867_v43, 1 }
 0x181   : > { %4822 = vmatpush3.bf16.msra.mxu1 %v5307_v49  ;;  %4934 = vmatpush3.bf16.msra.mxu0 %v5308_v50  ;;  %v4159_v49 = vunpack.c.h.bf16 %v4157_v47  ;;  %v870_v50 = vor.u32 %v869_v46, %v865_v45 }
 0x183   : > { %1347 = vmatmul.mubr.bf16.gmra.mrb[32].mxu1 %v6217_v14  ;;  %1636 = vmatmul.mubr.bf16.gmra.mrb[32].mxu0 %v6217_v14  ;;  %v764_v56 = vmul.f32 %v5309_v54, %v4159_v49  ;;  %v6405_v58 = vsel %vm6262_vm2, %v870_v50, 0 }
 0x184   : > { %1354 = vmatprep.mubr.bf16.mxu1 %v6323_v52  ;;  %1643 = vmatprep.mubr.bf16.mxu0 %v6252_v13 }
 0x185   : > { %v766_v1 = vadd.f32 %v5310_v61, %v764_v56 }
 0x187   : > { %v768_v8 = vmax.f32 %v766_v1, 0.0 }
 0x189   : > { %v771_v24 = vmul.f32 0.0, %v768_v8 }
 0x18b   : > { %1355 = vmatmul.mubr.bf16.gmra.mrb[36].mxu1 %v6223_v22  ;;  %1644 = vmatmul.mubr.bf16.gmra.mrb[36].mxu0 %v6223_v22  ;;  %v6422_v30 = vpack.c.bf16 %v771_v24, %v770_v23 }
 0x18c   : > { %1362 = vmatprep.mubr.bf16.mxu1 %v6333_v57  ;;  %1651 = vmatprep.mubr.bf16.mxu0 %v6267_v28 }
 0x193   : > { %1363 = vmatmul.mubr.bf16.gmra.mrb[40].mxu1 %v6252_v13  ;;  %1652 = vmatmul.mubr.bf16.gmra.mrb[40].mxu0 %v6252_v13 }
 0x194   : > { %1370 = vmatprep.mubr.bf16.mxu1 %v6343_v62  ;;  %1659 = vmatprep.mubr.bf16.mxu0 %v6147_v39 }
 0x19b   : > { %1371 = vmatmul.mubr.bf16.gmra.mrb[44].mxu1 %v6267_v28  ;;  %1660 = vmatmul.mubr.bf16.gmra.mrb[44].mxu0 %v6267_v28 }
 0x19c   : > { %1378 = vmatprep.mubr.bf16.mxu1 %v6353_v5  ;;  %1667 = vmatprep.mubr.bf16.mxu0 %v6177_v18 }
 0x1a3   : > { %1379 = vmatmul.mubr.bf16.gmra.mrb[48].mxu1 %v6147_v39  ;;  %1668 = vmatmul.mubr.bf16.gmra.mrb[48].mxu0 %v6147_v39 }
 0x1a4   : > { %1386 = vmatprep.mubr.bf16.mxu1 %v6363_v4  ;;  %1675 = vmatprep.mubr.bf16.mxu0 %v6186_v25 }
 0x1ab   : > { %1387 = vmatmul.mubr.bf16.gmra.mrb[52].mxu1 %v6177_v18  ;;  %1676 = vmatmul.mubr.bf16.gmra.mrb[52].mxu0 %v6177_v18 }
 0x1ac   : > { %1394 = vmatprep.mubr.bf16.mxu1 %v6373_v27  ;;  %1683 = vmatprep.mubr.bf16.mxu0 %v6215_v12 }
 0x1b3   : > { %1395 = vmatmul.mubr.bf16.gmra.mrb[56].mxu1 %v6186_v25  ;;  %1684 = vmatmul.mubr.bf16.gmra.mrb[56].mxu0 %v6186_v25 }
 0x1b4   : > { %1402 = vmatprep.mubr.bf16.mxu1 %v6383_v34  ;;  %1691 = vmatprep.mubr.bf16.mxu0 %v6221_v21 }
 0x1bb   : > { %1403 = vmatmul.mubr.bf16.gmra.mrb[60].mxu1 %v6215_v12  ;;  %1692 = vmatmul.mubr.bf16.gmra.mrb[60].mxu0 %v6215_v12 }
 0x1bc   : > { %1410 = vmatprep.mubr.bf16.mxu1 %v6393_v44  ;;  %1699 = vmatprep.mubr.bf16.mxu0 %v6232_v42 }
 0x1c3   : > { %1411 = vmatmul.mubr.bf16.gmra.mrb[64].mxu1 %v6221_v21  ;;  %1700 = vmatmul.mubr.bf16.gmra.mrb[64].mxu0 %v6221_v21 }
 0x1c4   : > { %1418 = vmatprep.mubr.bf16.mxu1 %v6405_v58  ;;  %1707 = vmatprep.mubr.bf16.mxu0 %v6254_v15 }
 0x1cb   : > { %1419 = vmatmul.mubr.bf16.gmra.mrb[68].mxu1 %v6232_v42  ;;  %1708 = vmatmul.mubr.bf16.gmra.mrb[68].mxu0 %v6232_v42 }
 0x1cc   : > { %1426 = vmatprep.mubr.bf16.mxu1 %v6415_v9  ;;  %1715 = vmatprep.mubr.bf16.mxu0 %v6269_v29 }
 0x1d3   : > { %1427 = vmatmul.mubr.bf16.gmra.mrb[72].mxu1 %v6254_v15  ;;  %1716 = vmatmul.mubr.bf16.gmra.mrb[72].mxu0 %v6254_v15 }
 0x1d4   : > { %1434 = vmatprep.mubr.bf16.mxu1 %v6426_v31  ;;  %1723 = vmatprep.mubr.bf16.mxu0 %v6422_v30 }
 0x1db   : > { %1435 = vmatmul.mubr.bf16.gmra.mrb[76].mxu1 %v6269_v29  ;;  %1724 = vmatmul.mubr.bf16.gmra.mrb[76].mxu0 %v6269_v29 }
 0x1dc   : > { %2020 = vmatprep.mubr.bf16.mxu1 %v6276_v40  ;;  %2181 = vmatprep.mubr.bf16.mxu0 %v6284_v51 }
 0x1e3   : > { %2021 = vmatmul.mubr.bf16.vlgmr.msra.gmra.mrb[80].mxu1 %v6145_v38  ;;  %2182 = vmatmul.mubr.bf16.vlgmr.msra.gmra.mrb[80].mxu0 %v6175_v16 }
 0x1e4   : > { %2028 = vmatprep.mubr.bf16.mxu1 %v6284_v51  ;;  %2189 = vmatprep.mubr.bf16.mxu0 %v6294_v0 }
 0x1eb   : > { %2029 = vmatmul.mubr.bf16.gmra.mrb[84].mxu1 %v6175_v16  ;;  %2190 = vmatmul.mubr.bf16.gmra.mrb[84].mxu0 %v6179_v20 }
 0x1ec   : > { %2036 = vmatprep.mubr.bf16.mxu1 %v6294_v0  ;;  %2197 = vmatprep.mubr.bf16.mxu0 %v6304_v19 }
 0x1f3   : > { %2037 = vmatmul.mubr.bf16.gmra.mrb[88].mxu1 %v6179_v20  ;;  %2198 = vmatmul.mubr.bf16.gmra.mrb[88].mxu0 %v6213_v6 }
 0x1f4   : > { %2044 = vmatprep.mubr.bf16.mxu1 %v6304_v19  ;;  %2205 = vmatprep.mubr.bf16.mxu0 %v6313_v36 }
 0x1fb   : > { %2045 = vmatmul.mubr.bf16.gmra.mrb[92].mxu1 %v6213_v6  ;;  %2206 = vmatmul.mubr.bf16.gmra.mrb[92].mxu0 %v6217_v14 }
 0x1fc   : > { %2052 = vmatprep.mubr.bf16.mxu1 %v6313_v36  ;;  %2213 = vmatprep.mubr.bf16.mxu0 %v6323_v52 }
 0x203   : > { %2053 = vmatmul.mubr.bf16.gmra.mrb[96].mxu1 %v6217_v14  ;;  %2214 = vmatmul.mubr.bf16.gmra.mrb[96].mxu0 %v6223_v22 }
 0x204   : > { %2060 = vmatprep.mubr.bf16.mxu1 %v6323_v52  ;;  %2221 = vmatprep.mubr.bf16.mxu0 %v6333_v57 }
 0x20b   : > { %2061 = vmatmul.mubr.bf16.gmra.mrb[100].mxu1 %v6223_v22  ;;  %2222 = vmatmul.mubr.bf16.gmra.mrb[100].mxu0 %v6252_v13 }
 0x20c   : > { %2068 = vmatprep.mubr.bf16.mxu1 %v6333_v57  ;;  %2229 = vmatprep.mubr.bf16.mxu0 %v6343_v62 }
 0x213   : > { %2069 = vmatmul.mubr.bf16.gmra.mrb[104].mxu1 %v6252_v13  ;;  %2230 = vmatmul.mubr.bf16.gmra.mrb[104].mxu0 %v6267_v28 }
 0x214   : > { %2076 = vmatprep.mubr.bf16.mxu1 %v6343_v62  ;;  %2237 = vmatprep.mubr.bf16.mxu0 %v6353_v5 }
 0x216   : > { %v6465_v38 = vpop.f32.mrb[0].mxu0  ;;  %v6467_v16 = vpop.f32.mrb[0].mxu1 }
 0x217   : > { %v6469_v20 = vpop.f32.mrb[1].mxu0  ;;  %v6471_v6 = vpop.f32.mrb[1].mxu1 }
 0x218   : > { %v6473_v14 = vpop.f32.mrb[2].mxu0  ;;  %v6475_v22 = vpop.f32.mrb[2].mxu1 }
 0x219   : > { %v4168_v13 = vpack.c.bf16 %v6473_v14, %v6465_v38  ;;  %v4208_v40 = vpack.c.bf16 %v6475_v22, %v6467_v16  ;;  %v6481_v51 = vpop.f32.mrb[3].mxu0  ;;  %v6483_v0 = vpop.f32.mrb[3].mxu1 }
 0x21a   : > { %v4163_v19 = vpack.c.bf16 %v6481_v51, %v6469_v20  ;;  %v4203_v36 = vpack.c.bf16 %v6483_v0, %v6471_v6 }
 0x21b   : > { %4496 = vst [vmem:[%s6489_s9 + $0x8] sm:$0xff] %v4168_v13   ;;  %4504 = vst [vmem:[%s6489_s9 + $0x48] sm:$0xff] %v4208_v40   ;;  %2077 = vmatmul.mubr.bf16.gmra.mrb[108].mxu1 %v6267_v28  ;;  %2238 = vmatmul.mubr.bf16.gmra.mrb[108].mxu0 %v6147_v39 }
 0x21c   : > { %4164 = vst [vmem:[%s6489_s9] sm:$0xff] %v4163_v19   ;;  %4503 = vst [vmem:[%s6489_s9 + $0x40] sm:$0xff] %v4203_v36   ;;  %2084 = vmatprep.mubr.bf16.mxu1 %v6353_v5  ;;  %2245 = vmatprep.mubr.bf16.mxu0 %v6363_v4 }
 0x21e   : > { %v6499_v52 = vpop.f32.mrb[4].mxu0  ;;  %v6501_v57 = vpop.f32.mrb[4].mxu1 }
 0x21f   : > { %v6503_v62 = vpop.f32.mrb[5].mxu0  ;;  %v6505_v32 = vpop.f32.mrb[5].mxu1 }
 0x220   : > { %v6507_v28 = vpop.f32.mrb[6].mxu0  ;;  %v6509_v33 = vpop.f32.mrb[6].mxu1 }
 0x221   : > { %v4178_v35 = vpack.c.bf16 %v6507_v28, %v6499_v52  ;;  %v4218_v5 = vpack.c.bf16 %v6509_v33, %v6501_v57  ;;  %v6515_v37 = vpop.f32.mrb[7].mxu0  ;;  %v6517_v41 = vpop.f32.mrb[7].mxu1 }
 0x222   : > { %v4173_v43 = vpack.c.bf16 %v6515_v37, %v6503_v62  ;;  %v4213_v45 = vpack.c.bf16 %v6517_v41, %v6505_v32 }
 0x223   : > { %4498 = vst [vmem:[%s6489_s9 + $0x18] sm:$0xff] %v4178_v35   ;;  %4506 = vst [vmem:[%s6489_s9 + $0x58] sm:$0xff] %v4218_v5   ;;  %2085 = vmatmul.mubr.bf16.gmra.mrb[112].mxu1 %v6147_v39  ;;  %2246 = vmatmul.mubr.bf16.gmra.mrb[112].mxu0 %v6177_v18 }
 0x224   : > { %4497 = vst [vmem:[%s6489_s9 + $0x10] sm:$0xff] %v4173_v43   ;;  %4505 = vst [vmem:[%s6489_s9 + $0x50] sm:$0xff] %v4213_v45   ;;  %2092 = vmatprep.mubr.bf16.mxu1 %v6363_v4  ;;  %2253 = vmatprep.mubr.bf16.mxu0 %v6373_v27 }
 0x226   : > { %v6531_v46 = vpop.f32.mrb[8].mxu0  ;;  %v6533_v47 = vpop.f32.mrb[8].mxu1 }
 0x227   : > { %v6535_v48 = vpop.f32.mrb[9].mxu0  ;;  %v6537_v49 = vpop.f32.mrb[9].mxu1 }
 0x228   : > { %v6539_v39 = vpop.f32.mrb[10].mxu0  ;;  %v6541_v50 = vpop.f32.mrb[10].mxu1 }
 0x229   : > { %v4188_v53 = vpack.c.bf16 %v6539_v39, %v6531_v46  ;;  %v4228_v4 = vpack.c.bf16 %v6541_v50, %v6533_v47  ;;  %v6547_v54 = vpop.f32.mrb[11].mxu0  ;;  %v6549_v55 = vpop.f32.mrb[11].mxu1 }
 0x22a   : > { %v4183_v56 = vpack.c.bf16 %v6547_v54, %v6535_v48  ;;  %v4223_v59 = vpack.c.bf16 %v6549_v55, %v6537_v49 }
 0x22b   : > { %4500 = vst [vmem:[%s6489_s9 + $0x28] sm:$0xff] %v4188_v53   ;;  %4508 = vst [vmem:[%s6489_s9 + $0x68] sm:$0xff] %v4228_v4   ;;  %2093 = vmatmul.mubr.bf16.gmra.mrb[116].mxu1 %v6177_v18  ;;  %2254 = vmatmul.mubr.bf16.gmra.mrb[116].mxu0 %v6186_v25 }
 0x22c   : > { %4499 = vst [vmem:[%s6489_s9 + $0x20] sm:$0xff] %v4183_v56   ;;  %4507 = vst [vmem:[%s6489_s9 + $0x60] sm:$0xff] %v4223_v59   ;;  %2100 = vmatprep.mubr.bf16.mxu1 %v6373_v27  ;;  %2261 = vmatprep.mubr.bf16.mxu0 %v6383_v34 }
 0x22e   : > { %v6563_v60 = vpop.f32.mrb[12].mxu0  ;;  %v6565_v61 = vpop.f32.mrb[12].mxu1 }
 0x22f   : > { %v6567_v63 = vpop.f32.mrb[13].mxu0  ;;  %v6569_v1 = vpop.f32.mrb[13].mxu1 }
 0x230   : > { %v6571_v18 = vpop.f32.mrb[14].mxu0  ;;  %v6573_v2 = vpop.f32.mrb[14].mxu1 }
 0x231   : > { %v4198_v3 = vpack.c.bf16 %v6571_v18, %v6563_v60  ;;  %v4238_v27 = vpack.c.bf16 %v6573_v2, %v6565_v61  ;;  %v6579_v7 = vpop.f32.mrb[15].mxu0  ;;  %v6581_v8 = vpop.f32.mrb[15].mxu1 }
 0x232   : > { %v4193_v10 = vpack.c.bf16 %v6579_v7, %v6567_v63  ;;  %v4233_v17 = vpack.c.bf16 %v6581_v8, %v6569_v1 }
 0x233   : > { %4502 = vst [vmem:[%s6489_s9 + $0x38] sm:$0xff] %v4198_v3   ;;  %4510 = vst [vmem:[%s6489_s9 + $0x78] sm:$0xff] %v4238_v27   ;;  %2101 = vmatmul.mubr.bf16.gmra.mrb[120].mxu1 %v6186_v25  ;;  %2262 = vmatmul.mubr.bf16.gmra.mrb[120].mxu0 %v6215_v12  ;;  %v2438_v25 = vmul.f32 %v6469_v20, %v6469_v20 }
 0x234   : > { %4501 = vst [vmem:[%s6489_s9 + $0x30] sm:$0xff] %v4193_v10   ;;  %4509 = vst [vmem:[%s6489_s9 + $0x70] sm:$0xff] %v4233_v17   ;;  %2108 = vmatprep.mubr.bf16.mxu1 %v6383_v34  ;;  %2269 = vmatprep.mubr.bf16.mxu0 %v6393_v44  ;;  %v2439_v34 = vmul.f32 %v6481_v51, %v6481_v51 }
 0x236   : > { %v4599_v23 = vpop.f32.mrb[16].mxu1  ;;  %v4711_v24 = vpop.f32.mrb[16].mxu0 }
 0x237   : > { %v4600_v11 = vpop.f32.mrb[17].mxu1  ;;  %v4712_v13 = vpop.f32.mrb[17].mxu0 }
 0x238   : > { %v4601_v40 = vadd.f32 %v4600_v11, %v4599_v23  ;;  %v4713_v19 = vadd.f32 %v4712_v13, %v4711_v24  ;;  %v4602_v36 = vpop.f32.mrb[18].mxu1  ;;  %v4714_v35 = vpop.f32.mrb[18].mxu0 }
 0x239   : > { %v4603_v5 = vpop.f32.mrb[19].mxu1  ;;  %v4715_v43 = vpop.f32.mrb[19].mxu0 }
 0x23a   : > { %v2310_v45 = vadd.f32 %v4601_v40, %v6469_v20  ;;  %v2470_v53 = vmul.f32 %v4601_v40, %v4601_v40  ;;  %v4604_v4 = vadd.f32 %v4603_v5, %v4602_v36  ;;  %v2534_v56 = vmul.f32 %v4713_v19, %v4713_v19 }
 0x23b   : > { %v4716_v59 = vadd.f32 %v4715_v43, %v4714_v35  ;;  %2109 = vmatmul.mubr.bf16.gmra.mrb[124].mxu1 %v6215_v12  ;;  %2270 = vmatmul.mubr.bf16.gmra.mrb[124].mxu0 %v6221_v21 }
 0x23c   : > { %v2502_v3 = vadd.f32 %v2470_v53, %v2438_v25  ;;  %v6602_v27 = vadd.f32 %v4713_v19, %v2310_v45  ;;  %v2311_v10 = vadd.f32 %v4604_v4, %v6481_v51  ;;  %v2471_v17 = vmul.f32 %v4604_v4, %v4604_v4  ;;  %2116 = vmatprep.mubr.bf16.mxu1 %v6393_v44 }
 0x23d   : > { %v4243_v20 = vpack.c.bf16 %v4604_v4, %v4601_v40  ;;  %v4323_v23 = vpack.c.bf16 %v4716_v59, %v4713_v19  ;;  %2277 = vmatprep.mubr.bf16.mxu0 %v6405_v58  ;;  %v2535_v13 = vmul.f32 %v4716_v59, %v4716_v59  ;;  %v2440_v4 = vmul.f32 %v6465_v38, %v6465_v38 }
 0x23e   : > { %v6607_v24 = vadd.f32 %v2534_v56, %v2502_v3  ;;  %v2503_v11 = vadd.f32 %v2471_v17, %v2439_v34  ;;  %v6609_v12 = vadd.f32 %v4716_v59, %v2311_v10  ;;  %v4605_v36 = vpop.f32.mrb[20].mxu1  ;;  %v4717_v35 = vpop.f32.mrb[20].mxu0  ;;  %v2441_v3 = vmul.f32 %v6473_v14, %v6473_v14 }
 0x23f   : > { %4511 = vst [vmem:[%s6489_s9 + $0x80] sm:$0xff] %v4243_v20   ;;  %4527 = vst [vmem:[%s6489_s9 + $0x100] sm:$0xff] %v4323_v23   ;;  %v4606_v5 = vpop.f32.mrb[21].mxu1  ;;  %v4718_v43 = vpop.f32.mrb[21].mxu0 }
 0x240   : > { %v6613_v51 = vadd.f32 %v2535_v13, %v2503_v11  ;;  %v4607_v25 = vadd.f32 %v4606_v5, %v4605_v36  ;;  %v4719_v44 = vadd.f32 %v4718_v43, %v4717_v35  ;;  %v4608_v40 = vpop.f32.mrb[22].mxu1  ;;  %v4720_v19 = vpop.f32.mrb[22].mxu0  ;;  %v888_v35 = vshll.u32 %v6422_v30, 16 }
 0x241   : > { %v4609_v45 = vpop.f32.mrb[23].mxu1  ;;  %v4721_v53 = vpop.f32.mrb[23].mxu0 }
 0x242   : > { %v2312_v34 = vadd.f32 %v6465_v38, %v4607_v25  ;;  %v2472_v56 = vmul.f32 %v4607_v25, %v4607_v25  ;;  %v4610_v59 = vadd.f32 %v4609_v45, %v4608_v40  ;;  %v2536_v10 = vmul.f32 %v4719_v44, %v4719_v44 }
 0x243   : > { %v4722_v17 = vadd.f32 %v4721_v53, %v4720_v19  ;;  %2117 = vmatmul.mubr.bf16.gmra.mrb[128].mxu1 %v6221_v21  ;;  %2278 = vmatmul.mubr.bf16.gmra.mrb[128].mxu0 %v6232_v42 }
 0x244   : > { %v2504_v20 = vadd.f32 %v2472_v56, %v2440_v4  ;;  %v6622_v23 = vadd.f32 %v4719_v44, %v2312_v34  ;;  %v2313_v11 = vadd.f32 %v6473_v14, %v4610_v59  ;;  %v2473_v13 = vmul.f32 %v4610_v59, %v4610_v59  ;;  %2124 = vmatprep.mubr.bf16.mxu1 %v6405_v58 }
 0x245   : > { %v4248_v38 = vpack.c.bf16 %v4610_v59, %v4607_v25  ;;  %v4328_v36 = vpack.c.bf16 %v4722_v17, %v4719_v44  ;;  %2285 = vmatprep.mubr.bf16.mxu0 %v6415_v9  ;;  %v2537_v40 = vmul.f32 %v4722_v17, %v4722_v17 }
 0x246   : > { %v6628_v5 = vadd.f32 %v2536_v10, %v2504_v20  ;;  %v2505_v21 = vadd.f32 %v2473_v13, %v2441_v3  ;;  %v6630_v43 = vadd.f32 %v4722_v17, %v2313_v11  ;;  %v4611_v19 = vpop.f32.mrb[24].mxu1  ;;  %v4723_v45 = vpop.f32.mrb[24].mxu0  ;;  %v886_v10 = vshrl.u32 %v6422_v30, 16 }
 0x247   : > { %4512 = vst [vmem:[%s6489_s9 + $0x88] sm:$0xff] %v4248_v38   ;;  %4528 = vst [vmem:[%s6489_s9 + $0x108] sm:$0xff] %v4328_v36   ;;  %v4612_v14 = vpop.f32.mrb[25].mxu1  ;;  %v4724_v53 = vpop.f32.mrb[25].mxu0  ;;  %v890_v3 = vrot.slane %v888_v35, 1  ;;  %v2442_v17 = vmul.f32 %v6503_v62, %v6503_v62  ;;  %v2443_v38 = vmul.f32 %v6515_v37, %v6515_v37 }
 0x248   : > { %v6634_v4 = vadd.f32 %v2537_v40, %v2505_v21  ;;  %v4613_v58 = vadd.f32 %v4612_v14, %v4611_v19  ;;  %v4725_v25 = vadd.f32 %v4724_v53, %v4723_v45  ;;  %v4614_v44 = vpop.f32.mrb[26].mxu1  ;;  %v4726_v34 = vpop.f32.mrb[26].mxu0 }
 0x249   : > { %v4615_v56 = vpop.f32.mrb[27].mxu1  ;;  %v4727_v59 = vpop.f32.mrb[27].mxu0  ;;  %v891_v53 = vor.u32 %v890_v3, %v886_v10 }
 0x24a   : > { %v2314_v20 = vadd.f32 %v4613_v58, %v6503_v62  ;;  %v2474_v11 = vmul.f32 %v4613_v58, %v4613_v58  ;;  %v4616_v13 = vadd.f32 %v4615_v56, %v4614_v44  ;;  %v2538_v36 = vmul.f32 %v4725_v25, %v4725_v25 }
 0x24b   : > { %v4728_v21 = vadd.f32 %v4727_v59, %v4726_v34  ;;  %2125 = vmatmul.mubr.bf16.gmra.mrb[132].mxu1 %v6232_v42  ;;  %2286 = vmatmul.mubr.bf16.gmra.mrb[132].mxu0 %v6254_v15  ;;  %v928_v3 = vsel %vm6262_vm2, %v891_v53, 0 }
 0x24c   : > { %v2506_v40 = vadd.f32 %v2474_v11, %v2442_v17  ;;  %v6644_v35 = vadd.f32 %v4725_v25, %v2314_v20  ;;  %v2315_v19 = vadd.f32 %v4616_v13, %v6515_v37  ;;  %v2475_v45 = vmul.f32 %v4616_v13, %v4616_v13  ;;  %2132 = vmatprep.mubr.bf16.mxu1 %v6415_v9 }
 0x24d   : > { %v4253_v62 = vpack.c.bf16 %v4616_v13, %v4613_v58  ;;  %v4333_v14 = vpack.c.bf16 %v4728_v21, %v4725_v25  ;;  %2293 = vmatprep.mubr.bf16.mxu0 %v6426_v31  ;;  %v2539_v56 = vmul.f32 %v4728_v21, %v4728_v21 }
 0x24e   : > { %7146 = vst [vmem:[#allocation29_spill] sm:$0xff] %v6644_v35  ;;  %v6649_v44 = vadd.f32 %v2538_v36, %v2506_v40  ;;  %v2507_v42 = vadd.f32 %v2475_v45, %v2443_v38  ;;  %v6651_v34 = vadd.f32 %v4728_v21, %v2315_v19  ;;  %v4617_v59 = vpop.f32.mrb[28].mxu1  ;;  %v4729_v17 = vpop.f32.mrb[28].mxu0  ;;  %v2444_v38 = vmul.f32 %v6499_v52, %v6499_v52 }
 0x24f   : > { %4513 = vst [vmem:[%s6489_s9 + $0x90] sm:$0xff] %v4253_v62   ;;  %4529 = vst [vmem:[%s6489_s9 + $0x110] sm:$0xff] %v4333_v14   ;;  %v4618_v20 = vpop.f32.mrb[29].mxu1  ;;  %v4730_v37 = vpop.f32.mrb[29].mxu0  ;;  %v2445_v19 = vmul.f32 %v6507_v28, %v6507_v28 }
 0x250   : > { %v6655_v11 = vadd.f32 %v2539_v56, %v2507_v42  ;;  %v4619_v9 = vadd.f32 %v4618_v20, %v4617_v59  ;;  %v4731_v58 = vadd.f32 %v4730_v37, %v4729_v17  ;;  %v4620_v25 = vpop.f32.mrb[30].mxu1  ;;  %v4732_v13 = vpop.f32.mrb[30].mxu0 }
 0x251   : > { %v4621_v35 = vpop.f32.mrb[31].mxu1  ;;  %v4733_v10 = vpop.f32.mrb[31].mxu0 }
 0x252   : > { %v2316_v36 = vadd.f32 %v6499_v52, %v4619_v9  ;;  %v2476_v21 = vmul.f32 %v4619_v9, %v4619_v9  ;;  %v4622_v40 = vadd.f32 %v4621_v35, %v4620_v25  ;;  %v2540_v45 = vmul.f32 %v4731_v58, %v4731_v58 }
 0x253   : > { %v4734_v62 = vadd.f32 %v4733_v10, %v4732_v13  ;;  %2133 = vmatmul.mubr.bf16.gmra.mrb[136].mxu1 %v6254_v15  ;;  %2294 = vmatmul.mubr.bf16.gmra.mrb[136].mxu0 %v6269_v29 }
 0x254   : > { %v2508_v26 = vadd.f32 %v2476_v21, %v2444_v38  ;;  %v6666_v14 = vadd.f32 %v4731_v58, %v2316_v36  ;;  %v2317_v53 = vadd.f32 %v6507_v28, %v4622_v40  ;;  %v2477_v42 = vmul.f32 %v4622_v40, %v4622_v40  ;;  %2140 = vmatprep.mubr.bf16.mxu1 %v6426_v31 }
 0x255   : > { %v4258_v52 = vpack.c.bf16 %v4622_v40, %v4619_v9  ;;  %v4338_v35 = vpack.c.bf16 %v4734_v62, %v4731_v58  ;;  %2301 = vmatprep.mubr.bf16.mxu0 %v928_v3  ;;  %v2541_v15 = vmul.f32 %v4734_v62, %v4734_v62  ;;  %v2446_v36 = vmul.f32 %v6535_v48, %v6535_v48 }
 0x256   : > { %v6670_v56 = vadd.f32 %v2540_v45, %v2508_v26  ;;  %v2509_v59 = vadd.f32 %v2477_v42, %v2445_v19  ;;  %v6672_v17 = vadd.f32 %v4734_v62, %v2317_v53  ;;  %v4623_v20 = vpop.f32.mrb[32].mxu1  ;;  %v4735_v37 = vpop.f32.mrb[32].mxu0  ;;  %v2447_v45 = vmul.f32 %v6547_v54, %v6547_v54 }
 0x257   : > { %4514 = vst [vmem:[%s6489_s9 + $0x98] sm:$0xff] %v4258_v52   ;;  %4530 = vst [vmem:[%s6489_s9 + $0x118] sm:$0xff] %v4338_v35   ;;  %v4624_v25 = vpop.f32.mrb[33].mxu1  ;;  %v4736_v13 = vpop.f32.mrb[33].mxu0 }
 0x258   : > { %v6676_v10 = vadd.f32 %v2541_v15, %v2509_v59  ;;  %v4625_v28 = vadd.f32 %v4624_v25, %v4623_v20  ;;  %v4737_v38 = vadd.f32 %v4736_v13, %v4735_v37  ;;  %v4626_v31 = vpop.f32.mrb[34].mxu1  ;;  %v4738_v9 = vpop.f32.mrb[34].mxu0 }
 0x259   : > { %v4627_v58 = vpop.f32.mrb[35].mxu1  ;;  %v4739_v3 = vpop.f32.mrb[35].mxu0 }
 0x25a   : > { %v2318_v21 = vadd.f32 %v4625_v28, %v6535_v48  ;;  %v2478_v40 = vmul.f32 %v4625_v28, %v4625_v28  ;;  %v4628_v19 = vadd.f32 %v4627_v58, %v4626_v31  ;;  %v2542_v62 = vmul.f32 %v4737_v38, %v4737_v38 }
 0x25b   : > { %v4740_v26 = vadd.f32 %v4739_v3, %v4738_v9  ;;  %2141 = vmatmul.mubr.bf16.gmra.mrb[140].mxu1 %v6269_v29  ;;  %2302 = vmatmul.mubr.bf16.gmra.mrb[140].mxu0 %v6422_v30 }
 0x25c   : > { %v2510_v53 = vadd.f32 %v2478_v40, %v2446_v36  ;;  %v6685_v42 = vadd.f32 %v4737_v38, %v2318_v21  ;;  %v2319_v52 = vadd.f32 %v4628_v19, %v6547_v54  ;;  %v2479_v35 = vmul.f32 %v4628_v19, %v4628_v19 }
 0x25d   : > { %v4263_v48 = vpack.c.bf16 %v4628_v19, %v4625_v28  ;;  %v4343_v59 = vpack.c.bf16 %v4740_v26, %v4737_v38  ;;  %v2543_v25 = vmul.f32 %v4740_v26, %v4740_v26  ;;  %v2448_v21 = vmul.f32 %v6531_v46, %v6531_v46 }
 0x25e   : > { %v6688_v15 = vadd.f32 %v2542_v62, %v2510_v53  ;;  %v2511_v20 = vadd.f32 %v2479_v35, %v2447_v45  ;;  %v6690_v37 = vadd.f32 %v4740_v26, %v2319_v52  ;;  %v4629_v13 = vpop.f32.mrb[36].mxu1  ;;  %v4741_v31 = vpop.f32.mrb[36].mxu0  ;;  %v2449_v62 = vmul.f32 %v6539_v39, %v6539_v39 }
 0x25f   : > { %4515 = vst [vmem:[%s6489_s9 + $0xa0] sm:$0xff] %v4263_v48   ;;  %4531 = vst [vmem:[%s6489_s9 + $0x120] sm:$0xff] %v4343_v59   ;;  %v4630_v29 = vpop.f32.mrb[37].mxu1  ;;  %v4742_v30 = vpop.f32.mrb[37].mxu0 }
 0x260   : > { %v6694_v9 = vadd.f32 %v2543_v25, %v2511_v20  ;;  %v4631_v58 = vadd.f32 %v4630_v29, %v4629_v13  ;;  %v4743_v3 = vadd.f32 %v4742_v30, %v4741_v31  ;;  %v4632_v54 = vpop.f32.mrb[38].mxu1  ;;  %v4744_v36 = vpop.f32.mrb[38].mxu0 }
 0x261   : > { %v4633_v28 = vpop.f32.mrb[39].mxu1  ;;  %v4745_v38 = vpop.f32.mrb[39].mxu0 }
 0x262   : > { %v2320_v40 = vadd.f32 %v6531_v46, %v4631_v58  ;;  %v2480_v19 = vmul.f32 %v4631_v58, %v4631_v58  ;;  %v4634_v45 = vadd.f32 %v4633_v28, %v4632_v54  ;;  %v2544_v26 = vmul.f32 %v4743_v3, %v4743_v3 }
 0x263   : > { %v4746_v53 = vadd.f32 %v4745_v38, %v4744_v36 }
 0x264   : > { %v2512_v52 = vadd.f32 %v2480_v19, %v2448_v21  ;;  %v6701_v35 = vadd.f32 %v4743_v3, %v2320_v40  ;;  %v2321_v48 = vadd.f32 %v6539_v39, %v4634_v45  ;;  %v2481_v59 = vmul.f32 %v4634_v45, %v4634_v45 }
 0x265   : > { %v4268_v20 = vpack.c.bf16 %v4634_v45, %v4631_v58  ;;  %v4348_v25 = vpack.c.bf16 %v4746_v53, %v4743_v3  ;;  %v2545_v29 = vmul.f32 %v4746_v53, %v4746_v53  ;;  %v2450_v45 = vmul.f32 %v6567_v63, %v6567_v63 }
 0x266   : > { %v6704_v13 = vadd.f32 %v2544_v26, %v2512_v52  ;;  %v2513_v46 = vadd.f32 %v2481_v59, %v2449_v62  ;;  %v6706_v31 = vadd.f32 %v4746_v53, %v2321_v48  ;;  %v4635_v30 = vpop.f32.mrb[40].mxu1  ;;  %v4747_v54 = vpop.f32.mrb[40].mxu0  ;;  %v2451_v52 = vmul.f32 %v6579_v7, %v6579_v7 }
 0x267   : > { %4516 = vst [vmem:[%s6489_s9 + $0xa8] sm:$0xff] %v4268_v20   ;;  %4532 = vst [vmem:[%s6489_s9 + $0x128] sm:$0xff] %v4348_v25   ;;  %v4636_v28 = vpop.f32.mrb[41].mxu1  ;;  %v4748_v36 = vpop.f32.mrb[41].mxu0 }
 0x268   : > { %7147 = vst [vmem:[#allocation30_spill] sm:$0xff] %v6706_v31  ;;  %v6710_v38 = vadd.f32 %v2545_v29, %v2513_v46  ;;  %v4637_v21 = vadd.f32 %v4636_v28, %v4635_v30  ;;  %v4749_v40 = vadd.f32 %v4748_v36, %v4747_v54  ;;  %v4638_v39 = vpop.f32.mrb[42].mxu1  ;;  %v4750_v19 = vpop.f32.mrb[42].mxu0 }
 0x269   : > { %v4639_v58 = vpop.f32.mrb[43].mxu1  ;;  %v4751_v3 = vpop.f32.mrb[43].mxu0 }
 0x26a   : > { %7148 = vst [vmem:[#allocation31_spill] sm:$0xff] %v6710_v38  ;;  %v2322_v62 = vadd.f32 %v4637_v21, %v6567_v63  ;;  %v2482_v26 = vmul.f32 %v4637_v21, %v4637_v21  ;;  %v4640_v53 = vadd.f32 %v4639_v58, %v4638_v39  ;;  %v2546_v48 = vmul.f32 %v4749_v40, %v4749_v40 }
 0x26b   : > { %v4752_v59 = vadd.f32 %v4751_v3, %v4750_v19 }
 0x26c   : > { %v2514_v20 = vadd.f32 %v2482_v26, %v2450_v45  ;;  %v6717_v25 = vadd.f32 %v4749_v40, %v2322_v62  ;;  %v2323_v46 = vadd.f32 %v4640_v53, %v6579_v7  ;;  %v2483_v29 = vmul.f32 %v4640_v53, %v4640_v53 }
 0x26d   : > { %v4273_v30 = vpack.c.bf16 %v4640_v53, %v4637_v21  ;;  %v4353_v54 = vpack.c.bf16 %v4752_v59, %v4749_v40  ;;  %v2547_v39 = vmul.f32 %v4752_v59, %v4752_v59  ;;  %v2452_v53 = vmul.f32 %v6563_v60, %v6563_v60 }
 0x26e   : > { %v6720_v28 = vadd.f32 %v2546_v48, %v2514_v20  ;;  %v2515_v63 = vadd.f32 %v2483_v29, %v2451_v52  ;;  %v6722_v36 = vadd.f32 %v4752_v59, %v2323_v46  ;;  %v4641_v58 = vpop.f32.mrb[44].mxu1  ;;  %v4753_v38 = vpop.f32.mrb[44].mxu0  ;;  %v2453_v20 = vmul.f32 %v6571_v18, %v6571_v18 }
 0x26f   : > { %4517 = vst [vmem:[%s6489_s9 + $0xb0] sm:$0xff] %v4273_v30   ;;  %4533 = vst [vmem:[%s6489_s9 + $0x130] sm:$0xff] %v4353_v54   ;;  %v4642_v31 = vpop.f32.mrb[45].mxu1  ;;  %v4754_v19 = vpop.f32.mrb[45].mxu0 }
 0x270   : > { %7149 = vst [vmem:[#allocation32_spill] sm:$0xff] %v6720_v28  ;;  %v6726_v3 = vadd.f32 %v2547_v39, %v2515_v63  ;;  %v4643_v45 = vadd.f32 %v4642_v31, %v4641_v58  ;;  %v4755_v62 = vadd.f32 %v4754_v19, %v4753_v38  ;;  %v4644_v7 = vpop.f32.mrb[46].mxu1  ;;  %v4756_v26 = vpop.f32.mrb[46].mxu0 }
 0x271   : > { %v4645_v21 = vpop.f32.mrb[47].mxu1  ;;  %v4757_v40 = vpop.f32.mrb[47].mxu0 }
 0x272   : > { %7150 = vst [vmem:[#allocation33_spill] sm:$0xff] %v6726_v3  ;;  %v2324_v52 = vadd.f32 %v6563_v60, %v4643_v45  ;;  %v2484_v48 = vmul.f32 %v4643_v45, %v4643_v45  ;;  %v4646_v59 = vadd.f32 %v4645_v21, %v4644_v7  ;;  %v2548_v46 = vmul.f32 %v4755_v62, %v4755_v62 }
 0x273   : > { %v4758_v29 = vadd.f32 %v4757_v40, %v4756_v26 }
 0x274   : > { %v2516_v31 = vadd.f32 %v2484_v48, %v2452_v53  ;;  %v6733_v38 = vadd.f32 %v4755_v62, %v2324_v52  ;;  %v2325_v30 = vadd.f32 %v6571_v18, %v4646_v59  ;;  %v2485_v54 = vmul.f32 %v4646_v59, %v4646_v59 }
 0x275   : > { %v4278_v63 = vpack.c.bf16 %v4646_v59, %v4643_v45  ;;  %v4358_v39 = vpack.c.bf16 %v4758_v29, %v4755_v62  ;;  %v2549_v7 = vmul.f32 %v4758_v29, %v4758_v29  ;;  %v2454_v59 = vmul.f32 %v6471_v6, %v6471_v6 }
 0x276   : > { %v6736_v58 = vadd.f32 %v2548_v46, %v2516_v31  ;;  %v2517_v60 = vadd.f32 %v2485_v54, %v2453_v20  ;;  %v6738_v19 = vadd.f32 %v4758_v29, %v2325_v30  ;;  %v4647_v21 = vpop.f32.mrb[48].mxu1  ;;  %v4759_v3 = vpop.f32.mrb[48].mxu0  ;;  %v2455_v31 = vmul.f32 %v6483_v0, %v6483_v0 }
 0x277   : > { %4518 = vst [vmem:[%s6489_s9 + $0xb8] sm:$0xff] %v4278_v63   ;;  %4534 = vst [vmem:[%s6489_s9 + $0x138] sm:$0xff] %v4358_v39   ;;  %v4648_v28 = vpop.f32.mrb[49].mxu1  ;;  %v4760_v26 = vpop.f32.mrb[49].mxu0 }
 0x278   : > { %7151 = vst [vmem:[#allocation34_spill] sm:$0xff] %v6738_v19  ;;  %v6742_v40 = vadd.f32 %v2549_v7, %v2517_v60  ;;  %v4649_v53 = vadd.f32 %v4648_v28, %v4647_v21  ;;  %v4761_v52 = vadd.f32 %v4760_v26, %v4759_v3  ;;  %v4650_v18 = vpop.f32.mrb[50].mxu1  ;;  %v4762_v48 = vpop.f32.mrb[50].mxu0 }
 0x279   : > { %v4651_v45 = vpop.f32.mrb[51].mxu1  ;;  %v4763_v62 = vpop.f32.mrb[51].mxu0 }
 0x27a   : > { %7152 = vst [vmem:[#allocation35_spill] sm:$0xff] %v6742_v40  ;;  %v2326_v20 = vadd.f32 %v4649_v53, %v6471_v6  ;;  %v2486_v46 = vmul.f32 %v4649_v53, %v4649_v53  ;;  %v4652_v29 = vadd.f32 %v4651_v45, %v4650_v18  ;;  %v2550_v30 = vmul.f32 %v4761_v52, %v4761_v52 }
 0x27b   : > { %v4764_v54 = vadd.f32 %v4763_v62, %v4762_v48 }
 0x27c   : > { %v2518_v28 = vadd.f32 %v2486_v46, %v2454_v59  ;;  %v6749_v3 = vadd.f32 %v4761_v52, %v2326_v20  ;;  %v2327_v63 = vadd.f32 %v4652_v29, %v6483_v0  ;;  %v2487_v39 = vmul.f32 %v4652_v29, %v4652_v29 }
 0x27d   : > { %v4283_v60 = vpack.c.bf16 %v4652_v29, %v4649_v53  ;;  %v4363_v7 = vpack.c.bf16 %v4764_v54, %v4761_v52  ;;  %v2551_v18 = vmul.f32 %v4764_v54, %v4764_v54  ;;  %v2456_v29 = vmul.f32 %v6467_v16, %v6467_v16 }
 0x27e   : > { %v6752_v21 = vadd.f32 %v2550_v30, %v2518_v28  ;;  %v2519_v6 = vadd.f32 %v2487_v39, %v2455_v31  ;;  %v6754_v26 = vadd.f32 %v4764_v54, %v2327_v63  ;;  %v4653_v45 = vpop.f32.mrb[52].mxu1  ;;  %v4765_v40 = vpop.f32.mrb[52].mxu0  ;;  %v2457_v28 = vmul.f32 %v6475_v22, %v6475_v22 }
 0x27f   : > { %4519 = vst [vmem:[%s6489_s9 + $0xc0] sm:$0xff] %v4283_v60   ;;  %4535 = vst [vmem:[%s6489_s9 + $0x140] sm:$0xff] %v4363_v7   ;;  %v4654_v19 = vpop.f32.mrb[53].mxu1  ;;  %v4766_v48 = vpop.f32.mrb[53].mxu0 }
 0x280   : > { %7153 = vst [vmem:[#allocation36_spill] sm:$0xff] %v6752_v21  ;;  %v6758_v62 = vadd.f32 %v2551_v18, %v2519_v6  ;;  %v4655_v59 = vadd.f32 %v4654_v19, %v4653_v45  ;;  %v4767_v20 = vadd.f32 %v4766_v48, %v4765_v40  ;;  %v4656_v0 = vpop.f32.mrb[54].mxu1  ;;  %v4768_v46 = vpop.f32.mrb[54].mxu0 }
 0x281   : > { %v4657_v53 = vpop.f32.mrb[55].mxu1  ;;  %v4769_v52 = vpop.f32.mrb[55].mxu0 }
 0x282   : > { %7154 = vst [vmem:[#allocation37_spill] sm:$0xff] %v6758_v62  ;;  %v2328_v31 = vadd.f32 %v6467_v16, %v4655_v59  ;;  %v2488_v30 = vmul.f32 %v4655_v59, %v4655_v59  ;;  %v4658_v54 = vadd.f32 %v4657_v53, %v4656_v0  ;;  %v2552_v63 = vmul.f32 %v4767_v20, %v4767_v20 }
 0x283   : > { %v4770_v39 = vadd.f32 %v4769_v52, %v4768_v46 }
 0x284   : > { %v2520_v19 = vadd.f32 %v2488_v30, %v2456_v29  ;;  %v6765_v40 = vadd.f32 %v4767_v20, %v2328_v31  ;;  %v2329_v60 = vadd.f32 %v6475_v22, %v4658_v54  ;;  %v2489_v7 = vmul.f32 %v4658_v54, %v4658_v54 }
 0x285   : > { %v4288_v6 = vpack.c.bf16 %v4658_v54, %v4655_v59  ;;  %v4368_v18 = vpack.c.bf16 %v4770_v39, %v4767_v20  ;;  %v2553_v0 = vmul.f32 %v4770_v39, %v4770_v39  ;;  %v2458_v54 = vmul.f32 %v6505_v32, %v6505_v32 }
 0x286   : > { %v6768_v45 = vadd.f32 %v2552_v63, %v2520_v19  ;;  %v2521_v16 = vadd.f32 %v2489_v7, %v2457_v28  ;;  %v6770_v48 = vadd.f32 %v4770_v39, %v2329_v60  ;;  %v4659_v53 = vpop.f32.mrb[56].mxu1  ;;  %v4771_v62 = vpop.f32.mrb[56].mxu0  ;;  %v2459_v19 = vmul.f32 %v6517_v41, %v6517_v41 }
 0x287   : > { %4520 = vst [vmem:[%s6489_s9 + $0xc8] sm:$0xff] %v4288_v6   ;;  %4536 = vst [vmem:[%s6489_s9 + $0x148] sm:$0xff] %v4368_v18   ;;  %v4660_v21 = vpop.f32.mrb[57].mxu1  ;;  %v4772_v46 = vpop.f32.mrb[57].mxu0 }
 0x288   : > { %7155 = vst [vmem:[#allocation38_spill] sm:$0xff] %v6770_v48  ;;  %v6774_v52 = vadd.f32 %v2553_v0, %v2521_v16  ;;  %v4661_v29 = vadd.f32 %v4660_v21, %v4659_v53  ;;  %v4773_v31 = vadd.f32 %v4772_v46, %v4771_v62  ;;  %v4662_v22 = vpop.f32.mrb[58].mxu1  ;;  %v4774_v30 = vpop.f32.mrb[58].mxu0 }
 0x289   : > { %v4663_v59 = vpop.f32.mrb[59].mxu1  ;;  %v4775_v20 = vpop.f32.mrb[59].mxu0 }
 0x28a   : > { %7156 = vst [vmem:[#allocation39_spill] sm:$0xff] %v6774_v52  ;;  %v2330_v28 = vadd.f32 %v4661_v29, %v6505_v32  ;;  %v2490_v63 = vmul.f32 %v4661_v29, %v4661_v29  ;;  %v4664_v39 = vadd.f32 %v4663_v59, %v4662_v22  ;;  %v2554_v60 = vmul.f32 %v4773_v31, %v4773_v31 }
 0x28b   : > { %v4776_v7 = vadd.f32 %v4775_v20, %v4774_v30 }
 0x28c   : > { %v2522_v21 = vadd.f32 %v2490_v63, %v2458_v54  ;;  %v6781_v62 = vadd.f32 %v4773_v31, %v2330_v28  ;;  %v2331_v6 = vadd.f32 %v4664_v39, %v6517_v41  ;;  %v2491_v18 = vmul.f32 %v4664_v39, %v4664_v39 }
 0x28d   : > { %v4293_v16 = vpack.c.bf16 %v4664_v39, %v4661_v29  ;;  %v4373_v0 = vpack.c.bf16 %v4776_v7, %v4773_v31  ;;  %v2555_v22 = vmul.f32 %v4776_v7, %v4776_v7  ;;  %v2460_v39 = vmul.f32 %v6501_v57, %v6501_v57 }
 0x28e   : > { %v6784_v53 = vadd.f32 %v2554_v60, %v2522_v21  ;;  %v2523_v32 = vadd.f32 %v2491_v18, %v2459_v19  ;;  %v6786_v46 = vadd.f32 %v4776_v7, %v2331_v6  ;;  %v4665_v59 = vpop.f32.mrb[60].mxu1  ;;  %v4777_v52 = vpop.f32.mrb[60].mxu0  ;;  %v2461_v21 = vmul.f32 %v6509_v33, %v6509_v33 }
 0x28f   : > { %4521 = vst [vmem:[%s6489_s9 + $0xd0] sm:$0xff] %v4293_v16   ;;  %4537 = vst [vmem:[%s6489_s9 + $0x150] sm:$0xff] %v4373_v0   ;;  %v4666_v48 = vpop.f32.mrb[61].mxu1  ;;  %v4778_v30 = vpop.f32.mrb[61].mxu0 }
 0x290   : > { %7157 = vst [vmem:[#allocation40_spill] sm:$0xff] %v6784_v53  ;;  %v6790_v20 = vadd.f32 %v2555_v22, %v2523_v32  ;;  %v4667_v54 = vadd.f32 %v4666_v48, %v4665_v59  ;;  %v4779_v28 = vadd.f32 %v4778_v30, %v4777_v52  ;;  %v4668_v41 = vpop.f32.mrb[62].mxu1  ;;  %v4780_v63 = vpop.f32.mrb[62].mxu0 }
 0x291   : > { %v4669_v29 = vpop.f32.mrb[63].mxu1  ;;  %v4781_v31 = vpop.f32.mrb[63].mxu0 }
 0x292   : > { %7158 = vst [vmem:[#allocation41_spill] sm:$0xff] %v6790_v20  ;;  %v2332_v19 = vadd.f32 %v6501_v57, %v4667_v54  ;;  %v2492_v60 = vmul.f32 %v4667_v54, %v4667_v54  ;;  %v4670_v7 = vadd.f32 %v4669_v29, %v4668_v41  ;;  %v2556_v6 = vmul.f32 %v4779_v28, %v4779_v28 }
 0x293   : > { %v4782_v18 = vadd.f32 %v4781_v31, %v4780_v63 }
 0x294   : > { %v2524_v48 = vadd.f32 %v2492_v60, %v2460_v39  ;;  %v6797_v52 = vadd.f32 %v4779_v28, %v2332_v19  ;;  %v2333_v16 = vadd.f32 %v6509_v33, %v4670_v7  ;;  %v2493_v0 = vmul.f32 %v4670_v7, %v4670_v7 }
 0x295   : > { %v4298_v32 = vpack.c.bf16 %v4670_v7, %v4667_v54  ;;  %v4378_v22 = vpack.c.bf16 %v4782_v18, %v4779_v28  ;;  %v2557_v41 = vmul.f32 %v4782_v18, %v4782_v18  ;;  %v2462_v7 = vmul.f32 %v6537_v49, %v6537_v49 }
 0x296   : > { %v6800_v59 = vadd.f32 %v2556_v6, %v2524_v48  ;;  %v2525_v57 = vadd.f32 %v2493_v0, %v2461_v21  ;;  %v6802_v30 = vadd.f32 %v4782_v18, %v2333_v16  ;;  %v4671_v29 = vpop.f32.mrb[64].mxu1  ;;  %v4783_v20 = vpop.f32.mrb[64].mxu0  ;;  %v2463_v48 = vmul.f32 %v6549_v55, %v6549_v55 }
 0x297   : > { %4522 = vst [vmem:[%s6489_s9 + $0xd8] sm:$0xff] %v4298_v32   ;;  %4538 = vst [vmem:[%s6489_s9 + $0x158] sm:$0xff] %v4378_v22   ;;  %v4672_v53 = vpop.f32.mrb[65].mxu1  ;;  %v4784_v63 = vpop.f32.mrb[65].mxu0 }
 0x298   : > { %7159 = vst [vmem:[#allocation42_spill] sm:$0xff] %v6802_v30  ;;  %v6806_v31 = vadd.f32 %v2557_v41, %v2525_v57  ;;  %v4673_v39 = vadd.f32 %v4672_v53, %v4671_v29  ;;  %v4785_v19 = vadd.f32 %v4784_v63, %v4783_v20  ;;  %v4674_v33 = vpop.f32.mrb[66].mxu1  ;;  %v4786_v60 = vpop.f32.mrb[66].mxu0 }
 0x299   : > { %v4675_v54 = vpop.f32.mrb[67].mxu1  ;;  %v4787_v28 = vpop.f32.mrb[67].mxu0 }
 0x29a   : > { %7160 = vst [vmem:[#allocation43_spill] sm:$0xff] %v6806_v31  ;;  %v2334_v21 = vadd.f32 %v4673_v39, %v6537_v49  ;;  %v2494_v6 = vmul.f32 %v4673_v39, %v4673_v39  ;;  %v4676_v18 = vadd.f32 %v4675_v54, %v4674_v33  ;;  %v2558_v16 = vmul.f32 %v4785_v19, %v4785_v19 }
 0x29b   : > { %v4788_v0 = vadd.f32 %v4787_v28, %v4786_v60 }
 0x29c   : > { %v2526_v53 = vadd.f32 %v2494_v6, %v2462_v7  ;;  %v6813_v20 = vadd.f32 %v4785_v19, %v2334_v21  ;;  %v2335_v32 = vadd.f32 %v4676_v18, %v6549_v55  ;;  %v2495_v22 = vmul.f32 %v4676_v18, %v4676_v18 }
 0x29d   : > { %v4303_v57 = vpack.c.bf16 %v4676_v18, %v4673_v39  ;;  %v4383_v41 = vpack.c.bf16 %v4788_v0, %v4785_v19  ;;  %v2559_v33 = vmul.f32 %v4788_v0, %v4788_v0  ;;  %v2464_v18 = vmul.f32 %v6533_v47, %v6533_v47 }
 0x29e   : > { %v6816_v29 = vadd.f32 %v2558_v16, %v2526_v53  ;;  %v2527_v49 = vadd.f32 %v2495_v22, %v2463_v48  ;;  %v6818_v63 = vadd.f32 %v4788_v0, %v2335_v32  ;;  %v4677_v54 = vpop.f32.mrb[68].mxu1  ;;  %v4789_v31 = vpop.f32.mrb[68].mxu0  ;;  %v2465_v53 = vmul.f32 %v6541_v50, %v6541_v50 }
 0x29f   : > { %4523 = vst [vmem:[%s6489_s9 + $0xe0] sm:$0xff] %v4303_v57   ;;  %4539 = vst [vmem:[%s6489_s9 + $0x160] sm:$0xff] %v4383_v41   ;;  %v4678_v30 = vpop.f32.mrb[69].mxu1  ;;  %v4790_v60 = vpop.f32.mrb[69].mxu0 }
 0x2a0   : > { %7161 = vst [vmem:[#allocation44_spill] sm:$0xff] %v6816_v29  ;;  %v6822_v28 = vadd.f32 %v2559_v33, %v2527_v49  ;;  %v4679_v7 = vadd.f32 %v4678_v30, %v4677_v54  ;;  %v4791_v21 = vadd.f32 %v4790_v60, %v4789_v31  ;;  %v4680_v55 = vpop.f32.mrb[70].mxu1  ;;  %v4792_v6 = vpop.f32.mrb[70].mxu0 }
 0x2a1   : > { %v4681_v39 = vpop.f32.mrb[71].mxu1  ;;  %v4793_v19 = vpop.f32.mrb[71].mxu0 }
 0x2a2   : > { %7162 = vst [vmem:[#allocation45_spill] sm:$0xff] %v6822_v28  ;;  %v2336_v48 = vadd.f32 %v6533_v47, %v4679_v7  ;;  %v2496_v16 = vmul.f32 %v4679_v7, %v4679_v7  ;;  %v4682_v0 = vadd.f32 %v4681_v39, %v4680_v55  ;;  %v2560_v32 = vmul.f32 %v4791_v21, %v4791_v21 }
 0x2a3   : > { %v4794_v22 = vadd.f32 %v4793_v19, %v4792_v6 }
 0x2a4   : > { %v2528_v30 = vadd.f32 %v2496_v16, %v2464_v18  ;;  %v6829_v31 = vadd.f32 %v4791_v21, %v2336_v48  ;;  %v2337_v57 = vadd.f32 %v6541_v50, %v4682_v0  ;;  %v2497_v41 = vmul.f32 %v4682_v0, %v4682_v0 }
 0x2a5   : > { %v4308_v49 = vpack.c.bf16 %v4682_v0, %v4679_v7  ;;  %v4388_v33 = vpack.c.bf16 %v4794_v22, %v4791_v21  ;;  %v2561_v55 = vmul.f32 %v4794_v22, %v4794_v22  ;;  %v2466_v0 = vmul.f32 %v6569_v1, %v6569_v1 }
 0x2a6   : > { %v6832_v54 = vadd.f32 %v2560_v32, %v2528_v30  ;;  %v2529_v47 = vadd.f32 %v2497_v41, %v2465_v53  ;;  %v6834_v60 = vadd.f32 %v4794_v22, %v2337_v57  ;;  %v4683_v39 = vpop.f32.mrb[72].mxu1  ;;  %v4795_v28 = vpop.f32.mrb[72].mxu0  ;;  %v2467_v30 = vmul.f32 %v6581_v8, %v6581_v8 }
 0x2a7   : > { %4524 = vst [vmem:[%s6489_s9 + $0xe8] sm:$0xff] %v4308_v49   ;;  %4540 = vst [vmem:[%s6489_s9 + $0x168] sm:$0xff] %v4388_v33   ;;  %v4684_v29 = vpop.f32.mrb[73].mxu1  ;;  %v4796_v6 = vpop.f32.mrb[73].mxu0 }
 0x2a8   : > { %7163 = vst [vmem:[#allocation46_spill] sm:$0xff] %v6834_v60  ;;  %v6838_v19 = vadd.f32 %v2561_v55, %v2529_v47  ;;  %v4685_v18 = vadd.f32 %v4684_v29, %v4683_v39  ;;  %v4797_v48 = vadd.f32 %v4796_v6, %v4795_v28  ;;  %v4686_v50 = vpop.f32.mrb[74].mxu1  ;;  %v4798_v16 = vpop.f32.mrb[74].mxu0 }
 0x2a9   : > { %v4687_v7 = vpop.f32.mrb[75].mxu1  ;;  %v4799_v21 = vpop.f32.mrb[75].mxu0 }
 0x2aa   : > { %7164 = vst [vmem:[#allocation47_spill] sm:$0xff] %v6838_v19  ;;  %v2338_v53 = vadd.f32 %v4685_v18, %v6569_v1  ;;  %v2498_v32 = vmul.f32 %v4685_v18, %v4685_v18  ;;  %v4688_v22 = vadd.f32 %v4687_v7, %v4686_v50  ;;  %v2562_v57 = vmul.f32 %v4797_v48, %v4797_v48 }
 0x2ab   : > { %v4800_v41 = vadd.f32 %v4799_v21, %v4798_v16 }
 0x2ac   : > { %v2530_v29 = vadd.f32 %v2498_v32, %v2466_v0  ;;  %v6845_v28 = vadd.f32 %v4797_v48, %v2338_v53  ;;  %v2339_v49 = vadd.f32 %v4688_v22, %v6581_v8  ;;  %v2499_v33 = vmul.f32 %v4688_v22, %v4688_v22 }
 0x2ad   : > { %v4313_v47 = vpack.c.bf16 %v4688_v22, %v4685_v18  ;;  %v4393_v55 = vpack.c.bf16 %v4800_v41, %v4797_v48  ;;  %v2563_v50 = vmul.f32 %v4800_v41, %v4800_v41  ;;  %v2468_v22 = vmul.f32 %v6565_v61, %v6565_v61 }
 0x2ae   : > { %v6848_v39 = vadd.f32 %v2562_v57, %v2530_v29  ;;  %v2531_v1 = vadd.f32 %v2499_v33, %v2467_v30  ;;  %v6850_v6 = vadd.f32 %v4800_v41, %v2339_v49  ;;  %v4689_v7 = vpop.f32.mrb[76].mxu1  ;;  %v4801_v19 = vpop.f32.mrb[76].mxu0  ;;  %v2469_v29 = vmul.f32 %v6573_v2, %v6573_v2 }
 0x2af   : > { %4525 = vst [vmem:[%s6489_s9 + $0xf0] sm:$0xff] %v4313_v47   ;;  %4541 = vst [vmem:[%s6489_s9 + $0x170] sm:$0xff] %v4393_v55   ;;  %v4690_v60 = vpop.f32.mrb[77].mxu1  ;;  %v4802_v16 = vpop.f32.mrb[77].mxu0 }
 0x2b0   : > { %7165 = vst [vmem:[#allocation48_spill] sm:$0xff] %v6848_v39  ;;  %v6854_v21 = vadd.f32 %v2563_v50, %v2531_v1  ;;  %v4691_v0 = vadd.f32 %v4690_v60, %v4689_v7  ;;  %v4803_v53 = vadd.f32 %v4802_v16, %v4801_v19  ;;  %v4692_v8 = vpop.f32.mrb[78].mxu1  ;;  %v4804_v32 = vpop.f32.mrb[78].mxu0 }
 0x2b1   : > { %v4693_v18 = vpop.f32.mrb[79].mxu1  ;;  %v4805_v48 = vpop.f32.mrb[79].mxu0 }
 0x2b2   : > { %7166 = vst [vmem:[#allocation49_spill] sm:$0xff] %v6854_v21  ;;  %v2340_v30 = vadd.f32 %v6565_v61, %v4691_v0  ;;  %v2500_v57 = vmul.f32 %v4691_v0, %v4691_v0  ;;  %v4694_v41 = vadd.f32 %v4693_v18, %v4692_v8  ;;  %v2564_v49 = vmul.f32 %v4803_v53, %v4803_v53 }
 0x2b3   : > { %v4806_v33 = vadd.f32 %v4805_v48, %v4804_v32 }
 0x2b4   : > { %v2532_v60 = vadd.f32 %v2500_v57, %v2468_v22  ;;  %v6861_v19 = vadd.f32 %v4803_v53, %v2340_v30  ;;  %v2341_v47 = vadd.f32 %v6573_v2, %v4694_v41  ;;  %v2501_v55 = vmul.f32 %v4694_v41, %v4694_v41 }
 0x2b5   : > { %v4318_v1 = vpack.c.bf16 %v4694_v41, %v4691_v0  ;;  %v4398_v50 = vpack.c.bf16 %v4806_v33, %v4803_v53  ;;  %v2565_v8 = vmul.f32 %v4806_v33, %v4806_v33 }
 0x2b6   : > { %v6864_v7 = vadd.f32 %v2564_v49, %v2532_v60  ;;  %v2533_v61 = vadd.f32 %v2501_v55, %v2469_v29  ;;  %v6866_v16 = vadd.f32 %v4806_v33, %v2341_v47  ;;  %v4823_v18 = vpop.f32.mrb[80].mxu1  ;;  %v4935_v21 = vpop.f32.mrb[80].mxu0 }
 0x2b7   : > { %4526 = vst [vmem:[%s6489_s9 + $0xf8] sm:$0xff] %v4318_v1   ;;  %4542 = vst [vmem:[%s6489_s9 + $0x178] sm:$0xff] %v4398_v50   ;;  %v4824_v39 = vpop.f32.mrb[81].mxu1  ;;  %v4936_v32 = vpop.f32.mrb[81].mxu0 }
 0x2b8   : > { %v6870_v48 = vadd.f32 %v2565_v8, %v2533_v61  ;;  %v4825_v22 = vadd.f32 %v4824_v39, %v4823_v18  ;;  %v4937_v30 = vadd.f32 %v4936_v32, %v4935_v21  ;;  %v4826_v2 = vpop.f32.mrb[82].mxu1  ;;  %v4938_v57 = vpop.f32.mrb[82].mxu0 }
 0x2b9   : > { %v4827_v0 = vpop.f32.mrb[83].mxu1  ;;  %v4939_v53 = vpop.f32.mrb[83].mxu0 }
 0x2ba   : > { %7167 = vst [vmem:[#allocation50_spill] sm:$0xff] %v6870_v48  ;;  %v2184_v41 = vadd.f32 %v4937_v30, %v4825_v22  ;;  %v4828_v29 = vadd.f32 %v4827_v0, %v4826_v2  ;;  %v4940_v49 = vadd.f32 %v4939_v53, %v4938_v57 }
 0x2bc   : > { %v2374_v33 = vadd.f32 %v6602_v27, %v2184_v41  ;;  %v2598_v60 = vmul.f32 %v2184_v41, %v2184_v41  ;;  %v2187_v47 = vadd.f32 %v4940_v49, %v4828_v29 }
 0x2be   : > { %v2630_v55 = vadd.f32 %v2598_v60, %v6607_v24  ;;  %v2375_v1 = vadd.f32 %v6609_v12, %v2187_v47  ;;  %v2599_v50 = vmul.f32 %v2187_v47, %v2187_v47  ;;  %v4403_v61 = vpack.c.bf16 %v2187_v47, %v2184_v41  ;;  %v4829_v39 = vpop.f32.mrb[84].mxu1  ;;  %v4941_v21 = vpop.f32.mrb[84].mxu0 }
 0x2bf   : > { %v4830_v8 = vpop.f32.mrb[85].mxu1  ;;  %v4942_v18 = vpop.f32.mrb[85].mxu0 }
 0x2c0   : > { %v2406_v32 = vadd.f32 %v2375_v1, %v2374_v33  ;;  %v2631_v22 = vadd.f32 %v2599_v50, %v6613_v51  ;;  %4543 = vst [vmem:[%s6489_s9 + $0x180] sm:$0xff] %v4403_v61   ;;  %v4831_v30 = vadd.f32 %v4830_v8, %v4829_v39  ;;  %v4943_v2 = vadd.f32 %v4942_v18, %v4941_v21  ;;  %v4832_v57 = vpop.f32.mrb[86].mxu1  ;;  %v4944_v27 = vpop.f32.mrb[86].mxu0 }
 0x2c1   : > { %v4833_v0 = vpop.f32.mrb[87].mxu1  ;;  %v4945_v53 = vpop.f32.mrb[87].mxu0 }
 0x2c2   : > { %v2662_v29 = vadd.f32 %v2631_v22, %v2630_v55  ;;  %v2192_v24 = vadd.f32 %v4943_v2, %v4831_v30  ;;  %v4834_v49 = vadd.f32 %v4833_v0, %v4832_v57  ;;  %v4946_v12 = vadd.f32 %v4945_v53, %v4944_v27 }
 0x2c4   : > { %v2376_v41 = vadd.f32 %v6622_v23, %v2192_v24  ;;  %v2600_v60 = vmul.f32 %v2192_v24, %v2192_v24  ;;  %v2195_v47 = vadd.f32 %v4946_v12, %v4834_v49 }
 0x2c6   : > { %v2407_v48 = vadd.f32 %v2406_v32, %v2376_v41  ;;  %v2632_v33 = vadd.f32 %v2600_v60, %v6628_v5  ;;  %v2377_v51 = vadd.f32 %v6630_v43, %v2195_v47  ;;  %v2601_v1 = vmul.f32 %v2195_v47, %v2195_v47  ;;  %v4835_v50 = vpop.f32.mrb[88].mxu1  ;;  %v4947_v61 = vpop.f32.mrb[88].mxu0 }
 0x2c7   : > { %v4408_v39 = vpack.c.bf16 %v2195_v47, %v2192_v24  ;;  %v4836_v21 = vpop.f32.mrb[89].mxu1  ;;  %v4948_v8 = vpop.f32.mrb[89].mxu0  ;;  %v7168_v24 = vld [vmem:[#allocation29_spill] sm:$0xff] }
 0x2c8   : > { %v2663_v55 = vadd.f32 %v2662_v29, %v2632_v33  ;;  %v2408_v18 = vadd.f32 %v2407_v48, %v2377_v51  ;;  %v2633_v22 = vadd.f32 %v2601_v1, %v6634_v4  ;;  %v4837_v30 = vadd.f32 %v4836_v21, %v4835_v50  ;;  %v4838_v23 = vpop.f32.mrb[90].mxu1  ;;  %v4950_v2 = vpop.f32.mrb[90].mxu0 }
 0x2c9   : > { %4544 = vst [vmem:[%s6489_s9 + $0x188] sm:$0xff] %v4408_v39   ;;  %v4949_v57 = vadd.f32 %v4948_v8, %v4947_v61  ;;  %v4839_v32 = vpop.f32.mrb[91].mxu1  ;;  %v4951_v27 = vpop.f32.mrb[91].mxu0 }
 0x2ca   : > { %v2664_v5 = vadd.f32 %v2663_v55, %v2633_v22  ;;  %v4840_v0 = vadd.f32 %v4839_v32, %v4838_v23  ;;  %v4952_v43 = vadd.f32 %v4951_v27, %v4950_v2 }
 0x2cb   : > { %v2200_v53 = vadd.f32 %v4949_v57, %v4837_v30 }
 0x2cc   : > { %v2203_v49 = vadd.f32 %v4952_v43, %v4840_v0 }
 0x2cd   : > { %v2378_v12 = vadd.f32 %v7168_v24, %v2200_v53  ;;  %v2602_v41 = vmul.f32 %v2200_v53, %v2200_v53 }
 0x2ce   : > { %v2379_v48 = vadd.f32 %v6651_v34, %v2203_v49  ;;  %v2603_v29 = vmul.f32 %v2203_v49, %v2203_v49  ;;  %v4413_v4 = vpack.c.bf16 %v2203_v49, %v2200_v53  ;;  %v4841_v60 = vpop.f32.mrb[92].mxu1  ;;  %v4953_v47 = vpop.f32.mrb[92].mxu0 }
 0x2cf   : > { %v2409_v33 = vadd.f32 %v2408_v18, %v2378_v12  ;;  %v2634_v51 = vadd.f32 %v2602_v41, %v6649_v44  ;;  %v4842_v1 = vpop.f32.mrb[93].mxu1  ;;  %v4954_v50 = vpop.f32.mrb[93].mxu0 }
 0x2d0   : > { %v2635_v61 = vadd.f32 %v2603_v29, %v6655_v11  ;;  %4545 = vst [vmem:[%s6489_s9 + $0x190] sm:$0xff] %v4413_v4   ;;  %v4843_v39 = vadd.f32 %v4842_v1, %v4841_v60  ;;  %v4955_v21 = vadd.f32 %v4954_v50, %v4953_v47  ;;  %v4844_v8 = vpop.f32.mrb[94].mxu1  ;;  %v4956_v55 = vpop.f32.mrb[94].mxu0 }
 0x2d1   : > { %v2665_v22 = vadd.f32 %v2664_v5, %v2634_v51  ;;  %v2410_v30 = vadd.f32 %v2409_v33, %v2379_v48  ;;  %v4845_v23 = vpop.f32.mrb[95].mxu1  ;;  %v4957_v34 = vpop.f32.mrb[95].mxu0 }
 0x2d2   : > { %v2208_v2 = vadd.f32 %v4955_v21, %v4843_v39  ;;  %v4846_v57 = vadd.f32 %v4845_v23, %v4844_v8  ;;  %v4958_v32 = vadd.f32 %v4957_v34, %v4956_v55 }
 0x2d3   : > { %v2666_v27 = vadd.f32 %v2665_v22, %v2635_v61 }
 0x2d4   : > { %v2380_v18 = vadd.f32 %v6666_v14, %v2208_v2  ;;  %v2604_v44 = vmul.f32 %v2208_v2, %v2208_v2  ;;  %v2211_v0 = vadd.f32 %v4958_v32, %v4846_v57 }
 0x2d6   : > { %v2411_v43 = vadd.f32 %v2410_v30, %v2380_v18  ;;  %v2636_v11 = vadd.f32 %v2604_v44, %v6670_v56  ;;  %v2381_v53 = vadd.f32 %v6672_v17, %v2211_v0  ;;  %v2605_v49 = vmul.f32 %v2211_v0, %v2211_v0  ;;  %v4847_v24 = vpop.f32.mrb[96].mxu1  ;;  %v4959_v5 = vpop.f32.mrb[96].mxu0 }
 0x2d7   : > { %v4418_v12 = vpack.c.bf16 %v2211_v0, %v2208_v2  ;;  %v4848_v41 = vpop.f32.mrb[97].mxu1  ;;  %v4960_v48 = vpop.f32.mrb[97].mxu0 }
 0x2d8   : > { %v2667_v29 = vadd.f32 %v2666_v27, %v2636_v11  ;;  %v2412_v4 = vadd.f32 %v2411_v43, %v2381_v53  ;;  %v2637_v60 = vadd.f32 %v2605_v49, %v6676_v10  ;;  %v4849_v47 = vadd.f32 %v4848_v41, %v4847_v24  ;;  %v4850_v14 = vpop.f32.mrb[98].mxu1  ;;  %v4962_v33 = vpop.f32.mrb[98].mxu0 }
 0x2d9   : > { %4546 = vst [vmem:[%s6489_s9 + $0x198] sm:$0xff] %v4418_v12   ;;  %v4961_v51 = vadd.f32 %v4960_v48, %v4959_v5  ;;  %v4851_v1 = vpop.f32.mrb[99].mxu1  ;;  %v4963_v50 = vpop.f32.mrb[99].mxu0 }
 0x2da   : > { %v2668_v56 = vadd.f32 %v2667_v29, %v2637_v60  ;;  %v4852_v61 = vadd.f32 %v4851_v1, %v4850_v14  ;;  %v4964_v17 = vadd.f32 %v4963_v50, %v4962_v33  ;;  %v7169_v60 = vld [vmem:[#allocation30_spill] sm:$0xff] }
 0x2db   : > { %v2216_v39 = vadd.f32 %v4961_v51, %v4849_v47 }
 0x2dc   : > { %v2219_v21 = vadd.f32 %v4964_v17, %v4852_v61 }
 0x2dd   : > { %v2382_v8 = vadd.f32 %v6685_v42, %v2216_v39  ;;  %v2606_v55 = vmul.f32 %v2216_v39, %v2216_v39 }
 0x2de   : > { %v2383_v22 = vadd.f32 %v6690_v37, %v2219_v21  ;;  %v2607_v30 = vmul.f32 %v2219_v21, %v2219_v21  ;;  %v4423_v10 = vpack.c.bf16 %v2219_v21, %v2216_v39  ;;  %v4853_v23 = vpop.f32.mrb[100].mxu1  ;;  %v4965_v34 = vpop.f32.mrb[100].mxu0  ;;  %v7170_v39 = vld [vmem:[#allocation31_spill] sm:$0xff] }
 0x2df   : > { %v2413_v2 = vadd.f32 %v2412_v4, %v2382_v8  ;;  %v2638_v57 = vadd.f32 %v2606_v55, %v6688_v15  ;;  %v4854_v32 = vpop.f32.mrb[101].mxu1  ;;  %v4966_v27 = vpop.f32.mrb[101].mxu0 }
 0x2e0   : > { %v2639_v18 = vadd.f32 %v2607_v30, %v6694_v9  ;;  %4547 = vst [vmem:[%s6489_s9 + $0x1a0] sm:$0xff] %v4423_v10   ;;  %v4855_v44 = vadd.f32 %v4854_v32, %v4853_v23  ;;  %v4967_v0 = vadd.f32 %v4966_v27, %v4965_v34  ;;  %v4856_v43 = vpop.f32.mrb[102].mxu1  ;;  %v4968_v11 = vpop.f32.mrb[102].mxu0 }
 0x2e1   : > { %v2669_v42 = vadd.f32 %v2668_v56, %v2638_v57  ;;  %v2414_v53 = vadd.f32 %v2413_v2, %v2383_v22  ;;  %v4857_v49 = vpop.f32.mrb[103].mxu1  ;;  %v4969_v37 = vpop.f32.mrb[103].mxu0 }
 0x2e2   : > { %v2224_v24 = vadd.f32 %v4967_v0, %v4855_v44  ;;  %v4858_v5 = vadd.f32 %v4857_v49, %v4856_v43  ;;  %v4970_v12 = vadd.f32 %v4969_v37, %v4968_v11 }
 0x2e3   : > { %v2670_v41 = vadd.f32 %v2669_v42, %v2639_v18 }
 0x2e4   : > { %v2384_v48 = vadd.f32 %v6701_v35, %v2224_v24  ;;  %v2608_v15 = vmul.f32 %v2224_v24, %v2224_v24  ;;  %v2227_v29 = vadd.f32 %v4970_v12, %v4858_v5  ;;  %v7172_v5 = vld [vmem:[#allocation33_spill] sm:$0xff] }
 0x2e6   : > { %v2415_v4 = vadd.f32 %v2414_v53, %v2384_v48  ;;  %v2640_v9 = vadd.f32 %v2608_v15, %v6704_v13  ;;  %v2385_v47 = vadd.f32 %v7169_v60, %v2227_v29  ;;  %v2609_v14 = vmul.f32 %v2227_v29, %v2227_v29  ;;  %v4859_v33 = vpop.f32.mrb[104].mxu1  ;;  %v4971_v51 = vpop.f32.mrb[104].mxu0  ;;  %v7171_v53 = vld [vmem:[#allocation32_spill] sm:$0xff] }
 0x2e7   : > { %v4428_v1 = vpack.c.bf16 %v2227_v29, %v2224_v24  ;;  %v4860_v50 = vpop.f32.mrb[105].mxu1  ;;  %v4972_v56 = vpop.f32.mrb[105].mxu0 }
 0x2e8   : > { %v2671_v61 = vadd.f32 %v2670_v41, %v2640_v9  ;;  %v2416_v17 = vadd.f32 %v2415_v4, %v2385_v47  ;;  %v2641_v21 = vadd.f32 %v2609_v14, %v7170_v39  ;;  %v4861_v8 = vadd.f32 %v4860_v50, %v4859_v33  ;;  %v4862_v35 = vpop.f32.mrb[106].mxu1  ;;  %v4974_v55 = vpop.f32.mrb[106].mxu0 }
 0x2e9   : > { %4548 = vst [vmem:[%s6489_s9 + $0x1a8] sm:$0xff] %v4428_v1   ;;  %v4973_v22 = vadd.f32 %v4972_v56, %v4971_v51  ;;  %v4863_v30 = vpop.f32.mrb[107].mxu1  ;;  %v4975_v10 = vpop.f32.mrb[107].mxu0 }
 0x2ea   : > { %v2672_v13 = vadd.f32 %v2671_v61, %v2641_v21  ;;  %v4864_v23 = vadd.f32 %v4863_v30, %v4862_v35  ;;  %v4976_v34 = vadd.f32 %v4975_v10, %v4974_v55 }
 0x2eb   : > { %v2232_v2 = vadd.f32 %v4973_v22, %v4861_v8 }
 0x2ec   : > { %v2235_v57 = vadd.f32 %v4976_v34, %v4864_v23  ;;  %v7174_v23 = vld [vmem:[#allocation35_spill] sm:$0xff] }
 0x2ed   : > { %v2386_v32 = vadd.f32 %v6717_v25, %v2232_v2  ;;  %v2610_v27 = vmul.f32 %v2232_v2, %v2232_v2 }
 0x2ee   : > { %v2387_v18 = vadd.f32 %v6722_v36, %v2235_v57  ;;  %v2611_v44 = vmul.f32 %v2235_v57, %v2235_v57  ;;  %v4433_v0 = vpack.c.bf16 %v2235_v57, %v2232_v2  ;;  %v4865_v43 = vpop.f32.mrb[108].mxu1  ;;  %v4977_v11 = vpop.f32.mrb[108].mxu0 }
 0x2ef   : > { %v2417_v42 = vadd.f32 %v2416_v17, %v2386_v32  ;;  %v2642_v49 = vadd.f32 %v2610_v27, %v7171_v53  ;;  %v4866_v37 = vpop.f32.mrb[109].mxu1  ;;  %v4978_v24 = vpop.f32.mrb[109].mxu0  ;;  %v7173_v17 = vld [vmem:[#allocation34_spill] sm:$0xff] }
 0x2f0   : > { %v2643_v12 = vadd.f32 %v2611_v44, %v7172_v5  ;;  %4549 = vst [vmem:[%s6489_s9 + $0x1b0] sm:$0xff] %v4433_v0   ;;  %v4867_v41 = vadd.f32 %v4866_v37, %v4865_v43  ;;  %v4979_v48 = vadd.f32 %v4978_v24, %v4977_v11  ;;  %v4868_v15 = vpop.f32.mrb[110].mxu1  ;;  %v4980_v29 = vpop.f32.mrb[110].mxu0 }
 0x2f1   : > { %v2673_v25 = vadd.f32 %v2672_v13, %v2642_v49  ;;  %v2418_v4 = vadd.f32 %v2417_v42, %v2387_v18  ;;  %v4869_v9 = vpop.f32.mrb[111].mxu1  ;;  %v4981_v36 = vpop.f32.mrb[111].mxu0 }
 0x2f2   : > { %v2240_v60 = vadd.f32 %v4979_v48, %v4867_v41  ;;  %v4870_v47 = vadd.f32 %v4869_v9, %v4868_v15  ;;  %v4982_v14 = vadd.f32 %v4981_v36, %v4980_v29  ;;  %v7175_v48 = vld [vmem:[#allocation36_spill] sm:$0xff] }
 0x2f3   : > { %v2674_v33 = vadd.f32 %v2673_v25, %v2643_v12 }
 0x2f4   : > { %v2388_v51 = vadd.f32 %v6733_v38, %v2240_v60  ;;  %v2612_v1 = vmul.f32 %v2240_v60, %v2240_v60  ;;  %v2243_v50 = vadd.f32 %v4982_v14, %v4870_v47 }
 0x2f6   : > { %v2419_v56 = vadd.f32 %v2418_v4, %v2388_v51  ;;  %v2644_v61 = vadd.f32 %v2612_v1, %v6736_v58  ;;  %v2389_v39 = vadd.f32 %v7173_v17, %v2243_v50  ;;  %v2613_v21 = vmul.f32 %v2243_v50, %v2243_v50  ;;  %v4871_v8 = vpop.f32.mrb[112].mxu1  ;;  %v4983_v35 = vpop.f32.mrb[112].mxu0  ;;  %v7176_v4 = vld [vmem:[#allocation37_spill] sm:$0xff] }
 0x2f7   : > { %v4438_v55 = vpack.c.bf16 %v2243_v50, %v2240_v60  ;;  %v4872_v22 = vpop.f32.mrb[113].mxu1  ;;  %v4984_v30 = vpop.f32.mrb[113].mxu0 }
 0x2f8   : > { %v2675_v10 = vadd.f32 %v2674_v33, %v2644_v61  ;;  %v2420_v13 = vadd.f32 %v2419_v56, %v2389_v39  ;;  %v2645_v34 = vadd.f32 %v2613_v21, %v7174_v23  ;;  %v4873_v2 = vadd.f32 %v4872_v22, %v4871_v8  ;;  %v4874_v38 = vpop.f32.mrb[114].mxu1  ;;  %v4986_v57 = vpop.f32.mrb[114].mxu0 }
 0x2f9   : > { %4550 = vst [vmem:[%s6489_s9 + $0x1b8] sm:$0xff] %v4438_v55   ;;  %v4985_v32 = vadd.f32 %v4984_v30, %v4983_v35  ;;  %v4875_v27 = vpop.f32.mrb[115].mxu1  ;;  %v4987_v18 = vpop.f32.mrb[115].mxu0  ;;  %v7177_v55 = vld [vmem:[#allocation38_spill] sm:$0xff] }
 0x2fa   : > { %v2676_v58 = vadd.f32 %v2675_v10, %v2645_v34  ;;  %v4876_v44 = vadd.f32 %v4875_v27, %v4874_v38  ;;  %v4988_v0 = vadd.f32 %v4987_v18, %v4986_v57 }
 0x2fb   : > { %v2248_v43 = vadd.f32 %v4985_v32, %v4873_v2  ;;  %v7178_v32 = vld [vmem:[#allocation39_spill] sm:$0xff] }
 0x2fc   : > { %v2251_v11 = vadd.f32 %v4988_v0, %v4876_v44 }
 0x2fd   : > { %v2390_v42 = vadd.f32 %v6749_v3, %v2248_v43  ;;  %v2614_v53 = vmul.f32 %v2248_v43, %v2248_v43 }
 0x2fe   : > { %v2391_v49 = vadd.f32 %v6754_v26, %v2251_v11  ;;  %v2615_v37 = vmul.f32 %v2251_v11, %v2251_v11  ;;  %v4443_v24 = vpack.c.bf16 %v2251_v11, %v2248_v43  ;;  %v4877_v5 = vpop.f32.mrb[116].mxu1  ;;  %v4989_v12 = vpop.f32.mrb[116].mxu0 }
 0x2ff   : > { %v2421_v41 = vadd.f32 %v2420_v13, %v2390_v42  ;;  %v2646_v15 = vadd.f32 %v2614_v53, %v7175_v48  ;;  %v4878_v29 = vpop.f32.mrb[117].mxu1  ;;  %v4990_v25 = vpop.f32.mrb[117].mxu0 }
 0x300   : > { %v2647_v9 = vadd.f32 %v2615_v37, %v7176_v4  ;;  %4551 = vst [vmem:[%s6489_s9 + $0x1c0] sm:$0xff] %v4443_v24   ;;  %v4879_v36 = vadd.f32 %v4878_v29, %v4877_v5  ;;  %v4991_v60 = vadd.f32 %v4990_v25, %v4989_v12  ;;  %v4880_v47 = vpop.f32.mrb[118].mxu1  ;;  %v4992_v14 = vpop.f32.mrb[118].mxu0  ;;  %v7179_v25 = vld [vmem:[#allocation40_spill] sm:$0xff] }
 0x301   : > { %v2677_v3 = vadd.f32 %v2676_v58, %v2646_v15  ;;  %v2422_v33 = vadd.f32 %v2421_v41, %v2391_v49  ;;  %v4881_v51 = vpop.f32.mrb[119].mxu1  ;;  %v4993_v26 = vpop.f32.mrb[119].mxu0 }
 0x302   : > { %v2256_v1 = vadd.f32 %v4991_v60, %v4879_v36  ;;  %v4882_v50 = vadd.f32 %v4881_v51, %v4880_v47  ;;  %v4994_v56 = vadd.f32 %v4993_v26, %v4992_v14  ;;  %v7180_v60 = vld [vmem:[#allocation41_spill] sm:$0xff] }
 0x303   : > { %v2678_v61 = vadd.f32 %v2677_v3, %v2647_v9 }
 0x304   : > { %v2392_v17 = vadd.f32 %v6765_v40, %v2256_v1  ;;  %v2616_v39 = vmul.f32 %v2256_v1, %v2256_v1  ;;  %v2259_v21 = vadd.f32 %v4994_v56, %v4882_v50 }
 0x306   : > { %v2423_v8 = vadd.f32 %v2422_v33, %v2392_v17  ;;  %v2648_v35 = vadd.f32 %v2616_v39, %v6768_v45  ;;  %v2393_v22 = vadd.f32 %v7177_v55, %v2259_v21  ;;  %v2617_v30 = vmul.f32 %v2259_v21, %v2259_v21  ;;  %v4883_v10 = vpop.f32.mrb[120].mxu1  ;;  %v4995_v13 = vpop.f32.mrb[120].mxu0 }
 0x307   : > { %v4448_v23 = vpack.c.bf16 %v2259_v21, %v2256_v1  ;;  %v4884_v34 = vpop.f32.mrb[121].mxu1  ;;  %v4996_v2 = vpop.f32.mrb[121].mxu0 }
 0x308   : > { %v2679_v38 = vadd.f32 %v2678_v61, %v2648_v35  ;;  %v2424_v57 = vadd.f32 %v2423_v8, %v2393_v22  ;;  %v2649_v27 = vadd.f32 %v2617_v30, %v7178_v32  ;;  %v4885_v18 = vadd.f32 %v4884_v34, %v4883_v10  ;;  %v4886_v40 = vpop.f32.mrb[122].mxu1  ;;  %v4998_v58 = vpop.f32.mrb[122].mxu0  ;;  %v7181_v22 = vld [vmem:[#allocation42_spill] sm:$0xff] }
 0x309   : > { %4552 = vst [vmem:[%s6489_s9 + $0x1c8] sm:$0xff] %v4448_v23   ;;  %v4997_v44 = vadd.f32 %v4996_v2, %v4995_v13  ;;  %v4887_v0 = vpop.f32.mrb[123].mxu1  ;;  %v4999_v43 = vpop.f32.mrb[123].mxu0 }
 0x30a   : > { %v2680_v45 = vadd.f32 %v2679_v38, %v2649_v27  ;;  %v4888_v11 = vadd.f32 %v4887_v0, %v4886_v40  ;;  %v5000_v42 = vadd.f32 %v4999_v43, %v4998_v58  ;;  %v7182_v27 = vld [vmem:[#allocation43_spill] sm:$0xff] }
 0x30b   : > { %v2264_v53 = vadd.f32 %v4997_v44, %v4885_v18 }
 0x30c   : > { %v2267_v49 = vadd.f32 %v5000_v42, %v4888_v11 }
 0x30d   : > { %v2394_v37 = vadd.f32 %v6781_v62, %v2264_v53  ;;  %v2618_v24 = vmul.f32 %v2264_v53, %v2264_v53 }
 0x30e   : > { %v2395_v5 = vadd.f32 %v6786_v46, %v2267_v49  ;;  %v2619_v12 = vmul.f32 %v2267_v49, %v2267_v49  ;;  %v4453_v41 = vpack.c.bf16 %v2267_v49, %v2264_v53  ;;  %v4889_v48 = vpop.f32.mrb[124].mxu1  ;;  %v5001_v15 = vpop.f32.mrb[124].mxu0 }
 0x30f   : > { %v2425_v29 = vadd.f32 %v2424_v57, %v2394_v37  ;;  %v2650_v4 = vadd.f32 %v2618_v24, %v7179_v25  ;;  %v4890_v9 = vpop.f32.mrb[125].mxu1  ;;  %v5002_v36 = vpop.f32.mrb[125].mxu0 }
 0x310   : > { %v2651_v47 = vadd.f32 %v2619_v12, %v7180_v60  ;;  %4553 = vst [vmem:[%s6489_s9 + $0x1d0] sm:$0xff] %v4453_v41   ;;  %v4891_v14 = vadd.f32 %v4890_v9, %v4889_v48  ;;  %v5003_v3 = vadd.f32 %v5002_v36, %v5001_v15  ;;  %v4892_v33 = vpop.f32.mrb[126].mxu1  ;;  %v5004_v51 = vpop.f32.mrb[126].mxu0  ;;  %v7184_v36 = vld [vmem:[#allocation45_spill] sm:$0xff] }
 0x311   : > { %v2681_v62 = vadd.f32 %v2680_v45, %v2650_v4  ;;  %v2426_v26 = vadd.f32 %v2425_v29, %v2395_v5  ;;  %v4893_v1 = vpop.f32.mrb[127].mxu1  ;;  %v5005_v46 = vpop.f32.mrb[127].mxu0  ;;  %v7183_v29 = vld [vmem:[#allocation44_spill] sm:$0xff] }
 0x312   : > { %v2272_v50 = vadd.f32 %v5003_v3, %v4891_v14  ;;  %v4894_v56 = vadd.f32 %v4893_v1, %v4892_v33  ;;  %v5006_v61 = vadd.f32 %v5005_v46, %v5004_v51 }
 0x313   : > { %v2682_v17 = vadd.f32 %v2681_v62, %v2651_v47 }
 0x314   : > { %v2396_v39 = vadd.f32 %v6797_v52, %v2272_v50  ;;  %v2620_v21 = vmul.f32 %v2272_v50, %v2272_v50  ;;  %v2275_v8 = vadd.f32 %v5006_v61, %v4894_v56 }
 0x316   : > { %v2427_v35 = vadd.f32 %v2426_v26, %v2396_v39  ;;  %v2652_v55 = vadd.f32 %v2620_v21, %v6800_v59  ;;  %v2397_v30 = vadd.f32 %v7181_v22, %v2275_v8  ;;  %v2621_v10 = vmul.f32 %v2275_v8, %v2275_v8  ;;  %v4895_v13 = vpop.f32.mrb[128].mxu1  ;;  %v5007_v23 = vpop.f32.mrb[128].mxu0 }
 0x317   : > { %v4458_v34 = vpack.c.bf16 %v2275_v8, %v2272_v50  ;;  %v4896_v2 = vpop.f32.mrb[129].mxu1  ;;  %v5008_v38 = vpop.f32.mrb[129].mxu0  ;;  %v7185_v8 = vld [vmem:[#allocation46_spill] sm:$0xff] }
 0x318   : > { %v2683_v57 = vadd.f32 %v2682_v17, %v2652_v55  ;;  %v2428_v32 = vadd.f32 %v2427_v35, %v2397_v30  ;;  %v2653_v18 = vadd.f32 %v2621_v10, %v7182_v27  ;;  %v4897_v40 = vadd.f32 %v4896_v2, %v4895_v13  ;;  %v4898_v52 = vpop.f32.mrb[130].mxu1  ;;  %v5010_v58 = vpop.f32.mrb[130].mxu0 }
 0x319   : > { %4554 = vst [vmem:[%s6489_s9 + $0x1d8] sm:$0xff] %v4458_v34   ;;  %v5009_v44 = vadd.f32 %v5008_v38, %v5007_v23  ;;  %v4899_v0 = vpop.f32.mrb[131].mxu1  ;;  %v5011_v43 = vpop.f32.mrb[131].mxu0  ;;  %v7186_v38 = vld [vmem:[#allocation47_spill] sm:$0xff] }
 0x31a   : > { %v2684_v59 = vadd.f32 %v2683_v57, %v2653_v18  ;;  %v4900_v45 = vadd.f32 %v4899_v0, %v4898_v52  ;;  %v5012_v11 = vadd.f32 %v5011_v43, %v5010_v58 }
 0x31b   : > { %v2280_v42 = vadd.f32 %v5009_v44, %v4897_v40 }
 0x31c   : > { %v2283_v53 = vadd.f32 %v5012_v11, %v4900_v45 }
 0x31d   : > { %v2398_v49 = vadd.f32 %v6813_v20, %v2280_v42  ;;  %v2622_v37 = vmul.f32 %v2280_v42, %v2280_v42 }
 0x31e   : > { %v2399_v24 = vadd.f32 %v6818_v63, %v2283_v53  ;;  %v2623_v5 = vmul.f32 %v2283_v53, %v2283_v53  ;;  %v4463_v12 = vpack.c.bf16 %v2283_v53, %v2280_v42  ;;  %v4901_v41 = vpop.f32.mrb[132].mxu1  ;;  %v5013_v48 = vpop.f32.mrb[132].mxu0 }
 0x31f   : > { %v2429_v15 = vadd.f32 %v2428_v32, %v2398_v49  ;;  %v2654_v25 = vadd.f32 %v2622_v37, %v7183_v29  ;;  %v4902_v4 = vpop.f32.mrb[133].mxu1  ;;  %v5014_v9 = vpop.f32.mrb[133].mxu0 }
 0x320   : > { %v2655_v60 = vadd.f32 %v2623_v5, %v7184_v36  ;;  %4555 = vst [vmem:[%s6489_s9 + $0x1e0] sm:$0xff] %v4463_v12   ;;  %v4903_v47 = vadd.f32 %v4902_v4, %v4901_v41  ;;  %v5015_v14 = vadd.f32 %v5014_v9, %v5013_v48  ;;  %v4904_v3 = vpop.f32.mrb[134].mxu1  ;;  %v5016_v33 = vpop.f32.mrb[134].mxu0  ;;  %v7187_v5 = vld [vmem:[#allocation48_spill] sm:$0xff] }
 0x321   : > { %v2685_v20 = vadd.f32 %v2684_v59, %v2654_v25  ;;  %v2430_v51 = vadd.f32 %v2429_v15, %v2399_v24  ;;  %v4905_v62 = vpop.f32.mrb[135].mxu1  ;;  %v5017_v63 = vpop.f32.mrb[135].mxu0  ;;  %v7189_v15 = vld [vmem:[#allocation49_spill] sm:$0xff] }
 0x322   : > { %v2288_v26 = vadd.f32 %v5015_v14, %v4903_v47  ;;  %v4906_v1 = vadd.f32 %v4905_v62, %v4904_v3  ;;  %v5018_v46 = vadd.f32 %v5017_v63, %v5016_v33 }
 0x323   : > { %v2686_v50 = vadd.f32 %v2685_v20, %v2655_v60 }
 0x324   : > { %v2400_v56 = vadd.f32 %v6829_v31, %v2288_v26  ;;  %v2624_v61 = vmul.f32 %v2288_v26, %v2288_v26  ;;  %v2291_v17 = vadd.f32 %v5018_v46, %v4906_v1 }
 0x326   : > { %v2431_v39 = vadd.f32 %v2430_v51, %v2400_v56  ;;  %v2656_v21 = vadd.f32 %v2624_v61, %v6832_v54  ;;  %v2401_v35 = vadd.f32 %v7185_v8, %v2291_v17  ;;  %v2625_v55 = vmul.f32 %v2291_v17, %v2291_v17  ;;  %v4907_v22 = vpop.f32.mrb[136].mxu1  ;;  %v5019_v30 = vpop.f32.mrb[136].mxu0 }
 0x327   : > { %v4468_v10 = vpack.c.bf16 %v2291_v17, %v2288_v26  ;;  %v4908_v13 = vpop.f32.mrb[137].mxu1  ;;  %v5020_v23 = vpop.f32.mrb[137].mxu0  ;;  %v7191_v17 = vld [vmem:[#allocation50_spill] sm:$0xff] }
 0x328   : > { %v2687_v34 = vadd.f32 %v2686_v50, %v2656_v21  ;;  %v2432_v2 = vadd.f32 %v2431_v39, %v2401_v35  ;;  %v2657_v57 = vadd.f32 %v2625_v55, %v7186_v38  ;;  %v4909_v32 = vadd.f32 %v4908_v13, %v4907_v22  ;;  %v4910_v31 = vpop.f32.mrb[138].mxu1  ;;  %v5022_v27 = vpop.f32.mrb[138].mxu0 }
 0x329   : > { %4556 = vst [vmem:[%s6489_s9 + $0x1e8] sm:$0xff] %v4468_v10   ;;  %v5021_v18 = vadd.f32 %v5020_v23, %v5019_v30  ;;  %v4911_v40 = vpop.f32.mrb[139].mxu1  ;;  %v5023_v52 = vpop.f32.mrb[139].mxu0 }
 0x32a   : > { %v2688_v54 = vadd.f32 %v2687_v34, %v2657_v57  ;;  %v4912_v58 = vadd.f32 %v4911_v40, %v4910_v31  ;;  %v5024_v44 = vadd.f32 %v5023_v52, %v5022_v27 }
 0x32b   : > { %v2296_v0 = vadd.f32 %v5021_v18, %v4909_v32 }
 0x32c   : > { %v2299_v43 = vadd.f32 %v5024_v44, %v4912_v58 }
 0x32d   : > { %v2402_v59 = vadd.f32 %v6845_v28, %v2296_v0  ;;  %v2626_v45 = vmul.f32 %v2296_v0, %v2296_v0 }
 0x32e   : > { %v2403_v11 = vadd.f32 %v6850_v6, %v2299_v43  ;;  %v2627_v42 = vmul.f32 %v2299_v43, %v2299_v43  ;;  %v4473_v53 = vpack.c.bf16 %v2299_v43, %v2296_v0  ;;  %v4913_v49 = vpop.f32.mrb[140].mxu1  ;;  %v5025_v37 = vpop.f32.mrb[140].mxu0 }
 0x32f   : > { %v2433_v24 = vadd.f32 %v2432_v2, %v2402_v59  ;;  %v2658_v12 = vadd.f32 %v2626_v45, %v7187_v5  ;;  %v4914_v41 = vpop.f32.mrb[141].mxu1  ;;  %v5026_v48 = vpop.f32.mrb[141].mxu0 }
 0x330   : > { %v2659_v29 = vadd.f32 %v2627_v42, %v7189_v15  ;;  %4557 = vst [vmem:[%s6489_s9 + $0x1f0] sm:$0xff] %v4473_v53   ;;  %v4915_v25 = vadd.f32 %v4914_v41, %v4913_v49  ;;  %v5027_v4 = vadd.f32 %v5026_v48, %v5025_v37  ;;  %v4916_v28 = vpop.f32.mrb[142].mxu1  ;;  %v5028_v6 = vpop.f32.mrb[142].mxu0 }
 0x331   : > { %v2689_v9 = vadd.f32 %v2688_v54, %v2658_v12  ;;  %v2434_v36 = vadd.f32 %v2433_v24, %v2403_v11  ;;  %v4917_v60 = vpop.f32.mrb[143].mxu1  ;;  %v5029_v47 = vpop.f32.mrb[143].mxu0 }
 0x332   : > { %v2304_v14 = vadd.f32 %v5027_v4, %v4915_v25  ;;  %v4918_v3 = vadd.f32 %v4917_v60, %v4916_v28  ;;  %v5030_v33 = vadd.f32 %v5029_v47, %v5028_v6 }
 0x333   : > { %v2690_v20 = vadd.f32 %v2689_v9, %v2659_v29 }
 0x334   : > { %v2404_v51 = vadd.f32 %v6861_v19, %v2304_v14  ;;  %v2628_v62 = vmul.f32 %v2304_v14, %v2304_v14  ;;  %v2307_v63 = vadd.f32 %v5030_v33, %v4918_v3 }
 0x336   : > { %v2435_v26 = vadd.f32 %v2434_v36, %v2404_v51  ;;  %v2660_v1 = vadd.f32 %v2628_v62, %v6864_v7  ;;  %v2405_v46 = vadd.f32 %v6866_v16, %v2307_v63  ;;  %v2629_v50 = vmul.f32 %v2307_v63, %v2307_v63 }
 0x337   : > { %v4478_v19 = vpack.c.bf16 %v2307_v63, %v2304_v14 }
 0x338   : > { %v2691_v56 = vadd.f32 %v2690_v20, %v2660_v1  ;;  %v2436_v61 = vadd.f32 %v2435_v26, %v2405_v46  ;;  %v2661_v39 = vadd.f32 %v2629_v50, %v7191_v17 }
 0x339   : > { %4558 = vst [vmem:[%s6489_s9 + $0x1f8] sm:$0xff] %v4478_v19  }
 0x33a   : > { %v2692_v7 = vadd.f32 %v2691_v56, %v2661_v39  ;;  %2437 = vst [vmem:[%s550_s5] sm:$0xff] %v2436_v61 }
 0x33b   : > { %5552 = shalt.err (!%p5549_p4)
}
 0x33c   : > { %s5553_s9 = scalar_lea.hbm %s6955_s7, 8192  ;;  %s5557_s12 = scalar_lea.hbm %s7190_s29, 16384 }
 0x33d   : > { %p5554_p8 = scmp.ne.s32.totalorder %s6955_s7, %s5553_s9  ;;  %p5558_p6 = scmp.lt.u32.totalorder %s6955_s7, %s7190_s29 }
 0x33e   : > { %p5559_p11 = scmp.lt.u32.totalorder %s5557_s12, %s5553_s9  ;;  %p5561_p12 = scmp.lt.u32.totalorder %s5553_s9, %s6955_s7 }
 0x33f   : > { %p5555_p9 = pnand %p5554_p8, %p7194_p0 }
 0x340   : > { %p5560_p3 = por %p5559_p11, %p5558_p6 }
 0x341   : > { %p5556_p1 = pneg %p5555_p9 }
 0x342   : > { %p5562_p10 = por %p5561_p12, %p5560_p3 }
 0x344   : > { %p5563_p13 = pnand %p5562_p10, %p5556_p1 }
 0x346   : > { %5566 = shalt.err (!%p5563_p13)
}
 0x347   : > { %s5714_s1 = smov 64   ;;  %s5715_s20 = smov 4  }
 0x348   : > { %5123 = dma.vmem_to_hbm [thread:$0]  (%p7194_p0), %s6959_s25, 8192, %s6955_s7, %s3338_s23, %s5714_s1, %s5714_s1, %s5715_s20  }
 0x349   : > { %s7195_s28 = sand.u32 1, %s5804_s19   ;;  %s5567_s9 = scalar_lea.vmem %s6970_s10, 128 }
 0x34a   : > { %s7006_s26 = scalar_lea.sflag [#allocation18], %s7195_s28  ;;  %p5568_p2 = scmp.ne.s32.totalorder %s6970_s10, %s5567_s9 }
 0x34b   : > { %s5716_s5 = smov [#allocation17]  }
 0x34c   : > { %p5569_p7 = pnand %p5568_p2, %p7194_p0  ;;  %s5571_s12 = sshll.u32 %s5716_s5, 4  ;;  %s5572_s12 = int_to_ptr.vmem [resolvable:$false] %s5571_s12 }
 0x34d   : > { %s5573_s24 = scalar_lea.vmem %s5572_s12, 256  ;;  %p5574_p4 = scmp.lt.s32.totalorder %s6970_s10, %s5572_s12 }
 0x34e   : > { %p5570_p5 = pneg %p5569_p7  ;;  %p5575_p8 = scmp.lt.s32.totalorder %s5573_s24, %s5567_s9 }
 0x350   : > { %p5576_p9 = por %p5575_p8, %p5574_p4 }
 0x352   : > { %p5577_p1 = pnand %p5576_p9, %p5570_p5 }
 0x354   : > { %5580 = shalt.err (!%p5577_p1)
}
 0x355   : > { %s5581_s19 = scalar_lea.hbm %s6968_s2, 128  ;;  %s5585_s7 = scalar_lea.hbm %s7192_s4, 256 }
 0x356   : > { %p5582_p6 = scmp.ne.s32.totalorder %s6968_s2, %s5581_s19  ;;  %p5586_p12 = scmp.lt.u32.totalorder %s6968_s2, %s7192_s4 }
 0x357   : > { %p5587_p10 = scmp.lt.u32.totalorder %s5585_s7, %s5581_s19  ;;  %p5589_p2 = scmp.lt.u32.totalorder %s5581_s19, %s6968_s2 }
 0x358   : > { %p5583_p11 = pnand %p5582_p6, %p7194_p0 }
 0x359   : > { %p5588_p13 = por %p5587_p10, %p5586_p12 }
 0x35a   : > { %p5584_p3 = pneg %p5583_p11 }
 0x35b   : > { %p5590_p7 = por %p5589_p2, %p5588_p13 }
 0x35d   : > { %p5591_p5 = pnand %p5590_p7, %p5584_p3 }
 0x35f   : > { %5594 = shalt.err (!%p5591_p5)
}
 0x360   : > { %5124 = dma.vmem_to_hbm [thread:$0]  (%p7194_p0), %s6970_s10, 128, %s6968_s2, %s7006_s26  }
 0x361   : > { %s7196_s1 = scalar_lea.vmem [#allocation19], %s6098_s27  ;;  %s5595_s20 = scalar_lea.vmem %s6978_s30, 128 }
 0x362   : > { %2693 = vst [vmem:[%s7196_s1] sm:$0xff] %v2692_v7  ;;  %p5596_p4 = scmp.ne.s32.totalorder %s6978_s30, %s5595_s20  ;;  %s5717_s28 = smov [#allocation19]  }
 0x363   : > { %s5599_s9 = sshll.u32 %s5717_s28, 4  ;;  %s5600_s9 = int_to_ptr.vmem [resolvable:$false] %s5599_s9 }
 0x364   : > { %p5597_p8 = pnand %p5596_p4, %p7194_p0  ;;  %s5601_s5 = scalar_lea.vmem %s5600_s9, 256 }
 0x365   : > { %p5602_p1 = scmp.lt.s32.totalorder %s6978_s30, %s5600_s9  ;;  %p5603_p6 = scmp.lt.s32.totalorder %s5601_s5, %s5595_s20 }
 0x366   : > { %p5598_p9 = pneg %p5597_p8 }
 0x367   : > { %p5604_p11 = por %p5603_p6, %p5602_p1 }
 0x369   : > { %p5605_p3 = pnand %p5604_p11, %p5598_p9 }
 0x36b   : > { %5608 = shalt.err (!%p5605_p3)
}
 0x36c   : > { %s5609_s27 = scalar_lea.hbm %s6976_s0, 128  ;;  %s5613_s12 = scalar_lea.hbm %s7193_s11, 256 }
 0x36d   : > { %p5610_p12 = scmp.ne.s32.totalorder %s6976_s0, %s5609_s27  ;;  %p5614_p2 = scmp.lt.u32.totalorder %s6976_s0, %s7193_s11 }
 0x36e   : > { %p5615_p7 = scmp.lt.u32.totalorder %s5613_s12, %s5609_s27  ;;  %p5617_p4 = scmp.lt.u32.totalorder %s5609_s27, %s6976_s0 }
 0x36f   : > { %p5611_p10 = pnand %p5610_p12, %p7194_p0 }
 0x370   : > { %p5616_p5 = por %p5615_p7, %p5614_p2 }
 0x371   : > { %p5612_p13 = pneg %p5611_p10 }
 0x372   : > { %p5618_p8 = por %p5617_p4, %p5616_p5 }
 0x374   : > { %p5619_p9 = pnand %p5618_p8, %p5612_p13 }
 0x376   : > { %5622 = shalt.err (!%p5619_p9)
}
 0x377   : > { %5125 = dma.vmem_to_hbm [thread:$0]  (%p7194_p0), %s6978_s30, 128, %s6976_s0, %s7006_s26  }
 0x378 PF: > { %s3407_s6 = sand.u32 1, %s5681_s13   ;;  %p7197_p1 = scmp.ne.s32.totalorder %s7129_s16, 0 }
 0x379   : > { %p7198_p6 = scmp.ge.s32.totalorder %s5701_s18, 2  ;;  %s3408_s25 = scalar_lea.sflag [#allocation4], %s3407_s6 }
 0x37b   : > { %p5156_p11 = pnand %p7198_p6, %p7197_p1 }
 0x37d   : > { %5672 = dma.done.wait (!%p5156_p11), %s3408_s25, 8192  }
 0x37e   : > { %5674 = vsyncadd (!%p5156_p11), %s3408_s25, 4294959104  ;;  %s7199_s7 = sadd.s32 4294967294, %s5701_s18  }
 0x37f   : > { %s3416_s23 = sand.u32 1, %s7199_s7  }
 0x380   : > { %s3417_s22 = scalar_lea.sflag [#allocation18], %s3416_s23 }
 0x381   : > { %5676 = dma.done.wait (!%p5156_p11), %s3417_s22, 256  }
 0x382   : > { %5678 = vsyncadd (!%p5156_p11), %s3417_s22, 4294967040  ;;  %s36_s18 = sadd.s32 1, %s5701_s18   ;;  %s7200_s13 = smov %s5685_s14 }
 0x383   : > { %p33_p0 = scmp.ge.s32.totalorder %s36_s18, 4   ;;  %s7201_s14 = smov %s5689_s15 }
 0x384   : > { %s7202_s15 = smov %s5989_s8  ;;  %s7203_s16 = smov %s5697_s17 }
 0x385   : > { %s7204_s17 = smov %s7206_s21  ;;  %35 = sbr.rel (!%p33_p0) target bundleno = 25 (0x19), region = 169 }
 0x38c   :  { %3431 = vsyncpa [#allocation3], 1 }
 0x38d   :  { %3433 = vsyncpa [#allocation3 + $0x1], 1 }
 0x38e   :  { %3434 = vsyncpa [#allocation6], 1 }
 0x38f   :  { %3436 = vsyncpa [#allocation6 + $0x1], 1 }
 0x390   :  { %3437 = vsyncpa [#allocation9], 1 }
 0x391   :  { %3438 = vsyncpa [#allocation12], 1 }
 0x392   :  { %3439 = vsyncpa [#allocation15], 1 }
 0x393   :  { %3440 = vsyncpa [#allocation4], 1 }
 0x394   :  { %3442 = vsyncpa [#allocation4 + $0x1], 1 }
 0x395   :  { %3443 = vsyncpa [#allocation18], 1 }
 0x396   :  { %3445 = vsyncpa [#allocation18 + $0x1], 1 }

</bundles_post_ra>
